<compile_context>
chip_gen: v7x
topology: tpu7x:2x2x1
jax: 0.10.0
libtpu: 0.0.40
codegen_flags: <defaults>
</compile_context>

<pallas_src>
import functools
import math

import jax
import jax.numpy as jnp
from jax import lax
from jax.experimental import pallas as pl
from jax.experimental.pallas import tpu as pltpu


# ----------------------------------------------------------------- in-kernel helpers
def _sigmoid(x):
    # exact identity; tanh runs on the EUP and is stable for large |x|
    return 0.5 * (jnp.tanh(0.5 * x) + 1.0)


def _elu(x):
    return jnp.where(x > 0.0, x, jnp.exp(jnp.minimum(x, 0.0)) - 1.0)


def _row_layernorm(x, g, b, eps):
    mu = jnp.mean(x, axis=-1, keepdims=True)
    xc = x - mu
    var = jnp.mean(xc * xc, axis=-1, keepdims=True)
    return xc * lax.rsqrt(var + eps) * g + b


def _block_diag_attention(x2, mask_bias, w_in, b_in, w_out, b_out, *, nhead, hdim, emb):
    """Multi-head self-attention on rows ordered (sequence, time): row = n*seq + t.

    One (E,3E) QKV matmul, dense (rows, rows) score matmul per head masked to the
    block-diagonal same-sequence pattern, lane-concatenated heads, one out-projection.
    """
    scale = 1.0 / math.sqrt(hdim)
    qkv = jnp.dot(x2, w_in, preferred_element_type=jnp.float32) + b_in
    heads = []
    for h in range(nhead):
        q = qkv[:, h * hdim:(h + 1) * hdim] * scale
        k = qkv[:, emb + h * hdim:emb + (h + 1) * hdim]
        v = qkv[:, 2 * emb + h * hdim:2 * emb + (h + 1) * hdim]
        s = lax.dot_general(q, k, (((1,), (1,)), ((), ())),
                            preferred_element_type=jnp.float32) + mask_bias
        m = jnp.max(s, axis=-1, keepdims=True)
        p = jnp.exp(s - m)
        l = jnp.sum(p, axis=-1, keepdims=True)
        heads.append(jnp.dot(p, v, preferred_element_type=jnp.float32) / l)
    cat = jnp.concatenate(heads, axis=-1)
    return jnp.dot(cat, w_out, preferred_element_type=jnp.float32) + b_out


# ----------------------------------------------------------------------------- kernels
def _glu_matmul_kernel(x_ref, w_ref, b_ref, o_ref, *, c_out):
    """im2col'd temporal conv: one matmul, GLU split on output lanes."""
    y = jnp.dot(x_ref[...], w_ref[...], preferred_element_type=jnp.float32) + b_ref[...]
    o_ref[...] = y[:, :c_out] * _sigmoid(y[:, c_out:])


def _cheb_block_kernel(x_ref, gso_ref, aw_ref, ab_ref, cw_ref, cb_ref, o_ref,
                       *, ks, nslices, v):
    """align -> Chebyshev graph conv (slice-batched GSO propagation) -> +residual -> ReLU."""
    xin = jnp.dot(x_ref[...], aw_ref[...], preferred_element_type=jnp.float32) + ab_ref[...]
    c1 = xin.shape[-1]
    acc = jnp.dot(xin, cw_ref[0], preferred_element_type=jnp.float32)
    if ks >= 2:
        gso_b = jnp.broadcast_to(gso_ref[...][None], (nslices, v, v))
        xk_m2 = xin.reshape(nslices, v, c1)
        xk_m1 = jnp.einsum('svw,swc->svc', gso_b, xk_m2,
                           preferred_element_type=jnp.float32)
        acc = acc + jnp.dot(xk_m1.reshape(nslices * v, c1), cw_ref[1],
                            preferred_element_type=jnp.float32)
        for k in range(2, ks):
            xk = 2.0 * jnp.einsum('svw,swc->svc', gso_b, xk_m1,
                                  preferred_element_type=jnp.float32) - xk_m2
            acc = acc + jnp.dot(xk.reshape(nslices * v, c1), cw_ref[k],
                                preferred_element_type=jnp.float32)
            xk_m2, xk_m1 = xk_m1, xk
    o_ref[...] = jnp.maximum(acc + cb_ref[...] + xin, 0.0)


def _layernorm_kernel(x_ref, g_ref, b_ref, o_ref, *, eps):
    o_ref[...] = _row_layernorm(x_ref[...], g_ref[...], b_ref[...], eps)


def _fused_transformer_kernel(x_ref, pb_ref, mask_ref, pw_ref, pg_ref, pbeta_ref,
                              inw_ref, inb_ref, outw_ref, outb_ref,
                              ln1g_ref, ln1b_ref, f1w_ref, f1b_ref,
                              f2w_ref, f2b_ref, ln2g_ref, ln2b_ref,
                              o_ref, *, nhead, hdim, emb, eps):
    """pre_transformer (layer 0) + one encoder layer per grid step + residual (last step).

    Activation stays resident in the output block across the layer grid axis.
    """
    li = pl.program_id(1)
    last = pl.num_programs(1) - 1

    @pl.when(li == 0)
    def _():
        y = jnp.dot(x_ref[...], pw_ref[...],
                    preferred_element_type=jnp.float32) + pb_ref[...]
        o_ref[...] = _elu(_row_layernorm(y, pg_ref[...], pbeta_ref[...], eps))

    x2 = o_ref[...]
    attn = _block_diag_attention(x2, mask_ref[...], inw_ref[0], inb_ref[0],
                                 outw_ref[0], outb_ref[0],
                                 nhead=nhead, hdim=hdim, emb=emb)
    y1 = _row_layernorm(x2 + attn, ln1g_ref[0], ln1b_ref[0], eps)
    # TODO(synk): PyTorch 'gelu' is the exact erf GELU; tanh approximation used for
    # guaranteed Mosaic lowering (EUP path).
    h = jax.nn.gelu(jnp.dot(y1, f1w_ref[0], preferred_element_type=jnp.float32)
                    + f1b_ref[0], approximate=True)
    y2 = jnp.dot(h, f2w_ref[0], preferred_element_type=jnp.float32) + f2b_ref[0]
    out = _row_layernorm(y1 + y2, ln2g_ref[0], ln2b_ref[0], eps)

    @pl.when(li != last)
    def _():
        o_ref[...] = out

    @pl.when(li == last)
    def _():
        o_ref[...] = x_ref[...] + out   # residual; LayerNorm([V, C]) applied in next stage


def _output_block_kernel(x_ref, w_ref, b_ref, g_ref, beta_ref,
                         f1w_ref, f1b_ref, f2w_ref, f2b_ref, o_ref,
                         *, c_out, ngroups, v, eps):
    """im2col GLU conv -> LayerNorm([V, c_out]) per (b, t) group -> fc1 -> relu -> fc2."""
    y = jnp.dot(x_ref[...], w_ref[...], preferred_element_type=jnp.float32) + b_ref[...]
    z = y[:, :c_out] * _sigmoid(y[:, c_out:])                       # (ngroups*V, c_out)
    z3 = z.reshape(ngroups, v, c_out)
    denom = 1.0 / float(v * c_out)
    mu = jnp.sum(jnp.sum(z3, axis=-1, keepdims=True), axis=-2, keepdims=True) * denom
    zc = z3 - mu
    var = jnp.sum(jnp.sum(zc * zc, axis=-1, keepdims=True), axis=-2, keepdims=True) * denom
    zn = (zc * lax.rsqrt(var + eps) * g_ref[...][None] + beta_ref[...][None])
    zn = zn.reshape(ngroups * v, c_out)
    h = jnp.maximum(jnp.dot(zn, f1w_ref[...], preferred_element_type=jnp.float32)
                    + f1b_ref[...], 0.0)
    o_ref[...] = jnp.dot(h, f2w_ref[...], preferred_element_type=jnp.float32) + f2b_ref[...]


def _mha_tail_kernel(x_ref, cf_ref, mask_ref,
                     inw_ref, inb_ref, outw_ref, outb_ref,
                     ca1w_ref, ca1b_ref, cag_ref, cab_ref, ca2w_ref, ca2b_ref,
                     e1w_ref, e1b_ref, e1g_ref, e1bb_ref,
                     e2w_ref, e2b_ref, e2g_ref, e2bb_ref,
                     e3w_ref, e3b_ref, o_ref, *, nhead, hdim, emb, eps):
    """global MHA over time + connection-weighted gate combine + expression head."""
    x = x_ref[...]
    attn = _block_diag_attention(x, mask_ref[...], inw_ref[...], inb_ref[...],
                                 outw_ref[...], outb_ref[...],
                                 nhead=nhead, hdim=hdim, emb=emb)
    g = jnp.dot(x, ca1w_ref[...], preferred_element_type=jnp.float32) + ca1b_ref[...]
    g = _elu(_row_layernorm(g, cag_ref[...], cab_ref[...], eps))
    gate = _sigmoid(jnp.dot(g, ca2w_ref[...], preferred_element_type=jnp.float32)
                    + ca2b_ref[...])
    y = x * (gate * cf_ref[...]) + 0.4 * attn
    h1 = _elu(_row_layernorm(
        jnp.dot(y, e1w_ref[...], preferred_element_type=jnp.float32) + e1b_ref[...],
        e1g_ref[...], e1bb_ref[...], eps))
    h2 = _elu(_row_layernorm(
        jnp.dot(h1, e2w_ref[...], preferred_element_type=jnp.float32) + e2b_ref[...],
        e2g_ref[...], e2bb_ref[...], eps))
    o_ref[...] = jnp.dot(h2, e3w_ref[...], preferred_element_type=jnp.float32) + e3b_ref[...]


# --------------------------------------------------------------------------- wrappers
def _align_matrix(c_in, c_out, w=None, b=None):
    """Align module: conv if c_in > c_out, zero-pad channels otherwise."""
    if c_in > c_out:
        return w, b
    return jnp.eye(c_in, c_out, dtype=jnp.float32), jnp.zeros((c_out,), jnp.float32)


def _im2col_time(x, kt):
    """x: (T, R, C) time-major -> ((T-kt+1)*R, kt*C)."""
    t, r, c = x.shape
    t_out = t - kt + 1
    cols = jnp.concatenate([x[dt:dt + t_out] for dt in range(kt)], axis=-1)
    return cols.reshape(t_out * r, kt * c), t_out


def temporal_conv_glu(x, kt, c_out, w, b, align_w=None, align_b=None):
    """x: (T, R, c_in), w: (kt*c_in, 2*c_out).  Returns (T-kt+1, R, c_out)."""
    t, r, c_in = x.shape
    aw, ab = _align_matrix(c_in, c_out, align_w, align_b)
    w = w.at[(kt - 1) * c_in:kt * c_in, :c_out].add(aw)      # fold GLU residual into P half
    bias = jnp.concatenate([b[:c_out] + ab, b[c_out:]]).reshape(1, 2 * c_out)
    xi, t_out = _im2col_time(x, kt)
    y = pl.pallas_call(
        functools.partial(_glu_matmul_kernel, c_out=c_out),
        out_shape=jax.ShapeDtypeStruct((t_out * r, c_out), jnp.float32),
    )(xi, w, bias)
    return y.reshape(t_out, r, c_out)


def cheb_graph_conv_block(x, gso, align_w, align_b, cheb_w, cheb_b, ks, v):
    """x: (T, B*V, c0) -> relu(cheb(align(x)) + align(x)) : (T, B*V, c1)."""
    t, r, c0 = x.shape
    bsz = r // v
    c1 = cheb_w.shape[-1]
    aw, ab = _align_matrix(c0, c1, align_w, align_b)
    nsl = t * bsz
    y = pl.pallas_call(
        functools.partial(_cheb_block_kernel, ks=ks, nslices=nsl, v=v),
        out_shape=jax.ShapeDtypeStruct((nsl * v, c1), jnp.float32),
    )(x.reshape(nsl * v, c0), gso, aw, ab.reshape(1, c1), cheb_w, cheb_b.reshape(1, c1))
    return y.reshape(t, r, c1)


def layernorm_rows(x2, g, b, eps=1e-5):
    return pl.pallas_call(
        functools.partial(_layernorm_kernel, eps=eps),
        out_shape=jax.ShapeDtypeStruct(x2.shape, jnp.float32),
    )(x2, g.reshape(1, -1), b.reshape(1, -1))


def st_conv_block(x, p, gso, kt, ks, v):
    # TODO(synk): layers.STConvBlockTwoSTBlocks source unavailable; standard STGCN block
    # assumed (GLU tconv -> ChebGraphConv + aligned residual -> ReLU -> GLU tconv ->
    # LayerNorm([V, C]) -> dropout == identity in eval), matching Ko = n_his - 2*(Kt-1).
    x = temporal_conv_glu(x, kt, p["c0"], p["tc1_w"], p["tc1_b"])
    x = cheb_graph_conv_block(x, gso, p["gc_align_w"], p["gc_align_b"],
                              p["cheb_w"], p["cheb_b"], ks, v)
    x = temporal_conv_glu(x, kt, p["c2"], p["tc2_w"], p["tc2_b"])
    t, r, c = x.shape
    bsz = r // v
    xn = layernorm_rows(x.reshape(t * bsz, v * c), p["ln_g"], p["ln_b"])
    return xn.reshape(t, r, c)


def _block_diag_bias(rows, seq):
    ri = jnp.arange(rows)[:, None] // seq
    ci = jnp.arange(rows)[None, :] // seq
    return jnp.where(ri == ci, 0.0, -1e30).astype(jnp.float32)


def fused_transformer(x_seq, pre_bias, pre_w1, pre_g, pre_beta, layer_params,
                      *, seq, nbatch, nhead, eps=1e-5):
    """pre_transformer + all encoder layers + residual add, one pallas_call."""
    rows, emb = x_seq.shape
    hd = emb // nhead
    nl = len(layer_params)

    stk = lambda name: jnp.stack([lp[name] for lp in layer_params])
    in_w = stk("in_w")
    in_b = stk("in_b").reshape(nl, 1, 3 * emb)
    out_w = stk("out_w")
    out_b = stk("out_b").reshape(nl, 1, emb)
    ln1g = stk("ln1_g").reshape(nl, 1, emb)
    ln1b = stk("ln1_b").reshape(nl, 1, emb)
    f1w = stk("ff1_w")
    f1b = stk("ff1_b").reshape(nl, 1, -1)
    f2w = stk("ff2_w")
    f2b = stk("ff2_b").reshape(nl, 1, emb)
    ln2g = stk("ln2_g").reshape(nl, 1, emb)
    ln2b = stk("ln2_b").reshape(nl, 1, emb)
    ffdim = f1w.shape[-1]

    # row tiling over whole sequences: parallel axis for the 2nd TensorCore on v7x
    n_tiles = 1
    if nbatch % 2 == 0 and ((nbatch // 2) * seq) % 8 == 0:
        n_tiles = 2
    rt = (nbatch // n_tiles) * seq
    mask = _block_diag_bias(rt, seq)      # same block-diagonal mask for every row tile

    row_spec = pl.BlockSpec((rt, emb), lambda r, l: (r, 0))

    def const2(shape):
        return pl.BlockSpec(shape, lambda r, l: (0, 0))

    def per_layer(shape):
        return pl.BlockSpec((1,) + shape, lambda r, l: (l, 0, 0))

    return pl.pallas_call(
        functools.partial(_fused_transformer_kernel, nhead=nhead, hdim=hd, emb=emb, eps=eps),
        grid=(n_tiles, nl),
        in_specs=[row_spec, row_spec, const2((rt, rt)),
                  const2((emb, emb)), const2((1, emb)), const2((1, emb)),
                  per_layer((emb, 3 * emb)), per_layer((1, 3 * emb)),
                  per_layer((emb, emb)), per_layer((1, emb)),
                  per_layer((1, emb)), per_layer((1, emb)),
                  per_layer((emb, ffdim)), per_layer((1, ffdim)),
                  per_layer((ffdim, emb)), per_layer((1, emb)),
                  per_layer((1, emb)), per_layer((1, emb))],
        out_specs=row_spec,
        out_shape=jax.ShapeDtypeStruct((rows, emb), jnp.float32),
        compiler_params=pltpu.CompilerParams(
            dimension_semantics=("parallel", "arbitrary")),
    )(x_seq, pre_bias, mask, pre_w1, pre_g.reshape(1, emb), pre_beta.reshape(1, emb),
      in_w, in_b, out_w, out_b, ln1g, ln1b, f1w, f1b, f2w, f2b, ln2g, ln2b)


def output_block(x, p, ko, v, eps=1e-5):
    """GLU temporal conv (kernel = Ko) + LayerNorm([V, c0]) + fc1 + relu + fc2, fused."""
    t, r, c = x.shape
    bsz = r // v
    oc0 = p["c0"]
    aw, ab = _align_matrix(c, oc0, p["align_w"], p["align_b"])
    w = p["tc_w"].at[(ko - 1) * c:ko * c, :oc0].add(aw)
    bias = jnp.concatenate([p["tc_b"][:oc0] + ab, p["tc_b"][oc0:]]).reshape(1, 2 * oc0)
    xi, t_out = _im2col_time(x, ko)
    ngroups = t_out * bsz
    oc1 = p["fc1_w"].shape[-1]
    end_c = p["fc2_w"].shape[-1]
    y = pl.pallas_call(
        functools.partial(_output_block_kernel, c_out=oc0, ngroups=ngroups, v=v, eps=eps),
        out_shape=jax.ShapeDtypeStruct((t_out * r, end_c), jnp.float32),
    )(xi, w, bias, p["ln_g"], p["ln_b"],
      p["fc1_w"], p["fc1_b"].reshape(1, oc1), p["fc2_w"], p["fc2_b"].reshape(1, end_c))
    return y.reshape(t_out, r, end_c)


def mha_tail(y_seq, cf_rows, params, *, seq, nhead, eps=1e-5):
    rows, emb = y_seq.shape
    hd = emb // nhead
    mask = _block_diag_bias(rows, seq)
    return pl.pallas_call(
        functools.partial(_mha_tail_kernel, nhead=nhead, hdim=hd, emb=emb, eps=eps),
        out_shape=jax.ShapeDtypeStruct((rows, 1), jnp.float32),
    )(y_seq, cf_rows, mask,
      params["mha_in_w"], params["mha_in_b"].reshape(1, 3 * emb),
      params["mha_out_w"], params["mha_out_b"].reshape(1, emb),
      params["ca1_w"], params["ca1_b"].reshape(1, emb),
      params["ca_ln_g"].reshape(1, emb), params["ca_ln_b"].reshape(1, emb),
      params["ca2_w"], params["ca2_b"].reshape(1, 1),
      params["e1_w"], params["e1_b"].reshape(1, -1),
      params["e1_ln_g"].reshape(1, -1), params["e1_ln_b"].reshape(1, -1),
      params["e2_w"], params["e2_b"].reshape(1, -1),
      params["e2_ln_g"].reshape(1, -1), params["e2_ln_b"].reshape(1, -1),
      params["e3_w"], params["e3_b"].reshape(1, 1))


# ----------------------------------------------------------------------------- forward
def forward(x, params):
    kt, ks, ko = params["kt"], params["ks"], params["Ko"]
    v = params["n_vertex"]
    bsz, c_in, t, _ = x.shape

    # single layout conversion: NCHW -> time-major, channel-last rows (t, b, v) x C
    xw = jnp.transpose(x, (2, 0, 3, 1)).reshape(t, bsz * v, c_in)

    for sp in params["st_blocks"]:
        xw = st_conv_block(xw, sp, params["gso"], kt, ks, v)
    t2, r, c = xw.shape                                               # r = bsz * v

    # ---- pre-transformer + encoder layers + residual, fused (seq-major rows (b, v, t))
    x_seq = jnp.transpose(xw, (1, 0, 2)).reshape(r * t2, c)
    ce = params["connection_weights"].reshape(v, 1) @ params["conn_emb_w"] \
        + params["conn_emb_b"]                                        # (V, Ch)
    bias_v = ce @ params["pre_w"][c:] + params["pre_b"]               # (V, C)
    pre_bias = jnp.broadcast_to(bias_v[None, :, None, :],
                                (bsz, v, t2, c)).reshape(r * t2, c)
    xt = fused_transformer(x_seq, pre_bias, params["pre_w"][:c],
                           params["pre_ln_g"], params["pre_ln_b"],
                           params["transformer"], seq=t2, nbatch=r, nhead=4)

    # ---- LayerNorm([V, C]) per (b, t) group
    xg = jnp.transpose(xt.reshape(bsz, v, t2, c), (2, 0, 1, 3)).reshape(t2 * bsz, v * c)
    xn = layernorm_rows(xg, params["tn_g"], params["tn_b"])
    xw = xn.reshape(t2, r, c)

    # ---- output block (Ko > 1 branch of the reference)
    y = output_block(xw, params["out"], ko, v)                        # (T', B*V, end_c)
    tp, _, end_c = y.shape

    # ---- global MHA over time + connection gate + expression head (seq-major rows)
    y_seq = jnp.transpose(y, (1, 0, 2)).reshape(r * tp, end_c)
    cf_v = 1.0 + params["attention_scale"] * params["connection_weights"]    # (V,)
    cf_rows = jnp.broadcast_to(cf_v[None, :, None], (bsz, v, tp)).reshape(r * tp, 1)
    res = mha_tail(y_seq, cf_rows, params, seq=tp, nhead=4)           # (B*V*T', 1)

    out = jnp.transpose(res.reshape(bsz, v, tp), (0, 2, 1))
    return out[:, None, :, :]                                         # (B, 1, T', V)


# ------------------------------------------------------------------------------ params
def init_params(key, n_vertex, n_his, kt, ks, blocks, gene_connections):
    keys = iter(jax.random.split(key, 256))

    def xav(shape):
        fan_in = shape[0] if len(shape) == 2 else shape[0] * shape[1]
        fan_out = shape[-1]
        std = math.sqrt(2.0 / (fan_in + fan_out))
        return (std * jax.random.normal(next(keys), shape)).astype(jnp.float32)

    zeros = lambda s: jnp.zeros(s, jnp.float32)
    ones = lambda s: jnp.ones(s, jnp.float32)

    C = blocks[-3][-1]
    Ch = C // 2
    end_c = blocks[-1][0]

    # deterministic graph shift operator (rescaled sym-normalized Laplacian)
    a = (jax.random.uniform(next(keys), (n_vertex, n_vertex)) < 0.3).astype(jnp.float32)
    a = jnp.maximum(a, a.T) * (1.0 - jnp.eye(n_vertex))
    deg = a.sum(1)
    dinv = jnp.where(deg > 0, 1.0 / jnp.sqrt(jnp.maximum(deg, 1e-6)), 0.0)
    lap = jnp.eye(n_vertex) - dinv[:, None] * a * dinv[None, :]
    gso = (lap - jnp.eye(n_vertex)).astype(jnp.float32)

    connections = jnp.array([float(gene_connections.get(i, 0)) for i in range(n_vertex)],
                            jnp.float32)
    connection_weights = jax.nn.softmax(connections)

    st_blocks = []
    for l in range(len(blocks) - 3):
        c_in = blocks[l][-1]
        c0, c1, c2 = blocks[l + 1]
        st_blocks.append(dict(
            c0=c0, c1=c1, c2=c2,
            tc1_w=xav((kt * c_in, 2 * c0)), tc1_b=zeros((2 * c0,)),
            gc_align_w=xav((c0, c1)), gc_align_b=zeros((c1,)),
            cheb_w=xav((ks, c1, c1)), cheb_b=zeros((c1,)),
            tc2_w=xav((kt * c1, 2 * c2)), tc2_b=zeros((2 * c2,)),
            ln_g=ones((n_vertex * c2,)), ln_b=zeros((n_vertex * c2,)),
        ))

    transformer = []
    for _ in range(4):
        transformer.append(dict(
            in_w=xav((C, 3 * C)), in_b=zeros((3 * C,)),
            out_w=xav((C, C)), out_b=zeros((C,)),
            ln1_g=ones((C,)), ln1_b=zeros((C,)),
            ff1_w=xav((C, 4 * C)), ff1_b=zeros((4 * C,)),
            ff2_w=xav((4 * C, C)), ff2_b=zeros((C,)),
            ln2_g=ones((C,)), ln2_b=zeros((C,)),
        ))

    Ko = n_his - (len(blocks) - 3) * 2 * (kt - 1)
    oc0, oc1 = blocks[-2]
    out = dict(
        c0=oc0,
        align_w=xav((C, oc0)), align_b=zeros((oc0,)),
        tc_w=xav((Ko * C, 2 * oc0)), tc_b=zeros((2 * oc0,)),
        ln_g=ones((n_vertex, oc0)), ln_b=zeros((n_vertex, oc0)),
        fc1_w=xav((oc0, oc1)), fc1_b=zeros((oc1,)),
        fc2_w=xav((oc1, end_c)), fc2_b=zeros((end_c,)),
    )

    return dict(
        kt=kt, ks=ks, Ko=Ko, n_vertex=n_vertex,
        gso=gso, connection_weights=connection_weights,
        st_blocks=st_blocks,
        conn_emb_w=xav((1, Ch)), conn_emb_b=zeros((Ch,)),
        pre_w=xav((C + Ch, C)), pre_b=zeros((C,)),
        pre_ln_g=ones((C,)), pre_ln_b=zeros((C,)),
        transformer=transformer,
        tn_g=ones((n_vertex * C,)), tn_b=zeros((n_vertex * C,)),
        out=out,
        mha_in_w=xav((end_c, 3 * end_c)), mha_in_b=zeros((3 * end_c,)),
        mha_out_w=xav((end_c, end_c)), mha_out_b=zeros((end_c,)),
        attention_scale=jnp.float32(0.2),
        ca1_w=xav((end_c, end_c)), ca1_b=zeros((end_c,)),
        ca_ln_g=ones((end_c,)), ca_ln_b=zeros((end_c,)),
        ca2_w=xav((end_c, 1)), ca2_b=zeros((1,)),
        e1_w=xav((end_c, 32)), e1_b=zeros((32,)),
        e1_ln_g=ones((32,)), e1_ln_b=zeros((32,)),
        e2_w=xav((32, 16)), e2_b=zeros((16,)),
        e2_ln_g=ones((16,)), e2_ln_b=zeros((16,)),
        e3_w=xav((16, 1)), e3_b=zeros((1,)),
    )


# -------------------------------------------------------------------------------- main
if __name__ == "__main__":
    key = jax.random.PRNGKey(0)
    B, n_vertex, n_his = 2, 16, 8
    kt, ks = 3, 3
    # blocks: [[C_in], [ST channels], [output-block channels], [end channel]]
    blocks = [[1], [32, 16, 32], [16, 16], [8]]
    gene_connections = {i: float(i % 5) for i in range(n_vertex)}

    kp, kx = jax.random.split(key)
    params = init_params(kp, n_vertex, n_his, kt, ks, blocks, gene_connections)
    x = jax.random.normal(kx, (B, blocks[0][0], n_his, n_vertex), dtype=jnp.float32)

    fwd = jax.jit(lambda inp: forward(inp, params))
    out = jax.block_until_ready(fwd(x))

    assert out.shape == (B, 1, 1, n_vertex), out.shape
    assert bool(jnp.all(jnp.isfinite(out)))
    print("KERNEL_OK")
</pallas_src>

<mosaic_0001>
module attributes {stable_mosaic.version = 11 : i64} {
  func.func @_glu_matmul_kernel(%arg0: memref<192x3xf32, #tpu.memory_space<vmem>>, %arg1: memref<3x64xf32, #tpu.memory_space<vmem>>, %arg2: memref<1x64xf32, #tpu.memory_space<vmem>>, %arg3: memref<192x32xf32, #tpu.memory_space<vmem>>) attributes {dimension_semantics = [], scalar_prefetch = 0 : i64, scratch_operands = 0 : i64, tpu.core_type = #tpu.core_type<tc>} {
    %c0 = arith.constant 0 : index
    %c0_0 = arith.constant 0 : index
    %0 = vector.load %arg0[%c0, %c0_0] : memref<192x3xf32, #tpu.memory_space<vmem>>, vector<192x3xf32>
    %c0_1 = arith.constant 0 : index
    %c0_2 = arith.constant 0 : index
    %1 = vector.load %arg1[%c0_1, %c0_2] : memref<3x64xf32, #tpu.memory_space<vmem>>, vector<3x64xf32>
    %cst = arith.constant dense<0.000000e+00> : vector<192x64xf32>
    %2 = tpu.matmul %0, %1, %cst {dimension_numbers = #tpu.dot_dimension_numbers<[1], [0], [0], [1], [0, 0, 1, 1], [], []>} : vector<192x3xf32>, vector<3x64xf32>, vector<192x64xf32> -> vector<192x64xf32>
    %c0_3 = arith.constant 0 : index
    %c0_4 = arith.constant 0 : index
    %3 = vector.load %arg2[%c0_3, %c0_4] : memref<1x64xf32, #tpu.memory_space<vmem>>, vector<1x64xf32>
    %4 = vector.broadcast %3 : vector<1x64xf32> to vector<192x64xf32>
    %5 = arith.addf %2, %4 : vector<192x64xf32>
    %6 = vector.extract_strided_slice %5 {offsets = [0, 0], sizes = [192, 32], strides = [1, 1]} : vector<192x64xf32> to vector<192x32xf32>
    %7 = vector.extract_strided_slice %5 {offsets = [0, 32], sizes = [192, 32], strides = [1, 1]} : vector<192x64xf32> to vector<192x32xf32>
    %cst_5 = arith.constant 5.000000e-01 : f32
    %8 = vector.broadcast %cst_5 : f32 to vector<192x32xf32>
    %9 = arith.mulf %8, %7 : vector<192x32xf32>
    %10 = math.tanh %9 : vector<192x32xf32>
    %cst_6 = arith.constant 1.000000e+00 : f32
    %11 = vector.broadcast %cst_6 : f32 to vector<192x32xf32>
    %12 = arith.addf %10, %11 : vector<192x32xf32>
    %cst_7 = arith.constant 5.000000e-01 : f32
    %13 = vector.broadcast %cst_7 : f32 to vector<192x32xf32>
    %14 = arith.mulf %13, %12 : vector<192x32xf32>
    %15 = arith.mulf %6, %14 : vector<192x32xf32>
    %c0_8 = arith.constant 0 : index
    %c0_9 = arith.constant 0 : index
    %16 = vector.load %arg3[%c0_8, %c0_9] : memref<192x32xf32, #tpu.memory_space<vmem>>, vector<192x32xf32>
    tpu.vector_store %arg3[%c0_8, %c0_9], %15 {strides = array<i32>} : memref<192x32xf32, #tpu.memory_space<vmem>>, vector<192x32xf32>,
    return
  }
}

module attributes {stable_mosaic.version = 11 : i64} {
  func.func @_cheb_block_kernel(%arg0: memref<192x32xf32, #tpu.memory_space<vmem>>, %arg1: memref<16x16xf32, #tpu.memory_space<vmem>>, %arg2: memref<32x16xf32, #tpu.memory_space<vmem>>, %arg3: memref<1x16xf32, #tpu.memory_space<vmem>>, %arg4: memref<3x16x16xf32, #tpu.memory_space<vmem>>, %arg5: memref<1x16xf32, #tpu.memory_space<vmem>>, %arg6: memref<192x16xf32, #tpu.memory_space<vmem>>) attributes {dimension_semantics = [], scalar_prefetch = 0 : i64, scratch_operands = 0 : i64, tpu.core_type = #tpu.core_type<tc>} {
    %c0 = arith.constant 0 : index
    %c0_0 = arith.constant 0 : index
    %0 = vector.load %arg0[%c0, %c0_0] : memref<192x32xf32, #tpu.memory_space<vmem>>, vector<192x32xf32>
    %c0_1 = arith.constant 0 : index
    %c0_2 = arith.constant 0 : index
    %1 = vector.load %arg2[%c0_1, %c0_2] : memref<32x16xf32, #tpu.memory_space<vmem>>, vector<32x16xf32>
    %cst = arith.constant dense<0.000000e+00> : vector<192x16xf32>
    %2 = tpu.matmul %0, %1, %cst {dimension_numbers = #tpu.dot_dimension_numbers<[1], [0], [0], [1], [0, 0, 1, 1], [], []>} : vector<192x32xf32>, vector<32x16xf32>, vector<192x16xf32> -> vector<192x16xf32>
    %c0_3 = arith.constant 0 : index
    %c0_4 = arith.constant 0 : index
    %3 = vector.load %arg3[%c0_3, %c0_4] : memref<1x16xf32, #tpu.memory_space<vmem>>, vector<1x16xf32>
    %4 = vector.broadcast %3 : vector<1x16xf32> to vector<192x16xf32>
    %5 = arith.addf %2, %4 : vector<192x16xf32>
    %c0_5 = arith.constant 0 : index
    %c0_6 = arith.constant 0 : index
    %c0_7 = arith.constant 0 : index
    %6 = vector.load %arg4[%c0_5, %c0_6, %c0_7] : memref<3x16x16xf32, #tpu.memory_space<vmem>>, vector<1x16x16xf32>
    %7 = vector.shape_cast %6 : vector<1x16x16xf32> to vector<16x16xf32>
    %cst_8 = arith.constant dense<0.000000e+00> : vector<192x16xf32>
    %8 = tpu.matmul %5, %7, %cst_8 {dimension_numbers = #tpu.dot_dimension_numbers<[1], [0], [0], [1], [0, 0, 1, 1], [], []>} : vector<192x16xf32>, vector<16x16xf32>, vector<192x16xf32> -> vector<192x16xf32>
    %c0_9 = arith.constant 0 : index
    %c0_10 = arith.constant 0 : index
    %9 = vector.load %arg1[%c0_9, %c0_10] : memref<16x16xf32, #tpu.memory_space<vmem>>, vector<16x16xf32>
    %10 = vector.shape_cast %9 : vector<16x16xf32> to vector<1x16x16xf32>
    %11 = vector.shape_cast %10 : vector<1x16x16xf32> to vector<1x16x16xf32>
    %12 = vector.broadcast %11 : vector<1x16x16xf32> to vector<12x16x16xf32>
    %13 = vector.shape_cast %5 : vector<192x16xf32> to vector<12x16x16xf32>
    "tpu.trace_start"() <{level = 10 : i32, message = "svw,swc->svc"}> : () -> ()
    %cst_11 = arith.constant dense<0.000000e+00> : vector<12x16x16xf32>
    %14 = tpu.matmul %12, %13, %cst_11 {dimension_numbers = #tpu.dot_dimension_numbers<[2], [1], [1], [2], [0, 0, 0, 1, 1, 2], [0], [0]>} : vector<12x16x16xf32>, vector<12x16x16xf32>, vector<12x16x16xf32> -> vector<12x16x16xf32>
    "tpu.trace_stop"() : () -> ()
    %15 = vector.shape_cast %14 : vector<12x16x16xf32> to vector<192x16xf32>
    %c1 = arith.constant 1 : index
    %c0_12 = arith.constant 0 : index
    %c0_13 = arith.constant 0 : index
    %16 = vector.load %arg4[%c1, %c0_12, %c0_13] : memref<3x16x16xf32, #tpu.memory_space<vmem>>, vector<1x16x16xf32>
    %17 = vector.shape_cast %16 : vector<1x16x16xf32> to vector<16x16xf32>
    %cst_14 = arith.constant dense<0.000000e+00> : vector<192x16xf32>
    %18 = tpu.matmul %15, %17, %cst_14 {dimension_numbers = #tpu.dot_dimension_numbers<[1], [0], [0], [1], [0, 0, 1, 1], [], []>} : vector<192x16xf32>, vector<16x16xf32>, vector<192x16xf32> -> vector<192x16xf32>
    %19 = arith.addf %8, %18 : vector<192x16xf32>
    "tpu.trace_start"() <{level = 10 : i32, message = "svw,swc->svc"}> : () -> ()
    %cst_15 = arith.constant dense<0.000000e+00> : vector<12x16x16xf32>
    %20 = tpu.matmul %12, %14, %cst_15 {dimension_numbers = #tpu.dot_dimension_numbers<[2], [1], [1], [2], [0, 0, 0, 1, 1, 2], [0], [0]>} : vector<12x16x16xf32>, vector<12x16x16xf32>, vector<12x16x16xf32> -> vector<12x16x16xf32>
    "tpu.trace_stop"() : () -> ()
    %cst_16 = arith.constant 2.000000e+00 : f32
    %21 = vector.broadcast %cst_16 : f32 to vector<12x16x16xf32>
    %22 = arith.mulf %21, %20 : vector<12x16x16xf32>
    %23 = arith.subf %22, %13 : vector<12x16x16xf32>
    %24 = vector.shape_cast %23 : vector<12x16x16xf32> to vector<192x16xf32>
    %c2 = arith.constant 2 : index
    %c0_17 = arith.constant 0 : index
    %c0_18 = arith.constant 0 : index
    %25 = vector.load %arg4[%c2, %c0_17, %c0_18] : memref<3x16x16xf32, #tpu.memory_space<vmem>>, vector<1x16x16xf32>
    %26 = vector.shape_cast %25 : vector<1x16x16xf32> to vector<16x16xf32>
    %cst_19 = arith.constant dense<0.000000e+00> : vector<192x16xf32>
    %27 = tpu.matmul %24, %26, %cst_19 {dimension_numbers = #tpu.dot_dimension_numbers<[1], [0], [0], [1], [0, 0, 1, 1], [], []>} : vector<192x16xf32>, vector<16x16xf32>, vector<192x16xf32> -> vector<192x16xf32>
    %28 = arith.addf %19, %27 : vector<192x16xf32>
    %c0_20 = arith.constant 0 : index
    %c0_21 = arith.constant 0 : index
    %29 = vector.load %arg5[%c0_20, %c0_21] : memref<1x16xf32, #tpu.memory_space<vmem>>, vector<1x16xf32>
    %30 = vector.broadcast %29 : vector<1x16xf32> to vector<192x16xf32>
    %31 = arith.addf %28, %30 : vector<192x16xf32>
    %32 = arith.addf %31, %5 : vector<192x16xf32>
    %cst_22 = arith.constant 0.000000e+00 : f32
    %33 = vector.broadcast %cst_22 : f32 to vector<192x16xf32>
    %34 = arith.maximumf %32, %33 : vector<192x16xf32>
    %c0_23 = arith.constant 0 : index
    %c0_24 = arith.constant 0 : index
    %35 = vector.load %arg6[%c0_23, %c0_24] : memref<192x16xf32, #tpu.memory_space<vmem>>, vector<192x16xf32>
    tpu.vector_store %arg6[%c0_23, %c0_24], %34 {strides = array<i32>} : memref<192x16xf32, #tpu.memory_space<vmem>>, vector<192x16xf32>,
    return
  }
}

module attributes {stable_mosaic.version = 11 : i64} {
  func.func @_glu_matmul_kernel(%arg0: memref<128x48xf32, #tpu.memory_space<vmem>>, %arg1: memref<48x64xf32, #tpu.memory_space<vmem>>, %arg2: memref<1x64xf32, #tpu.memory_space<vmem>>, %arg3: memref<128x32xf32, #tpu.memory_space<vmem>>) attributes {dimension_semantics = [], scalar_prefetch = 0 : i64, scratch_operands = 0 : i64, tpu.core_type = #tpu.core_type<tc>} {
    %c0 = arith.constant 0 : index
    %c0_0 = arith.constant 0 : index
    %0 = vector.load %arg0[%c0, %c0_0] : memref<128x48xf32, #tpu.memory_space<vmem>>, vector<128x48xf32>
    %c0_1 = arith.constant 0 : index
    %c0_2 = arith.constant 0 : index
    %1 = vector.load %arg1[%c0_1, %c0_2] : memref<48x64xf32, #tpu.memory_space<vmem>>, vector<48x64xf32>
    %cst = arith.constant dense<0.000000e+00> : vector<128x64xf32>
    %2 = tpu.matmul %0, %1, %cst {dimension_numbers = #tpu.dot_dimension_numbers<[1], [0], [0], [1], [0, 0, 1, 1], [], []>} : vector<128x48xf32>, vector<48x64xf32>, vector<128x64xf32> -> vector<128x64xf32>
    %c0_3 = arith.constant 0 : index
    %c0_4 = arith.constant 0 : index
    %3 = vector.load %arg2[%c0_3, %c0_4] : memref<1x64xf32, #tpu.memory_space<vmem>>, vector<1x64xf32>
    %4 = vector.broadcast %3 : vector<1x64xf32> to vector<128x64xf32>
    %5 = arith.addf %2, %4 : vector<128x64xf32>
    %6 = vector.extract_strided_slice %5 {offsets = [0, 0], sizes = [128, 32], strides = [1, 1]} : vector<128x64xf32> to vector<128x32xf32>
    %7 = vector.extract_strided_slice %5 {offsets = [0, 32], sizes = [128, 32], strides = [1, 1]} : vector<128x64xf32> to vector<128x32xf32>
    %cst_5 = arith.constant 5.000000e-01 : f32
    %8 = vector.broadcast %cst_5 : f32 to vector<128x32xf32>
    %9 = arith.mulf %8, %7 : vector<128x32xf32>
    %10 = math.tanh %9 : vector<128x32xf32>
    %cst_6 = arith.constant 1.000000e+00 : f32
    %11 = vector.broadcast %cst_6 : f32 to vector<128x32xf32>
    %12 = arith.addf %10, %11 : vector<128x32xf32>
    %cst_7 = arith.constant 5.000000e-01 : f32
    %13 = vector.broadcast %cst_7 : f32 to vector<128x32xf32>
    %14 = arith.mulf %13, %12 : vector<128x32xf32>
    %15 = arith.mulf %6, %14 : vector<128x32xf32>
    %c0_8 = arith.constant 0 : index
    %c0_9 = arith.constant 0 : index
    %16 = vector.load %arg3[%c0_8, %c0_9] : memref<128x32xf32, #tpu.memory_space<vmem>>, vector<128x32xf32>
    tpu.vector_store %arg3[%c0_8, %c0_9], %15 {strides = array<i32>} : memref<128x32xf32, #tpu.memory_space<vmem>>, vector<128x32xf32>,
    return
  }
}

module attributes {stable_mosaic.version = 11 : i64} {
  func.func @_layernorm_kernel(%arg0: memref<8x512xf32, #tpu.memory_space<vmem>>, %arg1: memref<1x512xf32, #tpu.memory_space<vmem>>, %arg2: memref<1x512xf32, #tpu.memory_space<vmem>>, %arg3: memref<8x512xf32, #tpu.memory_space<vmem>>) attributes {dimension_semantics = [], scalar_prefetch = 0 : i64, scratch_operands = 0 : i64, tpu.core_type = #tpu.core_type<tc>} {
    %c0 = arith.constant 0 : index
    %c0_0 = arith.constant 0 : index
    %0 = vector.load %arg0[%c0, %c0_0] : memref<8x512xf32, #tpu.memory_space<vmem>>, vector<8x512xf32>
    %c0_1 = arith.constant 0 : index
    %c0_2 = arith.constant 0 : index
    %1 = vector.load %arg1[%c0_1, %c0_2] : memref<1x512xf32, #tpu.memory_space<vmem>>, vector<1x512xf32>
    %c0_3 = arith.constant 0 : index
    %c0_4 = arith.constant 0 : index
    %2 = vector.load %arg2[%c0_3, %c0_4] : memref<1x512xf32, #tpu.memory_space<vmem>>, vector<1x512xf32>
    %cst = arith.constant dense<0.000000e+00> : vector<8xf32>
    %3 = vector.multi_reduction <add>, %0, %cst [1] : vector<8x512xf32> to vector<8xf32>
    %4 = vector.shape_cast %3 : vector<8xf32> to vector<8x1xf32>
    %cst_5 = arith.constant 5.120000e+02 : f32
    %5 = vector.broadcast %cst_5 : f32 to vector<8x1xf32>
    %6 = arith.divf %4, %5 : vector<8x1xf32>
    %7 = vector.broadcast %6 : vector<8x1xf32> to vector<8x512xf32>
    %8 = arith.subf %0, %7 : vector<8x512xf32>
    %9 = arith.mulf %8, %8 : vector<8x512xf32>
    %cst_6 = arith.constant dense<0.000000e+00> : vector<8xf32>
    %10 = vector.multi_reduction <add>, %9, %cst_6 [1] : vector<8x512xf32> to vector<8xf32>
    %11 = vector.shape_cast %10 : vector<8xf32> to vector<8x1xf32>
    %cst_7 = arith.constant 5.120000e+02 : f32
    %12 = vector.broadcast %cst_7 : f32 to vector<8x1xf32>
    %13 = arith.divf %11, %12 : vector<8x1xf32>
    %cst_8 = arith.constant 9.99999974E-6 : f32
    %14 = vector.broadcast %cst_8 : f32 to vector<8x1xf32>
    %15 = arith.addf %13, %14 : vector<8x1xf32>
    %16 = math.rsqrt %15 : vector<8x1xf32>
    %17 = vector.broadcast %16 : vector<8x1xf32> to vector<8x512xf32>
    %18 = arith.mulf %8, %17 : vector<8x512xf32>
    %19 = vector.broadcast %1 : vector<1x512xf32> to vector<8x512xf32>
    %20 = arith.mulf %18, %19 : vector<8x512xf32>
    %21 = vector.broadcast %2 : vector<1x512xf32> to vector<8x512xf32>
    %22 = arith.addf %20, %21 : vector<8x512xf32>
    %c0_9 = arith.constant 0 : index
    %c0_10 = arith.constant 0 : index
    %23 = vector.load %arg3[%c0_9, %c0_10] : memref<8x512xf32, #tpu.memory_space<vmem>>, vector<8x512xf32>
    tpu.vector_store %arg3[%c0_9, %c0_10], %22 {strides = array<i32>} : memref<8x512xf32, #tpu.memory_space<vmem>>, vector<8x512xf32>,
    return
  }
}

module attributes {stable_mosaic.version = 11 : i64} {
  func.func @_fused_transformer_kernel(%arg0: i32, %arg1: i32, %arg2: memref<64x32xf32, #tpu.memory_space<vmem>>, %arg3: memref<64x32xf32, #tpu.memory_space<vmem>>, %arg4: memref<64x64xf32, #tpu.memory_space<vmem>>, %arg5: memref<32x32xf32, #tpu.memory_space<vmem>>, %arg6: memref<1x32xf32, #tpu.memory_space<vmem>>, %arg7: memref<1x32xf32, #tpu.memory_space<vmem>>, %arg8: memref<1x32x96xf32, #tpu.memory_space<vmem>>, %arg9: memref<1x1x96xf32, #tpu.memory_space<vmem>>, %arg10: memref<1x32x32xf32, #tpu.memory_space<vmem>>, %arg11: memref<1x1x32xf32, #tpu.memory_space<vmem>>, %arg12: memref<1x1x32xf32, #tpu.memory_space<vmem>>, %arg13: memref<1x1x32xf32, #tpu.memory_space<vmem>>, %arg14: memref<1x32x128xf32, #tpu.memory_space<vmem>>, %arg15: memref<1x1x128xf32, #tpu.memory_space<vmem>>, %arg16: memref<1x128x32xf32, #tpu.memory_space<vmem>>, %arg17: memref<1x1x32xf32, #tpu.memory_space<vmem>>, %arg18: memref<1x1x32xf32, #tpu.memory_space<vmem>>, %arg19: memref<1x1x32xf32, #tpu.memory_space<vmem>>, %arg20: memref<64x32xf32, #tpu.memory_space<vmem>>) attributes {dimension_semantics = [#tpu.dimension_semantics<parallel>, #tpu.dimension_semantics<arbitrary>], iteration_bounds = array<i64: 2, 4>, scalar_prefetch = 0 : i64, scratch_operands = 0 : i64, tpu.core_type = #tpu.core_type<tc>, window_params = [{transform_indices = @transform_0, window_bounds = array<i64: 64, 32>}, {transform_indices = @transform_1, window_bounds = array<i64: 64, 32>}, {pipeline_mode = #tpu.pipeline_mode<synchronous>, transform_indices = @transform_2, window_bounds = array<i64: 64, 64>}, {pipeline_mode = #tpu.pipeline_mode<synchronous>, transform_indices = @transform_3, window_bounds = array<i64: 32, 32>}, {pipeline_mode = #tpu.pipeline_mode<synchronous>, transform_indices = @transform_4, window_bounds = array<i64: 1, 32>}, {pipeline_mode = #tpu.pipeline_mode<synchronous>, transform_indices = @transform_5, window_bounds = array<i64: 1, 32>}, {transform_indices = @transform_6, window_bounds = array<i64: 1, 32, 96>}, {transform_indices = @transform_7, window_bounds = array<i64: 1, 1, 96>}, {transform_indices = @transform_8, window_bounds = array<i64: 1, 32, 32>}, {transform_indices = @transform_9, window_bounds = array<i64: 1, 1, 32>}, {transform_indices = @transform_10, window_bounds = array<i64: 1, 1, 32>}, {transform_indices = @transform_11, window_bounds = array<i64: 1, 1, 32>}, {transform_indices = @transform_12, window_bounds = array<i64: 1, 32, 128>}, {transform_indices = @transform_13, window_bounds = array<i64: 1, 1, 128>}, {transform_indices = @transform_14, window_bounds = array<i64: 1, 128, 32>}, {transform_indices = @transform_15, window_bounds = array<i64: 1, 1, 32>}, {transform_indices = @transform_16, window_bounds = array<i64: 1, 1, 32>}, {transform_indices = @transform_17, window_bounds = array<i64: 1, 1, 32>}, {transform_indices = @transform_18, window_bounds = array<i64: 64, 32>}]} {
    %c0_i32 = arith.constant 0 : i32
    %0 = arith.cmpi eq, %arg1, %c0_i32 : i32
    %1 = arith.extui %0 : i1 to i32
    %c0_i32_0 = arith.constant 0 : i32
    %2 = arith.cmpi ne, %1, %c0_i32_0 : i32
    scf.if %2 {
      %c0_80 = arith.constant 0 : index
      %c0_81 = arith.constant 0 : index
      %171 = vector.load %arg2[%c0_80, %c0_81] : memref<64x32xf32, #tpu.memory_space<vmem>>, vector<64x32xf32>
      %c0_82 = arith.constant 0 : index
      %c0_83 = arith.constant 0 : index
      %172 = vector.load %arg5[%c0_82, %c0_83] : memref<32x32xf32, #tpu.memory_space<vmem>>, vector<32x32xf32>
      %cst_84 = arith.constant dense<0.000000e+00> : vector<64x32xf32>
      %173 = tpu.matmul %171, %172, %cst_84 {dimension_numbers = #tpu.dot_dimension_numbers<[1], [0], [0], [1], [0, 0, 1, 1], [], []>} : vector<64x32xf32>, vector<32x32xf32>, vector<64x32xf32> -> vector<64x32xf32>
      %c0_85 = arith.constant 0 : index
      %c0_86 = arith.constant 0 : index
      %174 = vector.load %arg3[%c0_85, %c0_86] : memref<64x32xf32, #tpu.memory_space<vmem>>, vector<64x32xf32>
      %175 = arith.addf %173, %174 : vector<64x32xf32>
      %c0_87 = arith.constant 0 : index
      %c0_88 = arith.constant 0 : index
      %176 = vector.load %arg6[%c0_87, %c0_88] : memref<1x32xf32, #tpu.memory_space<vmem>>, vector<1x32xf32>
      %c0_89 = arith.constant 0 : index
      %c0_90 = arith.constant 0 : index
      %177 = vector.load %arg7[%c0_89, %c0_90] : memref<1x32xf32, #tpu.memory_space<vmem>>, vector<1x32xf32>
      %cst_91 = arith.constant dense<0.000000e+00> : vector<64xf32>
      %178 = vector.multi_reduction <add>, %175, %cst_91 [1] : vector<64x32xf32> to vector<64xf32>
      %179 = vector.shape_cast %178 : vector<64xf32> to vector<64x1xf32>
      %cst_92 = arith.constant 3.200000e+01 : f32
      %180 = vector.broadcast %cst_92 : f32 to vector<64x1xf32>
      %181 = arith.divf %179, %180 : vector<64x1xf32>
      %182 = vector.broadcast %181 : vector<64x1xf32> to vector<64x32xf32>
      %183 = arith.subf %175, %182 : vector<64x32xf32>
      %184 = arith.mulf %183, %183 : vector<64x32xf32>
      %cst_93 = arith.constant dense<0.000000e+00> : vector<64xf32>
      %185 = vector.multi_reduction <add>, %184, %cst_93 [1] : vector<64x32xf32> to vector<64xf32>
      %186 = vector.shape_cast %185 : vector<64xf32> to vector<64x1xf32>
      %cst_94 = arith.constant 3.200000e+01 : f32
      %187 = vector.broadcast %cst_94 : f32 to vector<64x1xf32>
      %188 = arith.divf %186, %187 : vector<64x1xf32>
      %cst_95 = arith.constant 9.99999974E-6 : f32
      %189 = vector.broadcast %cst_95 : f32 to vector<64x1xf32>
      %190 = arith.addf %188, %189 : vector<64x1xf32>
      %191 = math.rsqrt %190 : vector<64x1xf32>
      %192 = vector.broadcast %191 : vector<64x1xf32> to vector<64x32xf32>
      %193 = arith.mulf %183, %192 : vector<64x32xf32>
      %194 = vector.broadcast %176 : vector<1x32xf32> to vector<64x32xf32>
      %195 = arith.mulf %193, %194 : vector<64x32xf32>
      %196 = vector.broadcast %177 : vector<1x32xf32> to vector<64x32xf32>
      %197 = arith.addf %195, %196 : vector<64x32xf32>
      %cst_96 = arith.constant 0.000000e+00 : f32
      %198 = vector.broadcast %cst_96 : f32 to vector<64x32xf32>
      %199 = arith.cmpf ogt, %197, %198 : vector<64x32xf32>
      %cst_97 = arith.constant 0.000000e+00 : f32
      %200 = vector.broadcast %cst_97 : f32 to vector<64x32xf32>
      %201 = arith.minimumf %197, %200 : vector<64x32xf32>
      %202 = math.exp %201 : vector<64x32xf32>
      %cst_98 = arith.constant 1.000000e+00 : f32
      %203 = vector.broadcast %cst_98 : f32 to vector<64x32xf32>
      %204 = arith.subf %202, %203 : vector<64x32xf32>
      %205 = arith.select %199, %197, %204 : vector<64x32xi1>, vector<64x32xf32>
      %c0_99 = arith.constant 0 : index
      %c0_100 = arith.constant 0 : index
      %206 = vector.load %arg20[%c0_99, %c0_100] : memref<64x32xf32, #tpu.memory_space<vmem>>, vector<64x32xf32>
      tpu.vector_store %arg20[%c0_99, %c0_100], %205 {strides = array<i32>} : memref<64x32xf32, #tpu.memory_space<vmem>>, vector<64x32xf32>,
    } else {
    }
    %c0 = arith.constant 0 : index
    %c0_1 = arith.constant 0 : index
    %3 = vector.load %arg20[%c0, %c0_1] : memref<64x32xf32, #tpu.memory_space<vmem>>, vector<64x32xf32>
    %c0_2 = arith.constant 0 : index
    %c0_3 = arith.constant 0 : index
    %4 = vector.load %arg4[%c0_2, %c0_3] : memref<64x64xf32, #tpu.memory_space<vmem>>, vector<64x64xf32>
    %c0_4 = arith.constant 0 : index
    %c0_5 = arith.constant 0 : index
    %c0_6 = arith.constant 0 : index
    %5 = vector.load %arg8[%c0_4, %c0_5, %c0_6] : memref<1x32x96xf32, #tpu.memory_space<vmem>>, vector<1x32x96xf32>
    %6 = vector.shape_cast %5 : vector<1x32x96xf32> to vector<32x96xf32>
    %c0_7 = arith.constant 0 : index
    %c0_8 = arith.constant 0 : index
    %c0_9 = arith.constant 0 : index
    %7 = vector.load %arg9[%c0_7, %c0_8, %c0_9] : memref<1x1x96xf32, #tpu.memory_space<vmem>>, vector<1x1x96xf32>
    %8 = vector.shape_cast %7 : vector<1x1x96xf32> to vector<1x96xf32>
    %c0_10 = arith.constant 0 : index
    %c0_11 = arith.constant 0 : index
    %c0_12 = arith.constant 0 : index
    %9 = vector.load %arg10[%c0_10, %c0_11, %c0_12] : memref<1x32x32xf32, #tpu.memory_space<vmem>>, vector<1x32x32xf32>
    %10 = vector.shape_cast %9 : vector<1x32x32xf32> to vector<32x32xf32>
    %c0_13 = arith.constant 0 : index
    %c0_14 = arith.constant 0 : index
    %c0_15 = arith.constant 0 : index
    %11 = vector.load %arg11[%c0_13, %c0_14, %c0_15] : memref<1x1x32xf32, #tpu.memory_space<vmem>>, vector<1x1x32xf32>
    %12 = vector.shape_cast %11 : vector<1x1x32xf32> to vector<1x32xf32>
    %cst = arith.constant dense<0.000000e+00> : vector<64x96xf32>
    %13 = tpu.matmul %3, %6, %cst {dimension_numbers = #tpu.dot_dimension_numbers<[1], [0], [0], [1], [0, 0, 1, 1], [], []>} : vector<64x32xf32>, vector<32x96xf32>, vector<64x96xf32> -> vector<64x96xf32>
    %14 = vector.broadcast %8 : vector<1x96xf32> to vector<64x96xf32>
    %15 = arith.addf %13, %14 : vector<64x96xf32>
    %16 = vector.extract_strided_slice %15 {offsets = [0, 0], sizes = [64, 8], strides = [1, 1]} : vector<64x96xf32> to vector<64x8xf32>
    %cst_16 = arith.constant 0.353553385 : f32
    %17 = vector.broadcast %cst_16 : f32 to vector<64x8xf32>
    %18 = arith.mulf %16, %17 : vector<64x8xf32>
    %19 = vector.extract_strided_slice %15 {offsets = [0, 32], sizes = [64, 8], strides = [1, 1]} : vector<64x96xf32> to vector<64x8xf32>
    %20 = vector.extract_strided_slice %15 {offsets = [0, 64], sizes = [64, 8], strides = [1, 1]} : vector<64x96xf32> to vector<64x8xf32>
    %cst_17 = arith.constant dense<0.000000e+00> : vector<64x64xf32>
    %21 = tpu.matmul %18, %19, %cst_17 {dimension_numbers = #tpu.dot_dimension_numbers<[1], [1], [0], [0], [0, 0, 1, 0], [], []>} : vector<64x8xf32>, vector<64x8xf32>, vector<64x64xf32> -> vector<64x64xf32>
    %22 = arith.addf %21, %4 : vector<64x64xf32>
    %cst_18 = arith.constant dense<0xFF800000> : vector<64xf32>
    %23 = vector.multi_reduction <maximumf>, %22, %cst_18 [1] : vector<64x64xf32> to vector<64xf32>
    %24 = vector.shape_cast %23 : vector<64xf32> to vector<64x1xf32>
    %25 = vector.broadcast %24 : vector<64x1xf32> to vector<64x64xf32>
    %26 = arith.subf %22, %25 : vector<64x64xf32>
    %27 = math.exp %26 : vector<64x64xf32>
    %cst_19 = arith.constant dense<0.000000e+00> : vector<64xf32>
    %28 = vector.multi_reduction <add>, %27, %cst_19 [1] : vector<64x64xf32> to vector<64xf32>
    %29 = vector.shape_cast %28 : vector<64xf32> to vector<64x1xf32>
    %cst_20 = arith.constant dense<0.000000e+00> : vector<64x8xf32>
    %30 = tpu.matmul %27, %20, %cst_20 {dimension_numbers = #tpu.dot_dimension_numbers<[1], [0], [0], [1], [0, 0, 1, 1], [], []>} : vector<64x64xf32>, vector<64x8xf32>, vector<64x8xf32> -> vector<64x8xf32>
    %31 = vector.broadcast %29 : vector<64x1xf32> to vector<64x8xf32>
    %32 = arith.divf %30, %31 : vector<64x8xf32>
    %33 = vector.extract_strided_slice %15 {offsets = [0, 8], sizes = [64, 8], strides = [1, 1]} : vector<64x96xf32> to vector<64x8xf32>
    %cst_21 = arith.constant 0.353553385 : f32
    %34 = vector.broadcast %cst_21 : f32 to vector<64x8xf32>
    %35 = arith.mulf %33, %34 : vector<64x8xf32>
    %36 = vector.extract_strided_slice %15 {offsets = [0, 40], sizes = [64, 8], strides = [1, 1]} : vector<64x96xf32> to vector<64x8xf32>
    %37 = vector.extract_strided_slice %15 {offsets = [0, 72], sizes = [64, 8], strides = [1, 1]} : vector<64x96xf32> to vector<64x8xf32>
    %cst_22 = arith.constant dense<0.000000e+00> : vector<64x64xf32>
    %38 = tpu.matmul %35, %36, %cst_22 {dimension_numbers = #tpu.dot_dimension_numbers<[1], [1], [0], [0], [0, 0, 1, 0], [], []>} : vector<64x8xf32>, vector<64x8xf32>, vector<64x64xf32> -> vector<64x64xf32>
    %39 = arith.addf %38, %4 : vector<64x64xf32>
    %cst_23 = arith.constant dense<0xFF800000> : vector<64xf32>
    %40 = vector.multi_reduction <maximumf>, %39, %cst_23 [1] : vector<64x64xf32> to vector<64xf32>
    %41 = vector.shape_cast %40 : vector<64xf32> to vector<64x1xf32>
    %42 = vector.broadcast %41 : vector<64x1xf32> to vector<64x64xf32>
    %43 = arith.subf %39, %42 : vector<64x64xf32>
    %44 = math.exp %43 : vector<64x64xf32>
    %cst_24 = arith.constant dense<0.000000e+00> : vector<64xf32>
    %45 = vector.multi_reduction <add>, %44, %cst_24 [1] : vector<64x64xf32> to vector<64xf32>
    %46 = vector.shape_cast %45 : vector<64xf32> to vector<64x1xf32>
    %cst_25 = arith.constant dense<0.000000e+00> : vector<64x8xf32>
    %47 = tpu.matmul %44, %37, %cst_25 {dimension_numbers = #tpu.dot_dimension_numbers<[1], [0], [0], [1], [0, 0, 1, 1], [], []>} : vector<64x64xf32>, vector<64x8xf32>, vector<64x8xf32> -> vector<64x8xf32>
    %48 = vector.broadcast %46 : vector<64x1xf32> to vector<64x8xf32>
    %49 = arith.divf %47, %48 : vector<64x8xf32>
    %50 = vector.extract_strided_slice %15 {offsets = [0, 16], sizes = [64, 8], strides = [1, 1]} : vector<64x96xf32> to vector<64x8xf32>
    %cst_26 = arith.constant 0.353553385 : f32
    %51 = vector.broadcast %cst_26 : f32 to vector<64x8xf32>
    %52 = arith.mulf %50, %51 : vector<64x8xf32>
    %53 = vector.extract_strided_slice %15 {offsets = [0, 48], sizes = [64, 8], strides = [1, 1]} : vector<64x96xf32> to vector<64x8xf32>
    %54 = vector.extract_strided_slice %15 {offsets = [0, 80], sizes = [64, 8], strides = [1, 1]} : vector<64x96xf32> to vector<64x8xf32>
    %cst_27 = arith.constant dense<0.000000e+00> : vector<64x64xf32>
    %55 = tpu.matmul %52, %53, %cst_27 {dimension_numbers = #tpu.dot_dimension_numbers<[1], [1], [0], [0], [0, 0, 1, 0], [], []>} : vector<64x8xf32>, vector<64x8xf32>, vector<64x64xf32> -> vector<64x64xf32>
    %56 = arith.addf %55, %4 : vector<64x64xf32>
    %cst_28 = arith.constant dense<0xFF800000> : vector<64xf32>
    %57 = vector.multi_reduction <maximumf>, %56, %cst_28 [1] : vector<64x64xf32> to vector<64xf32>
    %58 = vector.shape_cast %57 : vector<64xf32> to vector<64x1xf32>
    %59 = vector.broadcast %58 : vector<64x1xf32> to vector<64x64xf32>
    %60 = arith.subf %56, %59 : vector<64x64xf32>
    %61 = math.exp %60 : vector<64x64xf32>
    %cst_29 = arith.constant dense<0.000000e+00> : vector<64xf32>
    %62 = vector.multi_reduction <add>, %61, %cst_29 [1] : vector<64x64xf32> to vector<64xf32>
    %63 = vector.shape_cast %62 : vector<64xf32> to vector<64x1xf32>
    %cst_30 = arith.constant dense<0.000000e+00> : vector<64x8xf32>
    %64 = tpu.matmul %61, %54, %cst_30 {dimension_numbers = #tpu.dot_dimension_numbers<[1], [0], [0], [1], [0, 0, 1, 1], [], []>} : vector<64x64xf32>, vector<64x8xf32>, vector<64x8xf32> -> vector<64x8xf32>
    %65 = vector.broadcast %63 : vector<64x1xf32> to vector<64x8xf32>
    %66 = arith.divf %64, %65 : vector<64x8xf32>
    %67 = vector.extract_strided_slice %15 {offsets = [0, 24], sizes = [64, 8], strides = [1, 1]} : vector<64x96xf32> to vector<64x8xf32>
    %cst_31 = arith.constant 0.353553385 : f32
    %68 = vector.broadcast %cst_31 : f32 to vector<64x8xf32>
    %69 = arith.mulf %67, %68 : vector<64x8xf32>
    %70 = vector.extract_strided_slice %15 {offsets = [0, 56], sizes = [64, 8], strides = [1, 1]} : vector<64x96xf32> to vector<64x8xf32>
    %71 = vector.extract_strided_slice %15 {offsets = [0, 88], sizes = [64, 8], strides = [1, 1]} : vector<64x96xf32> to vector<64x8xf32>
    %cst_32 = arith.constant dense<0.000000e+00> : vector<64x64xf32>
    %72 = tpu.matmul %69, %70, %cst_32 {dimension_numbers = #tpu.dot_dimension_numbers<[1], [1], [0], [0], [0, 0, 1, 0], [], []>} : vector<64x8xf32>, vector<64x8xf32>, vector<64x64xf32> -> vector<64x64xf32>
    %73 = arith.addf %72, %4 : vector<64x64xf32>
    %cst_33 = arith.constant dense<0xFF800000> : vector<64xf32>
    %74 = vector.multi_reduction <maximumf>, %73, %cst_33 [1] : vector<64x64xf32> to vector<64xf32>
    %75 = vector.shape_cast %74 : vector<64xf32> to vector<64x1xf32>
    %76 = vector.broadcast %75 : vector<64x1xf32> to vector<64x64xf32>
    %77 = arith.subf %73, %76 : vector<64x64xf32>
    %78 = math.exp %77 : vector<64x64xf32>
    %cst_34 = arith.constant dense<0.000000e+00> : vector<64xf32>
    %79 = vector.multi_reduction <add>, %78, %cst_34 [1] : vector<64x64xf32> to vector<64xf32>
    %80 = vector.shape_cast %79 : vector<64xf32> to vector<64x1xf32>
    %cst_35 = arith.constant dense<0.000000e+00> : vector<64x8xf32>
    %81 = tpu.matmul %78, %71, %cst_35 {dimension_numbers = #tpu.dot_dimension_numbers<[1], [0], [0], [1], [0, 0, 1, 1], [], []>} : vector<64x64xf32>, vector<64x8xf32>, vector<64x8xf32> -> vector<64x8xf32>
    %82 = vector.broadcast %80 : vector<64x1xf32> to vector<64x8xf32>
    %83 = arith.divf %81, %82 : vector<64x8xf32>
    %84 = tpu.concatenate %32, %49, %66, %83 in 1 : vector<64x8xf32>, vector<64x8xf32>, vector<64x8xf32>, vector<64x8xf32> -> vector<64x32xf32>
    %cst_36 = arith.constant dense<0.000000e+00> : vector<64x32xf32>
    %85 = tpu.matmul %84, %10, %cst_36 {dimension_numbers = #tpu.dot_dimension_numbers<[1], [0], [0], [1], [0, 0, 1, 1], [], []>} : vector<64x32xf32>, vector<32x32xf32>, vector<64x32xf32> -> vector<64x32xf32>
    %86 = vector.broadcast %12 : vector<1x32xf32> to vector<64x32xf32>
    %87 = arith.addf %85, %86 : vector<64x32xf32>
    %88 = arith.addf %3, %87 : vector<64x32xf32>
    %c0_37 = arith.constant 0 : index
    %c0_38 = arith.constant 0 : index
    %c0_39 = arith.constant 0 : index
    %89 = vector.load %arg12[%c0_37, %c0_38, %c0_39] : memref<1x1x32xf32, #tpu.memory_space<vmem>>, vector<1x1x32xf32>
    %90 = vector.shape_cast %89 : vector<1x1x32xf32> to vector<1x32xf32>
    %c0_40 = arith.constant 0 : index
    %c0_41 = arith.constant 0 : index
    %c0_42 = arith.constant 0 : index
    %91 = vector.load %arg13[%c0_40, %c0_41, %c0_42] : memref<1x1x32xf32, #tpu.memory_space<vmem>>, vector<1x1x32xf32>
    %92 = vector.shape_cast %91 : vector<1x1x32xf32> to vector<1x32xf32>
    %cst_43 = arith.constant dense<0.000000e+00> : vector<64xf32>
    %93 = vector.multi_reduction <add>, %88, %cst_43 [1] : vector<64x32xf32> to vector<64xf32>
    %94 = vector.shape_cast %93 : vector<64xf32> to vector<64x1xf32>
    %cst_44 = arith.constant 3.200000e+01 : f32
    %95 = vector.broadcast %cst_44 : f32 to vector<64x1xf32>
    %96 = arith.divf %94, %95 : vector<64x1xf32>
    %97 = vector.broadcast %96 : vector<64x1xf32> to vector<64x32xf32>
    %98 = arith.subf %88, %97 : vector<64x32xf32>
    %99 = arith.mulf %98, %98 : vector<64x32xf32>
    %cst_45 = arith.constant dense<0.000000e+00> : vector<64xf32>
    %100 = vector.multi_reduction <add>, %99, %cst_45 [1] : vector<64x32xf32> to vector<64xf32>
    %101 = vector.shape_cast %100 : vector<64xf32> to vector<64x1xf32>
    %cst_46 = arith.constant 3.200000e+01 : f32
    %102 = vector.broadcast %cst_46 : f32 to vector<64x1xf32>
    %103 = arith.divf %101, %102 : vector<64x1xf32>
    %cst_47 = arith.constant 9.99999974E-6 : f32
    %104 = vector.broadcast %cst_47 : f32 to vector<64x1xf32>
    %105 = arith.addf %103, %104 : vector<64x1xf32>
    %106 = math.rsqrt %105 : vector<64x1xf32>
    %107 = vector.broadcast %106 : vector<64x1xf32> to vector<64x32xf32>
    %108 = arith.mulf %98, %107 : vector<64x32xf32>
    %109 = vector.broadcast %90 : vector<1x32xf32> to vector<64x32xf32>
    %110 = arith.mulf %108, %109 : vector<64x32xf32>
    %111 = vector.broadcast %92 : vector<1x32xf32> to vector<64x32xf32>
    %112 = arith.addf %110, %111 : vector<64x32xf32>
    %c0_48 = arith.constant 0 : index
    %c0_49 = arith.constant 0 : index
    %c0_50 = arith.constant 0 : index
    %113 = vector.load %arg14[%c0_48, %c0_49, %c0_50] : memref<1x32x128xf32, #tpu.memory_space<vmem>>, vector<1x32x128xf32>
    %114 = vector.shape_cast %113 : vector<1x32x128xf32> to vector<32x128xf32>
    %cst_51 = arith.constant dense<0.000000e+00> : vector<64x128xf32>
    %115 = tpu.matmul %112, %114, %cst_51 {dimension_numbers = #tpu.dot_dimension_numbers<[1], [0], [0], [1], [0, 0, 1, 1], [], []>} : vector<64x32xf32>, vector<32x128xf32>, vector<64x128xf32> -> vector<64x128xf32>
    %c0_52 = arith.constant 0 : index
    %c0_53 = arith.constant 0 : index
    %c0_54 = arith.constant 0 : index
    %116 = vector.load %arg15[%c0_52, %c0_53, %c0_54] : memref<1x1x128xf32, #tpu.memory_space<vmem>>, vector<1x1x128xf32>
    %117 = vector.shape_cast %116 : vector<1x1x128xf32> to vector<1x128xf32>
    %118 = vector.broadcast %117 : vector<1x128xf32> to vector<64x128xf32>
    %119 = arith.addf %115, %118 : vector<64x128xf32>
    %120 = arith.mulf %119, %119 : vector<64x128xf32>
    %121 = arith.mulf %119, %120 : vector<64x128xf32>
    %cst_55 = arith.constant 4.471500e-02 : f32
    %122 = vector.broadcast %cst_55 : f32 to vector<64x128xf32>
    %123 = arith.mulf %122, %121 : vector<64x128xf32>
    %124 = arith.addf %119, %123 : vector<64x128xf32>
    %cst_56 = arith.constant 0.797884583 : f32
    %125 = vector.broadcast %cst_56 : f32 to vector<64x128xf32>
    %126 = arith.mulf %125, %124 : vector<64x128xf32>
    %127 = math.tanh %126 : vector<64x128xf32>
    %cst_57 = arith.constant 1.000000e+00 : f32
    %128 = vector.broadcast %cst_57 : f32 to vector<64x128xf32>
    %129 = arith.addf %128, %127 : vector<64x128xf32>
    %cst_58 = arith.constant 5.000000e-01 : f32
    %130 = vector.broadcast %cst_58 : f32 to vector<64x128xf32>
    %131 = arith.mulf %130, %129 : vector<64x128xf32>
    %132 = arith.mulf %119, %131 : vector<64x128xf32>
    %c0_59 = arith.constant 0 : index
    %c0_60 = arith.constant 0 : index
    %c0_61 = arith.constant 0 : index
    %133 = vector.load %arg16[%c0_59, %c0_60, %c0_61] : memref<1x128x32xf32, #tpu.memory_space<vmem>>, vector<1x128x32xf32>
    %134 = vector.shape_cast %133 : vector<1x128x32xf32> to vector<128x32xf32>
    %cst_62 = arith.constant dense<0.000000e+00> : vector<64x32xf32>
    %135 = tpu.matmul %132, %134, %cst_62 {dimension_numbers = #tpu.dot_dimension_numbers<[1], [0], [0], [1], [0, 0, 1, 1], [], []>} : vector<64x128xf32>, vector<128x32xf32>, vector<64x32xf32> -> vector<64x32xf32>
    %c0_63 = arith.constant 0 : index
    %c0_64 = arith.constant 0 : index
    %c0_65 = arith.constant 0 : index
    %136 = vector.load %arg17[%c0_63, %c0_64, %c0_65] : memref<1x1x32xf32, #tpu.memory_space<vmem>>, vector<1x1x32xf32>
    %137 = vector.shape_cast %136 : vector<1x1x32xf32> to vector<1x32xf32>
    %138 = vector.broadcast %137 : vector<1x32xf32> to vector<64x32xf32>
    %139 = arith.addf %135, %138 : vector<64x32xf32>
    %140 = arith.addf %112, %139 : vector<64x32xf32>
    %c0_66 = arith.constant 0 : index
    %c0_67 = arith.constant 0 : index
    %c0_68 = arith.constant 0 : index
    %141 = vector.load %arg18[%c0_66, %c0_67, %c0_68] : memref<1x1x32xf32, #tpu.memory_space<vmem>>, vector<1x1x32xf32>
    %142 = vector.shape_cast %141 : vector<1x1x32xf32> to vector<1x32xf32>
    %c0_69 = arith.constant 0 : index
    %c0_70 = arith.constant 0 : index
    %c0_71 = arith.constant 0 : index
    %143 = vector.load %arg19[%c0_69, %c0_70, %c0_71] : memref<1x1x32xf32, #tpu.memory_space<vmem>>, vector<1x1x32xf32>
    %144 = vector.shape_cast %143 : vector<1x1x32xf32> to vector<1x32xf32>
    %cst_72 = arith.constant dense<0.000000e+00> : vector<64xf32>
    %145 = vector.multi_reduction <add>, %140, %cst_72 [1] : vector<64x32xf32> to vector<64xf32>
    %146 = vector.shape_cast %145 : vector<64xf32> to vector<64x1xf32>
    %cst_73 = arith.constant 3.200000e+01 : f32
    %147 = vector.broadcast %cst_73 : f32 to vector<64x1xf32>
    %148 = arith.divf %146, %147 : vector<64x1xf32>
    %149 = vector.broadcast %148 : vector<64x1xf32> to vector<64x32xf32>
    %150 = arith.subf %140, %149 : vector<64x32xf32>
    %151 = arith.mulf %150, %150 : vector<64x32xf32>
    %cst_74 = arith.constant dense<0.000000e+00> : vector<64xf32>
    %152 = vector.multi_reduction <add>, %151, %cst_74 [1] : vector<64x32xf32> to vector<64xf32>
    %153 = vector.shape_cast %152 : vector<64xf32> to vector<64x1xf32>
    %cst_75 = arith.constant 3.200000e+01 : f32
    %154 = vector.broadcast %cst_75 : f32 to vector<64x1xf32>
    %155 = arith.divf %153, %154 : vector<64x1xf32>
    %cst_76 = arith.constant 9.99999974E-6 : f32
    %156 = vector.broadcast %cst_76 : f32 to vector<64x1xf32>
    %157 = arith.addf %155, %156 : vector<64x1xf32>
    %158 = math.rsqrt %157 : vector<64x1xf32>
    %159 = vector.broadcast %158 : vector<64x1xf32> to vector<64x32xf32>
    %160 = arith.mulf %150, %159 : vector<64x32xf32>
    %161 = vector.broadcast %142 : vector<1x32xf32> to vector<64x32xf32>
    %162 = arith.mulf %160, %161 : vector<64x32xf32>
    %163 = vector.broadcast %144 : vector<1x32xf32> to vector<64x32xf32>
    %164 = arith.addf %162, %163 : vector<64x32xf32>
    %c3_i32 = arith.constant 3 : i32
    %165 = arith.cmpi ne, %arg1, %c3_i32 : i32
    %166 = arith.extui %165 : i1 to i32
    %c0_i32_77 = arith.constant 0 : i32
    %167 = arith.cmpi ne, %166, %c0_i32_77 : i32
    scf.if %167 {
      %c0_80 = arith.constant 0 : index
      %c0_81 = arith.constant 0 : index
      %171 = vector.load %arg20[%c0_80, %c0_81] : memref<64x32xf32, #tpu.memory_space<vmem>>, vector<64x32xf32>
      tpu.vector_store %arg20[%c0_80, %c0_81], %164 {strides = array<i32>} : memref<64x32xf32, #tpu.memory_space<vmem>>, vector<64x32xf32>,
    } else {
    }
    %c3_i32_78 = arith.constant 3 : i32
    %168 = arith.cmpi eq, %arg1, %c3_i32_78 : i32
    %169 = arith.extui %168 : i1 to i32
    %c0_i32_79 = arith.constant 0 : i32
    %170 = arith.cmpi ne, %169, %c0_i32_79 : i32
    scf.if %170 {
      %c0_80 = arith.constant 0 : index
      %c0_81 = arith.constant 0 : index
      %171 = vector.load %arg2[%c0_80, %c0_81] : memref<64x32xf32, #tpu.memory_space<vmem>>, vector<64x32xf32>
      %172 = arith.addf %171, %164 : vector<64x32xf32>
      %c0_82 = arith.constant 0 : index
      %c0_83 = arith.constant 0 : index
      %173 = vector.load %arg20[%c0_82, %c0_83] : memref<64x32xf32, #tpu.memory_space<vmem>>, vector<64x32xf32>
      tpu.vector_store %arg20[%c0_82, %c0_83], %172 {strides = array<i32>} : memref<64x32xf32, #tpu.memory_space<vmem>>, vector<64x32xf32>,
    } else {
    }
    return
  }
  func.func @transform_0(%arg0: i32, %arg1: i32) -> (i32, i32) {
    %c0_i32 = arith.constant 0 : i32
    %c0_i32_0 = arith.constant 0 : i32
    return %arg0, %c0_i32 : i32, i32
  }
  func.func @transform_1(%arg0: i32, %arg1: i32) -> (i32, i32) {
    %c0_i32 = arith.constant 0 : i32
    %c0_i32_0 = arith.constant 0 : i32
    return %arg0, %c0_i32 : i32, i32
  }
  func.func @transform_2(%arg0: i32, %arg1: i32) -> (i32, i32) {
    %c0_i32 = arith.constant 0 : i32
    %c0_i32_0 = arith.constant 0 : i32
    %c0_i32_1 = arith.constant 0 : i32
    return %c0_i32, %c0_i32_0 : i32, i32
  }
  func.func @transform_3(%arg0: i32, %arg1: i32) -> (i32, i32) {
    %c0_i32 = arith.constant 0 : i32
    %c0_i32_0 = arith.constant 0 : i32
    %c0_i32_1 = arith.constant 0 : i32
    return %c0_i32, %c0_i32_0 : i32, i32
  }
  func.func @transform_4(%arg0: i32, %arg1: i32) -> (i32, i32) {
    %c0_i32 = arith.constant 0 : i32
    %c0_i32_0 = arith.constant 0 : i32
    %c0_i32_1 = arith.constant 0 : i32
    return %c0_i32, %c0_i32_0 : i32, i32
  }
  func.func @transform_5(%arg0: i32, %arg1: i32) -> (i32, i32) {
    %c0_i32 = arith.constant 0 : i32
    %c0_i32_0 = arith.constant 0 : i32
    %c0_i32_1 = arith.constant 0 : i32
    return %c0_i32, %c0_i32_0 : i32, i32
  }
  func.func @transform_6(%arg0: i32, %arg1: i32) -> (i32, i32, i32) {
    %c0_i32 = arith.constant 0 : i32
    %c0_i32_0 = arith.constant 0 : i32
    %c0_i32_1 = arith.constant 0 : i32
    return %arg1, %c0_i32, %c0_i32_0 : i32, i32, i32
  }
  func.func @transform_7(%arg0: i32, %arg1: i32) -> (i32, i32, i32) {
    %c0_i32 = arith.constant 0 : i32
    %c0_i32_0 = arith.constant 0 : i32
    %c0_i32_1 = arith.constant 0 : i32
    return %arg1, %c0_i32, %c0_i32_0 : i32, i32, i32
  }
  func.func @transform_8(%arg0: i32, %arg1: i32) -> (i32, i32, i32) {
    %c0_i32 = arith.constant 0 : i32
    %c0_i32_0 = arith.constant 0 : i32
    %c0_i32_1 = arith.constant 0 : i32
    return %arg1, %c0_i32, %c0_i32_0 : i32, i32, i32
  }
  func.func @transform_9(%arg0: i32, %arg1: i32) -> (i32, i32, i32) {
    %c0_i32 = arith.constant 0 : i32
    %c0_i32_0 = arith.constant 0 : i32
    %c0_i32_1 = arith.constant 0 : i32
    return %arg1, %c0_i32, %c0_i32_0 : i32, i32, i32
  }
  func.func @transform_10(%arg0: i32, %arg1: i32) -> (i32, i32, i32) {
    %c0_i32 = arith.constant 0 : i32
    %c0_i32_0 = arith.constant 0 : i32
    %c0_i32_1 = arith.constant 0 : i32
    return %arg1, %c0_i32, %c0_i32_0 : i32, i32, i32
  }
  func.func @transform_11(%arg0: i32, %arg1: i32) -> (i32, i32, i32) {
    %c0_i32 = arith.constant 0 : i32
    %c0_i32_0 = arith.constant 0 : i32
    %c0_i32_1 = arith.constant 0 : i32
    return %arg1, %c0_i32, %c0_i32_0 : i32, i32, i32
  }
  func.func @transform_12(%arg0: i32, %arg1: i32) -> (i32, i32, i32) {
    %c0_i32 = arith.constant 0 : i32
    %c0_i32_0 = arith.constant 0 : i32
    %c0_i32_1 = arith.constant 0 : i32
    return %arg1, %c0_i32, %c0_i32_0 : i32, i32, i32
  }
  func.func @transform_13(%arg0: i32, %arg1: i32) -> (i32, i32, i32) {
    %c0_i32 = arith.constant 0 : i32
    %c0_i32_0 = arith.constant 0 : i32
    %c0_i32_1 = arith.constant 0 : i32
    return %arg1, %c0_i32, %c0_i32_0 : i32, i32, i32
  }
  func.func @transform_14(%arg0: i32, %arg1: i32) -> (i32, i32, i32) {
    %c0_i32 = arith.constant 0 : i32
    %c0_i32_0 = arith.constant 0 : i32
    %c0_i32_1 = arith.constant 0 : i32
    return %arg1, %c0_i32, %c0_i32_0 : i32, i32, i32
  }
  func.func @transform_15(%arg0: i32, %arg1: i32) -> (i32, i32, i32) {
    %c0_i32 = arith.constant 0 : i32
    %c0_i32_0 = arith.constant 0 : i32
    %c0_i32_1 = arith.constant 0 : i32
    return %arg1, %c0_i32, %c0_i32_0 : i32, i32, i32
  }
  func.func @transform_16(%arg0: i32, %arg1: i32) -> (i32, i32, i32) {
    %c0_i32 = arith.constant 0 : i32
    %c0_i32_0 = arith.constant 0 : i32
    %c0_i32_1 = arith.constant 0 : i32
    return %arg1, %c0_i32, %c0_i32_0 : i32, i32, i32
  }
  func.func @transform_17(%arg0: i32, %arg1: i32) -> (i32, i32, i32) {
    %c0_i32 = arith.constant 0 : i32
    %c0_i32_0 = arith.constant 0 : i32
    %c0_i32_1 = arith.constant 0 : i32
    return %arg1, %c0_i32, %c0_i32_0 : i32, i32, i32
  }
  func.func @transform_18(%arg0: i32, %arg1: i32) -> (i32, i32) {
    %c0_i32 = arith.constant 0 : i32
    %c0_i32_0 = arith.constant 0 : i32
    return %arg0, %c0_i32 : i32, i32
  }
}

module attributes {stable_mosaic.version = 11 : i64} {
  func.func @_output_block_kernel(%arg0: memref<32x128xf32, #tpu.memory_space<vmem>>, %arg1: memref<128x32xf32, #tpu.memory_space<vmem>>, %arg2: memref<1x32xf32, #tpu.memory_space<vmem>>, %arg3: memref<16x16xf32, #tpu.memory_space<vmem>>, %arg4: memref<16x16xf32, #tpu.memory_space<vmem>>, %arg5: memref<16x16xf32, #tpu.memory_space<vmem>>, %arg6: memref<1x16xf32, #tpu.memory_space<vmem>>, %arg7: memref<16x8xf32, #tpu.memory_space<vmem>>, %arg8: memref<1x8xf32, #tpu.memory_space<vmem>>, %arg9: memref<32x8xf32, #tpu.memory_space<vmem>>) attributes {dimension_semantics = [], scalar_prefetch = 0 : i64, scratch_operands = 0 : i64, tpu.core_type = #tpu.core_type<tc>} {
    %c0 = arith.constant 0 : index
    %c0_0 = arith.constant 0 : index
    %0 = vector.load %arg0[%c0, %c0_0] : memref<32x128xf32, #tpu.memory_space<vmem>>, vector<32x128xf32>
    %c0_1 = arith.constant 0 : index
    %c0_2 = arith.constant 0 : index
    %1 = vector.load %arg1[%c0_1, %c0_2] : memref<128x32xf32, #tpu.memory_space<vmem>>, vector<128x32xf32>
    %cst = arith.constant dense<0.000000e+00> : vector<32x32xf32>
    %2 = tpu.matmul %0, %1, %cst {dimension_numbers = #tpu.dot_dimension_numbers<[1], [0], [0], [1], [0, 0, 1, 1], [], []>} : vector<32x128xf32>, vector<128x32xf32>, vector<32x32xf32> -> vector<32x32xf32>
    %c0_3 = arith.constant 0 : index
    %c0_4 = arith.constant 0 : index
    %3 = vector.load %arg2[%c0_3, %c0_4] : memref<1x32xf32, #tpu.memory_space<vmem>>, vector<1x32xf32>
    %4 = vector.broadcast %3 : vector<1x32xf32> to vector<32x32xf32>
    %5 = arith.addf %2, %4 : vector<32x32xf32>
    %6 = vector.extract_strided_slice %5 {offsets = [0, 0], sizes = [32, 16], strides = [1, 1]} : vector<32x32xf32> to vector<32x16xf32>
    %7 = vector.extract_strided_slice %5 {offsets = [0, 16], sizes = [32, 16], strides = [1, 1]} : vector<32x32xf32> to vector<32x16xf32>
    %cst_5 = arith.constant 5.000000e-01 : f32
    %8 = vector.broadcast %cst_5 : f32 to vector<32x16xf32>
    %9 = arith.mulf %8, %7 : vector<32x16xf32>
    %10 = math.tanh %9 : vector<32x16xf32>
    %cst_6 = arith.constant 1.000000e+00 : f32
    %11 = vector.broadcast %cst_6 : f32 to vector<32x16xf32>
    %12 = arith.addf %10, %11 : vector<32x16xf32>
    %cst_7 = arith.constant 5.000000e-01 : f32
    %13 = vector.broadcast %cst_7 : f32 to vector<32x16xf32>
    %14 = arith.mulf %13, %12 : vector<32x16xf32>
    %15 = arith.mulf %6, %14 : vector<32x16xf32>
    %16 = vector.shape_cast %15 : vector<32x16xf32> to vector<2x16x16xf32>
    %cst_8 = arith.constant dense<0.000000e+00> : vector<2x16xf32>
    %17 = vector.multi_reduction <add>, %16, %cst_8 [2] : vector<2x16x16xf32> to vector<2x16xf32>
    %18 = vector.shape_cast %17 : vector<2x16xf32> to vector<2x16x1xf32>
    %cst_9 = arith.constant dense<0.000000e+00> : vector<2x1xf32>
    %19 = vector.multi_reduction <add>, %18, %cst_9 [1] : vector<2x16x1xf32> to vector<2x1xf32>
    %20 = vector.shape_cast %19 : vector<2x1xf32> to vector<2x1x1xf32>
    %cst_10 = arith.constant 3.906250e-03 : f32
    %21 = vector.broadcast %cst_10 : f32 to vector<2x1x1xf32>
    %22 = arith.mulf %20, %21 : vector<2x1x1xf32>
    %23 = vector.broadcast %22 : vector<2x1x1xf32> to vector<2x16x16xf32>
    %24 = arith.subf %16, %23 : vector<2x16x16xf32>
    %25 = arith.mulf %24, %24 : vector<2x16x16xf32>
    %cst_11 = arith.constant dense<0.000000e+00> : vector<2x16xf32>
    %26 = vector.multi_reduction <add>, %25, %cst_11 [2] : vector<2x16x16xf32> to vector<2x16xf32>
    %27 = vector.shape_cast %26 : vector<2x16xf32> to vector<2x16x1xf32>
    %cst_12 = arith.constant dense<0.000000e+00> : vector<2x1xf32>
    %28 = vector.multi_reduction <add>, %27, %cst_12 [1] : vector<2x16x1xf32> to vector<2x1xf32>
    %29 = vector.shape_cast %28 : vector<2x1xf32> to vector<2x1x1xf32>
    %cst_13 = arith.constant 3.906250e-03 : f32
    %30 = vector.broadcast %cst_13 : f32 to vector<2x1x1xf32>
    %31 = arith.mulf %29, %30 : vector<2x1x1xf32>
    %cst_14 = arith.constant 9.99999974E-6 : f32
    %32 = vector.broadcast %cst_14 : f32 to vector<2x1x1xf32>
    %33 = arith.addf %31, %32 : vector<2x1x1xf32>
    %34 = math.rsqrt %33 : vector<2x1x1xf32>
    %35 = vector.broadcast %34 : vector<2x1x1xf32> to vector<2x16x16xf32>
    %36 = arith.mulf %24, %35 : vector<2x16x16xf32>
    %c0_15 = arith.constant 0 : index
    %c0_16 = arith.constant 0 : index
    %37 = vector.load %arg3[%c0_15, %c0_16] : memref<16x16xf32, #tpu.memory_space<vmem>>, vector<16x16xf32>
    %38 = vector.shape_cast %37 : vector<16x16xf32> to vector<1x16x16xf32>
    %39 = vector.broadcast %38 : vector<1x16x16xf32> to vector<2x16x16xf32>
    %40 = arith.mulf %36, %39 : vector<2x16x16xf32>
    %c0_17 = arith.constant 0 : index
    %c0_18 = arith.constant 0 : index
    %41 = vector.load %arg4[%c0_17, %c0_18] : memref<16x16xf32, #tpu.memory_space<vmem>>, vector<16x16xf32>
    %42 = vector.shape_cast %41 : vector<16x16xf32> to vector<1x16x16xf32>
    %43 = vector.broadcast %42 : vector<1x16x16xf32> to vector<2x16x16xf32>
    %44 = arith.addf %40, %43 : vector<2x16x16xf32>
    %45 = vector.shape_cast %44 : vector<2x16x16xf32> to vector<32x16xf32>
    %c0_19 = arith.constant 0 : index
    %c0_20 = arith.constant 0 : index
    %46 = vector.load %arg5[%c0_19, %c0_20] : memref<16x16xf32, #tpu.memory_space<vmem>>, vector<16x16xf32>
    %cst_21 = arith.constant dense<0.000000e+00> : vector<32x16xf32>
    %47 = tpu.matmul %45, %46, %cst_21 {dimension_numbers = #tpu.dot_dimension_numbers<[1], [0], [0], [1], [0, 0, 1, 1], [], []>} : vector<32x16xf32>, vector<16x16xf32>, vector<32x16xf32> -> vector<32x16xf32>
    %c0_22 = arith.constant 0 : index
    %c0_23 = arith.constant 0 : index
    %48 = vector.load %arg6[%c0_22, %c0_23] : memref<1x16xf32, #tpu.memory_space<vmem>>, vector<1x16xf32>
    %49 = vector.broadcast %48 : vector<1x16xf32> to vector<32x16xf32>
    %50 = arith.addf %47, %49 : vector<32x16xf32>
    %cst_24 = arith.constant 0.000000e+00 : f32
    %51 = vector.broadcast %cst_24 : f32 to vector<32x16xf32>
    %52 = arith.maximumf %50, %51 : vector<32x16xf32>
    %c0_25 = arith.constant 0 : index
    %c0_26 = arith.constant 0 : index
    %53 = vector.load %arg7[%c0_25, %c0_26] : memref<16x8xf32, #tpu.memory_space<vmem>>, vector<16x8xf32>
    %cst_27 = arith.constant dense<0.000000e+00> : vector<32x8xf32>
    %54 = tpu.matmul %52, %53, %cst_27 {dimension_numbers = #tpu.dot_dimension_numbers<[1], [0], [0], [1], [0, 0, 1, 1], [], []>} : vector<32x16xf32>, vector<16x8xf32>, vector<32x8xf32> -> vector<32x8xf32>
    %c0_28 = arith.constant 0 : index
    %c0_29 = arith.constant 0 : index
    %55 = vector.load %arg8[%c0_28, %c0_29] : memref<1x8xf32, #tpu.memory_space<vmem>>, vector<1x8xf32>
    %56 = vector.broadcast %55 : vector<1x8xf32> to vector<32x8xf32>
    %57 = arith.addf %54, %56 : vector<32x8xf32>
    %c0_30 = arith.constant 0 : index
    %c0_31 = arith.constant 0 : index
    %58 = vector.load %arg9[%c0_30, %c0_31] : memref<32x8xf32, #tpu.memory_space<vmem>>, vector<32x8xf32>
    tpu.vector_store %arg9[%c0_30, %c0_31], %57 {strides = array<i32>} : memref<32x8xf32, #tpu.memory_space<vmem>>, vector<32x8xf32>,
    return
  }
}

module attributes {stable_mosaic.version = 11 : i64} {
  func.func @_mha_tail_kernel(%arg0: memref<32x8xf32, #tpu.memory_space<vmem>>, %arg1: memref<32x1xf32, #tpu.memory_space<vmem>>, %arg2: memref<32x32xf32, #tpu.memory_space<vmem>>, %arg3: memref<8x24xf32, #tpu.memory_space<vmem>>, %arg4: memref<1x24xf32, #tpu.memory_space<vmem>>, %arg5: memref<8x8xf32, #tpu.memory_space<vmem>>, %arg6: memref<1x8xf32, #tpu.memory_space<vmem>>, %arg7: memref<8x8xf32, #tpu.memory_space<vmem>>, %arg8: memref<1x8xf32, #tpu.memory_space<vmem>>, %arg9: memref<1x8xf32, #tpu.memory_space<vmem>>, %arg10: memref<1x8xf32, #tpu.memory_space<vmem>>, %arg11: memref<8x1xf32, #tpu.memory_space<vmem>>, %arg12: memref<1x1xf32, #tpu.memory_space<vmem>>, %arg13: memref<8x32xf32, #tpu.memory_space<vmem>>, %arg14: memref<1x32xf32, #tpu.memory_space<vmem>>, %arg15: memref<1x32xf32, #tpu.memory_space<vmem>>, %arg16: memref<1x32xf32, #tpu.memory_space<vmem>>, %arg17: memref<32x16xf32, #tpu.memory_space<vmem>>, %arg18: memref<1x16xf32, #tpu.memory_space<vmem>>, %arg19: memref<1x16xf32, #tpu.memory_space<vmem>>, %arg20: memref<1x16xf32, #tpu.memory_space<vmem>>, %arg21: memref<16x1xf32, #tpu.memory_space<vmem>>, %arg22: memref<1x1xf32, #tpu.memory_space<vmem>>, %arg23: memref<32x1xf32, #tpu.memory_space<vmem>>) attributes {dimension_semantics = [], scalar_prefetch = 0 : i64, scratch_operands = 0 : i64, tpu.core_type = #tpu.core_type<tc>} {
    %c0 = arith.constant 0 : index
    %c0_0 = arith.constant 0 : index
    %0 = vector.load %arg0[%c0, %c0_0] : memref<32x8xf32, #tpu.memory_space<vmem>>, vector<32x8xf32>
    %c0_1 = arith.constant 0 : index
    %c0_2 = arith.constant 0 : index
    %1 = vector.load %arg2[%c0_1, %c0_2] : memref<32x32xf32, #tpu.memory_space<vmem>>, vector<32x32xf32>
    %c0_3 = arith.constant 0 : index
    %c0_4 = arith.constant 0 : index
    %2 = vector.load %arg3[%c0_3, %c0_4] : memref<8x24xf32, #tpu.memory_space<vmem>>, vector<8x24xf32>
    %c0_5 = arith.constant 0 : index
    %c0_6 = arith.constant 0 : index
    %3 = vector.load %arg4[%c0_5, %c0_6] : memref<1x24xf32, #tpu.memory_space<vmem>>, vector<1x24xf32>
    %c0_7 = arith.constant 0 : index
    %c0_8 = arith.constant 0 : index
    %4 = vector.load %arg5[%c0_7, %c0_8] : memref<8x8xf32, #tpu.memory_space<vmem>>, vector<8x8xf32>
    %c0_9 = arith.constant 0 : index
    %c0_10 = arith.constant 0 : index
    %5 = vector.load %arg6[%c0_9, %c0_10] : memref<1x8xf32, #tpu.memory_space<vmem>>, vector<1x8xf32>
    %cst = arith.constant dense<0.000000e+00> : vector<32x24xf32>
    %6 = tpu.matmul %0, %2, %cst {dimension_numbers = #tpu.dot_dimension_numbers<[1], [0], [0], [1], [0, 0, 1, 1], [], []>} : vector<32x8xf32>, vector<8x24xf32>, vector<32x24xf32> -> vector<32x24xf32>
    %7 = vector.broadcast %3 : vector<1x24xf32> to vector<32x24xf32>
    %8 = arith.addf %6, %7 : vector<32x24xf32>
    %9 = vector.extract_strided_slice %8 {offsets = [0, 0], sizes = [32, 2], strides = [1, 1]} : vector<32x24xf32> to vector<32x2xf32>
    %cst_11 = arith.constant 0.707106769 : f32
    %10 = vector.broadcast %cst_11 : f32 to vector<32x2xf32>
    %11 = arith.mulf %9, %10 : vector<32x2xf32>
    %12 = vector.extract_strided_slice %8 {offsets = [0, 8], sizes = [32, 2], strides = [1, 1]} : vector<32x24xf32> to vector<32x2xf32>
    %13 = vector.extract_strided_slice %8 {offsets = [0, 16], sizes = [32, 2], strides = [1, 1]} : vector<32x24xf32> to vector<32x2xf32>
    %cst_12 = arith.constant dense<0.000000e+00> : vector<32x32xf32>
    %14 = tpu.matmul %11, %12, %cst_12 {dimension_numbers = #tpu.dot_dimension_numbers<[1], [1], [0], [0], [0, 0, 1, 0], [], []>} : vector<32x2xf32>, vector<32x2xf32>, vector<32x32xf32> -> vector<32x32xf32>
    %15 = arith.addf %14, %1 : vector<32x32xf32>
    %cst_13 = arith.constant dense<0xFF800000> : vector<32xf32>
    %16 = vector.multi_reduction <maximumf>, %15, %cst_13 [1] : vector<32x32xf32> to vector<32xf32>
    %17 = vector.shape_cast %16 : vector<32xf32> to vector<32x1xf32>
    %18 = vector.broadcast %17 : vector<32x1xf32> to vector<32x32xf32>
    %19 = arith.subf %15, %18 : vector<32x32xf32>
    %20 = math.exp %19 : vector<32x32xf32>
    %cst_14 = arith.constant dense<0.000000e+00> : vector<32xf32>
    %21 = vector.multi_reduction <add>, %20, %cst_14 [1] : vector<32x32xf32> to vector<32xf32>
    %22 = vector.shape_cast %21 : vector<32xf32> to vector<32x1xf32>
    %cst_15 = arith.constant dense<0.000000e+00> : vector<32x2xf32>
    %23 = tpu.matmul %20, %13, %cst_15 {dimension_numbers = #tpu.dot_dimension_numbers<[1], [0], [0], [1], [0, 0, 1, 1], [], []>} : vector<32x32xf32>, vector<32x2xf32>, vector<32x2xf32> -> vector<32x2xf32>
    %24 = vector.broadcast %22 : vector<32x1xf32> to vector<32x2xf32>
    %25 = arith.divf %23, %24 : vector<32x2xf32>
    %26 = vector.extract_strided_slice %8 {offsets = [0, 2], sizes = [32, 2], strides = [1, 1]} : vector<32x24xf32> to vector<32x2xf32>
    %cst_16 = arith.constant 0.707106769 : f32
    %27 = vector.broadcast %cst_16 : f32 to vector<32x2xf32>
    %28 = arith.mulf %26, %27 : vector<32x2xf32>
    %29 = vector.extract_strided_slice %8 {offsets = [0, 10], sizes = [32, 2], strides = [1, 1]} : vector<32x24xf32> to vector<32x2xf32>
    %30 = vector.extract_strided_slice %8 {offsets = [0, 18], sizes = [32, 2], strides = [1, 1]} : vector<32x24xf32> to vector<32x2xf32>
    %cst_17 = arith.constant dense<0.000000e+00> : vector<32x32xf32>
    %31 = tpu.matmul %28, %29, %cst_17 {dimension_numbers = #tpu.dot_dimension_numbers<[1], [1], [0], [0], [0, 0, 1, 0], [], []>} : vector<32x2xf32>, vector<32x2xf32>, vector<32x32xf32> -> vector<32x32xf32>
    %32 = arith.addf %31, %1 : vector<32x32xf32>
    %cst_18 = arith.constant dense<0xFF800000> : vector<32xf32>
    %33 = vector.multi_reduction <maximumf>, %32, %cst_18 [1] : vector<32x32xf32> to vector<32xf32>
    %34 = vector.shape_cast %33 : vector<32xf32> to vector<32x1xf32>
    %35 = vector.broadcast %34 : vector<32x1xf32> to vector<32x32xf32>
    %36 = arith.subf %32, %35 : vector<32x32xf32>
    %37 = math.exp %36 : vector<32x32xf32>
    %cst_19 = arith.constant dense<0.000000e+00> : vector<32xf32>
    %38 = vector.multi_reduction <add>, %37, %cst_19 [1] : vector<32x32xf32> to vector<32xf32>
    %39 = vector.shape_cast %38 : vector<32xf32> to vector<32x1xf32>
    %cst_20 = arith.constant dense<0.000000e+00> : vector<32x2xf32>
    %40 = tpu.matmul %37, %30, %cst_20 {dimension_numbers = #tpu.dot_dimension_numbers<[1], [0], [0], [1], [0, 0, 1, 1], [], []>} : vector<32x32xf32>, vector<32x2xf32>, vector<32x2xf32> -> vector<32x2xf32>
    %41 = vector.broadcast %39 : vector<32x1xf32> to vector<32x2xf32>
    %42 = arith.divf %40, %41 : vector<32x2xf32>
    %43 = vector.extract_strided_slice %8 {offsets = [0, 4], sizes = [32, 2], strides = [1, 1]} : vector<32x24xf32> to vector<32x2xf32>
    %cst_21 = arith.constant 0.707106769 : f32
    %44 = vector.broadcast %cst_21 : f32 to vector<32x2xf32>
    %45 = arith.mulf %43, %44 : vector<32x2xf32>
    %46 = vector.extract_strided_slice %8 {offsets = [0, 12], sizes = [32, 2], strides = [1, 1]} : vector<32x24xf32> to vector<32x2xf32>
    %47 = vector.extract_strided_slice %8 {offsets = [0, 20], sizes = [32, 2], strides = [1, 1]} : vector<32x24xf32> to vector<32x2xf32>
    %cst_22 = arith.constant dense<0.000000e+00> : vector<32x32xf32>
    %48 = tpu.matmul %45, %46, %cst_22 {dimension_numbers = #tpu.dot_dimension_numbers<[1], [1], [0], [0], [0, 0, 1, 0], [], []>} : vector<32x2xf32>, vector<32x2xf32>, vector<32x32xf32> -> vector<32x32xf32>
    %49 = arith.addf %48, %1 : vector<32x32xf32>
    %cst_23 = arith.constant dense<0xFF800000> : vector<32xf32>
    %50 = vector.multi_reduction <maximumf>, %49, %cst_23 [1] : vector<32x32xf32> to vector<32xf32>
    %51 = vector.shape_cast %50 : vector<32xf32> to vector<32x1xf32>
    %52 = vector.broadcast %51 : vector<32x1xf32> to vector<32x32xf32>
    %53 = arith.subf %49, %52 : vector<32x32xf32>
    %54 = math.exp %53 : vector<32x32xf32>
    %cst_24 = arith.constant dense<0.000000e+00> : vector<32xf32>
    %55 = vector.multi_reduction <add>, %54, %cst_24 [1] : vector<32x32xf32> to vector<32xf32>
    %56 = vector.shape_cast %55 : vector<32xf32> to vector<32x1xf32>
    %cst_25 = arith.constant dense<0.000000e+00> : vector<32x2xf32>
    %57 = tpu.matmul %54, %47, %cst_25 {dimension_numbers = #tpu.dot_dimension_numbers<[1], [0], [0], [1], [0, 0, 1, 1], [], []>} : vector<32x32xf32>, vector<32x2xf32>, vector<32x2xf32> -> vector<32x2xf32>
    %58 = vector.broadcast %56 : vector<32x1xf32> to vector<32x2xf32>
    %59 = arith.divf %57, %58 : vector<32x2xf32>
    %60 = vector.extract_strided_slice %8 {offsets = [0, 6], sizes = [32, 2], strides = [1, 1]} : vector<32x24xf32> to vector<32x2xf32>
    %cst_26 = arith.constant 0.707106769 : f32
    %61 = vector.broadcast %cst_26 : f32 to vector<32x2xf32>
    %62 = arith.mulf %60, %61 : vector<32x2xf32>
    %63 = vector.extract_strided_slice %8 {offsets = [0, 14], sizes = [32, 2], strides = [1, 1]} : vector<32x24xf32> to vector<32x2xf32>
    %64 = vector.extract_strided_slice %8 {offsets = [0, 22], sizes = [32, 2], strides = [1, 1]} : vector<32x24xf32> to vector<32x2xf32>
    %cst_27 = arith.constant dense<0.000000e+00> : vector<32x32xf32>
    %65 = tpu.matmul %62, %63, %cst_27 {dimension_numbers = #tpu.dot_dimension_numbers<[1], [1], [0], [0], [0, 0, 1, 0], [], []>} : vector<32x2xf32>, vector<32x2xf32>, vector<32x32xf32> -> vector<32x32xf32>
    %66 = arith.addf %65, %1 : vector<32x32xf32>
    %cst_28 = arith.constant dense<0xFF800000> : vector<32xf32>
    %67 = vector.multi_reduction <maximumf>, %66, %cst_28 [1] : vector<32x32xf32> to vector<32xf32>
    %68 = vector.shape_cast %67 : vector<32xf32> to vector<32x1xf32>
    %69 = vector.broadcast %68 : vector<32x1xf32> to vector<32x32xf32>
    %70 = arith.subf %66, %69 : vector<32x32xf32>
    %71 = math.exp %70 : vector<32x32xf32>
    %cst_29 = arith.constant dense<0.000000e+00> : vector<32xf32>
    %72 = vector.multi_reduction <add>, %71, %cst_29 [1] : vector<32x32xf32> to vector<32xf32>
    %73 = vector.shape_cast %72 : vector<32xf32> to vector<32x1xf32>
    %cst_30 = arith.constant dense<0.000000e+00> : vector<32x2xf32>
    %74 = tpu.matmul %71, %64, %cst_30 {dimension_numbers = #tpu.dot_dimension_numbers<[1], [0], [0], [1], [0, 0, 1, 1], [], []>} : vector<32x32xf32>, vector<32x2xf32>, vector<32x2xf32> -> vector<32x2xf32>
    %75 = vector.broadcast %73 : vector<32x1xf32> to vector<32x2xf32>
    %76 = arith.divf %74, %75 : vector<32x2xf32>
    %77 = tpu.concatenate %25, %42, %59, %76 in 1 : vector<32x2xf32>, vector<32x2xf32>, vector<32x2xf32>, vector<32x2xf32> -> vector<32x8xf32>
    %cst_31 = arith.constant dense<0.000000e+00> : vector<32x8xf32>
    %78 = tpu.matmul %77, %4, %cst_31 {dimension_numbers = #tpu.dot_dimension_numbers<[1], [0], [0], [1], [0, 0, 1, 1], [], []>} : vector<32x8xf32>, vector<8x8xf32>, vector<32x8xf32> -> vector<32x8xf32>
    %79 = vector.broadcast %5 : vector<1x8xf32> to vector<32x8xf32>
    %80 = arith.addf %78, %79 : vector<32x8xf32>
    %c0_32 = arith.constant 0 : index
    %c0_33 = arith.constant 0 : index
    %81 = vector.load %arg7[%c0_32, %c0_33] : memref<8x8xf32, #tpu.memory_space<vmem>>, vector<8x8xf32>
    %cst_34 = arith.constant dense<0.000000e+00> : vector<32x8xf32>
    %82 = tpu.matmul %0, %81, %cst_34 {dimension_numbers = #tpu.dot_dimension_numbers<[1], [0], [0], [1], [0, 0, 1, 1], [], []>} : vector<32x8xf32>, vector<8x8xf32>, vector<32x8xf32> -> vector<32x8xf32>
    %c0_35 = arith.constant 0 : index
    %c0_36 = arith.constant 0 : index
    %83 = vector.load %arg8[%c0_35, %c0_36] : memref<1x8xf32, #tpu.memory_space<vmem>>, vector<1x8xf32>
    %84 = vector.broadcast %83 : vector<1x8xf32> to vector<32x8xf32>
    %85 = arith.addf %82, %84 : vector<32x8xf32>
    %c0_37 = arith.constant 0 : index
    %c0_38 = arith.constant 0 : index
    %86 = vector.load %arg9[%c0_37, %c0_38] : memref<1x8xf32, #tpu.memory_space<vmem>>, vector<1x8xf32>
    %c0_39 = arith.constant 0 : index
    %c0_40 = arith.constant 0 : index
    %87 = vector.load %arg10[%c0_39, %c0_40] : memref<1x8xf32, #tpu.memory_space<vmem>>, vector<1x8xf32>
    %cst_41 = arith.constant dense<0.000000e+00> : vector<32xf32>
    %88 = vector.multi_reduction <add>, %85, %cst_41 [1] : vector<32x8xf32> to vector<32xf32>
    %89 = vector.shape_cast %88 : vector<32xf32> to vector<32x1xf32>
    %cst_42 = arith.constant 8.000000e+00 : f32
    %90 = vector.broadcast %cst_42 : f32 to vector<32x1xf32>
    %91 = arith.divf %89, %90 : vector<32x1xf32>
    %92 = vector.broadcast %91 : vector<32x1xf32> to vector<32x8xf32>
    %93 = arith.subf %85, %92 : vector<32x8xf32>
    %94 = arith.mulf %93, %93 : vector<32x8xf32>
    %cst_43 = arith.constant dense<0.000000e+00> : vector<32xf32>
    %95 = vector.multi_reduction <add>, %94, %cst_43 [1] : vector<32x8xf32> to vector<32xf32>
    %96 = vector.shape_cast %95 : vector<32xf32> to vector<32x1xf32>
    %cst_44 = arith.constant 8.000000e+00 : f32
    %97 = vector.broadcast %cst_44 : f32 to vector<32x1xf32>
    %98 = arith.divf %96, %97 : vector<32x1xf32>
    %cst_45 = arith.constant 9.99999974E-6 : f32
    %99 = vector.broadcast %cst_45 : f32 to vector<32x1xf32>
    %100 = arith.addf %98, %99 : vector<32x1xf32>
    %101 = math.rsqrt %100 : vector<32x1xf32>
    %102 = vector.broadcast %101 : vector<32x1xf32> to vector<32x8xf32>
    %103 = arith.mulf %93, %102 : vector<32x8xf32>
    %104 = vector.broadcast %86 : vector<1x8xf32> to vector<32x8xf32>
    %105 = arith.mulf %103, %104 : vector<32x8xf32>
    %106 = vector.broadcast %87 : vector<1x8xf32> to vector<32x8xf32>
    %107 = arith.addf %105, %106 : vector<32x8xf32>
    %cst_46 = arith.constant 0.000000e+00 : f32
    %108 = vector.broadcast %cst_46 : f32 to vector<32x8xf32>
    %109 = arith.cmpf ogt, %107, %108 : vector<32x8xf32>
    %cst_47 = arith.constant 0.000000e+00 : f32
    %110 = vector.broadcast %cst_47 : f32 to vector<32x8xf32>
    %111 = arith.minimumf %107, %110 : vector<32x8xf32>
    %112 = math.exp %111 : vector<32x8xf32>
    %cst_48 = arith.constant 1.000000e+00 : f32
    %113 = vector.broadcast %cst_48 : f32 to vector<32x8xf32>
    %114 = arith.subf %112, %113 : vector<32x8xf32>
    %115 = arith.select %109, %107, %114 : vector<32x8xi1>, vector<32x8xf32>
    %c0_49 = arith.constant 0 : index
    %c0_50 = arith.constant 0 : index
    %116 = vector.load %arg11[%c0_49, %c0_50] : memref<8x1xf32, #tpu.memory_space<vmem>>, vector<8x1xf32>
    %cst_51 = arith.constant dense<0.000000e+00> : vector<32x1xf32>
    %117 = tpu.matmul %115, %116, %cst_51 {dimension_numbers = #tpu.dot_dimension_numbers<[1], [0], [0], [1], [0, 0, 1, 1], [], []>} : vector<32x8xf32>, vector<8x1xf32>, vector<32x1xf32> -> vector<32x1xf32>
    %c0_52 = arith.constant 0 : index
    %c0_53 = arith.constant 0 : index
    %118 = vector.load %arg12[%c0_52, %c0_53] : memref<1x1xf32, #tpu.memory_space<vmem>>, vector<1x1xf32>
    %119 = vector.broadcast %118 : vector<1x1xf32> to vector<32x1xf32>
    %120 = arith.addf %117, %119 : vector<32x1xf32>
    %cst_54 = arith.constant 5.000000e-01 : f32
    %121 = vector.broadcast %cst_54 : f32 to vector<32x1xf32>
    %122 = arith.mulf %121, %120 : vector<32x1xf32>
    %123 = math.tanh %122 : vector<32x1xf32>
    %cst_55 = arith.constant 1.000000e+00 : f32
    %124 = vector.broadcast %cst_55 : f32 to vector<32x1xf32>
    %125 = arith.addf %123, %124 : vector<32x1xf32>
    %cst_56 = arith.constant 5.000000e-01 : f32
    %126 = vector.broadcast %cst_56 : f32 to vector<32x1xf32>
    %127 = arith.mulf %126, %125 : vector<32x1xf32>
    %c0_57 = arith.constant 0 : index
    %c0_58 = arith.constant 0 : index
    %128 = vector.load %arg1[%c0_57, %c0_58] : memref<32x1xf32, #tpu.memory_space<vmem>>, vector<32x1xf32>
    %129 = arith.mulf %127, %128 : vector<32x1xf32>
    %130 = vector.broadcast %129 : vector<32x1xf32> to vector<32x8xf32>
    %131 = arith.mulf %0, %130 : vector<32x8xf32>
    %cst_59 = arith.constant 4.000000e-01 : f32
    %132 = vector.broadcast %cst_59 : f32 to vector<32x8xf32>
    %133 = arith.mulf %132, %80 : vector<32x8xf32>
    %134 = arith.addf %131, %133 : vector<32x8xf32>
    %c0_60 = arith.constant 0 : index
    %c0_61 = arith.constant 0 : index
    %135 = vector.load %arg13[%c0_60, %c0_61] : memref<8x32xf32, #tpu.memory_space<vmem>>, vector<8x32xf32>
    %cst_62 = arith.constant dense<0.000000e+00> : vector<32x32xf32>
    %136 = tpu.matmul %134, %135, %cst_62 {dimension_numbers = #tpu.dot_dimension_numbers<[1], [0], [0], [1], [0, 0, 1, 1], [], []>} : vector<32x8xf32>, vector<8x32xf32>, vector<32x32xf32> -> vector<32x32xf32>
    %c0_63 = arith.constant 0 : index
    %c0_64 = arith.constant 0 : index
    %137 = vector.load %arg14[%c0_63, %c0_64] : memref<1x32xf32, #tpu.memory_space<vmem>>, vector<1x32xf32>
    %138 = vector.broadcast %137 : vector<1x32xf32> to vector<32x32xf32>
    %139 = arith.addf %136, %138 : vector<32x32xf32>
    %c0_65 = arith.constant 0 : index
    %c0_66 = arith.constant 0 : index
    %140 = vector.load %arg15[%c0_65, %c0_66] : memref<1x32xf32, #tpu.memory_space<vmem>>, vector<1x32xf32>
    %c0_67 = arith.constant 0 : index
    %c0_68 = arith.constant 0 : index
    %141 = vector.load %arg16[%c0_67, %c0_68] : memref<1x32xf32, #tpu.memory_space<vmem>>, vector<1x32xf32>
    %cst_69 = arith.constant dense<0.000000e+00> : vector<32xf32>
    %142 = vector.multi_reduction <add>, %139, %cst_69 [1] : vector<32x32xf32> to vector<32xf32>
    %143 = vector.shape_cast %142 : vector<32xf32> to vector<32x1xf32>
    %cst_70 = arith.constant 3.200000e+01 : f32
    %144 = vector.broadcast %cst_70 : f32 to vector<32x1xf32>
    %145 = arith.divf %143, %144 : vector<32x1xf32>
    %146 = vector.broadcast %145 : vector<32x1xf32> to vector<32x32xf32>
    %147 = arith.subf %139, %146 : vector<32x32xf32>
    %148 = arith.mulf %147, %147 : vector<32x32xf32>
    %cst_71 = arith.constant dense<0.000000e+00> : vector<32xf32>
    %149 = vector.multi_reduction <add>, %148, %cst_71 [1] : vector<32x32xf32> to vector<32xf32>
    %150 = vector.shape_cast %149 : vector<32xf32> to vector<32x1xf32>
    %cst_72 = arith.constant 3.200000e+01 : f32
    %151 = vector.broadcast %cst_72 : f32 to vector<32x1xf32>
    %152 = arith.divf %150, %151 : vector<32x1xf32>
    %cst_73 = arith.constant 9.99999974E-6 : f32
    %153 = vector.broadcast %cst_73 : f32 to vector<32x1xf32>
    %154 = arith.addf %152, %153 : vector<32x1xf32>
    %155 = math.rsqrt %154 : vector<32x1xf32>
    %156 = vector.broadcast %155 : vector<32x1xf32> to vector<32x32xf32>
    %157 = arith.mulf %147, %156 : vector<32x32xf32>
    %158 = vector.broadcast %140 : vector<1x32xf32> to vector<32x32xf32>
    %159 = arith.mulf %157, %158 : vector<32x32xf32>
    %160 = vector.broadcast %141 : vector<1x32xf32> to vector<32x32xf32>
    %161 = arith.addf %159, %160 : vector<32x32xf32>
    %cst_74 = arith.constant 0.000000e+00 : f32
    %162 = vector.broadcast %cst_74 : f32 to vector<32x32xf32>
    %163 = arith.cmpf ogt, %161, %162 : vector<32x32xf32>
    %cst_75 = arith.constant 0.000000e+00 : f32
    %164 = vector.broadcast %cst_75 : f32 to vector<32x32xf32>
    %165 = arith.minimumf %161, %164 : vector<32x32xf32>
    %166 = math.exp %165 : vector<32x32xf32>
    %cst_76 = arith.constant 1.000000e+00 : f32
    %167 = vector.broadcast %cst_76 : f32 to vector<32x32xf32>
    %168 = arith.subf %166, %167 : vector<32x32xf32>
    %169 = arith.select %163, %161, %168 : vector<32x32xi1>, vector<32x32xf32>
    %c0_77 = arith.constant 0 : index
    %c0_78 = arith.constant 0 : index
    %170 = vector.load %arg17[%c0_77, %c0_78] : memref<32x16xf32, #tpu.memory_space<vmem>>, vector<32x16xf32>
    %cst_79 = arith.constant dense<0.000000e+00> : vector<32x16xf32>
    %171 = tpu.matmul %169, %170, %cst_79 {dimension_numbers = #tpu.dot_dimension_numbers<[1], [0], [0], [1], [0, 0, 1, 1], [], []>} : vector<32x32xf32>, vector<32x16xf32>, vector<32x16xf32> -> vector<32x16xf32>
    %c0_80 = arith.constant 0 : index
    %c0_81 = arith.constant 0 : index
    %172 = vector.load %arg18[%c0_80, %c0_81] : memref<1x16xf32, #tpu.memory_space<vmem>>, vector<1x16xf32>
    %173 = vector.broadcast %172 : vector<1x16xf32> to vector<32x16xf32>
    %174 = arith.addf %171, %173 : vector<32x16xf32>
    %c0_82 = arith.constant 0 : index
    %c0_83 = arith.constant 0 : index
    %175 = vector.load %arg19[%c0_82, %c0_83] : memref<1x16xf32, #tpu.memory_space<vmem>>, vector<1x16xf32>
    %c0_84 = arith.constant 0 : index
    %c0_85 = arith.constant 0 : index
    %176 = vector.load %arg20[%c0_84, %c0_85] : memref<1x16xf32, #tpu.memory_space<vmem>>, vector<1x16xf32>
    %cst_86 = arith.constant dense<0.000000e+00> : vector<32xf32>
    %177 = vector.multi_reduction <add>, %174, %cst_86 [1] : vector<32x16xf32> to vector<32xf32>
    %178 = vector.shape_cast %177 : vector<32xf32> to vector<32x1xf32>
    %cst_87 = arith.constant 1.600000e+01 : f32
    %179 = vector.broadcast %cst_87 : f32 to vector<32x1xf32>
    %180 = arith.divf %178, %179 : vector<32x1xf32>
    %181 = vector.broadcast %180 : vector<32x1xf32> to vector<32x16xf32>
    %182 = arith.subf %174, %181 : vector<32x16xf32>
    %183 = arith.mulf %182, %182 : vector<32x16xf32>
    %cst_88 = arith.constant dense<0.000000e+00> : vector<32xf32>
    %184 = vector.multi_reduction <add>, %183, %cst_88 [1] : vector<32x16xf32> to vector<32xf32>
    %185 = vector.shape_cast %184 : vector<32xf32> to vector<32x1xf32>
    %cst_89 = arith.constant 1.600000e+01 : f32
    %186 = vector.broadcast %cst_89 : f32 to vector<32x1xf32>
    %187 = arith.divf %185, %186 : vector<32x1xf32>
    %cst_90 = arith.constant 9.99999974E-6 : f32
    %188 = vector.broadcast %cst_90 : f32 to vector<32x1xf32>
    %189 = arith.addf %187, %188 : vector<32x1xf32>
    %190 = math.rsqrt %189 : vector<32x1xf32>
    %191 = vector.broadcast %190 : vector<32x1xf32> to vector<32x16xf32>
    %192 = arith.mulf %182, %191 : vector<32x16xf32>
    %193 = vector.broadcast %175 : vector<1x16xf32> to vector<32x16xf32>
    %194 = arith.mulf %192, %193 : vector<32x16xf32>
    %195 = vector.broadcast %176 : vector<1x16xf32> to vector<32x16xf32>
    %196 = arith.addf %194, %195 : vector<32x16xf32>
    %cst_91 = arith.constant 0.000000e+00 : f32
    %197 = vector.broadcast %cst_91 : f32 to vector<32x16xf32>
    %198 = arith.cmpf ogt, %196, %197 : vector<32x16xf32>
    %cst_92 = arith.constant 0.000000e+00 : f32
    %199 = vector.broadcast %cst_92 : f32 to vector<32x16xf32>
    %200 = arith.minimumf %196, %199 : vector<32x16xf32>
    %201 = math.exp %200 : vector<32x16xf32>
    %cst_93 = arith.constant 1.000000e+00 : f32
    %202 = vector.broadcast %cst_93 : f32 to vector<32x16xf32>
    %203 = arith.subf %201, %202 : vector<32x16xf32>
    %204 = arith.select %198, %196, %203 : vector<32x16xi1>, vector<32x16xf32>
    %c0_94 = arith.constant 0 : index
    %c0_95 = arith.constant 0 : index
    %205 = vector.load %arg21[%c0_94, %c0_95] : memref<16x1xf32, #tpu.memory_space<vmem>>, vector<16x1xf32>
    %cst_96 = arith.constant dense<0.000000e+00> : vector<32x1xf32>
    %206 = tpu.matmul %204, %205, %cst_96 {dimension_numbers = #tpu.dot_dimension_numbers<[1], [0], [0], [1], [0, 0, 1, 1], [], []>} : vector<32x16xf32>, vector<16x1xf32>, vector<32x1xf32> -> vector<32x1xf32>
    %c0_97 = arith.constant 0 : index
    %c0_98 = arith.constant 0 : index
    %207 = vector.load %arg22[%c0_97, %c0_98] : memref<1x1xf32, #tpu.memory_space<vmem>>, vector<1x1xf32>
    %208 = vector.broadcast %207 : vector<1x1xf32> to vector<32x1xf32>
    %209 = arith.addf %206, %208 : vector<32x1xf32>
    %c0_99 = arith.constant 0 : index
    %c0_100 = arith.constant 0 : index
    %210 = vector.load %arg23[%c0_99, %c0_100] : memref<32x1xf32, #tpu.memory_space<vmem>>, vector<32x1xf32>
    tpu.vector_store %arg23[%c0_99, %c0_100], %209 {strides = array<i32>} : memref<32x1xf32, #tpu.memory_space<vmem>>, vector<32x1xf32>,
    return
  }
}

</mosaic_0001>

<bundles_post_ra>
// kernel: _lambda_.8
= control target key start
LH: loop header
LB: loop body
LE: loop exit
PB: predicated region body
PF: predicated region fallthrough
CT: control target
= control target key end

     0   :  { %vm119_vm0 = vcmask 1042432   ;;  %vm46_vm1 = vcmask 23552   ;;  %vm524_vm2 = vcmask 261120   ;;  %s1058_s1 = inlined_call_operand.vmem [shape: f32[3,64], index: 1, kind: input, shape index: {}]   ;;  %s1059_s0 = inlined_call_operand.vmem [shape: f32[192,3], index: 0, kind: input, shape index: {}]   ;;  %s1060_s2 = inlined_call_operand.vmem [shape: f32[1,64], index: 2, kind: input, shape index: {}]   ;;  %s1061_s3 = inlined_call_operand.vmem [shape: f32[192,32], index: 3, kind: output, shape index: {}]  }
   0x1   :  { %v38_v0 = vld [vmem:[%s1058_s1] sm:$0x7]  ;;  %v15_v3 = vld [vmem:[%s1059_s0 + $0x8] sm:$0xff]  ;;  %v16_v5 = vld [vmem:[%s1059_s0 + $0x10] sm:$0xff] }
   0x2   :  { %v14_v1 = vld [vmem:[%s1059_s0] sm:$0xff]  ;;  %604 = vmatprep.subr.msk.mxu0 %vm119_vm0, %v38_v0  ;;  %642 = vmatprep.subr.msk.mxu1 %vm119_vm0, %v38_v0  ;;  %v27_v4 = vld [vmem:[%s1059_s0 + $0x68] sm:$0xff]  ;;  %v28_v6 = vld [vmem:[%s1059_s0 + $0x70] sm:$0xff] }
   0x3   :  { %v26_v2 = vld [vmem:[%s1059_s0 + $0x60] sm:$0xff]  ;;  %605 = vmatpush3.msk.msra.mxu0 %vm119_vm0, %v38_v0  ;;  %643 = vmatpush3.msk.msra.mxu1 %vm119_vm0, %v38_v0  ;;  %v17_v7 = vld [vmem:[%s1059_s0 + $0x18] sm:$0xff]  ;;  %v19_v11 = vld [vmem:[%s1059_s0 + $0x28] sm:$0xff] }
   0x4   :  { %606 = vmatprep.mubr.msk.f32.mxu0 %vm46_vm1, %v14_v1  ;;  %624 = vmatprep.mubr.msk.f32.mxu1 %vm46_vm1, %v26_v2  ;;  %v29_v8 = vld [vmem:[%s1059_s0 + $0x78] sm:$0xff]  ;;  %v18_v9 = vld [vmem:[%s1059_s0 + $0x20] sm:$0xff]  ;;  %v31_v12 = vld [vmem:[%s1059_s0 + $0x88] sm:$0xff] }
   0x5   :  { %607 = vmatmul.mubr.msk.f32.vlgmr.msra.gmra.mrb[0].mxu0 %vm46_vm1, %v15_v3  ;;  %625 = vmatmul.mubr.msk.f32.vlgmr.msra.gmra.mrb[0].mxu1 %vm46_vm1, %v27_v4  ;;  %v30_v10 = vld [vmem:[%s1059_s0 + $0x80] sm:$0xff]  ;;  %v20_v13 = vld [vmem:[%s1059_s0 + $0x30] sm:$0xff]  ;;  %v21_v15 = vld [vmem:[%s1059_s0 + $0x38] sm:$0xff] }
   0x6   :  { %609 = vmatprep.mubr.msk.f32.mxu0 %vm46_vm1, %v16_v5  ;;  %627 = vmatprep.mubr.msk.f32.mxu1 %vm46_vm1, %v28_v6  ;;  %v32_v14 = vld [vmem:[%s1059_s0 + $0x90] sm:$0xff]  ;;  %v33_v16 = vld [vmem:[%s1059_s0 + $0x98] sm:$0xff]  ;;  %v22_v17 = vld [vmem:[%s1059_s0 + $0x40] sm:$0xff] }
   0x7   :  { %v34_v18 = vld [vmem:[%s1059_s0 + $0xa0] sm:$0xff]  ;;  %v23_v19 = vld [vmem:[%s1059_s0 + $0x48] sm:$0xff]  ;;  %v24_v21 = vld [vmem:[%s1059_s0 + $0x50] sm:$0xff] }
   0x8   :  { %v35_v20 = vld [vmem:[%s1059_s0 + $0xa8] sm:$0xff]  ;;  %v36_v22 = vld [vmem:[%s1059_s0 + $0xb0] sm:$0xff]  ;;  %v25_v23 = vld [vmem:[%s1059_s0 + $0x58] sm:$0xff] }
   0x9   :  { %610 = vmatmul.mubr.msk.f32.gmra.mrb[2].mxu0 %vm46_vm1, %v17_v7  ;;  %628 = vmatmul.mubr.msk.f32.gmra.mrb[2].mxu1 %vm46_vm1, %v29_v8  ;;  %v37_v24 = vld [vmem:[%s1059_s0 + $0xb8] sm:$0xff]  ;;  %v816_v25 = vld [vmem:[%s1060_s2] ss:$0 sm:$0xff]  ;;  %s693_s0 = smov 96  }
   0xa   :  { %612 = vmatprep.mubr.msk.f32.mxu0 %vm46_vm1, %v18_v9  ;;  %630 = vmatprep.mubr.msk.f32.mxu1 %vm46_vm1, %v30_v10 }
   0xd   :  { %613 = vmatmul.mubr.msk.f32.gmra.mrb[4].mxu0 %vm46_vm1, %v19_v11  ;;  %631 = vmatmul.mubr.msk.f32.gmra.mrb[4].mxu1 %vm46_vm1, %v31_v12 }
   0xe   :  { %615 = vmatprep.mubr.msk.f32.mxu0 %vm46_vm1, %v20_v13  ;;  %633 = vmatprep.mubr.msk.f32.mxu1 %vm46_vm1, %v32_v14 }
  0x11   :  { %616 = vmatmul.mubr.msk.f32.gmra.mrb[6].mxu0 %vm46_vm1, %v21_v15  ;;  %634 = vmatmul.mubr.msk.f32.gmra.mrb[6].mxu1 %vm46_vm1, %v33_v16 }
  0x12   :  { %618 = vmatprep.mubr.msk.f32.mxu0 %vm46_vm1, %v22_v17  ;;  %636 = vmatprep.mubr.msk.f32.mxu1 %vm46_vm1, %v34_v18 }
  0x15   :  { %619 = vmatmul.mubr.msk.f32.gmra.mrb[8].mxu0 %vm46_vm1, %v23_v19  ;;  %637 = vmatmul.mubr.msk.f32.gmra.mrb[8].mxu1 %vm46_vm1, %v35_v20 }
  0x16   :  { %621 = vmatprep.mubr.msk.f32.mxu0 %vm46_vm1, %v24_v21  ;;  %639 = vmatprep.mubr.msk.f32.mxu1 %vm46_vm1, %v36_v22 }
  0x19   :  { %622 = vmatmul.mubr.msk.f32.gmra.mrb[10].mxu0 %vm46_vm1, %v25_v23  ;;  %640 = vmatmul.mubr.msk.f32.gmra.mrb[10].mxu1 %vm46_vm1, %v37_v24 }
  0xd8   :  { %v608_v26 = vpop.f32.mrb[0].mxu0  ;;  %v626_v27 = vpop.f32.mrb[0].mxu1 }
  0xd9   :  { %v819_v28 = vadd.f32 %v608_v26, %v816_v25  ;;  %v822_v29 = vadd.f32 %v626_v27, %v816_v25  ;;  %v189_v30 = vpop.f32.mrb[1].mxu0  ;;  %v249_v31 = vpop.f32.mrb[1].mxu1 }
  0xda   :  { %v825_v32 = vadd.f32 %v816_v25, %v189_v30  ;;  %v828_v33 = vadd.f32 %v816_v25, %v249_v31 }
  0xdb   :  { %v309_v34 = vmul.f32 0.5, %v819_v28  ;;  %v321_v35 = vmul.f32 0.5, %v822_v29 }
  0xdc   :  { %v308_v36 = vmul.f32 0.5, %v825_v32  ;;  %v320_v37 = vmul.f32 0.5, %v828_v33  ;;  %v611_v38 = vpop.f32.mrb[2].mxu0  ;;  %v629_v39 = vpop.f32.mrb[2].mxu1 }
  0xdd   :  { %645 = vtanh.f32 %v309_v34  ;;  %v835_v40 = vadd.f32 %v611_v38, %v816_v25  ;;  %v199_v41 = vpop.f32.mrb[3].mxu0  ;;  %v838_v42 = vadd.f32 %v629_v39, %v816_v25  ;;  %v259_v43 = vpop.f32.mrb[3].mxu1 }
  0xde   :  { %647 = vtanh.f32 %v321_v35  ;;  %v841_v44 = vadd.f32 %v816_v25, %v199_v41  ;;  %v844_v45 = vadd.f32 %v816_v25, %v259_v43 }
  0xdf   :  { %649 = vtanh.f32 %v308_v36  ;;  %v311_v46 = vmul.f32 0.5, %v835_v40  ;;  %v323_v47 = vmul.f32 0.5, %v838_v42 }
  0xe0   :  { %651 = vtanh.f32 %v320_v37  ;;  %v614_v48 = vpop.f32.mrb[4].mxu0  ;;  %v632_v49 = vpop.f32.mrb[4].mxu1  ;;  %v322_v50 = vmul.f32 0.5, %v844_v45  ;;  %v310_v54 = vmul.f32 0.5, %v841_v44 }
  0xe1   :  { %653 = vtanh.f32 %v311_v46  ;;  %v850_v51 = vadd.f32 %v614_v48, %v816_v25  ;;  %v209_v52 = vpop.f32.mrb[5].mxu0  ;;  %v269_v53 = vpop.f32.mrb[5].mxu1  ;;  %v862_v59 = vadd.f32 %v632_v49, %v816_v25 }
  0xe2   :  { %v854_v55 = vadd.f32 %v816_v25, %v209_v52  ;;  %655 = vtanh.f32 %v323_v47  ;;  %v857_v56 = vadd.f32 %v816_v25, %v269_v53 }
  0xe3   :  { %v313_v57 = vmul.f32 0.5, %v850_v51  ;;  %657 = vtanh.f32 %v322_v50  ;;  %v325_v4 = vmul.f32 0.5, %v862_v59 }
  0xe4   :  { %v312_v58 = vmul.f32 0.5, %v854_v55  ;;  %v617_v60 = vpop.f32.mrb[6].mxu0  ;;  %v635_v61 = vpop.f32.mrb[6].mxu1  ;;  %659 = vtanh.f32 %v310_v54  ;;  %v324_v1 = vmul.f32 0.5, %v857_v56 }
  0xe5   :  { %v219_v62 = vpop.f32.mrb[7].mxu0  ;;  %v279_v63 = vpop.f32.mrb[7].mxu1  ;;  %v870_v6 = vadd.f32 %v617_v60, %v816_v25  ;;  %v879_v22 = vadd.f32 %v635_v61, %v816_v25 }
  0xe6   :  { %661 = vtanh.f32 %v312_v58  ;;  %v866_v2 = vadd.f32 %v816_v25, %v219_v62  ;;  %v874_v19 = vadd.f32 %v816_v25, %v279_v63 }
  0xe7   :  { %v646_v0 = vpop.eup %645  ;;  %663 = vtanh.f32 %v313_v57  ;;  %v315_v20 = vmul.f32 0.5, %v870_v6  ;;  %v327_v43 = vmul.f32 0.5, %v879_v22 }
  0xe8   :  { %v648_v3 = vpop.eup %647  ;;  %v357_v5 = vadd.f32 1.0, %v646_v0  ;;  %v620_v7 = vpop.f32.mrb[8].mxu0  ;;  %665 = vtanh.f32 %v324_v1  ;;  %v314_v18 = vmul.f32 0.5, %v866_v2  ;;  %v326_v38 = vmul.f32 0.5, %v874_v19 }
  0xe9   :  { %v638_v8 = vpop.f32.mrb[8].mxu1  ;;  %v650_v9 = vpop.eup %649  ;;  %v369_v10 = vadd.f32 1.0, %v648_v3  ;;  %667 = vtanh.f32 %v325_v4  ;;  %v889_v46 = vadd.f32 %v620_v7, %v816_v25 }
  0xea   :  { %v229_v11 = vpop.f32.mrb[9].mxu0  ;;  %v289_v12 = vpop.f32.mrb[9].mxu1  ;;  %v381_v14 = vmul.f32 0.5, %v357_v5  ;;  %v356_v15 = vadd.f32 1.0, %v650_v9  ;;  %669 = vtanh.f32 %v314_v18  ;;  %v893_v53 = vadd.f32 %v638_v8, %v816_v25 }
  0xeb   :  { %v652_v13 = vpop.eup %651  ;;  %v393_v17 = vmul.f32 0.5, %v369_v10  ;;  %v884_v39 = vadd.f32 %v816_v25, %v229_v11  ;;  %671 = vtanh.f32 %v315_v20  ;;  %v897_v58 = vadd.f32 %v816_v25, %v289_v12 }
  0xec   :  { %v654_v16 = vpop.eup %653  ;;  %430 = vrot.lane.b32.xlu0 %v381_v14, %s693_s0  ;;  %v623_v23 = vpop.f32.mrb[10].mxu0  ;;  %v380_v34 = vmul.f32 0.5, %v356_v15  ;;  %v368_v36 = vadd.f32 1.0, %v652_v13  ;;  %673 = vtanh.f32 %v326_v38  ;;  %v317_v60 = vmul.f32 0.5, %v889_v46 }
  0xed   :  { %v359_v21 = vadd.f32 1.0, %v654_v16  ;;  %v641_v24 = vpop.f32.mrb[10].mxu1  ;;  %v656_v26 = vpop.eup %655  ;;  %454 = vrot.lane.b32.xlu1 %v393_v17, %s693_s0  ;;  %v316_v54 = vmul.f32 0.5, %v884_v39  ;;  %675 = vtanh.f32 %v327_v43  ;;  %v329_v3 = vmul.f32 0.5, %v893_v53 }
  0xee   :  { %v239_v27 = vpop.f32.mrb[11].mxu0  ;;  %v299_v30 = vpop.f32.mrb[11].mxu1  ;;  %v371_v35 = vadd.f32 1.0, %v656_v26  ;;  %v392_v50 = vmul.f32 0.5, %v368_v36  ;;  %v328_v5 = vmul.f32 0.5, %v897_v58  ;;  %v909_v9 = vadd.f32 %v623_v23, %v816_v25 }
  0xef   :  { %v383_v31 = vmul.f32 0.5, %v359_v21  ;;  %v658_v37 = vpop.eup %657  ;;  %677 = vtanh.f32 %v316_v54  ;;  %v905_v7 = vadd.f32 %v816_v25, %v239_v27  ;;  %v914_v16 = vadd.f32 %v816_v25, %v299_v30 }
  0xf0   :  { %v660_v41 = vpop.eup %659  ;;  %428 = vrot.lane.b32.xlu0 %v380_v34, %s693_s0  ;;  %v395_v48 = vmul.f32 0.5, %v371_v35  ;;  %v370_v52 = vadd.f32 1.0, %v658_v37  ;;  %679 = vtanh.f32 %v317_v60  ;;  %v319_v17 = vmul.f32 0.5, %v909_v9 }
  0xf1   :  { %v662_v47 = vpop.eup %661  ;;  %434 = vrot.lane.b32.xlu1 %v383_v31, %s693_s0  ;;  %v358_v57 = vadd.f32 1.0, %v660_v41  ;;  %681 = vtanh.f32 %v329_v3  ;;  %v318_v15 = vmul.f32 0.5, %v905_v7  ;;  %v919_v20 = vadd.f32 %v641_v24, %v816_v25 }
  0xf2   :  { %v664_v49 = vpop.eup %663  ;;  %v360_v61 = vadd.f32 1.0, %v662_v47  ;;  %v394_v1 = vmul.f32 0.5, %v370_v52  ;;  %683 = vtanh.f32 %v328_v5  ;;  %v330_v34 = vmul.f32 0.5, %v914_v16 }
  0xf3   :  { %v666_v62 = vpop.eup %665  ;;  %v361_v63 = vadd.f32 1.0, %v664_v49  ;;  %v382_v4 = vmul.f32 0.5, %v358_v57  ;;  %685 = vtanh.f32 %v318_v15  ;;  %v331_v30 = vmul.f32 0.5, %v919_v20 }
  0xf4   :  { %452 = vrot.lane.b32.xlu0 %v392_v50, %s693_s0  ;;  %v668_v0 = vpop.eup %667  ;;  %v384_v8 = vmul.f32 0.5, %v360_v61  ;;  %v372_v10 = vadd.f32 1.0, %v666_v62  ;;  %687 = vtanh.f32 %v319_v17 }
  0xf5   :  { %458 = vrot.lane.b32.xlu1 %v395_v48, %s693_s0  ;;  %v670_v11 = vpop.eup %669  ;;  %v385_v12 = vmul.f32 0.5, %v361_v63  ;;  %v373_v13 = vadd.f32 1.0, %v668_v0  ;;  %689 = vtanh.f32 %v330_v34 }
  0xf6   :  { %v672_v14 = vpop.eup %671  ;;  %v396_v18 = vmul.f32 0.5, %v372_v10  ;;  %v362_v21 = vadd.f32 1.0, %v670_v11  ;;  %691 = vtanh.f32 %v331_v30 }
  0xf7   :  { %v674_v23 = vpop.eup %673  ;;  %v397_v26 = vmul.f32 0.5, %v373_v13  ;;  %v363_v27 = vadd.f32 1.0, %v672_v14 }
  0xf8   :  { %456 = vrot.lane.b32.xlu0 %v394_v1, %s693_s0  ;;  %v676_v31 = vpop.eup %675  ;;  %v386_v35 = vmul.f32 0.5, %v362_v21  ;;  %v374_v36 = vadd.f32 1.0, %v674_v23 }
  0xf9   :  { %432 = vrot.lane.b32.xlu1 %v382_v4, %s693_s0  ;;  %v678_v37 = vpop.eup %677  ;;  %v387_v25 = vmul.f32 0.5, %v363_v27  ;;  %v375_v24 = vadd.f32 1.0, %v676_v31 }
  0xfa   :  { %v680_v38 = vpop.eup %679  ;;  %v398_v43 = vmul.f32 0.5, %v374_v36  ;;  %v364_v47 = vadd.f32 1.0, %v678_v37 }
  0xfb   :  { %v682_v41 = vpop.eup %681  ;;  %v399_v49 = vmul.f32 0.5, %v375_v24  ;;  %v365_v50 = vadd.f32 1.0, %v680_v38 }
  0xfc   :  { %436 = vrot.lane.b32.xlu0 %v384_v8, %s693_s0  ;;  %v684_v48 = vpop.eup %683  ;;  %v388_v52 = vmul.f32 0.5, %v364_v47  ;;  %v377_v61 = vadd.f32 1.0, %v682_v41 }
  0xfd   :  { %438 = vrot.lane.b32.xlu1 %v385_v12, %s693_s0  ;;  %v376_v54 = vadd.f32 1.0, %v684_v48  ;;  %v686_v57 = vpop.eup %685  ;;  %v389_v60 = vmul.f32 0.5, %v365_v50 }
  0xfe   :  { %v688_v62 = vpop.eup %687  ;;  %v366_v0 = vadd.f32 1.0, %v686_v57  ;;  %v401_v3 = vmul.f32 0.5, %v377_v61 }
  0xff   :  { %v400_v63 = vmul.f32 0.5, %v376_v54  ;;  %v690_v1 = vpop.eup %689  ;;  %v367_v4 = vadd.f32 1.0, %v688_v62 }
 0x100   :  { %460 = vrot.lane.b32.xlu0 %v396_v18, %s693_s0  ;;  %v692_v5 = vpop.eup %691  ;;  %v390_v8 = vmul.f32 0.5, %v366_v0  ;;  %v378_v10 = vadd.f32 1.0, %v690_v1 }
 0x101   :  { %462 = vrot.lane.b32.xlu1 %v397_v26, %s693_s0  ;;  %v391_v11 = vmul.f32 0.5, %v367_v4  ;;  %v379_v12 = vadd.f32 1.0, %v692_v5 }
 0x102   :  { %v402_v13 = vmul.f32 0.5, %v378_v10 }
 0x103   :  { %v403_v14 = vmul.f32 0.5, %v379_v12 }
 0x104   :  { %440 = vrot.lane.b32.xlu0 %v386_v35, %s693_s0 }
 0x105   :  { %442 = vrot.lane.b32.xlu1 %v387_v25, %s693_s0 }
 0x108   :  { %464 = vrot.lane.b32.xlu0 %v398_v43, %s693_s0 }
 0x109   :  { %466 = vrot.lane.b32.xlu1 %v399_v49, %s693_s0 }
 0x10c   :  { %444 = vrot.lane.b32.xlu0 %v388_v52, %s693_s0 }
 0x10d   :  { %446 = vrot.lane.b32.xlu1 %v389_v60, %s693_s0 }
 0x110   :  { %468 = vrot.lane.b32.xlu0 %v400_v63, %s693_s0 }
 0x111   :  { %470 = vrot.lane.b32.xlu1 %v401_v3, %s693_s0 }
 0x114   :  { %448 = vrot.lane.b32.xlu0 %v390_v8, %s693_s0 }
 0x115   :  { %450 = vrot.lane.b32.xlu1 %v391_v11, %s693_s0 }
 0x118   :  { %472 = vrot.lane.b32.xlu0 %v402_v13, %s693_s0 }
 0x119   :  { %474 = vrot.lane.b32.xlu1 %v403_v14, %s693_s0 }
 0x15e   :  { %v431_v15 = vpop.permute.xlu0 %430 }
 0x15f   :  { %v455_v17 = vpop.permute.xlu1 %454  ;;  %v501_v18 = vmul.f32 %v431_v15, %v819_v28 }
 0x160   :  { %v513_v21 = vmul.f32 %v455_v17, %v822_v29 }
 0x161   :  { %526 = vst.msk [vmem:[%s1061_s3 + $0x8] sm:$0xff] %vm524_vm2, %v501_v18 }
 0x162   :  { %538 = vst.msk [vmem:[%s1061_s3 + $0x68] sm:$0xff] %vm524_vm2, %v513_v21  ;;  %v429_v23 = vpop.permute.xlu0 %428 }
 0x163   :  { %v435_v26 = vpop.permute.xlu1 %434  ;;  %v500_v27 = vmul.f32 %v429_v23, %v825_v32 }
 0x164   :  { %v503_v31 = vmul.f32 %v435_v26, %v835_v40 }
 0x165   :  { %525 = vst.msk [vmem:[%s1061_s3] sm:$0xff] %vm524_vm2, %v500_v27 }
 0x166   :  { %528 = vst.msk [vmem:[%s1061_s3 + $0x18] sm:$0xff] %vm524_vm2, %v503_v31  ;;  %v453_v28 = vpop.permute.xlu0 %452 }
 0x167   :  { %v459_v29 = vpop.permute.xlu1 %458  ;;  %v512_v34 = vmul.f32 %v453_v28, %v828_v33 }
 0x168   :  { %v515_v30 = vmul.f32 %v459_v29, %v838_v42 }
 0x169   :  { %537 = vst.msk [vmem:[%s1061_s3 + $0x60] sm:$0xff] %vm524_vm2, %v512_v34 }
 0x16a   :  { %540 = vst.msk [vmem:[%s1061_s3 + $0x78] sm:$0xff] %vm524_vm2, %v515_v30  ;;  %v457_v32 = vpop.permute.xlu0 %456 }
 0x16b   :  { %v433_v40 = vpop.permute.xlu1 %432  ;;  %v514_v35 = vmul.f32 %v457_v32, %v844_v45 }
 0x16c   :  { %v502_v36 = vmul.f32 %v433_v40, %v841_v44 }
 0x16d   :  { %539 = vst.msk [vmem:[%s1061_s3 + $0x70] sm:$0xff] %vm524_vm2, %v514_v35 }
 0x16e   :  { %527 = vst.msk [vmem:[%s1061_s3 + $0x10] sm:$0xff] %vm524_vm2, %v502_v36  ;;  %v437_v33 = vpop.permute.xlu0 %436 }
 0x16f   :  { %v439_v42 = vpop.permute.xlu1 %438  ;;  %v504_v37 = vmul.f32 %v437_v33, %v854_v55 }
 0x170   :  { %v505_v25 = vmul.f32 %v439_v42, %v850_v51 }
 0x171   :  { %529 = vst.msk [vmem:[%s1061_s3 + $0x20] sm:$0xff] %vm524_vm2, %v504_v37 }
 0x172   :  { %530 = vst.msk [vmem:[%s1061_s3 + $0x28] sm:$0xff] %vm524_vm2, %v505_v25  ;;  %v461_v44 = vpop.permute.xlu0 %460 }
 0x173   :  { %v463_v45 = vpop.permute.xlu1 %462  ;;  %v516_v24 = vmul.f32 %v461_v44, %v857_v56 }
 0x174   :  { %v517_v38 = vmul.f32 %v463_v45, %v862_v59 }
 0x175   :  { %541 = vst.msk [vmem:[%s1061_s3 + $0x80] sm:$0xff] %vm524_vm2, %v516_v24 }
 0x176   :  { %542 = vst.msk [vmem:[%s1061_s3 + $0x88] sm:$0xff] %vm524_vm2, %v517_v38  ;;  %v441_v51 = vpop.permute.xlu0 %440 }
 0x177   :  { %v443_v55 = vpop.permute.xlu1 %442  ;;  %v506_v41 = vmul.f32 %v441_v51, %v866_v2 }
 0x178   :  { %v507_v43 = vmul.f32 %v443_v55, %v870_v6 }
 0x179   :  { %531 = vst.msk [vmem:[%s1061_s3 + $0x30] sm:$0xff] %vm524_vm2, %v506_v41 }
 0x17a   :  { %532 = vst.msk [vmem:[%s1061_s3 + $0x38] sm:$0xff] %vm524_vm2, %v507_v43  ;;  %v465_v56 = vpop.permute.xlu0 %464 }
 0x17b   :  { %v467_v59 = vpop.permute.xlu1 %466  ;;  %v518_v47 = vmul.f32 %v465_v56, %v874_v19 }
 0x17c   :  { %v519_v48 = vmul.f32 %v467_v59, %v879_v22 }
 0x17d   :  { %543 = vst.msk [vmem:[%s1061_s3 + $0x90] sm:$0xff] %vm524_vm2, %v518_v47 }
 0x17e   :  { %544 = vst.msk [vmem:[%s1061_s3 + $0x98] sm:$0xff] %vm524_vm2, %v519_v48  ;;  %v445_v2 = vpop.permute.xlu0 %444 }
 0x17f   :  { %v447_v6 = vpop.permute.xlu1 %446  ;;  %v508_v49 = vmul.f32 %v445_v2, %v884_v39 }
 0x180   :  { %v509_v50 = vmul.f32 %v447_v6, %v889_v46 }
 0x181   :  { %533 = vst.msk [vmem:[%s1061_s3 + $0x40] sm:$0xff] %vm524_vm2, %v508_v49 }
 0x182   :  { %534 = vst.msk [vmem:[%s1061_s3 + $0x48] sm:$0xff] %vm524_vm2, %v509_v50  ;;  %v469_v19 = vpop.permute.xlu0 %468 }
 0x183   :  { %v471_v22 = vpop.permute.xlu1 %470  ;;  %v520_v52 = vmul.f32 %v469_v19, %v897_v58 }
 0x184   :  { %v521_v54 = vmul.f32 %v471_v22, %v893_v53 }
 0x185   :  { %545 = vst.msk [vmem:[%s1061_s3 + $0xa0] sm:$0xff] %vm524_vm2, %v520_v52 }
 0x186   :  { %546 = vst.msk [vmem:[%s1061_s3 + $0xa8] sm:$0xff] %vm524_vm2, %v521_v54  ;;  %v449_v39 = vpop.permute.xlu0 %448 }
 0x187   :  { %v451_v46 = vpop.permute.xlu1 %450  ;;  %v510_v57 = vmul.f32 %v449_v39, %v905_v7 }
 0x188   :  { %v511_v60 = vmul.f32 %v451_v46, %v909_v9 }
 0x189   :  { %535 = vst.msk [vmem:[%s1061_s3 + $0x50] sm:$0xff] %vm524_vm2, %v510_v57 }
 0x18a   :  { %536 = vst.msk [vmem:[%s1061_s3 + $0x58] sm:$0xff] %vm524_vm2, %v511_v60  ;;  %v473_v53 = vpop.permute.xlu0 %472 }
 0x18b   :  { %v475_v58 = vpop.permute.xlu1 %474  ;;  %v522_v61 = vmul.f32 %v473_v53, %v914_v16 }
 0x18c   :  { %v523_v62 = vmul.f32 %v475_v58, %v919_v20 }
 0x18d   :  { %547 = vst.msk [vmem:[%s1061_s3 + $0xb0] sm:$0xff] %vm524_vm2, %v522_v61 }
 0x18e   :  { %548 = vst.msk [vmem:[%s1061_s3 + $0xb8] sm:$0xff] %vm524_vm2, %v523_v62 }

// kernel: _lambda_.10
= control target key start
LH: loop header
LB: loop body
LE: loop exit
PB: predicated region body
PF: predicated region fallthrough
CT: control target
= control target key end

     0   :  { %vm43_vm0 = vcmask 392192   ;;  %vm381_vm1 = vcmask 261120   ;;  %s796_s1 = inlined_call_operand.vmem [shape: f32[48,64], index: 1, kind: input, shape index: {}]   ;;  %s797_s0 = inlined_call_operand.vmem [shape: f32[128,48], index: 0, kind: input, shape index: {}]   ;;  %s798_s2 = inlined_call_operand.vmem [shape: f32[1,64], index: 2, kind: input, shape index: {}]   ;;  %s799_s3 = inlined_call_operand.vmem [shape: f32[128,32], index: 3, kind: output, shape index: {}]  }
   0x1   :  { %v30_v0 = vld [vmem:[%s796_s1] sm:$0xff]  ;;  %v31_v1 = vld [vmem:[%s796_s1 + $0x8] sm:$0xff]  ;;  %v32_v2 = vld [vmem:[%s796_s1 + $0x10] sm:$0xff] }
   0x2   :  { %v477_v3 = vpack.c.bf16 %v31_v1, %v30_v0  ;;  %v33_v4 = vld [vmem:[%s796_s1 + $0x18] sm:$0xff]  ;;  %v34_v6 = vld [vmem:[%s796_s1 + $0x20] sm:$0xff]  ;;  %v35_v7 = vld [vmem:[%s796_s1 + $0x28] sm:$0xff] }
   0x3   :  { %v481_v5 = vpack.c.bf16 %v33_v4, %v32_v2  ;;  %v14_v8 = vld [vmem:[%s797_s0] sm:$0xff]  ;;  %v485_v10 = vpack.c.bf16 %v35_v7, %v34_v6  ;;  %v15_v11 = vld [vmem:[%s797_s0 + $0x8] sm:$0xff]  ;;  %v16_v13 = vld [vmem:[%s797_s0 + $0x10] sm:$0xff] }
   0x4   :  { %478 = vmatprep.subr.bf16.mxu0 %v477_v3  ;;  %489 = vmatprep.subr.bf16.mxu1 %v477_v3  ;;  %v22_v9 = vld [vmem:[%s797_s0 + $0x40] sm:$0xff]  ;;  %v23_v12 = vld [vmem:[%s797_s0 + $0x48] sm:$0xff]  ;;  %v24_v14 = vld [vmem:[%s797_s0 + $0x50] sm:$0xff] }
   0x5   :  { %480 = vmatpush3.bf16.msra.mxu0 %v477_v3  ;;  %492 = vmatpush3.bf16.msra.mxu1 %v477_v3  ;;  %v17_v15 = vld [vmem:[%s797_s0 + $0x18] sm:$0xff]  ;;  %v18_v17 = vld [vmem:[%s797_s0 + $0x20] sm:$0xff]  ;;  %v19_v19 = vld [vmem:[%s797_s0 + $0x28] sm:$0xff] }
   0x6   :  { %482 = vmatprep.subr.bf16.mxu0 %v481_v5  ;;  %490 = vmatprep.subr.bf16.mxu1 %v481_v5  ;;  %v25_v16 = vld [vmem:[%s797_s0 + $0x58] sm:$0xff]  ;;  %v26_v18 = vld [vmem:[%s797_s0 + $0x60] sm:$0xff]  ;;  %v27_v20 = vld [vmem:[%s797_s0 + $0x68] sm:$0xff] }
   0x7   :  { %453 = vmatprep.mubr.msk.f32.mxu0 %vm43_vm0, %v14_v8  ;;  %465 = vmatprep.mubr.msk.f32.mxu1 %vm43_vm0, %v22_v9  ;;  %v20_v21 = vld [vmem:[%s797_s0 + $0x30] sm:$0xff]  ;;  %v21_v23 = vld [vmem:[%s797_s0 + $0x38] sm:$0xff]  ;;  %v634_v25 = vld [vmem:[%s798_s2] ss:$0 sm:$0xff] }
   0x8   :  { %v28_v22 = vld [vmem:[%s797_s0 + $0x70] sm:$0xff]  ;;  %v29_v24 = vld [vmem:[%s797_s0 + $0x78] sm:$0xff]  ;;  %s528_s0 = smov 96  }
   0x9   :  { %484 = vmatpush3.bf16.msra.mxu0 %v481_v5  ;;  %493 = vmatpush3.bf16.msra.mxu1 %v481_v5 }
   0xa   :  { %486 = vmatprep.subr.bf16.mxu0 %v485_v10  ;;  %491 = vmatprep.subr.bf16.mxu1 %v485_v10 }
   0xd   :  { %488 = vmatpush3.bf16.msra.mxu0 %v485_v10  ;;  %494 = vmatpush3.bf16.msra.mxu1 %v485_v10 }
  0x10   :  { %454 = vmatmul.mubr.msk.f32.vlgmr.msra.gmra.mrb[0].mxu0 %vm43_vm0, %v15_v11  ;;  %466 = vmatmul.mubr.msk.f32.vlgmr.msra.gmra.mrb[0].mxu1 %vm43_vm0, %v23_v12 }
  0x11   :  { %456 = vmatprep.mubr.msk.f32.mxu0 %vm43_vm0, %v16_v13  ;;  %468 = vmatprep.mubr.msk.f32.mxu1 %vm43_vm0, %v24_v14 }
  0x14   :  { %457 = vmatmul.mubr.msk.f32.gmra.mrb[2].mxu0 %vm43_vm0, %v17_v15  ;;  %469 = vmatmul.mubr.msk.f32.gmra.mrb[2].mxu1 %vm43_vm0, %v25_v16 }
  0x15   :  { %459 = vmatprep.mubr.msk.f32.mxu0 %vm43_vm0, %v18_v17  ;;  %471 = vmatprep.mubr.msk.f32.mxu1 %vm43_vm0, %v26_v18 }
  0x18   :  { %460 = vmatmul.mubr.msk.f32.gmra.mrb[4].mxu0 %vm43_vm0, %v19_v19  ;;  %472 = vmatmul.mubr.msk.f32.gmra.mrb[4].mxu1 %vm43_vm0, %v27_v20 }
  0x19   :  { %462 = vmatprep.mubr.msk.f32.mxu0 %vm43_vm0, %v20_v21  ;;  %474 = vmatprep.mubr.msk.f32.mxu1 %vm43_vm0, %v28_v22 }
  0x1c   :  { %463 = vmatmul.mubr.msk.f32.gmra.mrb[6].mxu0 %vm43_vm0, %v21_v23  ;;  %475 = vmatmul.mubr.msk.f32.gmra.mrb[6].mxu1 %vm43_vm0, %v29_v24 }
  0xe3   :  { %v455_v26 = vpop.f32.mrb[0].mxu0  ;;  %v467_v27 = vpop.f32.mrb[0].mxu1 }
  0xe4   :  { %v637_v28 = vadd.f32 %v455_v26, %v634_v25  ;;  %v640_v29 = vadd.f32 %v467_v27, %v634_v25  ;;  %v158_v30 = vpop.f32.mrb[1].mxu0  ;;  %v198_v31 = vpop.f32.mrb[1].mxu1 }
  0xe5   :  { %v643_v32 = vadd.f32 %v634_v25, %v158_v30  ;;  %v646_v33 = vadd.f32 %v634_v25, %v198_v31 }
  0xe6   :  { %v238_v34 = vmul.f32 0.5, %v637_v28  ;;  %v246_v35 = vmul.f32 0.5, %v640_v29 }
  0xe7   :  { %v237_v36 = vmul.f32 0.5, %v643_v32  ;;  %v245_v37 = vmul.f32 0.5, %v646_v33  ;;  %v458_v38 = vpop.f32.mrb[2].mxu0  ;;  %v470_v39 = vpop.f32.mrb[2].mxu1 }
  0xe8   :  { %496 = vtanh.f32 %v238_v34  ;;  %v653_v40 = vadd.f32 %v458_v38, %v634_v25  ;;  %v168_v41 = vpop.f32.mrb[3].mxu0  ;;  %v656_v42 = vadd.f32 %v470_v39, %v634_v25  ;;  %v208_v43 = vpop.f32.mrb[3].mxu1 }
  0xe9   :  { %498 = vtanh.f32 %v246_v35  ;;  %v659_v44 = vadd.f32 %v634_v25, %v168_v41  ;;  %v662_v45 = vadd.f32 %v634_v25, %v208_v43 }
  0xea   :  { %500 = vtanh.f32 %v237_v36  ;;  %v240_v46 = vmul.f32 0.5, %v653_v40  ;;  %v248_v47 = vmul.f32 0.5, %v656_v42 }
  0xeb   :  { %502 = vtanh.f32 %v245_v37  ;;  %v461_v48 = vpop.f32.mrb[4].mxu0  ;;  %v473_v49 = vpop.f32.mrb[4].mxu1  ;;  %v247_v50 = vmul.f32 0.5, %v662_v45  ;;  %v239_v54 = vmul.f32 0.5, %v659_v44 }
  0xec   :  { %504 = vtanh.f32 %v240_v46  ;;  %v668_v51 = vadd.f32 %v461_v48, %v634_v25  ;;  %v178_v52 = vpop.f32.mrb[5].mxu0  ;;  %v218_v53 = vpop.f32.mrb[5].mxu1  ;;  %v680_v59 = vadd.f32 %v473_v49, %v634_v25 }
  0xed   :  { %v672_v55 = vadd.f32 %v634_v25, %v178_v52  ;;  %506 = vtanh.f32 %v248_v47  ;;  %v675_v56 = vadd.f32 %v634_v25, %v218_v53 }
  0xee   :  { %v242_v57 = vmul.f32 0.5, %v668_v51  ;;  %508 = vtanh.f32 %v247_v50  ;;  %v250_v4 = vmul.f32 0.5, %v680_v59 }
  0xef   :  { %v241_v58 = vmul.f32 0.5, %v672_v55  ;;  %v464_v60 = vpop.f32.mrb[6].mxu0  ;;  %v476_v61 = vpop.f32.mrb[6].mxu1  ;;  %510 = vtanh.f32 %v239_v54  ;;  %v249_v1 = vmul.f32 0.5, %v675_v56 }
  0xf0   :  { %v188_v62 = vpop.f32.mrb[7].mxu0  ;;  %v228_v63 = vpop.f32.mrb[7].mxu1  ;;  %v688_v6 = vadd.f32 %v464_v60, %v634_v25  ;;  %v697_v18 = vadd.f32 %v476_v61, %v634_v25 }
  0xf1   :  { %512 = vtanh.f32 %v241_v58  ;;  %v684_v2 = vadd.f32 %v634_v25, %v188_v62  ;;  %v692_v15 = vadd.f32 %v634_v25, %v228_v63 }
  0xf2   :  { %v497_v0 = vpop.eup %496  ;;  %514 = vtanh.f32 %v242_v57  ;;  %v244_v16 = vmul.f32 0.5, %v688_v6  ;;  %v252_v30 = vmul.f32 0.5, %v697_v18 }
  0xf3   :  { %v499_v3 = vpop.eup %498  ;;  %v270_v5 = vadd.f32 1.0, %v497_v0  ;;  %516 = vtanh.f32 %v249_v1  ;;  %v243_v14 = vmul.f32 0.5, %v684_v2  ;;  %v251_v26 = vmul.f32 0.5, %v692_v15 }
  0xf4   :  { %v501_v7 = vpop.eup %500  ;;  %v278_v8 = vadd.f32 1.0, %v499_v3  ;;  %518 = vtanh.f32 %v250_v4 }
  0xf5   :  { %v503_v9 = vpop.eup %502  ;;  %v286_v10 = vmul.f32 0.5, %v270_v5  ;;  %v269_v11 = vadd.f32 1.0, %v501_v7  ;;  %520 = vtanh.f32 %v243_v14 }
  0xf6   :  { %v505_v12 = vpop.eup %504  ;;  %v294_v13 = vmul.f32 0.5, %v278_v8  ;;  %v277_v23 = vadd.f32 1.0, %v503_v9  ;;  %522 = vtanh.f32 %v244_v16 }
  0xf7   :  { %319 = vrot.lane.b32.xlu0 %v286_v10, %s528_s0  ;;  %v272_v17 = vadd.f32 1.0, %v505_v12  ;;  %v507_v19 = vpop.eup %506  ;;  %v285_v21 = vmul.f32 0.5, %v269_v11  ;;  %524 = vtanh.f32 %v251_v26 }
  0xf8   :  { %335 = vrot.lane.b32.xlu1 %v294_v13, %s528_s0  ;;  %v280_v22 = vadd.f32 1.0, %v507_v19  ;;  %v509_v24 = vpop.eup %508  ;;  %v293_v35 = vmul.f32 0.5, %v277_v23  ;;  %526 = vtanh.f32 %v252_v30 }
  0xf9   :  { %v288_v20 = vmul.f32 0.5, %v272_v17  ;;  %v511_v27 = vpop.eup %510  ;;  %v279_v36 = vadd.f32 1.0, %v509_v24 }
  0xfa   :  { %v296_v25 = vmul.f32 0.5, %v280_v22  ;;  %v271_v37 = vadd.f32 1.0, %v511_v27 }
  0xfb   :  { %317 = vrot.lane.b32.xlu0 %v285_v21, %s528_s0  ;;  %v513_v31 = vpop.eup %512  ;;  %v295_v46 = vmul.f32 0.5, %v279_v36 }
  0xfc   :  { %323 = vrot.lane.b32.xlu1 %v288_v20, %s528_s0  ;;  %v515_v34 = vpop.eup %514  ;;  %v273_v38 = vadd.f32 1.0, %v513_v31  ;;  %v287_v47 = vmul.f32 0.5, %v271_v37 }
  0xfd   :  { %v517_v39 = vpop.eup %516  ;;  %v274_v41 = vadd.f32 1.0, %v515_v34 }
  0xfe   :  { %v519_v43 = vpop.eup %518  ;;  %v289_v48 = vmul.f32 0.5, %v273_v38  ;;  %v281_v49 = vadd.f32 1.0, %v517_v39 }
  0xff   :  { %333 = vrot.lane.b32.xlu0 %v293_v35, %s528_s0  ;;  %v521_v50 = vpop.eup %520  ;;  %v290_v52 = vmul.f32 0.5, %v274_v41  ;;  %v282_v53 = vadd.f32 1.0, %v519_v43 }
 0x100   :  { %339 = vrot.lane.b32.xlu1 %v296_v25, %s528_s0  ;;  %v523_v54 = vpop.eup %522  ;;  %v297_v57 = vmul.f32 0.5, %v281_v49  ;;  %v275_v58 = vadd.f32 1.0, %v521_v50 }
 0x101   :  { %v525_v60 = vpop.eup %524  ;;  %v298_v61 = vmul.f32 0.5, %v282_v53  ;;  %v276_v62 = vadd.f32 1.0, %v523_v54 }
 0x102   :  { %v527_v63 = vpop.eup %526  ;;  %v291_v0 = vmul.f32 0.5, %v275_v58  ;;  %v283_v1 = vadd.f32 1.0, %v525_v60 }
 0x103   :  { %337 = vrot.lane.b32.xlu0 %v295_v46, %s528_s0  ;;  %v292_v3 = vmul.f32 0.5, %v276_v62  ;;  %v284_v4 = vadd.f32 1.0, %v527_v63 }
 0x104   :  { %321 = vrot.lane.b32.xlu1 %v287_v47, %s528_s0  ;;  %v299_v5 = vmul.f32 0.5, %v283_v1 }
 0x105   :  { %v300_v7 = vmul.f32 0.5, %v284_v4 }
 0x107   :  { %325 = vrot.lane.b32.xlu0 %v289_v48, %s528_s0 }
 0x108   :  { %327 = vrot.lane.b32.xlu1 %v290_v52, %s528_s0 }
 0x10b   :  { %341 = vrot.lane.b32.xlu0 %v297_v57, %s528_s0 }
 0x10c   :  { %343 = vrot.lane.b32.xlu1 %v298_v61, %s528_s0 }
 0x10f   :  { %329 = vrot.lane.b32.xlu0 %v291_v0, %s528_s0 }
 0x110   :  { %331 = vrot.lane.b32.xlu1 %v292_v3, %s528_s0 }
 0x113   :  { %345 = vrot.lane.b32.xlu0 %v299_v5, %s528_s0 }
 0x114   :  { %347 = vrot.lane.b32.xlu1 %v300_v7, %s528_s0 }
 0x169   :  { %v320_v8 = vpop.permute.xlu0 %319 }
 0x16a   :  { %v336_v9 = vpop.permute.xlu1 %335  ;;  %v366_v10 = vmul.f32 %v320_v8, %v637_v28 }
 0x16b   :  { %v374_v11 = vmul.f32 %v336_v9, %v640_v29 }
 0x16c   :  { %383 = vst.msk [vmem:[%s799_s3 + $0x8] sm:$0xff] %vm381_vm1, %v366_v10 }
 0x16d   :  { %391 = vst.msk [vmem:[%s799_s3 + $0x48] sm:$0xff] %vm381_vm1, %v374_v11  ;;  %v318_v12 = vpop.permute.xlu0 %317 }
 0x16e   :  { %v324_v13 = vpop.permute.xlu1 %323  ;;  %v365_v14 = vmul.f32 %v318_v12, %v643_v32 }
 0x16f   :  { %v368_v16 = vmul.f32 %v324_v13, %v653_v40 }
 0x170   :  { %382 = vst.msk [vmem:[%s799_s3] sm:$0xff] %vm381_vm1, %v365_v14 }
 0x171   :  { %385 = vst.msk [vmem:[%s799_s3 + $0x18] sm:$0xff] %vm381_vm1, %v368_v16  ;;  %v334_v28 = vpop.permute.xlu0 %333 }
 0x172   :  { %v340_v29 = vpop.permute.xlu1 %339  ;;  %v373_v17 = vmul.f32 %v334_v28, %v646_v33 }
 0x173   :  { %v376_v19 = vmul.f32 %v340_v29, %v656_v42 }
 0x174   :  { %390 = vst.msk [vmem:[%s799_s3 + $0x40] sm:$0xff] %vm381_vm1, %v373_v17 }
 0x175   :  { %393 = vst.msk [vmem:[%s799_s3 + $0x58] sm:$0xff] %vm381_vm1, %v376_v19  ;;  %v338_v32 = vpop.permute.xlu0 %337 }
 0x176   :  { %v322_v40 = vpop.permute.xlu1 %321  ;;  %v375_v20 = vmul.f32 %v338_v32, %v662_v45 }
 0x177   :  { %v367_v21 = vmul.f32 %v322_v40, %v659_v44 }
 0x178   :  { %392 = vst.msk [vmem:[%s799_s3 + $0x50] sm:$0xff] %vm381_vm1, %v375_v20 }
 0x179   :  { %384 = vst.msk [vmem:[%s799_s3 + $0x10] sm:$0xff] %vm381_vm1, %v367_v21  ;;  %v326_v33 = vpop.permute.xlu0 %325 }
 0x17a   :  { %v328_v42 = vpop.permute.xlu1 %327  ;;  %v369_v22 = vmul.f32 %v326_v33, %v672_v55 }
 0x17b   :  { %v370_v23 = vmul.f32 %v328_v42, %v668_v51 }
 0x17c   :  { %386 = vst.msk [vmem:[%s799_s3 + $0x20] sm:$0xff] %vm381_vm1, %v369_v22 }
 0x17d   :  { %387 = vst.msk [vmem:[%s799_s3 + $0x28] sm:$0xff] %vm381_vm1, %v370_v23  ;;  %v342_v44 = vpop.permute.xlu0 %341 }
 0x17e   :  { %v344_v45 = vpop.permute.xlu1 %343  ;;  %v377_v24 = vmul.f32 %v342_v44, %v675_v56 }
 0x17f   :  { %v378_v26 = vmul.f32 %v344_v45, %v680_v59 }
 0x180   :  { %394 = vst.msk [vmem:[%s799_s3 + $0x60] sm:$0xff] %vm381_vm1, %v377_v24 }
 0x181   :  { %395 = vst.msk [vmem:[%s799_s3 + $0x68] sm:$0xff] %vm381_vm1, %v378_v26  ;;  %v330_v51 = vpop.permute.xlu0 %329 }
 0x182   :  { %v332_v55 = vpop.permute.xlu1 %331  ;;  %v371_v27 = vmul.f32 %v330_v51, %v684_v2 }
 0x183   :  { %v372_v30 = vmul.f32 %v332_v55, %v688_v6 }
 0x184   :  { %388 = vst.msk [vmem:[%s799_s3 + $0x30] sm:$0xff] %vm381_vm1, %v371_v27 }
 0x185   :  { %389 = vst.msk [vmem:[%s799_s3 + $0x38] sm:$0xff] %vm381_vm1, %v372_v30  ;;  %v346_v56 = vpop.permute.xlu0 %345 }
 0x186   :  { %v348_v59 = vpop.permute.xlu1 %347  ;;  %v379_v31 = vmul.f32 %v346_v56, %v692_v15 }
 0x187   :  { %v380_v25 = vmul.f32 %v348_v59, %v697_v18 }
 0x188   :  { %396 = vst.msk [vmem:[%s799_s3 + $0x70] sm:$0xff] %vm381_vm1, %v379_v31 }
 0x189   :  { %397 = vst.msk [vmem:[%s799_s3 + $0x78] sm:$0xff] %vm381_vm1, %v380_v25 }

// kernel: _lambda_.9
= control target key start
LH: loop header
LB: loop body
LE: loop exit
PB: predicated region body
PF: predicated region fallthrough
CT: control target
= control target key end

     0   :  { %vm58_vm0 = vcmask 261120   ;;  %vm320_vm1 = vcmask 130048   ;;  %s4640_s2 = inlined_call_operand.vmem [shape: f32[32,16], index: 2, kind: input, shape index: {}]   ;;  %s4641_s0 = inlined_call_operand.vmem [shape: f32[192,32], index: 0, kind: input, shape index: {}]   ;;  %s4642_s1 = inlined_call_operand.vmem [shape: f32[16,16], index: 1, kind: input, shape index: {}]   ;;  %s4643_s4 = inlined_call_operand.vmem [shape: f32[3,16,16], index: 4, kind: input, shape index: {}]   ;;  %s4644_s3 = inlined_call_operand.vmem [shape: f32[1,16], index: 3, kind: input, shape index: {}, may-alias: {3,5}]   ;;  %s4645_s5 = inlined_call_operand.vmem [shape: f32[1,16], index: 5, kind: input, shape index: {}, may-alias: {3,5}]   ;;  %s4646_s6 = inlined_call_operand.vmem [shape: f32[192,16], index: 6, kind: output, shape index: {}]  }
   0x1   :  { %v47_v0 = vld [vmem:[%s4640_s2] sm:$0xff]  ;;  %v48_v1 = vld [vmem:[%s4640_s2 + $0x8] sm:$0xff]  ;;  %v49_v2 = vld [vmem:[%s4640_s2 + $0x10] sm:$0xff] }
   0x2   :  { %v3767_v3 = vpack.c.bf16 %v48_v1, %v47_v0  ;;  %v50_v4 = vld [vmem:[%s4640_s2 + $0x18] sm:$0xff]  ;;  %v23_v5 = vld [vmem:[%s4641_s0] sm:$0xff]  ;;  %v24_v7 = vld [vmem:[%s4641_s0 + $0x8] sm:$0xff] }
   0x3   :  { %v3771_v6 = vpack.c.bf16 %v50_v4, %v49_v2  ;;  %3443 = vmatprep.mubr.msk.f32.mxu0 %vm58_vm0, %v23_v5  ;;  %v25_v8 = vld [vmem:[%s4641_s0 + $0x10] sm:$0xff]  ;;  %v26_v9 = vld [vmem:[%s4641_s0 + $0x18] sm:$0xff]  ;;  %v27_v10 = vld [vmem:[%s4641_s0 + $0x20] sm:$0xff] }
   0x4   :  { %3768 = vmatprep.subr.bf16.mxu0 %v3767_v3  ;;  %v28_v11 = vld [vmem:[%s4641_s0 + $0x28] sm:$0xff]  ;;  %v29_v12 = vld [vmem:[%s4641_s0 + $0x30] sm:$0xff]  ;;  %v30_v13 = vld [vmem:[%s4641_s0 + $0x38] sm:$0xff] }
   0x5   :  { %3770 = vmatpush3.bf16.msra.mxu0 %v3767_v3  ;;  %v31_v14 = vld [vmem:[%s4641_s0 + $0x40] sm:$0xff]  ;;  %v32_v15 = vld [vmem:[%s4641_s0 + $0x48] sm:$0xff]  ;;  %v33_v16 = vld [vmem:[%s4641_s0 + $0x50] sm:$0xff] }
   0x6   :  { %3772 = vmatprep.subr.bf16.mxu0 %v3771_v6  ;;  %v34_v17 = vld [vmem:[%s4641_s0 + $0x58] sm:$0xff]  ;;  %v35_v18 = vld [vmem:[%s4641_s0 + $0x60] sm:$0xff]  ;;  %v36_v19 = vld [vmem:[%s4641_s0 + $0x68] sm:$0xff] }
   0x7   :  { %v37_v20 = vld [vmem:[%s4641_s0 + $0x70] sm:$0xff]  ;;  %v38_v21 = vld [vmem:[%s4641_s0 + $0x78] sm:$0xff]  ;;  %v39_v22 = vld [vmem:[%s4641_s0 + $0x80] sm:$0xff] }
   0x8   :  { %v40_v23 = vld [vmem:[%s4641_s0 + $0x88] sm:$0xff]  ;;  %v41_v24 = vld [vmem:[%s4641_s0 + $0x90] sm:$0xff]  ;;  %v42_v25 = vld [vmem:[%s4641_s0 + $0x98] sm:$0xff] }
   0x9   :  { %3774 = vmatpush3.bf16.msra.mxu0 %v3771_v6  ;;  %v43_v26 = vld [vmem:[%s4641_s0 + $0xa0] sm:$0xff]  ;;  %v44_v27 = vld [vmem:[%s4641_s0 + $0xa8] sm:$0xff]  ;;  %v45_v28 = vld [vmem:[%s4641_s0 + $0xb0] sm:$0xff] }
   0xa   :  { %v46_v29 = vld [vmem:[%s4641_s0 + $0xb8] sm:$0xff]  ;;  %v4077_v30 = vld [vmem:[%s4642_s1] sm:$0xff]  ;;  %v3132_v31 = vld [vmem:[%s4643_s4 + $0x10] sm:$0xff] }
   0xb   :  { %3483 = vmatprep.mubr.msk.f32.mxu1 %vm320_vm1, %v4077_v30  ;;  %v3133_v32 = vld [vmem:[%s4643_s4 + $0x18] sm:$0xff]  ;;  %v4090_v34 = vld [vmem:[%s4644_s3] ss:$0 sm:$0xff]  ;;  %v4109_v44 = vld [vmem:[%s4642_s1 + $0x8] sm:$0xff] }
   0xc   :  { %3444 = vmatmul.mubr.msk.f32.vlgmr.msra.gmra.mrb[0].mxu0 %vm58_vm0, %v24_v7  ;;  %v3823_v33 = vpack.c.bf16 %v3133_v32, %v3132_v31  ;;  %v316_v31 = vld [vmem:[%s4643_s4] sm:$0xff]  ;;  %v317_v32 = vld [vmem:[%s4643_s4 + $0x8] sm:$0xff] }
   0xd   :  { %3446 = vmatprep.mubr.msk.f32.mxu0 %vm58_vm0, %v25_v8 }
   0xe   :  { %3824 = vmatprep.subr.bf16.mxu0 %v3823_v33 }
   0xf   :  { %3826 = vmatpush3.bf16.msra.mxu0 %v3823_v33 }
  0x10   :  { %3447 = vmatmul.mubr.msk.f32.gmra.mrb[2].mxu0 %vm58_vm0, %v26_v9 }
  0x11   :  { %3449 = vmatprep.mubr.msk.f32.mxu0 %vm58_vm0, %v27_v10 }
  0x14   :  { %3450 = vmatmul.mubr.msk.f32.gmra.mrb[4].mxu0 %vm58_vm0, %v28_v11 }
  0x15   :  { %3452 = vmatprep.mubr.msk.f32.mxu0 %vm58_vm0, %v29_v12 }
  0x18   :  { %3453 = vmatmul.mubr.msk.f32.gmra.mrb[6].mxu0 %vm58_vm0, %v30_v13 }
  0x19   :  { %3455 = vmatprep.mubr.msk.f32.mxu0 %vm58_vm0, %v31_v14 }
  0x1c   :  { %3456 = vmatmul.mubr.msk.f32.gmra.mrb[8].mxu0 %vm58_vm0, %v32_v15 }
  0x1d   :  { %3458 = vmatprep.mubr.msk.f32.mxu0 %vm58_vm0, %v33_v16 }
  0x20   :  { %3459 = vmatmul.mubr.msk.f32.gmra.mrb[10].mxu0 %vm58_vm0, %v34_v17 }
  0x21   :  { %3461 = vmatprep.mubr.msk.f32.mxu0 %vm58_vm0, %v35_v18 }
  0x24   :  { %3462 = vmatmul.mubr.msk.f32.gmra.mrb[12].mxu0 %vm58_vm0, %v36_v19 }
  0x25   :  { %3464 = vmatprep.mubr.msk.f32.mxu0 %vm58_vm0, %v37_v20 }
  0x28   :  { %3465 = vmatmul.mubr.msk.f32.gmra.mrb[14].mxu0 %vm58_vm0, %v38_v21 }
  0x29   :  { %3467 = vmatprep.mubr.msk.f32.mxu0 %vm58_vm0, %v39_v22 }
  0x2c   :  { %3468 = vmatmul.mubr.msk.f32.gmra.mrb[16].mxu0 %vm58_vm0, %v40_v23 }
  0x2d   :  { %3470 = vmatprep.mubr.msk.f32.mxu0 %vm58_vm0, %v41_v24 }
  0x30   :  { %3471 = vmatmul.mubr.msk.f32.gmra.mrb[18].mxu0 %vm58_vm0, %v42_v25 }
  0x31   :  { %3473 = vmatprep.mubr.msk.f32.mxu0 %vm58_vm0, %v43_v26 }
  0x34   :  { %3474 = vmatmul.mubr.msk.f32.gmra.mrb[20].mxu0 %vm58_vm0, %v44_v27 }
  0x35   :  { %3476 = vmatprep.mubr.msk.f32.mxu0 %vm58_vm0, %v45_v28 }
  0x38   :  { %3477 = vmatmul.mubr.msk.f32.gmra.mrb[22].mxu0 %vm58_vm0, %v46_v29 }
  0xdf   :  { %v3445_v35 = vpop.f32.mrb[0].mxu0 }
  0xe0   :  { %v4093_v36 = vadd.f32 %v3445_v35, %v4090_v34  ;;  %v197_v37 = vpop.f32.mrb[1].mxu0 }
  0xe1   :  { %v4096_v38 = vadd.f32 %v4090_v34, %v197_v37  ;;  %v3827_v37 = vpack.c.bf16 %v317_v32, %v316_v31 }
  0xe3   :  { %v3448_v39 = vpop.f32.mrb[2].mxu0  ;;  %v3775_v40 = vpack.c.bf16 %v4093_v36, %v4096_v38 }
  0xe4   :  { %v4101_v41 = vadd.f32 %v3448_v39, %v4090_v34  ;;  %v207_v42 = vpop.f32.mrb[3].mxu0 }
  0xe5   :  { %v4104_v43 = vadd.f32 %v4090_v34, %v207_v42  ;;  %3776 = vmatprep.subr.bf16.mxu1 %v3775_v40 }
  0xe6   :  { %3778 = vmatpush3.bf16.msra.mxu1 %v3775_v40 }
  0xe7   :  { %v3451_v45 = vpop.f32.mrb[4].mxu0  ;;  %v3779_v46 = vpack.c.bf16 %v4101_v41, %v4104_v43 }
  0xe8   :  { %v4114_v47 = vadd.f32 %v3451_v45, %v4090_v34  ;;  %v217_v48 = vpop.f32.mrb[5].mxu0 }
  0xe9   :  { %v4117_v49 = vadd.f32 %v4090_v34, %v217_v48  ;;  %3484 = vmatmul.mubr.msk.f32.vlgmr.msra.gmra.mrb[0].mxu1 %vm320_vm1, %v4109_v44  ;;  %3780 = vmatprep.subr.bf16.mxu1 %v3779_v46 }
  0xea   :  { %3782 = vmatpush3.bf16.msra.mxu1 %v3779_v46  ;;  %3490 = vmatprep.mubr.msk.f32.mxu1 %vm320_vm1, %v4077_v30 }
  0xeb   :  { %v3454_v50 = vpop.f32.mrb[6].mxu0  ;;  %v3783_v51 = vpack.c.bf16 %v4114_v47, %v4117_v49 }
  0xec   :  { %v4126_v52 = vadd.f32 %v3454_v50, %v4090_v34  ;;  %v227_v53 = vpop.f32.mrb[7].mxu0 }
  0xed   :  { %v4129_v54 = vadd.f32 %v4090_v34, %v227_v53  ;;  %3491 = vmatmul.mubr.msk.f32.vlgmr.msra.gmra.mrb[2].mxu1 %vm320_vm1, %v4109_v44  ;;  %3784 = vmatprep.subr.bf16.mxu1 %v3783_v51 }
  0xee   :  { %3786 = vmatpush3.bf16.msra.mxu1 %v3783_v51  ;;  %3497 = vmatprep.mubr.msk.f32.mxu1 %vm320_vm1, %v4077_v30 }
  0xef   :  { %v3457_v55 = vpop.f32.mrb[8].mxu0  ;;  %v3787_v56 = vpack.c.bf16 %v4126_v52, %v4129_v54 }
  0xf0   :  { %v4138_v57 = vadd.f32 %v3457_v55, %v4090_v34  ;;  %v237_v58 = vpop.f32.mrb[9].mxu0 }
  0xf1   :  { %v4141_v59 = vadd.f32 %v4090_v34, %v237_v58  ;;  %3498 = vmatmul.mubr.msk.f32.vlgmr.msra.gmra.mrb[4].mxu1 %vm320_vm1, %v4109_v44  ;;  %3788 = vmatprep.subr.bf16.mxu1 %v3787_v56 }
  0xf2   :  { %3790 = vmatpush3.bf16.msra.mxu1 %v3787_v56  ;;  %3504 = vmatprep.mubr.msk.f32.mxu1 %vm320_vm1, %v4077_v30 }
  0xf3   :  { %v3460_v60 = vpop.f32.mrb[10].mxu0  ;;  %v3791_v61 = vpack.c.bf16 %v4138_v57, %v4141_v59 }
  0xf4   :  { %v4150_v62 = vadd.f32 %v3460_v60, %v4090_v34  ;;  %v247_v63 = vpop.f32.mrb[11].mxu0 }
  0xf5   :  { %v4153_v0 = vadd.f32 %v4090_v34, %v247_v63  ;;  %3505 = vmatmul.mubr.msk.f32.vlgmr.msra.gmra.mrb[6].mxu1 %vm320_vm1, %v4109_v44  ;;  %3792 = vmatprep.subr.bf16.mxu1 %v3791_v61 }
  0xf6   :  { %3794 = vmatpush3.bf16.msra.mxu1 %v3791_v61  ;;  %3511 = vmatprep.mubr.msk.f32.mxu1 %vm320_vm1, %v4077_v30 }
  0xf7   :  { %v3463_v1 = vpop.f32.mrb[12].mxu0  ;;  %v3795_v2 = vpack.c.bf16 %v4150_v62, %v4153_v0 }
  0xf8   :  { %v4162_v3 = vadd.f32 %v3463_v1, %v4090_v34  ;;  %v257_v4 = vpop.f32.mrb[13].mxu0 }
  0xf9   :  { %v4165_v5 = vadd.f32 %v4090_v34, %v257_v4  ;;  %3512 = vmatmul.mubr.msk.f32.vlgmr.msra.gmra.mrb[8].mxu1 %vm320_vm1, %v4109_v44  ;;  %3796 = vmatprep.subr.bf16.mxu1 %v3795_v2 }
  0xfa   :  { %3798 = vmatpush3.bf16.msra.mxu1 %v3795_v2  ;;  %3518 = vmatprep.mubr.msk.f32.mxu1 %vm320_vm1, %v4077_v30 }
  0xfb   :  { %v3466_v6 = vpop.f32.mrb[14].mxu0  ;;  %v3799_v7 = vpack.c.bf16 %v4162_v3, %v4165_v5 }
  0xfc   :  { %v4174_v8 = vadd.f32 %v3466_v6, %v4090_v34  ;;  %v267_v9 = vpop.f32.mrb[15].mxu0 }
  0xfd   :  { %v4177_v10 = vadd.f32 %v4090_v34, %v267_v9  ;;  %3519 = vmatmul.mubr.msk.f32.vlgmr.msra.gmra.mrb[10].mxu1 %vm320_vm1, %v4109_v44  ;;  %3800 = vmatprep.subr.bf16.mxu1 %v3799_v7 }
  0xfe   :  { %3802 = vmatpush3.bf16.msra.mxu1 %v3799_v7  ;;  %3525 = vmatprep.mubr.msk.f32.mxu1 %vm320_vm1, %v4077_v30 }
  0xff   :  { %v3469_v11 = vpop.f32.mrb[16].mxu0  ;;  %v3803_v12 = vpack.c.bf16 %v4174_v8, %v4177_v10 }
 0x100   :  { %v4186_v13 = vadd.f32 %v3469_v11, %v4090_v34  ;;  %v277_v14 = vpop.f32.mrb[17].mxu0 }
 0x101   :  { %v4189_v15 = vadd.f32 %v4090_v34, %v277_v14  ;;  %3526 = vmatmul.mubr.msk.f32.vlgmr.msra.gmra.mrb[12].mxu1 %vm320_vm1, %v4109_v44  ;;  %3804 = vmatprep.subr.bf16.mxu1 %v3803_v12 }
 0x102   :  { %3806 = vmatpush3.bf16.msra.mxu1 %v3803_v12  ;;  %3532 = vmatprep.mubr.msk.f32.mxu1 %vm320_vm1, %v4077_v30 }
 0x103   :  { %v3472_v16 = vpop.f32.mrb[18].mxu0  ;;  %v3807_v17 = vpack.c.bf16 %v4186_v13, %v4189_v15 }
 0x104   :  { %v4198_v18 = vadd.f32 %v3472_v16, %v4090_v34  ;;  %v287_v19 = vpop.f32.mrb[19].mxu0 }
 0x105   :  { %v4201_v20 = vadd.f32 %v4090_v34, %v287_v19  ;;  %3533 = vmatmul.mubr.msk.f32.vlgmr.msra.gmra.mrb[14].mxu1 %vm320_vm1, %v4109_v44  ;;  %3808 = vmatprep.subr.bf16.mxu1 %v3807_v17 }
 0x106   :  { %3810 = vmatpush3.bf16.msra.mxu1 %v3807_v17  ;;  %3539 = vmatprep.mubr.msk.f32.mxu1 %vm320_vm1, %v4077_v30 }
 0x107   :  { %v3475_v21 = vpop.f32.mrb[20].mxu0  ;;  %v3811_v22 = vpack.c.bf16 %v4198_v18, %v4201_v20 }
 0x108   :  { %v4210_v23 = vadd.f32 %v3475_v21, %v4090_v34  ;;  %v297_v24 = vpop.f32.mrb[21].mxu0 }
 0x109   :  { %v4213_v25 = vadd.f32 %v4090_v34, %v297_v24  ;;  %3540 = vmatmul.mubr.msk.f32.vlgmr.msra.gmra.mrb[16].mxu1 %vm320_vm1, %v4109_v44  ;;  %3812 = vmatprep.subr.bf16.mxu1 %v3811_v22 }
 0x10a   :  { %3814 = vmatpush3.bf16.msra.mxu1 %v3811_v22  ;;  %3546 = vmatprep.mubr.msk.f32.mxu1 %vm320_vm1, %v4077_v30 }
 0x10b   :  { %v3478_v26 = vpop.f32.mrb[22].mxu0  ;;  %v3815_v27 = vpack.c.bf16 %v4210_v23, %v4213_v25 }
 0x10c   :  { %v4222_v28 = vadd.f32 %v3478_v26, %v4090_v34  ;;  %v307_v29 = vpop.f32.mrb[23].mxu0 }
 0x10d   :  { %v4231_v33 = vadd.f32 %v4090_v34, %v307_v29  ;;  %3547 = vmatmul.mubr.msk.f32.vlgmr.msra.gmra.mrb[18].mxu1 %vm320_vm1, %v4109_v44  ;;  %3816 = vmatprep.subr.bf16.mxu1 %v3815_v27 }
 0x10e   :  { %3818 = vmatpush3.bf16.msra.mxu1 %v3815_v27  ;;  %3553 = vmatprep.mubr.msk.f32.mxu1 %vm320_vm1, %v4077_v30 }
 0x10f   :  { %v3819_v35 = vpack.c.bf16 %v4222_v28, %v4231_v33 }
 0x111   :  { %3554 = vmatmul.mubr.msk.f32.vlgmr.msra.gmra.mrb[20].mxu1 %vm320_vm1, %v4109_v44  ;;  %3820 = vmatprep.subr.bf16.mxu1 %v3819_v35 }
 0x112   :  { %3822 = vmatpush3.bf16.msra.mxu1 %v3819_v35  ;;  %3560 = vmatprep.mubr.msk.f32.mxu1 %vm320_vm1, %v4077_v30  ;;  %v3206_v35 = vld [vmem:[%s4643_s4 + $0x20] sm:$0xff] }
 0x113   :  { %3828 = vmatprep.subr.bf16.mxu1 %v3827_v37 }
 0x115   :  { %3561 = vmatmul.mubr.msk.f32.vlgmr.msra.gmra.mrb[22].mxu1 %vm320_vm1, %v4109_v44 }
 0x116   :  { %3830 = vmatpush3.bf16.msra.mxu1 %v3827_v37  ;;  %3607 = vmatprep.mubr.msk.f32.mxu1 %vm320_vm1, %v4096_v38  ;;  %v3207_v37 = vld [vmem:[%s4643_s4 + $0x28] sm:$0xff] }
 0x119   :  { %3608 = vmatmul.mubr.msk.f32.vlgmr.msra.gmra.mrb[24].mxu1 %vm320_vm1, %v4093_v36 }
 0x11a   :  { %3610 = vmatprep.mubr.msk.f32.mxu1 %vm320_vm1, %v4104_v43 }
 0x11d   :  { %3611 = vmatmul.mubr.msk.f32.gmra.mrb[26].mxu1 %vm320_vm1, %v4101_v41 }
 0x11e   :  { %3613 = vmatprep.mubr.msk.f32.mxu1 %vm320_vm1, %v4117_v49 }
 0x121   :  { %3614 = vmatmul.mubr.msk.f32.gmra.mrb[28].mxu1 %vm320_vm1, %v4114_v47 }
 0x122   :  { %3616 = vmatprep.mubr.msk.f32.mxu1 %vm320_vm1, %v4129_v54 }
 0x125   :  { %3617 = vmatmul.mubr.msk.f32.gmra.mrb[30].mxu1 %vm320_vm1, %v4126_v52 }
 0x126   :  { %3619 = vmatprep.mubr.msk.f32.mxu1 %vm320_vm1, %v4141_v59 }
 0x129   :  { %3620 = vmatmul.mubr.msk.f32.gmra.mrb[32].mxu1 %vm320_vm1, %v4138_v57 }
 0x12a   :  { %3622 = vmatprep.mubr.msk.f32.mxu1 %vm320_vm1, %v4153_v0 }
 0x12d   :  { %3623 = vmatmul.mubr.msk.f32.gmra.mrb[34].mxu1 %vm320_vm1, %v4150_v62 }
 0x12e   :  { %3625 = vmatprep.mubr.msk.f32.mxu1 %vm320_vm1, %v4165_v5 }
 0x131   :  { %3626 = vmatmul.mubr.msk.f32.gmra.mrb[36].mxu1 %vm320_vm1, %v4162_v3 }
 0x132   :  { %3628 = vmatprep.mubr.msk.f32.mxu1 %vm320_vm1, %v4177_v10 }
 0x135   :  { %3629 = vmatmul.mubr.msk.f32.gmra.mrb[38].mxu1 %vm320_vm1, %v4174_v8 }
 0x136   :  { %3631 = vmatprep.mubr.msk.f32.mxu1 %vm320_vm1, %v4189_v15 }
 0x139   :  { %3632 = vmatmul.mubr.msk.f32.gmra.mrb[40].mxu1 %vm320_vm1, %v4186_v13 }
 0x13a   :  { %3634 = vmatprep.mubr.msk.f32.mxu1 %vm320_vm1, %v4201_v20 }
 0x13d   :  { %3635 = vmatmul.mubr.msk.f32.gmra.mrb[42].mxu1 %vm320_vm1, %v4198_v18 }
 0x13e   :  { %3637 = vmatprep.mubr.msk.f32.mxu1 %vm320_vm1, %v4213_v25 }
 0x141   :  { %3638 = vmatmul.mubr.msk.f32.gmra.mrb[44].mxu1 %vm320_vm1, %v4210_v23 }
 0x142   :  { %3640 = vmatprep.mubr.msk.f32.mxu1 %vm320_vm1, %v4231_v33 }
 0x145   :  { %3641 = vmatmul.mubr.msk.f32.gmra.mrb[46].mxu1 %vm320_vm1, %v4222_v28 }
 0x1bc   :  { %v3485_v34 = vpop.f32.mrb[0].mxu1 }
 0x1bd   :  { %v393_v39 = vpop.f32.mrb[1].mxu1 }
 0x1be   :  { %v3831_v40 = vpack.c.bf16 %v3485_v34, %v393_v39  ;;  %3567 = vmatprep.mubr.msk.f32.mxu0 %vm320_vm1, %v393_v39 }
 0x1bf   :  { %3568 = vmatmul.mubr.msk.f32.vlgmr.msra.gmra.mrb[24].mxu0 %vm320_vm1, %v3485_v34  ;;  %v3879_v34 = vpack.c.bf16 %v3207_v37, %v3206_v35 }
 0x1c0   :  { %v3492_v42 = vpop.f32.mrb[2].mxu1  ;;  %3832 = vmatprep.subr.bf16.mxu0 %v3831_v40 }
 0x1c1   :  { %v468_v45 = vpop.f32.mrb[3].mxu1  ;;  %3834 = vmatpush3.bf16.msra.mxu0 %v3831_v40  ;;  %3880 = vmatprep.subr.bf16.mxu1 %v3879_v34 }
 0x1c2   :  { %v3835_v46 = vpack.c.bf16 %v3492_v42, %v468_v45  ;;  %3570 = vmatprep.mubr.msk.f32.mxu0 %vm320_vm1, %v468_v45  ;;  %3882 = vmatpush3.bf16.msra.mxu1 %v3879_v34 }
 0x1c3   :  { %3571 = vmatmul.mubr.msk.f32.gmra.mrb[26].mxu0 %vm320_vm1, %v3492_v42 }
 0x1c4   :  { %v3499_v48 = vpop.f32.mrb[4].mxu1  ;;  %3836 = vmatprep.subr.bf16.mxu0 %v3835_v46 }
 0x1c5   :  { %v543_v50 = vpop.f32.mrb[5].mxu1 }
 0x1c6   :  { %v3839_v51 = vpack.c.bf16 %v3499_v48, %v543_v50  ;;  %3573 = vmatprep.mubr.msk.f32.mxu0 %vm320_vm1, %v543_v50 }
 0x1c7   :  { %3574 = vmatmul.mubr.msk.f32.gmra.mrb[28].mxu0 %vm320_vm1, %v3499_v48 }
 0x1c8   :  { %v3506_v53 = vpop.f32.mrb[6].mxu1 }
 0x1c9   :  { %v618_v55 = vpop.f32.mrb[7].mxu1 }
 0x1ca   :  { %v3843_v56 = vpack.c.bf16 %v3506_v53, %v618_v55  ;;  %3576 = vmatprep.mubr.msk.f32.mxu0 %vm320_vm1, %v618_v55 }
 0x1cb   :  { %3577 = vmatmul.mubr.msk.f32.gmra.mrb[30].mxu0 %vm320_vm1, %v3506_v53 }
 0x1cc   :  { %v3513_v58 = vpop.f32.mrb[8].mxu1 }
 0x1cd   :  { %v693_v60 = vpop.f32.mrb[9].mxu1 }
 0x1ce   :  { %v3847_v61 = vpack.c.bf16 %v3513_v58, %v693_v60  ;;  %3579 = vmatprep.mubr.msk.f32.mxu0 %vm320_vm1, %v693_v60 }
 0x1cf   :  { %3580 = vmatmul.mubr.msk.f32.gmra.mrb[32].mxu0 %vm320_vm1, %v3513_v58 }
 0x1d0   :  { %v3520_v63 = vpop.f32.mrb[10].mxu1 }
 0x1d1   :  { %v768_v1 = vpop.f32.mrb[11].mxu1 }
 0x1d2   :  { %v3851_v2 = vpack.c.bf16 %v3520_v63, %v768_v1  ;;  %3582 = vmatprep.mubr.msk.f32.mxu0 %vm320_vm1, %v768_v1 }
 0x1d3   :  { %3583 = vmatmul.mubr.msk.f32.gmra.mrb[34].mxu0 %vm320_vm1, %v3520_v63 }
 0x1d4   :  { %v3527_v4 = vpop.f32.mrb[12].mxu1 }
 0x1d5   :  { %v843_v6 = vpop.f32.mrb[13].mxu1 }
 0x1d6   :  { %v3855_v7 = vpack.c.bf16 %v3527_v4, %v843_v6  ;;  %3585 = vmatprep.mubr.msk.f32.mxu0 %vm320_vm1, %v843_v6 }
 0x1d7   :  { %3586 = vmatmul.mubr.msk.f32.gmra.mrb[36].mxu0 %vm320_vm1, %v3527_v4 }
 0x1d8   :  { %v3534_v9 = vpop.f32.mrb[14].mxu1 }
 0x1d9   :  { %v918_v11 = vpop.f32.mrb[15].mxu1 }
 0x1da   :  { %v3859_v12 = vpack.c.bf16 %v3534_v9, %v918_v11  ;;  %3588 = vmatprep.mubr.msk.f32.mxu0 %vm320_vm1, %v918_v11 }
 0x1db   :  { %3589 = vmatmul.mubr.msk.f32.gmra.mrb[38].mxu0 %vm320_vm1, %v3534_v9 }
 0x1dc   :  { %v3541_v14 = vpop.f32.mrb[16].mxu1 }
 0x1dd   :  { %v993_v16 = vpop.f32.mrb[17].mxu1 }
 0x1de   :  { %v3863_v17 = vpack.c.bf16 %v3541_v14, %v993_v16  ;;  %3591 = vmatprep.mubr.msk.f32.mxu0 %vm320_vm1, %v993_v16 }
 0x1df   :  { %3592 = vmatmul.mubr.msk.f32.gmra.mrb[40].mxu0 %vm320_vm1, %v3541_v14 }
 0x1e0   :  { %v3548_v19 = vpop.f32.mrb[18].mxu1 }
 0x1e1   :  { %v1068_v21 = vpop.f32.mrb[19].mxu1 }
 0x1e2   :  { %v3867_v22 = vpack.c.bf16 %v3548_v19, %v1068_v21  ;;  %3594 = vmatprep.mubr.msk.f32.mxu0 %vm320_vm1, %v1068_v21 }
 0x1e3   :  { %3595 = vmatmul.mubr.msk.f32.gmra.mrb[42].mxu0 %vm320_vm1, %v3548_v19 }
 0x1e4   :  { %v3555_v24 = vpop.f32.mrb[20].mxu1 }
 0x1e5   :  { %v1143_v26 = vpop.f32.mrb[21].mxu1 }
 0x1e6   :  { %v3871_v27 = vpack.c.bf16 %v3555_v24, %v1143_v26  ;;  %3597 = vmatprep.mubr.msk.f32.mxu0 %vm320_vm1, %v1143_v26 }
 0x1e7   :  { %3598 = vmatmul.mubr.msk.f32.gmra.mrb[44].mxu0 %vm320_vm1, %v3555_v24 }
 0x1e8   :  { %v3562_v29 = vpop.f32.mrb[22].mxu1 }
 0x1e9   :  { %v1218_v31 = vpop.f32.mrb[23].mxu1 }
 0x1ea   :  { %v3875_v32 = vpack.c.bf16 %v3562_v29, %v1218_v31  ;;  %3600 = vmatprep.mubr.msk.f32.mxu0 %vm320_vm1, %v1218_v31 }
 0x1eb   :  { %3601 = vmatmul.mubr.msk.f32.gmra.mrb[46].mxu0 %vm320_vm1, %v3562_v29 }
 0x1ec   :  { %3647 = vmatprep.mubr.msk.f32.mxu0 %vm320_vm1, %v4077_v30 }
 0x1ef   :  { %3648 = vmatmul.mubr.msk.f32.vlgmr.msra.gmra.mrb[48].mxu0 %vm320_vm1, %v4109_v44 }
 0x1f0   :  { %3838 = vmatpush3.bf16.msra.mxu0 %v3835_v46  ;;  %3654 = vmatprep.mubr.msk.f32.mxu0 %vm320_vm1, %v4077_v30 }
 0x1f1   :  { %3840 = vmatprep.subr.bf16.mxu0 %v3839_v51 }
 0x1f3   :  { %3655 = vmatmul.mubr.msk.f32.vlgmr.msra.gmra.mrb[50].mxu0 %vm320_vm1, %v4109_v44 }
 0x1f4   :  { %3842 = vmatpush3.bf16.msra.mxu0 %v3839_v51  ;;  %3661 = vmatprep.mubr.msk.f32.mxu0 %vm320_vm1, %v4077_v30 }
 0x1f5   :  { %3844 = vmatprep.subr.bf16.mxu0 %v3843_v56 }
 0x1f7   :  { %3662 = vmatmul.mubr.msk.f32.vlgmr.msra.gmra.mrb[52].mxu0 %vm320_vm1, %v4109_v44 }
 0x1f8   :  { %3846 = vmatpush3.bf16.msra.mxu0 %v3843_v56  ;;  %3668 = vmatprep.mubr.msk.f32.mxu0 %vm320_vm1, %v4077_v30 }
 0x1f9   :  { %3848 = vmatprep.subr.bf16.mxu0 %v3847_v61 }
 0x1fb   :  { %3669 = vmatmul.mubr.msk.f32.vlgmr.msra.gmra.mrb[54].mxu0 %vm320_vm1, %v4109_v44 }
 0x1fc   :  { %3850 = vmatpush3.bf16.msra.mxu0 %v3847_v61  ;;  %3675 = vmatprep.mubr.msk.f32.mxu0 %vm320_vm1, %v4077_v30 }
 0x1fd   :  { %3852 = vmatprep.subr.bf16.mxu0 %v3851_v2 }
 0x1ff   :  { %3676 = vmatmul.mubr.msk.f32.vlgmr.msra.gmra.mrb[56].mxu0 %vm320_vm1, %v4109_v44 }
 0x200   :  { %3854 = vmatpush3.bf16.msra.mxu0 %v3851_v2  ;;  %3682 = vmatprep.mubr.msk.f32.mxu0 %vm320_vm1, %v4077_v30 }
 0x201   :  { %3856 = vmatprep.subr.bf16.mxu0 %v3855_v7 }
 0x203   :  { %3683 = vmatmul.mubr.msk.f32.vlgmr.msra.gmra.mrb[58].mxu0 %vm320_vm1, %v4109_v44 }
 0x204   :  { %3858 = vmatpush3.bf16.msra.mxu0 %v3855_v7  ;;  %3689 = vmatprep.mubr.msk.f32.mxu0 %vm320_vm1, %v4077_v30 }
 0x205   :  { %3860 = vmatprep.subr.bf16.mxu0 %v3859_v12 }
 0x207   :  { %3690 = vmatmul.mubr.msk.f32.vlgmr.msra.gmra.mrb[60].mxu0 %vm320_vm1, %v4109_v44 }
 0x208   :  { %3862 = vmatpush3.bf16.msra.mxu0 %v3859_v12  ;;  %3696 = vmatprep.mubr.msk.f32.mxu0 %vm320_vm1, %v4077_v30 }
 0x209   :  { %3864 = vmatprep.subr.bf16.mxu0 %v3863_v17 }
 0x20b   :  { %3697 = vmatmul.mubr.msk.f32.vlgmr.msra.gmra.mrb[62].mxu0 %vm320_vm1, %v4109_v44 }
 0x20c   :  { %3866 = vmatpush3.bf16.msra.mxu0 %v3863_v17  ;;  %3703 = vmatprep.mubr.msk.f32.mxu0 %vm320_vm1, %v4077_v30 }
 0x20d   :  { %3868 = vmatprep.subr.bf16.mxu0 %v3867_v22 }
 0x20f   :  { %3704 = vmatmul.mubr.msk.f32.vlgmr.msra.gmra.mrb[64].mxu0 %vm320_vm1, %v4109_v44 }
 0x210   :  { %3870 = vmatpush3.bf16.msra.mxu0 %v3867_v22  ;;  %3710 = vmatprep.mubr.msk.f32.mxu0 %vm320_vm1, %v4077_v30 }
 0x211   :  { %3872 = vmatprep.subr.bf16.mxu0 %v3871_v27 }
 0x213   :  { %3711 = vmatmul.mubr.msk.f32.vlgmr.msra.gmra.mrb[66].mxu0 %vm320_vm1, %v4109_v44 }
 0x214   :  { %3874 = vmatpush3.bf16.msra.mxu0 %v3871_v27  ;;  %3717 = vmatprep.mubr.msk.f32.mxu0 %vm320_vm1, %v4077_v30 }
 0x215   :  { %3876 = vmatprep.subr.bf16.mxu0 %v3875_v32 }
 0x217   :  { %3718 = vmatmul.mubr.msk.f32.vlgmr.msra.gmra.mrb[68].mxu0 %vm320_vm1, %v4109_v44 }
 0x218   :  { %3878 = vmatpush3.bf16.msra.mxu0 %v3875_v32  ;;  %3724 = vmatprep.mubr.msk.f32.mxu0 %vm320_vm1, %v4077_v30 }
 0x21b   :  { %3725 = vmatmul.mubr.msk.f32.vlgmr.msra.gmra.mrb[70].mxu0 %vm320_vm1, %v4109_v44 }
 0x292   :  { %v4371_v39 = vpop.f32.mrb[24].mxu0 }
 0x293   :  { %v4373_v40 = vpop.f32.mrb[25].mxu0 }
 0x296   :  { %v4375_v42 = vpop.f32.mrb[26].mxu0 }
 0x297   :  { %v4377_v30 = vpop.f32.mrb[27].mxu0 }
 0x29a   :  { %v4379_v45 = vpop.f32.mrb[28].mxu0 }
 0x29b   :  { %v4381_v46 = vpop.f32.mrb[29].mxu0 }
 0x29e   :  { %v4383_v48 = vpop.f32.mrb[30].mxu0 }
 0x29f   :  { %v4385_v50 = vpop.f32.mrb[31].mxu0 }
 0x2a2   :  { %v4387_v44 = vpop.f32.mrb[32].mxu0 }
 0x2a3   :  { %v4389_v51 = vpop.f32.mrb[33].mxu0 }
 0x2a6   :  { %v4391_v53 = vpop.f32.mrb[34].mxu0 }
 0x2a7   :  { %v4393_v55 = vpop.f32.mrb[35].mxu0 }
 0x2aa   :  { %v4395_v56 = vpop.f32.mrb[36].mxu0 }
 0x2ab   :  { %v4397_v58 = vpop.f32.mrb[37].mxu0 }
 0x2ae   :  { %v4399_v60 = vpop.f32.mrb[38].mxu0 }
 0x2af   :  { %v4401_v61 = vpop.f32.mrb[39].mxu0 }
 0x2b2   :  { %v4403_v63 = vpop.f32.mrb[40].mxu0 }
 0x2b3   :  { %v4405_v1 = vpop.f32.mrb[41].mxu0 }
 0x2b6   :  { %v4407_v2 = vpop.f32.mrb[42].mxu0 }
 0x2b7   :  { %v4409_v4 = vpop.f32.mrb[43].mxu0 }
 0x2ba   :  { %v4411_v6 = vpop.f32.mrb[44].mxu0 }
 0x2bb   :  { %v4413_v7 = vpop.f32.mrb[45].mxu0 }
 0x2be   :  { %v4415_v9 = vpop.f32.mrb[46].mxu0 }
 0x2bf   :  { %v4417_v11 = vpop.f32.mrb[47].mxu0 }
 0x2c2   :  { %v3649_v12 = vpop.f32.mrb[48].mxu0 }
 0x2c3   :  { %v2645_v14 = vmul.f32 2.0, %v3649_v12  ;;  %v1810_v16 = vpop.f32.mrb[49].mxu0 }
 0x2c4   :  { %v2644_v17 = vmul.f32 2.0, %v1810_v16 }
 0x2c5   :  { %v2669_v22 = vsub.f32 %v2645_v14, %v4093_v36 }
 0x2c6   :  { %v2668_v19 = vsub.f32 %v2644_v17, %v4096_v38  ;;  %v3656_v21 = vpop.f32.mrb[50].mxu0 }
 0x2c7   :  { %v2647_v24 = vmul.f32 2.0, %v3656_v21  ;;  %v1885_v26 = vpop.f32.mrb[51].mxu0 }
 0x2c8   :  { %v2646_v27 = vmul.f32 2.0, %v1885_v26  ;;  %3731 = vmatprep.mubr.msk.f32.mxu1 %vm320_vm1, %v2668_v19 }
 0x2c9   :  { %3732 = vmatmul.mubr.msk.f32.vlgmr.msra.gmra.mrb[24].mxu1 %vm320_vm1, %v2669_v22  ;;  %v2671_v32 = vsub.f32 %v2647_v24, %v4101_v41 }
 0x2ca   :  { %v2670_v29 = vsub.f32 %v2646_v27, %v4104_v43  ;;  %v3663_v31 = vpop.f32.mrb[52].mxu0 }
 0x2cb   :  { %v2649_v35 = vmul.f32 2.0, %v3663_v31  ;;  %v1960_v37 = vpop.f32.mrb[53].mxu0 }
 0x2cc   :  { %v2648_v34 = vmul.f32 2.0, %v1960_v37  ;;  %3734 = vmatprep.mubr.msk.f32.mxu1 %vm320_vm1, %v2670_v29 }
 0x2cd   :  { %3735 = vmatmul.mubr.msk.f32.gmra.mrb[26].mxu1 %vm320_vm1, %v2671_v32  ;;  %v2673_v16 = vsub.f32 %v2649_v35, %v4114_v47 }
 0x2ce   :  { %v2672_v12 = vsub.f32 %v2648_v34, %v4117_v49  ;;  %v3670_v14 = vpop.f32.mrb[54].mxu0 }
 0x2cf   :  { %v2651_v17 = vmul.f32 2.0, %v3670_v14  ;;  %v2035_v19 = vpop.f32.mrb[55].mxu0 }
 0x2d0   :  { %v2650_v21 = vmul.f32 2.0, %v2035_v19  ;;  %3737 = vmatprep.mubr.msk.f32.mxu1 %vm320_vm1, %v2672_v12 }
 0x2d1   :  { %3738 = vmatmul.mubr.msk.f32.gmra.mrb[28].mxu1 %vm320_vm1, %v2673_v16  ;;  %v2675_v26 = vsub.f32 %v2651_v17, %v4126_v52 }
 0x2d2   :  { %v2674_v22 = vsub.f32 %v2650_v21, %v4129_v54  ;;  %v3677_v24 = vpop.f32.mrb[56].mxu0 }
 0x2d3   :  { %v2653_v27 = vmul.f32 2.0, %v3677_v24  ;;  %v2110_v29 = vpop.f32.mrb[57].mxu0 }
 0x2d4   :  { %v2652_v31 = vmul.f32 2.0, %v2110_v29  ;;  %3740 = vmatprep.mubr.msk.f32.mxu1 %vm320_vm1, %v2674_v22 }
 0x2d5   :  { %3741 = vmatmul.mubr.msk.f32.gmra.mrb[30].mxu1 %vm320_vm1, %v2675_v26  ;;  %v2677_v37 = vsub.f32 %v2653_v27, %v4138_v57 }
 0x2d6   :  { %v2676_v32 = vsub.f32 %v2652_v31, %v4141_v59  ;;  %v3684_v35 = vpop.f32.mrb[58].mxu0 }
 0x2d7   :  { %v2655_v34 = vmul.f32 2.0, %v3684_v35  ;;  %v2185_v12 = vpop.f32.mrb[59].mxu0 }
 0x2d8   :  { %v2654_v14 = vmul.f32 2.0, %v2185_v12  ;;  %3743 = vmatprep.mubr.msk.f32.mxu1 %vm320_vm1, %v2676_v32 }
 0x2d9   :  { %3744 = vmatmul.mubr.msk.f32.gmra.mrb[32].mxu1 %vm320_vm1, %v2677_v37  ;;  %v2679_v19 = vsub.f32 %v2655_v34, %v4150_v62 }
 0x2da   :  { %v2678_v16 = vsub.f32 %v2654_v14, %v4153_v0  ;;  %v3691_v17 = vpop.f32.mrb[60].mxu0 }
 0x2db   :  { %v2657_v21 = vmul.f32 2.0, %v3691_v17  ;;  %v2260_v22 = vpop.f32.mrb[61].mxu0 }
 0x2dc   :  { %v2656_v24 = vmul.f32 2.0, %v2260_v22  ;;  %3746 = vmatprep.mubr.msk.f32.mxu1 %vm320_vm1, %v2678_v16 }
 0x2dd   :  { %3747 = vmatmul.mubr.msk.f32.gmra.mrb[34].mxu1 %vm320_vm1, %v2679_v19  ;;  %v2681_v29 = vsub.f32 %v2657_v21, %v4162_v3 }
 0x2de   :  { %v2680_v26 = vsub.f32 %v2656_v24, %v4165_v5  ;;  %v3698_v27 = vpop.f32.mrb[62].mxu0 }
 0x2df   :  { %v2659_v31 = vmul.f32 2.0, %v3698_v27  ;;  %v2335_v32 = vpop.f32.mrb[63].mxu0 }
 0x2e0   :  { %v2658_v35 = vmul.f32 2.0, %v2335_v32  ;;  %3749 = vmatprep.mubr.msk.f32.mxu1 %vm320_vm1, %v2680_v26 }
 0x2e1   :  { %3750 = vmatmul.mubr.msk.f32.gmra.mrb[36].mxu1 %vm320_vm1, %v2681_v29  ;;  %v2683_v12 = vsub.f32 %v2659_v31, %v4174_v8 }
 0x2e2   :  { %v2682_v37 = vsub.f32 %v2658_v35, %v4177_v10  ;;  %v3705_v34 = vpop.f32.mrb[64].mxu0 }
 0x2e3   :  { %v2661_v14 = vmul.f32 2.0, %v3705_v34  ;;  %v2410_v16 = vpop.f32.mrb[65].mxu0 }
 0x2e4   :  { %v2660_v17 = vmul.f32 2.0, %v2410_v16  ;;  %3752 = vmatprep.mubr.msk.f32.mxu1 %vm320_vm1, %v2682_v37 }
 0x2e5   :  { %3753 = vmatmul.mubr.msk.f32.gmra.mrb[38].mxu1 %vm320_vm1, %v2683_v12  ;;  %v2685_v22 = vsub.f32 %v2661_v14, %v4186_v13 }
 0x2e6   :  { %v2684_v19 = vsub.f32 %v2660_v17, %v4189_v15  ;;  %v3712_v21 = vpop.f32.mrb[66].mxu0 }
 0x2e7   :  { %v2663_v24 = vmul.f32 2.0, %v3712_v21  ;;  %v2485_v26 = vpop.f32.mrb[67].mxu0 }
 0x2e8   :  { %v2662_v27 = vmul.f32 2.0, %v2485_v26  ;;  %3755 = vmatprep.mubr.msk.f32.mxu1 %vm320_vm1, %v2684_v19 }
 0x2e9   :  { %3756 = vmatmul.mubr.msk.f32.gmra.mrb[40].mxu1 %vm320_vm1, %v2685_v22  ;;  %v2687_v32 = vsub.f32 %v2663_v24, %v4198_v18 }
 0x2ea   :  { %v2686_v29 = vsub.f32 %v2662_v27, %v4201_v20  ;;  %v3719_v31 = vpop.f32.mrb[68].mxu0  ;;  %v4470_v27 = vld [vmem:[%s4645_s5] ss:$0 sm:$0xff] }
 0x2eb   :  { %v2665_v35 = vmul.f32 2.0, %v3719_v31  ;;  %v2560_v37 = vpop.f32.mrb[69].mxu0 }
 0x2ec   :  { %v2664_v34 = vmul.f32 2.0, %v2560_v37  ;;  %3758 = vmatprep.mubr.msk.f32.mxu1 %vm320_vm1, %v2686_v29 }
 0x2ed   :  { %3759 = vmatmul.mubr.msk.f32.gmra.mrb[42].mxu1 %vm320_vm1, %v2687_v32  ;;  %v2689_v16 = vsub.f32 %v2665_v35, %v4210_v23 }
 0x2ee   :  { %v2688_v12 = vsub.f32 %v2664_v34, %v4213_v25  ;;  %v3726_v14 = vpop.f32.mrb[70].mxu0 }
 0x2ef   :  { %v2667_v17 = vmul.f32 2.0, %v3726_v14  ;;  %v2635_v19 = vpop.f32.mrb[71].mxu0 }
 0x2f0   :  { %v2666_v21 = vmul.f32 2.0, %v2635_v19  ;;  %3761 = vmatprep.mubr.msk.f32.mxu1 %vm320_vm1, %v2688_v12 }
 0x2f1   :  { %3762 = vmatmul.mubr.msk.f32.gmra.mrb[44].mxu1 %vm320_vm1, %v2689_v16  ;;  %v2691_v24 = vsub.f32 %v2667_v17, %v4222_v28 }
 0x2f2   :  { %v2690_v22 = vsub.f32 %v2666_v21, %v4231_v33 }
 0x2f4   :  { %3764 = vmatprep.mubr.msk.f32.mxu1 %vm320_vm1, %v2690_v22 }
 0x2f5   :  { %3765 = vmatmul.mubr.msk.f32.gmra.mrb[46].mxu1 %vm320_vm1, %v2691_v24 }
 0x39c   :  { %v3733_v26 = vpop.f32.mrb[24].mxu1 }
 0x39d   :  { %v3883_v29 = vadd.f32 %v3733_v26, %v4371_v39  ;;  %v2833_v31 = vpop.f32.mrb[25].mxu1 }
 0x39e   :  { %v3884_v32 = vadd.f32 %v2833_v31, %v4373_v40 }
 0x39f   :  { %v2984_v35 = vadd.f32 %v3883_v29, %v4470_v27 }
 0x3a0   :  { %v2983_v37 = vadd.f32 %v3884_v32, %v4470_v27  ;;  %v3736_v34 = vpop.f32.mrb[26].mxu1 }
 0x3a1   :  { %v3008_v12 = vadd.f32 %v2984_v35, %v4093_v36  ;;  %v3885_v14 = vadd.f32 %v3736_v34, %v4375_v42  ;;  %v2843_v16 = vpop.f32.mrb[27].mxu1 }
 0x3a2   :  { %v3007_v17 = vadd.f32 %v2983_v37, %v4096_v38  ;;  %v3886_v19 = vadd.f32 %v2843_v16, %v4377_v30 }
 0x3a3   :  { %v3032_v21 = vmax.f32 %v3008_v12, 0.0  ;;  %v2986_v39 = vadd.f32 %v3885_v14, %v4470_v27 }
 0x3a4   :  { %v3031_v22 = vmax.f32 %v3007_v17, 0.0  ;;  %v2985_v40 = vadd.f32 %v3886_v19, %v4470_v27  ;;  %v3739_v24 = vpop.f32.mrb[28].mxu1 }
 0x3a5   :  { %3056 = vst.msk [vmem:[%s4646_s6 + $0x8] sm:$0xff] %vm320_vm1, %v3032_v21  ;;  %v3010_v36 = vadd.f32 %v2986_v39, %v4101_v41  ;;  %v3887_v42 = vadd.f32 %v3739_v24, %v4379_v45  ;;  %v2853_v26 = vpop.f32.mrb[29].mxu1 }
 0x3a6   :  { %3055 = vst.msk [vmem:[%s4646_s6] sm:$0xff] %vm320_vm1, %v3031_v22  ;;  %v3009_v38 = vadd.f32 %v2985_v40, %v4104_v43  ;;  %v3888_v30 = vadd.f32 %v2853_v26, %v4381_v46 }
 0x3a7   :  { %v3034_v29 = vmax.f32 %v3010_v36, 0.0  ;;  %v2988_v31 = vadd.f32 %v3887_v42, %v4470_v27 }
 0x3a8   :  { %v3033_v32 = vmax.f32 %v3009_v38, 0.0  ;;  %v2987_v35 = vadd.f32 %v3888_v30, %v4470_v27  ;;  %v3742_v37 = vpop.f32.mrb[30].mxu1 }
 0x3a9   :  { %3058 = vst.msk [vmem:[%s4646_s6 + $0x18] sm:$0xff] %vm320_vm1, %v3034_v29  ;;  %v3012_v41 = vadd.f32 %v2988_v31, %v4114_v47  ;;  %v3889_v45 = vadd.f32 %v3742_v37, %v4383_v48  ;;  %v2863_v34 = vpop.f32.mrb[31].mxu1 }
 0x3aa   :  { %3057 = vst.msk [vmem:[%s4646_s6 + $0x10] sm:$0xff] %vm320_vm1, %v3033_v32  ;;  %v3011_v43 = vadd.f32 %v2987_v35, %v4117_v49  ;;  %v3890_v46 = vadd.f32 %v2863_v34, %v4385_v50 }
 0x3ab   :  { %v3036_v12 = vmax.f32 %v3012_v41, 0.0  ;;  %v2990_v14 = vadd.f32 %v3889_v45, %v4470_v27 }
 0x3ac   :  { %v3035_v16 = vmax.f32 %v3011_v43, 0.0  ;;  %v2989_v17 = vadd.f32 %v3890_v46, %v4470_v27  ;;  %v3745_v19 = vpop.f32.mrb[32].mxu1 }
 0x3ad   :  { %3060 = vst.msk [vmem:[%s4646_s6 + $0x28] sm:$0xff] %vm320_vm1, %v3036_v12  ;;  %v3014_v47 = vadd.f32 %v2990_v14, %v4126_v52  ;;  %v3891_v48 = vadd.f32 %v3745_v19, %v4387_v44  ;;  %v2873_v21 = vpop.f32.mrb[33].mxu1 }
 0x3ae   :  { %3059 = vst.msk [vmem:[%s4646_s6 + $0x20] sm:$0xff] %vm320_vm1, %v3035_v16  ;;  %v3013_v49 = vadd.f32 %v2989_v17, %v4129_v54  ;;  %v3892_v50 = vadd.f32 %v2873_v21, %v4389_v51 }
 0x3af   :  { %v3038_v39 = vmax.f32 %v3014_v47, 0.0  ;;  %v2992_v22 = vadd.f32 %v3891_v48, %v4470_v27 }
 0x3b0   :  { %v3037_v40 = vmax.f32 %v3013_v49, 0.0  ;;  %v2991_v24 = vadd.f32 %v3892_v50, %v4470_v27  ;;  %v3748_v36 = vpop.f32.mrb[34].mxu1 }
 0x3b1   :  { %3062 = vst.msk [vmem:[%s4646_s6 + $0x38] sm:$0xff] %vm320_vm1, %v3038_v39  ;;  %v3016_v52 = vadd.f32 %v2992_v22, %v4138_v57  ;;  %v3893_v44 = vadd.f32 %v3748_v36, %v4391_v53  ;;  %v2883_v42 = vpop.f32.mrb[35].mxu1 }
 0x3b2   :  { %3061 = vst.msk [vmem:[%s4646_s6 + $0x30] sm:$0xff] %vm320_vm1, %v3037_v40  ;;  %v3015_v54 = vadd.f32 %v2991_v24, %v4141_v59  ;;  %v3894_v51 = vadd.f32 %v2883_v42, %v4393_v55 }
 0x3b3   :  { %v3040_v26 = vmax.f32 %v3016_v52, 0.0  ;;  %v2994_v38 = vadd.f32 %v3893_v44, %v4470_v27 }
 0x3b4   :  { %v3039_v30 = vmax.f32 %v3015_v54, 0.0  ;;  %v2993_v29 = vadd.f32 %v3894_v51, %v4470_v27  ;;  %v3751_v31 = vpop.f32.mrb[36].mxu1 }
 0x3b5   :  { %3064 = vst.msk [vmem:[%s4646_s6 + $0x48] sm:$0xff] %vm320_vm1, %v3040_v26  ;;  %v3018_v57 = vadd.f32 %v2994_v38, %v4150_v62  ;;  %v3895_v53 = vadd.f32 %v3751_v31, %v4395_v56  ;;  %v2893_v32 = vpop.f32.mrb[37].mxu1 }
 0x3b6   :  { %3063 = vst.msk [vmem:[%s4646_s6 + $0x40] sm:$0xff] %vm320_vm1, %v3039_v30  ;;  %v3017_v59 = vadd.f32 %v2993_v29, %v4153_v0  ;;  %v3896_v55 = vadd.f32 %v2893_v32, %v4397_v58 }
 0x3b7   :  { %v3042_v35 = vmax.f32 %v3018_v57, 0.0  ;;  %v2996_v37 = vadd.f32 %v3895_v53, %v4470_v27 }
 0x3b8   :  { %v3041_v41 = vmax.f32 %v3017_v59, 0.0  ;;  %v2995_v45 = vadd.f32 %v3896_v55, %v4470_v27  ;;  %v3754_v34 = vpop.f32.mrb[38].mxu1 }
 0x3b9   :  { %3066 = vst.msk [vmem:[%s4646_s6 + $0x58] sm:$0xff] %vm320_vm1, %v3042_v35  ;;  %v3020_v62 = vadd.f32 %v2996_v37, %v4162_v3  ;;  %v3897_v56 = vadd.f32 %v3754_v34, %v4399_v60  ;;  %v2903_v43 = vpop.f32.mrb[39].mxu1 }
 0x3ba   :  { %3065 = vst.msk [vmem:[%s4646_s6 + $0x50] sm:$0xff] %vm320_vm1, %v3041_v41  ;;  %v3019_v0 = vadd.f32 %v2995_v45, %v4165_v5  ;;  %v3898_v58 = vadd.f32 %v2903_v43, %v4401_v61 }
 0x3bb   :  { %v3044_v46 = vmax.f32 %v3020_v62, 0.0  ;;  %v2998_v12 = vadd.f32 %v3897_v56, %v4470_v27 }
 0x3bc   :  { %v3043_v14 = vmax.f32 %v3019_v0, 0.0  ;;  %v2997_v16 = vadd.f32 %v3898_v58, %v4470_v27  ;;  %v3757_v17 = vpop.f32.mrb[40].mxu1 }
 0x3bd   :  { %3068 = vst.msk [vmem:[%s4646_s6 + $0x68] sm:$0xff] %vm320_vm1, %v3044_v46  ;;  %v3022_v3 = vadd.f32 %v2998_v12, %v4174_v8  ;;  %v3899_v60 = vadd.f32 %v3757_v17, %v4403_v63  ;;  %v2913_v19 = vpop.f32.mrb[41].mxu1 }
 0x3be   :  { %3067 = vst.msk [vmem:[%s4646_s6 + $0x60] sm:$0xff] %vm320_vm1, %v3043_v14  ;;  %v3021_v5 = vadd.f32 %v2997_v16, %v4177_v10  ;;  %v3900_v61 = vadd.f32 %v2913_v19, %v4405_v1 }
 0x3bf   :  { %v3046_v47 = vmax.f32 %v3022_v3, 0.0  ;;  %v3000_v48 = vadd.f32 %v3899_v60, %v4470_v27 }
 0x3c0   :  { %v3045_v21 = vmax.f32 %v3021_v5, 0.0  ;;  %v2999_v49 = vadd.f32 %v3900_v61, %v4470_v27  ;;  %v3760_v50 = vpop.f32.mrb[42].mxu1 }
 0x3c1   :  { %3070 = vst.msk [vmem:[%s4646_s6 + $0x78] sm:$0xff] %vm320_vm1, %v3046_v47  ;;  %v3024_v8 = vadd.f32 %v3000_v48, %v4186_v13  ;;  %v3901_v63 = vadd.f32 %v3760_v50, %v4407_v2  ;;  %v2923_v39 = vpop.f32.mrb[43].mxu1 }
 0x3c2   :  { %3069 = vst.msk [vmem:[%s4646_s6 + $0x70] sm:$0xff] %vm320_vm1, %v3045_v21  ;;  %v3023_v10 = vadd.f32 %v2999_v49, %v4189_v15  ;;  %v3902_v1 = vadd.f32 %v2923_v39, %v4409_v4 }
 0x3c3   :  { %v3048_v22 = vmax.f32 %v3024_v8, 0.0  ;;  %v3002_v40 = vadd.f32 %v3901_v63, %v4470_v27 }
 0x3c4   :  { %v3047_v24 = vmax.f32 %v3023_v10, 0.0  ;;  %v3001_v36 = vadd.f32 %v3902_v1, %v4470_v27  ;;  %v3763_v52 = vpop.f32.mrb[44].mxu1 }
 0x3c5   :  { %3072 = vst.msk [vmem:[%s4646_s6 + $0x88] sm:$0xff] %vm320_vm1, %v3048_v22  ;;  %v3026_v13 = vadd.f32 %v3002_v40, %v4198_v18  ;;  %v3903_v2 = vadd.f32 %v3763_v52, %v4411_v6  ;;  %v2933_v44 = vpop.f32.mrb[45].mxu1 }
 0x3c6   :  { %3071 = vst.msk [vmem:[%s4646_s6 + $0x80] sm:$0xff] %vm320_vm1, %v3047_v24  ;;  %v3025_v15 = vadd.f32 %v3001_v36, %v4201_v20  ;;  %v3904_v4 = vadd.f32 %v2933_v44, %v4413_v7 }
 0x3c7   :  { %v3050_v42 = vmax.f32 %v3026_v13, 0.0  ;;  %v3004_v54 = vadd.f32 %v3903_v2, %v4470_v27 }
 0x3c8   :  { %v3049_v51 = vmax.f32 %v3025_v15, 0.0  ;;  %v3003_v26 = vadd.f32 %v3904_v4, %v4470_v27  ;;  %v3766_v38 = vpop.f32.mrb[46].mxu1 }
 0x3c9   :  { %3074 = vst.msk [vmem:[%s4646_s6 + $0x98] sm:$0xff] %vm320_vm1, %v3050_v42  ;;  %v3028_v18 = vadd.f32 %v3004_v54, %v4210_v23  ;;  %v3905_v6 = vadd.f32 %v3766_v38, %v4415_v9  ;;  %v2943_v30 = vpop.f32.mrb[47].mxu1 }
 0x3ca   :  { %3073 = vst.msk [vmem:[%s4646_s6 + $0x90] sm:$0xff] %vm320_vm1, %v3049_v51  ;;  %v3027_v20 = vadd.f32 %v3003_v26, %v4213_v25  ;;  %v3906_v7 = vadd.f32 %v2943_v30, %v4417_v11 }
 0x3cb   :  { %v3052_v29 = vmax.f32 %v3028_v18, 0.0  ;;  %v3006_v31 = vadd.f32 %v3905_v6, %v4470_v27 }
 0x3cc   :  { %v3051_v57 = vmax.f32 %v3027_v20, 0.0  ;;  %v3005_v53 = vadd.f32 %v3906_v7, %v4470_v27 }
 0x3cd   :  { %3076 = vst.msk [vmem:[%s4646_s6 + $0xa8] sm:$0xff] %vm320_vm1, %v3052_v29  ;;  %v3030_v23 = vadd.f32 %v3006_v31, %v4222_v28 }
 0x3ce   :  { %3075 = vst.msk [vmem:[%s4646_s6 + $0xa0] sm:$0xff] %vm320_vm1, %v3051_v57  ;;  %v3029_v25 = vadd.f32 %v3005_v53, %v4231_v33 }
 0x3cf   :  { %v3054_v9 = vmax.f32 %v3030_v23, 0.0 }
 0x3d0   :  { %v3053_v11 = vmax.f32 %v3029_v25, 0.0 }
 0x3d1   :  { %3078 = vst.msk [vmem:[%s4646_s6 + $0xb8] sm:$0xff] %vm320_vm1, %v3054_v9 }
 0x3d2   :  { %3077 = vst.msk [vmem:[%s4646_s6 + $0xb0] sm:$0xff] %vm320_vm1, %v3053_v11 }

// kernel: _lambda_.11
= control target key start
LH: loop header
LB: loop body
LE: loop exit
PB: predicated region body
PF: predicated region fallthrough
CT: control target
= control target key end

     0   :  { %v48_v22 = vlaneseq  ;;  %s157_s0 = inlined_call_operand.vmem [shape: f32[8,512], index: 0, kind: input, shape index: {}]   ;;  %s158_s1 = inlined_call_operand.vmem [shape: f32[1,512], index: 1, kind: input, shape index: {}]   ;;  %s159_s2 = inlined_call_operand.vmem [shape: f32[1,512], index: 2, kind: input, shape index: {}]   ;;  %s160_s3 = inlined_call_operand.vmem [shape: f32[8,512], index: 3, kind: output, shape index: {}]  }
   0x1   :  { %v14_v0 = vld [vmem:[%s157_s0] sm:$0xff]  ;;  %v15_v1 = vld [vmem:[%s157_s0 + $0x8] sm:$0xff]  ;;  %v16_v2 = vld [vmem:[%s157_s0 + $0x10] sm:$0xff] }
   0x2   :  { %v20_v3 = vadd.f32 %v15_v1, %v14_v0  ;;  %v17_v4 = vld [vmem:[%s157_s0 + $0x18] sm:$0xff]  ;;  %v49_v24 = vshrl.u32 %v48_v22, 7  ;;  %v18_v29 = vld [vmem:[%s158_s1] sm:$0xf] }
   0x3   :  { %v19_v30 = vld [vmem:[%s159_s2] sm:$0xf] }
   0x4   :  { %v21_v5 = vadd.f32 %v20_v3, %v16_v2  ;;  %v50_v25 = vsub.s32 0, %v49_v24  ;;  %v54_v26 = vsub.s32 1, %v49_v24  ;;  %v58_v27 = vsub.s32 2, %v49_v24 }
   0x5   :  { %v62_v28 = vsub.s32 3, %v49_v24 }
   0x6   :  { %v22_v6 = vadd.f32 %v21_v5, %v17_v4  ;;  %v51_v31 = vrot.slane %v18_v29, %v50_v25  ;;  %v55_v32 = vrot.slane %v18_v29, %v54_v26  ;;  %v59_v33 = vrot.slane %v18_v29, %v58_v27 }
   0x7   :  { %v63_v34 = vrot.slane %v18_v29, %v62_v28  ;;  %v76_v36 = vrot.slane %v19_v30, %v50_v25  ;;  %v80_v37 = vrot.slane %v19_v30, %v54_v26  ;;  %v84_v38 = vrot.slane %v19_v30, %v58_v27 }
   0x8   :  { %23 = vadd.xlane.f32.xlu0 %v22_v6  ;;  %v88_v39 = vrot.slane %v19_v30, %v62_v28 }
  0x95   :  { %v24_v7 = vpop.xlane.xlu0 %23 }
  0x96   :  { %v26_v8 = vmul.f32 0.001953125, %v24_v7 }
  0x98   :  { %v27_v9 = vsub.f32 %v14_v0, %v26_v8  ;;  %v28_v10 = vsub.f32 %v15_v1, %v26_v8  ;;  %v29_v11 = vsub.f32 %v16_v2, %v26_v8  ;;  %v30_v12 = vsub.f32 %v17_v4, %v26_v8 }
  0x9a   :  { %v31_v13 = vmul.f32 %v27_v9, %v27_v9  ;;  %v32_v14 = vmul.f32 %v28_v10, %v28_v10  ;;  %v33_v15 = vmul.f32 %v29_v11, %v29_v11  ;;  %v34_v17 = vmul.f32 %v30_v12, %v30_v12 }
  0x9c   :  { %v35_v16 = vadd.f32 %v32_v14, %v31_v13 }
  0x9e   :  { %v36_v18 = vadd.f32 %v35_v16, %v33_v15 }
  0xa0   :  { %v37_v19 = vadd.f32 %v36_v18, %v34_v17 }
  0xa2   :  { %38 = vadd.xlane.f32.xlu0 %v37_v19 }
 0x12f   :  { %v39_v20 = vpop.xlane.xlu0 %38 }
 0x130   :  { %v40_v21 = vmul.f32 0.001953125, %v39_v20 }
 0x132   :  { %v41_v23 = vadd.f32 1e-05, %v40_v21 }
 0x134   :  { %105 = vrsqrt.f32 %v41_v23 }
 0x13e   :  { %v106_v35 = vpop.eup %105 }
 0x13f   :  { %v43_v40 = vmul.f32 %v106_v35, %v27_v9  ;;  %v44_v41 = vmul.f32 %v106_v35, %v28_v10  ;;  %v45_v42 = vmul.f32 %v106_v35, %v29_v11  ;;  %v46_v43 = vmul.f32 %v106_v35, %v30_v12 }
 0x141   :  { %v68_v44 = vmul.f32 %v51_v31, %v43_v40  ;;  %v69_v45 = vmul.f32 %v55_v32, %v44_v41  ;;  %v70_v46 = vmul.f32 %v59_v33, %v45_v42  ;;  %v71_v47 = vmul.f32 %v63_v34, %v46_v43 }
 0x143   :  { %v93_v48 = vadd.f32 %v76_v36, %v68_v44  ;;  %v94_v49 = vadd.f32 %v80_v37, %v69_v45  ;;  %v95_v50 = vadd.f32 %v84_v38, %v70_v46  ;;  %v96_v51 = vadd.f32 %v88_v39, %v71_v47 }
 0x145   :  { %97 = vst [vmem:[%s160_s3] sm:$0xff] %v93_v48  ;;  %98 = vst [vmem:[%s160_s3 + $0x8] sm:$0xff] %v94_v49 }
 0x146   :  { %99 = vst [vmem:[%s160_s3 + $0x10] sm:$0xff] %v95_v50  ;;  %100 = vst [vmem:[%s160_s3 + $0x18] sm:$0xff] %v96_v51 }

// kernel: _lambda_.14
= control target key start
LH: loop header
LB: loop body
LE: loop exit
PB: predicated region body
PF: predicated region fallthrough
CT: control target
= control target key end

     0   :  { %vm180_vm0 = vcmask 130048   ;;  %vm481_vm1 = vcmask 64512   ;;  %s816_s1 = inlined_call_operand.vmem [shape: f32[128,32], index: 1, kind: input, shape index: {}]   ;;  %s817_s0 = inlined_call_operand.vmem [shape: f32[32,128], index: 0, kind: input, shape index: {}]   ;;  %s818_s2 = inlined_call_operand.vmem [shape: f32[1,32], index: 2, kind: input, shape index: {}]   ;;  %s819_s5 = inlined_call_operand.vmem [shape: f32[16,16], index: 5, kind: input, shape index: {}]   ;;  %s820_s7 = inlined_call_operand.vmem [shape: f32[16,8], index: 7, kind: input, shape index: {}]   ;;  %s821_s3 = inlined_call_operand.vmem [shape: f32[16,16], index: 3, kind: input, shape index: {}]   ;;  %s822_s4 = inlined_call_operand.vmem [shape: f32[16,16], index: 4, kind: input, shape index: {}]   ;;  %s823_s6 = inlined_call_operand.vmem [shape: f32[1,16], index: 6, kind: input, shape index: {}]   ;;  %s824_s8 = inlined_call_operand.vmem [shape: f32[1,8], index: 8, kind: input, shape index: {}]   ;;  %s825_s9 = inlined_call_operand.vmem [shape: f32[32,8], index: 9, kind: output, shape index: {}]  }
   0x1   :  { %v36_v0 = vld [vmem:[%s816_s1] sm:$0xff]  ;;  %v37_v1 = vld [vmem:[%s816_s1 + $0x8] sm:$0xff]  ;;  %v38_v2 = vld [vmem:[%s816_s1 + $0x10] sm:$0xff] }
   0x2   :  { %v591_v3 = vpack.c.bf16 %v37_v1, %v36_v0  ;;  %v39_v4 = vld [vmem:[%s816_s1 + $0x18] sm:$0xff]  ;;  %v40_v6 = vld [vmem:[%s816_s1 + $0x20] sm:$0xff]  ;;  %v41_v7 = vld [vmem:[%s816_s1 + $0x28] sm:$0xff] }
   0x3   :  { %v595_v5 = vpack.c.bf16 %v39_v4, %v38_v2  ;;  %v599_v8 = vpack.c.bf16 %v41_v7, %v40_v6  ;;  %v32_v9 = vld [vmem:[%s817_s0] sm:$0xff]  ;;  %v42_v10 = vld [vmem:[%s816_s1 + $0x30] sm:$0xff]  ;;  %v43_v11 = vld [vmem:[%s816_s1 + $0x38] sm:$0xff] }
   0x4   :  { %592 = vmatprep.subr.bf16.mxu0 %v591_v3  ;;  %565 = vmatprep.mubr.f32.mxu0 %v32_v9  ;;  %v603_v12 = vpack.c.bf16 %v43_v11, %v42_v10  ;;  %v44_v13 = vld [vmem:[%s816_s1 + $0x40] sm:$0xff]  ;;  %v45_v14 = vld [vmem:[%s816_s1 + $0x48] sm:$0xff]  ;;  %v46_v16 = vld [vmem:[%s816_s1 + $0x50] sm:$0xff] }
   0x5   :  { %594 = vmatpush3.bf16.msra.mxu0 %v591_v3  ;;  %v607_v15 = vpack.c.bf16 %v45_v14, %v44_v13  ;;  %v47_v17 = vld [vmem:[%s816_s1 + $0x58] sm:$0xff]  ;;  %v48_v19 = vld [vmem:[%s816_s1 + $0x60] sm:$0xff]  ;;  %v49_v20 = vld [vmem:[%s816_s1 + $0x68] sm:$0xff] }
   0x6   :  { %596 = vmatprep.subr.bf16.mxu0 %v595_v5  ;;  %v611_v18 = vpack.c.bf16 %v47_v17, %v46_v16  ;;  %v615_v21 = vpack.c.bf16 %v49_v20, %v48_v19  ;;  %v50_v22 = vld [vmem:[%s816_s1 + $0x70] sm:$0xff]  ;;  %v51_v23 = vld [vmem:[%s816_s1 + $0x78] sm:$0xff]  ;;  %v33_v25 = vld [vmem:[%s817_s0 + $0x8] sm:$0xff] }
   0x7   :  { %v619_v24 = vpack.c.bf16 %v51_v23, %v50_v22  ;;  %v34_v26 = vld [vmem:[%s817_s0 + $0x10] sm:$0xff]  ;;  %v35_v27 = vld [vmem:[%s817_s0 + $0x18] sm:$0xff]  ;;  %v490_v28 = vld [vmem:[%s818_s2] ss:$0 sm:$0xff]  ;;  %s644_s0 = smov 112  }
   0x9   :  { %598 = vmatpush3.bf16.msra.mxu0 %v595_v5 }
   0xa   :  { %600 = vmatprep.subr.bf16.mxu0 %v599_v8 }
   0xd   :  { %602 = vmatpush3.bf16.msra.mxu0 %v599_v8 }
   0xe   :  { %604 = vmatprep.subr.bf16.mxu0 %v603_v12 }
  0x11   :  { %606 = vmatpush3.bf16.msra.mxu0 %v603_v12 }
  0x12   :  { %608 = vmatprep.subr.bf16.mxu0 %v607_v15 }
  0x15   :  { %610 = vmatpush3.bf16.msra.mxu0 %v607_v15 }
  0x16   :  { %612 = vmatprep.subr.bf16.mxu0 %v611_v18 }
  0x19   :  { %614 = vmatpush3.bf16.msra.mxu0 %v611_v18 }
  0x1a   :  { %616 = vmatprep.subr.bf16.mxu0 %v615_v21 }
  0x1d   :  { %618 = vmatpush3.bf16.msra.mxu0 %v615_v21 }
  0x1e   :  { %620 = vmatprep.subr.bf16.mxu0 %v619_v24 }
  0x21   :  { %622 = vmatpush3.bf16.msra.mxu0 %v619_v24 }
  0x24   :  { %566 = vmatmul.mubr.f32.vlgmr.msra.gmra.mrb[0].mxu0 %v33_v25 }
  0x25   :  { %568 = vmatprep.mubr.f32.mxu0 %v34_v26 }
  0x28   :  { %569 = vmatmul.mubr.f32.gmra.mrb[2].mxu0 %v35_v27 }
  0xf7   :  { %v567_v29 = vpop.f32.mrb[0].mxu0 }
  0xf8   :  { %v131_v30 = vadd.f32 %v567_v29, %v490_v28  ;;  %v125_v31 = vpop.f32.mrb[1].mxu0 }
  0xf9   :  { %v126_v32 = vadd.f32 %v490_v28, %v125_v31 }
  0xfa   :  { %v145_v33 = vmul.f32 0.5, %v131_v30 }
  0xfb   :  { %v144_v34 = vmul.f32 0.5, %v126_v32  ;;  %v570_v35 = vpop.f32.mrb[2].mxu0 }
  0xfc   :  { %632 = vtanh.f32 %v145_v33  ;;  %v141_v36 = vadd.f32 %v570_v35, %v490_v28  ;;  %v135_v37 = vpop.f32.mrb[3].mxu0  ;;  %v265_v33 = vld [vmem:[%s819_s5] sm:$0xff] }
  0xfd   :  { %634 = vtanh.f32 %v144_v34  ;;  %v136_v38 = vadd.f32 %v490_v28, %v135_v37  ;;  %v266_v34 = vld [vmem:[%s819_s5 + $0x8] sm:$0xff] }
  0xfe   :  { %v147_v39 = vmul.f32 0.5, %v141_v36  ;;  %v623_v35 = vpack.c.bf16 %v266_v34, %v265_v33  ;;  %v376_v37 = vld [vmem:[%s820_s7 + $0x8] sm:$0xff] }
  0xff   :  { %v146_v40 = vmul.f32 0.5, %v136_v38 }
 0x100   :  { %636 = vtanh.f32 %v147_v39  ;;  %624 = vmatprep.subr.bf16.mxu1 %v623_v35 }
 0x101   :  { %638 = vtanh.f32 %v146_v40  ;;  %626 = vmatpush3.bf16.msra.mxu1 %v623_v35 }
 0x106   :  { %v633_v41 = vpop.eup %632 }
 0x107   :  { %v635_v42 = vpop.eup %634  ;;  %v153_v46 = vadd.f32 1.0, %v633_v41 }
 0x108   :  { %v152_v43 = vadd.f32 1.0, %v635_v42 }
 0x109   :  { %v157_v50 = vmul.f32 0.5, %v153_v46 }
 0x10a   :  { %v637_v44 = vpop.eup %636  ;;  %v156_v45 = vmul.f32 0.5, %v152_v43 }
 0x10b   :  { %v639_v47 = vpop.eup %638  ;;  %v155_v51 = vadd.f32 1.0, %v637_v44 }
 0x10c   :  { %164 = vrot.lane.b32.xlu0 %v156_v45, %s644_s0  ;;  %v154_v48 = vadd.f32 1.0, %v639_v47 }
 0x10d   :  { %v159_v52 = vmul.f32 0.5, %v155_v51 }
 0x10e   :  { %v158_v49 = vmul.f32 0.5, %v154_v48 }
 0x110   :  { %168 = vrot.lane.b32.xlu1 %v158_v49, %s644_s0  ;;  %166 = vrot.lane.b32.xlu0 %v157_v50, %s644_s0 }
 0x114   :  { %170 = vrot.lane.b32.xlu1 %v159_v52, %s644_s0 }
 0x17e   :  { %v165_v53 = vpop.permute.xlu0 %164 }
 0x17f   :  { %v176_v54 = vmul.f32 %v165_v53, %v126_v32 }
 0x181   :  { %v181_v55 = vsel %vm180_vm0, %v176_v54, 0.0 }
 0x182   :  { %v169_v56 = vpop.permute.xlu1 %168  ;;  %182 = vadd.xlane.f32.xlu0 %v181_v55  ;;  %v167_v57 = vpop.permute.xlu0 %166 }
 0x183   :  { %v178_v58 = vmul.f32 %v169_v56, %v136_v38  ;;  %v177_v59 = vmul.f32 %v167_v57, %v131_v30 }
 0x185   :  { %v187_v60 = vsel %vm180_vm0, %v178_v58, 0.0  ;;  %v184_v61 = vsel %vm180_vm0, %v177_v59, 0.0 }
 0x186   :  { %v171_v62 = vpop.permute.xlu1 %170  ;;  %188 = vadd.xlane.f32.xlu0 %v187_v60  ;;  %185 = vadd.xlane.f32.xlu1 %v184_v61 }
 0x187   :  { %v179_v63 = vmul.f32 %v171_v62, %v141_v36  ;;  %v375_v36 = vld [vmem:[%s820_s7] sm:$0xff] }
 0x188   :  { %v627_v38 = vpack.c.bf16 %v376_v37, %v375_v36  ;;  %v253_v62 = vld [vmem:[%s821_s3] sm:$0xff] }
 0x189   :  { %v190_v0 = vsel %vm180_vm0, %v179_v63, 0.0 }
 0x18a   :  { %191 = vadd.xlane.f32.xlu0 %v190_v0  ;;  %628 = vmatprep.subr.bf16.mxu1 %v627_v38 }
 0x20f   :  { %v183_v1 = vpop.xlane.xlu0 %182 }
 0x213   :  { %v186_v2 = vpop.xlane.xlu1 %185  ;;  %v189_v3 = vpop.xlane.xlu0 %188 }
 0x214   :  { %v193_v4 = vadd.f32 %v186_v2, %v183_v1  ;;  %v259_v2 = vld [vmem:[%s822_s4] sm:$0xff] }
 0x216   :  { %v194_v5 = vrot.slane %v193_v4, 4 }
 0x217   :  { %v192_v6 = vpop.xlane.xlu0 %191 }
 0x218   :  { %v195_v7 = vadd.f32 %v194_v5, %v193_v4  ;;  %v200_v8 = vadd.f32 %v192_v6, %v189_v3  ;;  %v260_v3 = vld [vmem:[%s822_s4 + $0x8] sm:$0xff] }
 0x21a   :  { %v196_v9 = vrot.slane %v195_v7, 2  ;;  %v201_v10 = vrot.slane %v200_v8, 4 }
 0x21c   :  { %v197_v11 = vadd.f32 %v196_v9, %v195_v7  ;;  %v202_v12 = vadd.f32 %v201_v10, %v200_v8 }
 0x21e   :  { %v198_v13 = vrot.slane %v197_v11, 1  ;;  %v203_v14 = vrot.slane %v202_v12, 2 }
 0x220   :  { %v199_v15 = vadd.f32 %v198_v13, %v197_v11  ;;  %v204_v16 = vadd.f32 %v203_v14, %v202_v12 }
 0x222   :  { %v205_v17 = vrot.slane %v204_v16, 1  ;;  %v207_v18 = vmul.f32 0.00390625, %v199_v15  ;;  %v491_v15 = vld [vmem:[%s823_s6] ss:$0 sm:$0xff] }
 0x224   :  { %v206_v19 = vadd.f32 %v205_v17, %v204_v16  ;;  %v210_v20 = vsub.f32 %v177_v59, %v207_v18  ;;  %v209_v21 = vsub.f32 %v176_v54, %v207_v18 }
 0x226   :  { %v214_v22 = vmul.f32 %v210_v20, %v210_v20  ;;  %v213_v23 = vmul.f32 %v209_v21, %v209_v21  ;;  %v208_v24 = vmul.f32 0.00390625, %v206_v19 }
 0x228   :  { %v220_v25 = vsel %vm180_vm0, %v214_v22, 0.0  ;;  %v217_v26 = vsel %vm180_vm0, %v213_v23, 0.0  ;;  %v212_v27 = vsub.f32 %v179_v63, %v208_v24  ;;  %v211_v28 = vsub.f32 %v178_v58, %v208_v24  ;;  %v254_v63 = vld [vmem:[%s821_s3 + $0x8] sm:$0xff] }
 0x229   :  { %221 = vadd.xlane.f32.xlu0 %v220_v25  ;;  %218 = vadd.xlane.f32.xlu1 %v217_v26 }
 0x22a   :  { %v216_v29 = vmul.f32 %v212_v27, %v212_v27  ;;  %v215_v30 = vmul.f32 %v211_v28, %v211_v28 }
 0x22c   :  { %v226_v31 = vsel %vm180_vm0, %v216_v29, 0.0  ;;  %v223_v32 = vsel %vm180_vm0, %v215_v30, 0.0 }
 0x22d   :  { %227 = vadd.xlane.f32.xlu0 %v226_v31  ;;  %224 = vadd.xlane.f32.xlu1 %v223_v32 }
 0x2b6   :  { %v219_v39 = vpop.xlane.xlu1 %218  ;;  %v222_v40 = vpop.xlane.xlu0 %221 }
 0x2b7   :  { %v229_v41 = vadd.f32 %v222_v40, %v219_v39 }
 0x2b9   :  { %v230_v42 = vrot.slane %v229_v41, 4 }
 0x2ba   :  { %v225_v43 = vpop.xlane.xlu1 %224  ;;  %v228_v44 = vpop.xlane.xlu0 %227 }
 0x2bb   :  { %v231_v45 = vadd.f32 %v230_v42, %v229_v41  ;;  %v236_v46 = vadd.f32 %v228_v44, %v225_v43 }
 0x2bd   :  { %v232_v47 = vrot.slane %v231_v45, 2  ;;  %v237_v48 = vrot.slane %v236_v46, 4 }
 0x2bf   :  { %v233_v49 = vadd.f32 %v232_v47, %v231_v45  ;;  %v238_v50 = vadd.f32 %v237_v48, %v236_v46 }
 0x2c1   :  { %v234_v51 = vrot.slane %v233_v49, 1  ;;  %v239_v52 = vrot.slane %v238_v50, 2 }
 0x2c3   :  { %v235_v53 = vadd.f32 %v234_v51, %v233_v49  ;;  %v240_v54 = vadd.f32 %v239_v52, %v238_v50 }
 0x2c5   :  { %v243_v55 = vmul.f32 0.00390625, %v235_v53  ;;  %v241_v56 = vrot.slane %v240_v54, 1 }
 0x2c7   :  { %v245_v57 = vadd.f32 1e-05, %v243_v55  ;;  %v242_v58 = vadd.f32 %v241_v56, %v240_v54 }
 0x2c9   :  { %640 = vrsqrt.f32 %v245_v57  ;;  %v244_v59 = vmul.f32 0.00390625, %v242_v58 }
 0x2cb   :  { %v246_v60 = vadd.f32 1e-05, %v244_v59 }
 0x2cd   :  { %642 = vrsqrt.f32 %v246_v60 }
 0x2d3   :  { %v641_v61 = vpop.eup %640 }
 0x2d4   :  { %v249_v0 = vmul.f32 %v641_v61, %v209_v21  ;;  %v250_v1 = vmul.f32 %v641_v61, %v210_v20 }
 0x2d6   :  { %v255_v4 = vmul.f32 %v253_v62, %v249_v0  ;;  %v256_v5 = vmul.f32 %v254_v63, %v250_v1 }
 0x2d7   :  { %v643_v6 = vpop.eup %642 }
 0x2d8   :  { %v251_v7 = vmul.f32 %v643_v6, %v211_v28  ;;  %v252_v8 = vmul.f32 %v643_v6, %v212_v27  ;;  %v261_v9 = vadd.f32 %v259_v2, %v255_v4  ;;  %v262_v10 = vadd.f32 %v260_v3, %v256_v5  ;;  %v496_v28 = vld [vmem:[%s824_s8] ss:$0 sm:$0xff] }
 0x2da   :  { %v257_v11 = vmul.f32 %v253_v62, %v251_v7  ;;  %v258_v12 = vmul.f32 %v254_v63, %v252_v8  ;;  %575 = vmatprep.mubr.msk.f32.mxu1 %vm180_vm0, %v261_v9 }
 0x2db   :  { %576 = vmatmul.mubr.msk.f32.vlgmr.msra.gmra.mrb[0].mxu1 %vm180_vm0, %v262_v10 }
 0x2dc   :  { %v263_v13 = vadd.f32 %v259_v2, %v257_v11  ;;  %v264_v14 = vadd.f32 %v260_v3, %v258_v12  ;;  %630 = vmatpush3.bf16.msra.mxu1 %v627_v38 }
 0x2de   :  { %578 = vmatprep.mubr.msk.f32.mxu1 %vm180_vm0, %v263_v13 }
 0x2df   :  { %579 = vmatmul.mubr.msk.f32.gmra.mrb[2].mxu1 %vm180_vm0, %v264_v14 }
 0x3ae   :  { %v577_v16 = vpop.f32.mrb[0].mxu1 }
 0x3af   :  { %v358_v17 = vadd.f32 %v577_v16, %v491_v15  ;;  %v352_v18 = vpop.f32.mrb[1].mxu1 }
 0x3b0   :  { %v353_v19 = vadd.f32 %v491_v15, %v352_v18 }
 0x3b1   :  { %v372_v22 = vmax.f32 %v358_v17, 0.0 }
 0x3b2   :  { %v371_v20 = vmax.f32 %v353_v19, 0.0  ;;  %v580_v21 = vpop.f32.mrb[2].mxu1 }
 0x3b3   :  { %v368_v23 = vadd.f32 %v580_v21, %v491_v15  ;;  %v362_v24 = vpop.f32.mrb[3].mxu1 }
 0x3b4   :  { %v363_v25 = vadd.f32 %v491_v15, %v362_v24  ;;  %585 = vmatprep.mubr.msk.f32.mxu1 %vm180_vm0, %v371_v20 }
 0x3b5   :  { %586 = vmatmul.mubr.msk.f32.vlgmr.msra.gmra.mrb[4].mxu1 %vm180_vm0, %v372_v22  ;;  %v374_v27 = vmax.f32 %v368_v23, 0.0 }
 0x3b6   :  { %v373_v26 = vmax.f32 %v363_v25, 0.0 }
 0x3b8   :  { %588 = vmatprep.mubr.msk.f32.mxu1 %vm180_vm0, %v373_v26 }
 0x3b9   :  { %589 = vmatmul.mubr.msk.f32.gmra.mrb[6].mxu1 %vm180_vm0, %v374_v27 }
 0x488   :  { %v587_v29 = vpop.f32.mrb[4].mxu1 }
 0x489   :  { %v468_v30 = vadd.f32 %v587_v29, %v496_v28  ;;  %v462_v31 = vpop.f32.mrb[5].mxu1 }
 0x48a   :  { %v463_v32 = vadd.f32 %v496_v28, %v462_v31 }
 0x48b   :  { %483 = vst.msk [vmem:[%s825_s9 + $0x8] sm:$0xff] %vm481_vm1, %v468_v30 }
 0x48c   :  { %482 = vst.msk [vmem:[%s825_s9] sm:$0xff] %vm481_vm1, %v463_v32  ;;  %v590_v33 = vpop.f32.mrb[6].mxu1 }
 0x48d   :  { %v478_v34 = vadd.f32 %v590_v33, %v496_v28  ;;  %v472_v35 = vpop.f32.mrb[7].mxu1 }
 0x48e   :  { %v473_v36 = vadd.f32 %v496_v28, %v472_v35 }
 0x48f   :  { %485 = vst.msk [vmem:[%s825_s9 + $0x18] sm:$0xff] %vm481_vm1, %v478_v34 }
 0x490   :  { %484 = vst.msk [vmem:[%s825_s9 + $0x10] sm:$0xff] %vm481_vm1, %v473_v36 }

// kernel: _lambda_.12
= control target key start
LH: loop header
LB: loop body
LE: loop exit
PB: predicated region body
PF: predicated region fallthrough
CT: control target
= control target key end

     0   :  { %s5613_s27 = smov 0   ;;  %s5615_s28 = smov 0   ;;  %s7004_s0 = inlined_call_operand.vmem [shape: f32[128,32], index: 0, kind: input, shape index: {}]   ;;  %s7005_s1 = inlined_call_operand.vmem [shape: f32[128,32], index: 1, kind: input, shape index: {}]   ;;  %s7006_s2 = inlined_call_operand.vmem [shape: f32[64,64], index: 2, kind: input, shape index: {}]   ;;  %s7007_s3 = inlined_call_operand.vmem [shape: f32[32,32], index: 3, kind: input, shape index: {}]   ;;  %s7008_s4 = inlined_call_operand.vmem [shape: f32[1,32], index: 4, kind: input, shape index: {}]   ;;  %s7009_s5 = inlined_call_operand.vmem [shape: f32[1,32], index: 5, kind: input, shape index: {}]   ;;  %s7010_s6 = inlined_call_operand.vmem [shape: f32[4,32,96], index: 6, kind: input, shape index: {}]   ;;  %s7011_s7 = inlined_call_operand.vmem [shape: f32[4,1,96], index: 7, kind: input, shape index: {}]   ;;  %s7012_s8 = inlined_call_operand.vmem [shape: f32[4,32,32], index: 8, kind: input, shape index: {}]   ;;  %s7013_s9 = inlined_call_operand.vmem [shape: f32[4,1,32], index: 9, kind: input, shape index: {}, may-alias: {9,11,15,17}]   ;;  %s7014_s10 = inlined_call_operand.vmem [shape: f32[4,1,32], index: 10, kind: input, shape index: {}, may-alias: {10,16}]   ;;  %s7015_s11 = inlined_call_operand.vmem [shape: f32[4,1,32], index: 11, kind: input, shape index: {}, may-alias: {9,11,15,17}]   ;;  %s7016_s12 = inlined_call_operand.vmem [shape: f32[4,32,128], index: 12, kind: input, shape index: {}]   ;;  %s7017_s13 = inlined_call_operand.vmem [shape: f32[4,1,128], index: 13, kind: input, shape index: {}]   ;;  %s7018_s14 = inlined_call_operand.vmem [shape: f32[4,128,32], index: 14, kind: input, shape index: {}]   ;;  %s7019_s15 = inlined_call_operand.vmem [shape: f32[4,1,32], index: 15, kind: input, shape index: {}, may-alias: {9,11,15,17}]   ;;  %s7020_s16 = inlined_call_operand.vmem [shape: f32[4,1,32], index: 16, kind: input, shape index: {}, may-alias: {10,16}]   ;;  %s7021_s17 = inlined_call_operand.vmem [shape: f32[4,1,32], index: 17, kind: input, shape index: {}, may-alias: {9,11,15,17}]   ;;  %s7022_s18 = inlined_call_operand.vmem [shape: f32[128,32], index: 18, kind: output, shape index: {}]  }
   0x1   :  { %7030 = sst [smem:[#allocation15_spill]] %s7004_s0  ;;  %s5617_s29 = smov 0  }
   0x2   :  { %7031 = sst [smem:[#allocation16_spill]] %s7005_s1  ;;  %s5619_s30 = smov 0  }
   0x3   :  { %7032 = sst [smem:[#allocation17_spill]] %s7006_s2  ;;  %s5621_s0 = smov 0  }
   0x4   :  { %7033 = sst [smem:[#allocation18_spill]] %s7007_s3 }
   0x5   :  { %7034 = sst [smem:[#allocation19_spill]] %s7008_s4 }
   0x6   :  { %7035 = sst [smem:[#allocation20_spill]] %s7009_s5 }
   0x7   :  { %7036 = sst [smem:[#allocation21_spill]] %s7010_s6 }
   0x8   :  { %7037 = sst [smem:[#allocation22_spill]] %s7011_s7 }
   0x9   :  { %7038 = sst [smem:[#allocation23_spill]] %s7012_s8 }
   0xa   :  { %7039 = sst [smem:[#allocation24_spill]] %s7016_s12 }
   0xb   :  { %7040 = sst [smem:[#allocation25_spill]] %s7022_s18 }
   0xc LB: > { %7041 = sst [smem:[#allocation2_spill]] %s5486_s27  ;;  %s37_s19 = sadd.s32 1, %s5494_s29  ;;  %s5502_s0 = sphi %s5621_s0, %s28_s0   ;;  %s5498_s30 = sphi %s5619_s30, %s7087_s30   ;;  %s5494_s29 = sphi %s5617_s29, %s7086_s29   ;;  %s5490_s28 = sphi %s5615_s28, %s7085_s28   ;;  %s5486_s27 = sphi %s5613_s27, %s7084_s27  }
   0xd   : > { %7042 = sst [smem:[#allocation3_spill]] %s5494_s29  ;;  %s40_s1 = sadd.s32 1, %s5498_s30 }
   0xe   : > { %7043 = sst [smem:[#allocation4_spill]] %s5498_s30  ;;  %p38_p0 = scmp.ge.s32.totalorder %s37_s19, 4 }
   0xf   : > { %7044 = sst [smem:[#allocation5_spill]] %s5502_s0  ;;  %p4088_p1 = scmp.ge.s32.totalorder %s5502_s0, 1 }
  0x10   : > { %p640_p2 = scmp.lt.s32.totalorder %s5502_s0, 9  ;;  %s7089_s19 = smov (%p38_p0, %s37_s19), 0 }
  0x11   : > { %7045 = sst [smem:[#allocation6_spill]] %s7089_s19  ;;  %s7091_s1 = smov (!%p38_p0, %s40_s1), %s5498_s30 }
  0x12   : > { %p641_p3 = pnand %p4088_p1, %p640_p2  ;;  %p42_p4 = scmp.ge.s32.totalorder %s7091_s1, 2 }
  0x14   : > { %s7093_s1 = smov (%p42_p4, %s7091_s1), 0  ;;  %644 = sbr.rel (%p641_p3) target bundleno = 3990 (0xf96), region = 92 }
  0x15   : > { %7046 = sst [smem:[#allocation7_spill]] %s7093_s1 }
  0x1b   : > { %s4089_s20 = sshll.u32 %s5490_s28, 3  ;;  %p755_p5 = scmp.lt.s32.totalorder %s5486_s27, 3 }
  0x1c   : > { %p744_p6 = scmp.lt.s32.totalorder %s4089_s20, 15  ;;  %s7048_s6 = sld [smem:[#allocation21_spill]] }
  0x1d   : > { %s5647_s21 = scalar_select %p755_p5, %s5486_s27, 3 }
  0x1e   : > { %s7095_s20 = smov (!%p744_p6, %s4089_s20), 15  ;;  %s7049_s29 = sld [smem:[#allocation15_spill]] }
  0x1f   : > { %s4254_s22 = sshll.u32 %s5647_s21, 5  ;;  %s4090_s25 = sshll.u32 %s7095_s20, 3 }
  0x20   : > { %s7050_s3 = sld [smem:[#allocation16_spill]]  ;;  %s7051_s8 = sld [smem:[#allocation23_spill]] }
  0x21   : > { %s7053_s12 = sld [smem:[#allocation24_spill]]  ;;  %s792_s26 = scalar_lea.vmem %s7019_s15, %s5647_s21 }
  0x22   : > { %s5657_s1 = scalar_lea.vmem %s7048_s6, %s4254_s22  ;;  %s795_s4 = scalar_lea.vmem %s7020_s16, %s5647_s21 }
  0x23   : > { %s798_s7 = scalar_lea.vmem %s7021_s17, %s5647_s21  ;;  %s7055_s24 = sld [smem:[#allocation2_spill]] }
  0x24   : > { %s5662_s0 = scalar_lea.vmem %s7049_s29, %s4090_s25 }
  0x26   : > { %s5667_s27 = scalar_lea.vmem %s7050_s3, %s4090_s25  ;;  %s5672_s23 = scalar_lea.vmem %s7051_s8, %s4254_s22 }
  0x27   : > { %7052 = sst [smem:[#allocation8_spill]] %s5672_s23  ;;  %s5689_s5 = scalar_lea.vmem %s7053_s12, %s4254_s22 }
  0x28   : > { %s4257_s23 = sshll.u32 %s5647_s21, 7  ;;  %s7054_s8 = sld [smem:[#allocation25_spill]] }
  0x29   : > { %s5703_s30 = scalar_lea.vmem %s7018_s14, %s4257_s23  ;;  %p4103_p7 = scmp.ne.s32.totalorder %s7055_s24, 0 }
  0x2a   : > { %s7056_s23 = sld [smem:[#allocation18_spill]] (!%p4103_p7)  ;;  %vm829_vm0 = vcmask (!%p4103_p7), 261120   ;;  %v809_v5 = vld [vmem:[%s5662_s0] sm:$0xff] (!%p4103_p7)  ;;  %v810_v8 = vld [vmem:[%s5662_s0 + $0x8] sm:$0xff] (!%p4103_p7)  ;;  %v811_v10 = vld [vmem:[%s5662_s0 + $0x10] sm:$0xff] (!%p4103_p7)  ;;  %s7057_s18 = sld [smem:[#allocation19_spill]] (!%p4103_p7) }
  0x2b   : > { %808 = sbr.rel (%p4103_p7) target bundleno = 621 (0x26d), region = 96  ;;  %v813_v6 = vld [vmem:[%s5662_s0 + $0x20] sm:$0xff] (!%p4103_p7)  ;;  %4466 = vmatprep.mubr.msk.f32.mxu0 (!%p4103_p7), %vm829_vm0, %v809_v5  ;;  %v814_v9 = vld [vmem:[%s5662_s0 + $0x28] sm:$0xff] (!%p4103_p7)  ;;  %v815_v11 = vld [vmem:[%s5662_s0 + $0x30] sm:$0xff] (!%p4103_p7)  ;;  %s7058_s20 = sld [smem:[#allocation20_spill]] (!%p4103_p7) }
  0x2c   : > { %4472 = vmatprep.mubr.msk.f32.mxu1 (!%p4103_p7), %vm829_vm0, %v813_v6  ;;  %v812_v12 = vld [vmem:[%s5662_s0 + $0x18] sm:$0xff] (!%p4103_p7)  ;;  %v822_v14 = vld [vmem:[%s5667_s27 + $0x8] sm:$0xff] (!%p4103_p7)  ;;  %v821_v18 = vld [vmem:[%s5667_s27] sm:$0xff] (!%p4103_p7) }
  0x2d   : > { %v816_v13 = vld [vmem:[%s5662_s0 + $0x38] sm:$0xff] (!%p4103_p7)  ;;  %v826_v15 = vld [vmem:[%s5667_s27 + $0x28] sm:$0xff] (!%p4103_p7)  ;;  %v823_v27 = vld [vmem:[%s5667_s27 + $0x10] sm:$0xff] (!%p4103_p7) }
  0x2e   : > { %s5716_s12 = scalar_lea.vmem %s7054_s8, %s4090_s25  ;;  %v824_v23 = vld [vmem:[%s5667_s27 + $0x18] sm:$0xff] (!%p4103_p7)  ;;  %v825_v28 = vld [vmem:[%s5667_s27 + $0x20] sm:$0xff] (!%p4103_p7)  ;;  %v827_v36 = vld [vmem:[%s5667_s27 + $0x30] sm:$0xff] (!%p4103_p7) }
  0x2f   : > { %v828_v35 = vld [vmem:[%s5667_s27 + $0x38] sm:$0xff] (!%p4103_p7) }
  0x30   : > { %v817_v0 = vld [vmem:[%s7056_s23] sm:$0xff] (!%p4103_p7)  ;;  %v818_v1 = vld [vmem:[%s7056_s23 + $0x8] sm:$0xff] (!%p4103_p7)  ;;  %v819_v2 = vld [vmem:[%s7056_s23 + $0x10] sm:$0xff] (!%p4103_p7) }
  0x31   : > { %v4806_v3 = vpack.c.bf16 (!%p4103_p7), %v818_v1, %v817_v0  ;;  %v820_v4 = vld [vmem:[%s7056_s23 + $0x18] sm:$0xff] (!%p4103_p7) }
  0x32   : > { %v4810_v7 = vpack.c.bf16 %v820_v4, %v819_v2 }
  0x33   : > { %4807 = vmatprep.subr.bf16.mxu0 %v4806_v3  ;;  %5030 = vmatprep.subr.bf16.mxu1 %v4806_v3 }
  0x34   : > { %4809 = vmatpush3.bf16.msra.mxu0 %v4806_v3  ;;  %5032 = vmatpush3.bf16.msra.mxu1 %v4806_v3 }
  0x35   : > { %4811 = vmatprep.subr.bf16.mxu0 %v4810_v7  ;;  %5031 = vmatprep.subr.bf16.mxu1 %v4810_v7 }
  0x38   : > { %4813 = vmatpush3.bf16.msra.mxu0 %v4810_v7  ;;  %5033 = vmatpush3.bf16.msra.mxu1 %v4810_v7 }
  0x3b   : > { %4467 = vmatmul.mubr.msk.f32.vlgmr.msra.gmra.mrb[0].mxu0 %vm829_vm0, %v810_v8  ;;  %4473 = vmatmul.mubr.msk.f32.vlgmr.msra.gmra.mrb[0].mxu1 %vm829_vm0, %v814_v9 }
  0x3c   : > { %4469 = vmatprep.mubr.msk.f32.mxu0 %vm829_vm0, %v811_v10  ;;  %4475 = vmatprep.mubr.msk.f32.mxu1 %vm829_vm0, %v815_v11 }
  0x3f   : > { %4470 = vmatmul.mubr.msk.f32.gmra.mrb[2].mxu0 %vm829_vm0, %v812_v12  ;;  %4476 = vmatmul.mubr.msk.f32.gmra.mrb[2].mxu1 %vm829_vm0, %v816_v13 }
 0x10e   : > { %v4468_v16 = vpop.f32.mrb[0].mxu0  ;;  %v4474_v17 = vpop.f32.mrb[0].mxu1 }
 0x10f   : > { %v926_v19 = vadd.f32 %v4468_v16, %v822_v14  ;;  %v946_v20 = vadd.f32 %v4474_v17, %v826_v15  ;;  %v920_v21 = vpop.f32.mrb[1].mxu0  ;;  %v940_v22 = vpop.f32.mrb[1].mxu1 }
 0x110   : > { %v921_v24 = vadd.f32 %v920_v21, %v821_v18  ;;  %v941_v37 = vadd.f32 %v940_v22, %v825_v28 }
 0x111   : > { %v976_v25 = vsel %vm829_vm0, %v946_v20, 0.0  ;;  %v964_v26 = vsel %vm829_vm0, %v926_v19, 0.0 }
 0x112   : > { %977 = vadd.xlane.f32.xlu1 %v976_v25  ;;  %965 = vadd.xlane.f32.xlu0 %v964_v26  ;;  %v4471_v29 = vpop.f32.mrb[2].mxu0  ;;  %v4477_v30 = vpop.f32.mrb[2].mxu1  ;;  %v961_v39 = vsel %vm829_vm0, %v921_v24, 0.0  ;;  %v973_v43 = vsel %vm829_vm0, %v941_v37, 0.0 }
 0x113   : > { %v936_v31 = vadd.f32 %v4471_v29, %v824_v23  ;;  %v930_v32 = vpop.f32.mrb[3].mxu0  ;;  %v950_v33 = vpop.f32.mrb[3].mxu1  ;;  %v956_v40 = vadd.f32 %v4477_v30, %v828_v35 }
 0x114   : > { %v931_v34 = vadd.f32 %v930_v32, %v823_v27  ;;  %v951_v41 = vadd.f32 %v950_v33, %v827_v36 }
 0x115   : > { %v970_v38 = vsel %vm829_vm0, %v936_v31, 0.0  ;;  %v982_v44 = vsel %vm829_vm0, %v956_v40, 0.0 }
 0x116   : > { %971 = vadd.xlane.f32.xlu1 %v970_v38  ;;  %962 = vadd.xlane.f32.xlu0 %v961_v39  ;;  %v967_v42 = vsel %vm829_vm0, %v931_v34, 0.0  ;;  %v979_v45 = vsel %vm829_vm0, %v951_v41, 0.0 }
 0x11a   : > { %968 = vadd.xlane.f32.xlu1 %v967_v42  ;;  %974 = vadd.xlane.f32.xlu0 %v973_v43  ;;  %v4112_v42 = vld [vmem:[%s7057_s18] ss:$0 sm:$0xff] }
 0x11e   : > { %983 = vadd.xlane.f32.xlu1 %v982_v44  ;;  %980 = vadd.xlane.f32.xlu0 %v979_v45 }
 0x19f   : > { %v978_v46 = vpop.xlane.xlu1 %977  ;;  %v966_v47 = vpop.xlane.xlu0 %965 }
 0x1a0   : > { %v991_v48 = vmul.f32 0.03125, %v978_v46  ;;  %v987_v49 = vmul.f32 0.03125, %v966_v47  ;;  %v4113_v47 = vld [vmem:[%s7058_s20] ss:$0 sm:$0xff] }
 0x1a2   : > { %v5763_v50 = vsub.f32 %v946_v20, %v991_v48  ;;  %v5765_v51 = vsub.f32 %v926_v19, %v987_v49 }
 0x1a3   : > { %v972_v52 = vpop.xlane.xlu1 %971  ;;  %v963_v53 = vpop.xlane.xlu0 %962 }
 0x1a4   : > { %v989_v54 = vmul.f32 0.03125, %v972_v52  ;;  %v986_v55 = vmul.f32 0.03125, %v963_v53  ;;  %v1003_v56 = vmul.f32 %v5765_v51, %v5765_v51  ;;  %v1007_v60 = vmul.f32 %v5763_v50, %v5763_v50 }
 0x1a6   : > { %v5769_v57 = vsub.f32 %v936_v31, %v989_v54  ;;  %v5771_v58 = vsub.f32 %v921_v24, %v986_v55  ;;  %v1013_v59 = vsel %vm829_vm0, %v1003_v56, 0.0  ;;  %v1025_v5 = vsel %vm829_vm0, %v1007_v60, 0.0 }
 0x1a7   : > { %1014 = vadd.xlane.f32.xlu1 %v1013_v59  ;;  %v969_v61 = vpop.xlane.xlu1 %968  ;;  %v975_v62 = vpop.xlane.xlu0 %974 }
 0x1a8   : > { %v988_v63 = vmul.f32 0.03125, %v969_v61  ;;  %v990_v0 = vmul.f32 0.03125, %v975_v62  ;;  %v1002_v1 = vmul.f32 %v5771_v58, %v5771_v58  ;;  %v1005_v2 = vmul.f32 %v5769_v57, %v5769_v57 }
 0x1aa   : > { %v5780_v3 = vsub.f32 %v931_v34, %v988_v63  ;;  %v5782_v4 = vsub.f32 %v941_v37, %v990_v0  ;;  %v1010_v6 = vsel %vm829_vm0, %v1002_v1, 0.0  ;;  %v1019_v12 = vsel %vm829_vm0, %v1005_v2, 0.0 }
 0x1ab   : > { %1026 = vadd.xlane.f32.xlu1 %v1025_v5  ;;  %v984_v7 = vpop.xlane.xlu1 %983  ;;  %1011 = vadd.xlane.f32.xlu0 %v1010_v6  ;;  %v981_v8 = vpop.xlane.xlu0 %980 }
 0x1ac   : > { %v993_v9 = vmul.f32 0.03125, %v984_v7  ;;  %v992_v10 = vmul.f32 0.03125, %v981_v8  ;;  %v1006_v11 = vmul.f32 %v5782_v4, %v5782_v4  ;;  %v1004_v16 = vmul.f32 %v5780_v3, %v5780_v3 }
 0x1ae   : > { %v5789_v13 = vsub.f32 %v956_v40, %v993_v9  ;;  %v5791_v14 = vsub.f32 %v951_v41, %v992_v10  ;;  %v1022_v15 = vsel %vm829_vm0, %v1006_v11, 0.0  ;;  %v1016_v19 = vsel %vm829_vm0, %v1004_v16, 0.0 }
 0x1af   : > { %1020 = vadd.xlane.f32.xlu1 %v1019_v12  ;;  %1023 = vadd.xlane.f32.xlu0 %v1022_v15 }
 0x1b0   : > { %v1009_v17 = vmul.f32 %v5789_v13, %v5789_v13  ;;  %v1008_v20 = vmul.f32 %v5791_v14, %v5791_v14 }
 0x1b2   : > { %v1031_v18 = vsel %vm829_vm0, %v1009_v17, 0.0  ;;  %v1028_v21 = vsel %vm829_vm0, %v1008_v20, 0.0 }
 0x1b3   : > { %1032 = vadd.xlane.f32.xlu1 %v1031_v18  ;;  %1017 = vadd.xlane.f32.xlu0 %v1016_v19 }
 0x1b7   : > { %1029 = vadd.xlane.f32.xlu0 %v1028_v21 }
 0x234   : > { %v1015_v22 = vpop.xlane.xlu1 %1014 }
 0x235   : > { %v1035_v23 = vmul.f32 0.03125, %v1015_v22 }
 0x237   : > { %v1043_v24 = vadd.f32 1e-05, %v1035_v23 }
 0x238   : > { %v1027_v25 = vpop.xlane.xlu1 %1026  ;;  %v1012_v26 = vpop.xlane.xlu0 %1011 }
 0x239   : > { %5088 = vrsqrt.f32 %v1043_v24  ;;  %v1039_v27 = vmul.f32 0.03125, %v1027_v25  ;;  %v1034_v28 = vmul.f32 0.03125, %v1012_v26 }
 0x23b   : > { %v1047_v29 = vadd.f32 1e-05, %v1039_v27  ;;  %v1042_v30 = vadd.f32 1e-05, %v1034_v28 }
 0x23c   : > { %v1021_v31 = vpop.xlane.xlu1 %1020  ;;  %v1024_v32 = vpop.xlane.xlu0 %1023 }
 0x23d   : > { %5090 = vrsqrt.f32 %v1047_v29  ;;  %v1037_v33 = vmul.f32 0.03125, %v1021_v31  ;;  %v1038_v34 = vmul.f32 0.03125, %v1024_v32 }
 0x23e   : > { %5092 = vrsqrt.f32 %v1042_v30 }
 0x23f   : > { %v1045_v35 = vadd.f32 1e-05, %v1037_v33  ;;  %v1046_v36 = vadd.f32 1e-05, %v1038_v34 }
 0x240   : > { %v1033_v37 = vpop.xlane.xlu1 %1032  ;;  %v1018_v38 = vpop.xlane.xlu0 %1017 }
 0x241   : > { %5094 = vrsqrt.f32 %v1045_v35  ;;  %v1041_v39 = vmul.f32 0.03125, %v1033_v37  ;;  %v1036_v40 = vmul.f32 0.03125, %v1018_v38 }
 0x242   : > { %5096 = vrsqrt.f32 %v1046_v36 }
 0x243   : > { %v5089_v41 = vpop.eup %5088  ;;  %v1049_v43 = vadd.f32 1e-05, %v1041_v39  ;;  %v1044_v44 = vadd.f32 1e-05, %v1036_v40 }
 0x244   : > { %v1059_v45 = vmul.f32 %v5089_v41, %v5765_v51  ;;  %v1030_v46 = vpop.xlane.xlu0 %1029 }
 0x245   : > { %5098 = vrsqrt.f32 %v1049_v43  ;;  %v1040_v48 = vmul.f32 0.03125, %v1030_v46 }
 0x246   : > { %v1073_v49 = vmul.f32 %v4112_v42, %v1059_v45  ;;  %5100 = vrsqrt.f32 %v1044_v44 }
 0x247   : > { %v5091_v52 = vpop.eup %5090  ;;  %v1048_v53 = vadd.f32 1e-05, %v1040_v48 }
 0x248   : > { %v5093_v54 = vpop.eup %5092  ;;  %v1087_v55 = vadd.f32 %v4113_v47, %v1073_v49  ;;  %v1063_v56 = vmul.f32 %v5091_v52, %v5763_v50 }
 0x249   : > { %v1058_v59 = vmul.f32 %v5093_v54, %v5771_v58  ;;  %5102 = vrsqrt.f32 %v1048_v53 }
 0x24a   : > { %v1103_v60 = vmin.f32 %v1087_v55, 0.0  ;;  %v1077_v51 = vmul.f32 %v4112_v42, %v1063_v56  ;;  %vm1095_vm1 = vcmp.gt.f32.partialorder %v1087_v55, 0.0 }
 0x24b   : > { %v5095_v61 = vpop.eup %5094  ;;  %v1072_v62 = vmul.f32 %v4112_v42, %v1058_v59 }
 0x24c   : > { %v5097_v63 = vpop.eup %5096  ;;  %v1112_v0 = vmul.f32 1.442695, %v1103_v60  ;;  %v1091_v1 = vadd.f32 %v4113_v47, %v1077_v51  ;;  %v1061_v2 = vmul.f32 %v5095_v61, %v5769_v57 }
 0x24d   : > { %v1086_v5 = vadd.f32 %v4113_v47, %v1072_v62  ;;  %v1062_v6 = vmul.f32 %v5097_v63, %v5782_v4 }
 0x24e   : > { %5104 = vpow2.f32 %v1112_v0  ;;  %v1107_v7 = vmin.f32 %v1091_v1, 0.0  ;;  %v1075_v8 = vmul.f32 %v4112_v42, %v1061_v2  ;;  %vm1099_vm2 = vcmp.gt.f32.partialorder %v1091_v1, 0.0 }
 0x24f   : > { %v5099_v9 = vpop.eup %5098  ;;  %v1102_v50 = vmin.f32 %v1086_v5, 0.0  ;;  %v1076_v10 = vmul.f32 %v4112_v42, %v1062_v6  ;;  %vm1094_vm3 = vcmp.gt.f32.partialorder %v1086_v5, 0.0 }
 0x250   : > { %v5101_v58 = vpop.eup %5100  ;;  %v1120_v11 = vmul.f32 1.442695, %v1107_v7  ;;  %v1089_v12 = vadd.f32 %v4113_v47, %v1075_v8  ;;  %v1065_v15 = vmul.f32 %v5099_v9, %v5789_v13 }
 0x251   : > { %v1110_v16 = vmul.f32 1.442695, %v1102_v50  ;;  %v1090_v17 = vadd.f32 %v4113_v47, %v1076_v10  ;;  %v1060_v18 = vmul.f32 %v5101_v58, %v5780_v3 }
 0x252   : > { %5106 = vpow2.f32 %v1120_v11  ;;  %v1105_v57 = vmin.f32 %v1089_v12, 0.0  ;;  %v1079_v19 = vmul.f32 %v4112_v42, %v1065_v15  ;;  %vm1097_vm4 = vcmp.gt.f32.partialorder %v1089_v12, 0.0 }
 0x253   : > { %v5103_v20 = vpop.eup %5102  ;;  %5108 = vpow2.f32 %v1110_v16  ;;  %v1106_v4 = vmin.f32 %v1090_v17, 0.0  ;;  %v1074_v21 = vmul.f32 %v4112_v42, %v1060_v18  ;;  %vm1098_vm5 = vcmp.gt.f32.partialorder %v1090_v17, 0.0 }
 0x254   : > { %v1116_v22 = vmul.f32 1.442695, %v1105_v57  ;;  %v1093_v23 = vadd.f32 %v4113_v47, %v1079_v19  ;;  %v1064_v24 = vmul.f32 %v5103_v20, %v5791_v14 }
 0x255   : > { %v1118_v25 = vmul.f32 1.442695, %v1106_v4  ;;  %v1088_v26 = vadd.f32 %v4113_v47, %v1074_v21 }
 0x256   : > { %5110 = vpow2.f32 %v1116_v22  ;;  %v1109_v13 = vmin.f32 %v1093_v23, 0.0  ;;  %v1078_v27 = vmul.f32 %v4112_v42, %v1064_v24  ;;  %vm1101_vm6 = vcmp.gt.f32.partialorder %v1093_v23, 0.0 }
 0x257   : > { %5112 = vpow2.f32 %v1118_v25  ;;  %v1104_v28 = vmin.f32 %v1088_v26, 0.0  ;;  %vm1096_vm7 = vcmp.gt.f32.partialorder %v1088_v26, 0.0 }
 0x258   : > { %v5105_v3 = vpop.eup %5104  ;;  %v1124_v29 = vmul.f32 1.442695, %v1109_v13  ;;  %v1092_v30 = vadd.f32 %v4113_v47, %v1078_v27 }
 0x259   : > { %v4115_v31 = vadd.f32 -1.0, %v5105_v3  ;;  %v1114_v32 = vmul.f32 1.442695, %v1104_v28 }
 0x25a   : > { %5114 = vpow2.f32 %v1124_v29  ;;  %v1108_v33 = vmin.f32 %v1092_v30, 0.0  ;;  %vm1100_vm8 = vcmp.gt.f32.partialorder %v1092_v30, 0.0 }
 0x25b   : > { %v1135_v34 = vsel %vm1095_vm1, %v1087_v55, %v4115_v31  ;;  %5116 = vpow2.f32 %v1114_v32 }
 0x25c   : > { %v5107_v14 = vpop.eup %5106  ;;  %1143 = vst.msk [vmem:[%s5716_s12 + $0x8] sm:$0xff] %vm829_vm0, %v1135_v34  ;;  %v1122_v35 = vmul.f32 1.442695, %v1108_v33 }
 0x25d   : > { %v5109_v36 = vpop.eup %5108  ;;  %v4119_v37 = vadd.f32 -1.0, %v5107_v14 }
 0x25e   : > { %v4114_v38 = vadd.f32 -1.0, %v5109_v36  ;;  %5118 = vpow2.f32 %v1122_v35 }
 0x25f   : > { %v1139_v39 = vsel %vm1099_vm2, %v1091_v1, %v4119_v37 }
 0x260   : > { %v5111_v40 = vpop.eup %5110  ;;  %1147 = vst.msk [vmem:[%s5716_s12 + $0x28] sm:$0xff] %vm829_vm0, %v1139_v39  ;;  %v1134_v41 = vsel %vm1094_vm3, %v1086_v5, %v4114_v38 }
 0x261   : > { %v5113_v42 = vpop.eup %5112  ;;  %1142 = vst.msk [vmem:[%s5716_s12] sm:$0xff] %vm829_vm0, %v1134_v41  ;;  %v4117_v43 = vadd.f32 -1.0, %v5111_v40 }
 0x262   : > { %v4118_v44 = vadd.f32 -1.0, %v5113_v42 }
 0x263   : > { %v1137_v45 = vsel %vm1097_vm4, %v1089_v12, %v4117_v43 }
 0x264   : > { %v5115_v46 = vpop.eup %5114  ;;  %1145 = vst.msk [vmem:[%s5716_s12 + $0x18] sm:$0xff] %vm829_vm0, %v1137_v45  ;;  %v1138_v47 = vsel %vm1098_vm5, %v1090_v17, %v4118_v44 }
 0x265   : > { %v5117_v48 = vpop.eup %5116  ;;  %1146 = vst.msk [vmem:[%s5716_s12 + $0x20] sm:$0xff] %vm829_vm0, %v1138_v47  ;;  %v4121_v49 = vadd.f32 -1.0, %v5115_v46 }
 0x266   : > { %v4116_v52 = vadd.f32 -1.0, %v5117_v48 }
 0x267   : > { %v1141_v53 = vsel %vm1101_vm6, %v1093_v23, %v4121_v49 }
 0x268   : > { %v5119_v54 = vpop.eup %5118  ;;  %1149 = vst.msk [vmem:[%s5716_s12 + $0x38] sm:$0xff] %vm829_vm0, %v1141_v53  ;;  %v1136_v55 = vsel %vm1096_vm7, %v1088_v26, %v4116_v52 }
 0x269   : > { %1144 = vst.msk [vmem:[%s5716_s12 + $0x10] sm:$0xff] %vm829_vm0, %v1136_v55  ;;  %v4120_v56 = vadd.f32 -1.0, %v5119_v54 }
 0x26b   : > { %v1140_v59 = vsel %vm1100_vm8, %v1092_v30, %v4120_v56 }
 0x26c   : > { %1148 = vst.msk [vmem:[%s5716_s12 + $0x30] sm:$0xff] %vm829_vm0, %v1140_v59 }
 0x26d PF: > { %v1166_v60 = vld [vmem:[%s5657_s1] sm:$0xff]  ;;  %v1167_v51 = vld [vmem:[%s5657_s1 + $0x8] sm:$0xff]  ;;  %v1168_v61 = vld [vmem:[%s5657_s1 + $0x10] sm:$0xff]  ;;  %vm1182_vm9 = vcmask 261120   ;;  %s7059_s28 = sld [smem:[#allocation22_spill]]  ;;  %vm1344_vm10 = vcmask 64512   ;;  %s7077_s20 = scalar_lea.vmem %s7013_s9, %s5647_s21 }
 0x26e   : > { %v4814_v62 = vpack.c.bf16 %v1167_v51, %v1166_v60  ;;  %v1169_v63 = vld [vmem:[%s5657_s1 + $0x18] sm:$0xff]  ;;  %v1150_v0 = vld [vmem:[%s5716_s12] sm:$0xff]  ;;  %v1151_v2 = vld [vmem:[%s5716_s12 + $0x8] sm:$0xff]  ;;  %s5504_s19 = smov 96   ;;  %s5505_s22 = smov 64   ;;  %vm1490_vm12 = vcmask 523264  }
 0x26f   : > { %v4818_v1 = vpack.c.bf16 %v1169_v63, %v1168_v61  ;;  %4486 = vmatprep.mubr.msk.f32.mxu0 %vm1182_vm9, %v1150_v0  ;;  %v1153_v6 = vld [vmem:[%s5716_s12 + $0x18] sm:$0xff]  ;;  %v1154_v7 = vld [vmem:[%s5716_s12 + $0x20] sm:$0xff]  ;;  %v1155_v8 = vld [vmem:[%s5716_s12 + $0x28] sm:$0xff]  ;;  %s5506_s8 = smov 88   ;;  %s7063_s3 = sld [smem:[#allocation17_spill]]  ;;  %vm3066_vm13 = vcmask 130048  }
 0x270   : > { %4815 = vmatprep.subr.bf16.mxu0 %v4814_v62  ;;  %v1152_v5 = vld [vmem:[%s5716_s12 + $0x10] sm:$0xff]  ;;  %v1157_v50 = vld [vmem:[%s5716_s12 + $0x38] sm:$0xff]  ;;  %vm5905_vm11 = vmpackc.low %vm1344_vm10, %vm1344_vm10  ;;  %s5507_s24 = smov 80   ;;  %s5508_s27 = smov 120   ;;  %vm3075_vm14 = vcmask 195584  }
 0x271   : > { %4817 = vmatpush3.bf16.msra.mxu0 %v4814_v62  ;;  %s5509_s1 = smov 112   ;;  %s5510_s6 = smov 56  }
 0x272   : > { %4819 = vmatprep.subr.bf16.mxu0 %v4818_v1  ;;  %s5516_s25 = smov 16   ;;  %s5517_s18 = smov 24  }
 0x273   : > { %v1156_v9 = vld [vmem:[%s5716_s12 + $0x30] sm:$0xff]  ;;  %s7060_s29 = scalar_lea.vmem %s7059_s28, %s5647_s21  ;;  %s5511_s28 = smov 48  }
 0x274   : > { %v4122_v10 = vld [vmem:[%s7060_s29] ss:$0 sm:$0xff]  ;;  %s5513_s29 = smov 104  }
 0x275   : > { %4821 = vmatpush3.bf16.msra.mxu0 %v4818_v1 }
 0x278   : > { %4487 = vmatmul.mubr.msk.f32.vlgmr.msra.gmra.mrb[0].mxu0 %vm1182_vm9, %v1151_v2 }
 0x279   : > { %4489 = vmatprep.mubr.msk.f32.mxu0 %vm1182_vm9, %v1152_v5 }
 0x27c   : > { %4490 = vmatmul.mubr.msk.f32.gmra.mrb[2].mxu0 %vm1182_vm9, %v1153_v6 }
 0x27d   : > { %4492 = vmatprep.mubr.msk.f32.mxu0 %vm1182_vm9, %v1154_v7 }
 0x280   : > { %4493 = vmatmul.mubr.msk.f32.gmra.mrb[4].mxu0 %vm1182_vm9, %v1155_v8 }
 0x281   : > { %4495 = vmatprep.mubr.msk.f32.mxu0 %vm1182_vm9, %v1156_v9 }
 0x284   : > { %4496 = vmatmul.mubr.msk.f32.gmra.mrb[6].mxu0 %vm1182_vm9, %v1157_v50 }
 0x34b   : > { %v4488_v58 = vpop.f32.mrb[0].mxu0 }
 0x34c   : > { %v5858_v11 = vadd.f32 %v4488_v58, %v4122_v10  ;;  %v1273_v12 = vpop.f32.mrb[1].mxu0 }
 0x34d   : > { %v1274_v15 = vadd.f32 %v4122_v10, %v1273_v12  ;;  %v5970_v12 = vld [vmem:[%s7063_s3 + $0x8] sm:$0xff] }
 0x34e   : > { %v5933_v7 = vmul.f32 0.35355338, %v5858_v11 }
 0x34f   : > { %v4491_v16 = vpop.f32.mrb[2].mxu0  ;;  %v5861_v17 = vpack.i.bf16 %v5858_v11, %v1274_v15  ;;  %v5863_v18 = vmul.f32 0.35355338, %v1274_v15  ;;  %v5975_v15 = vld [vmem:[%s7063_s3] sm:$0xff] }
 0x350   : > { %v5865_v57 = vadd.f32 %v4491_v16, %v4122_v10  ;;  %v1283_v19 = vpop.f32.mrb[3].mxu0 }
 0x351   : > { %v5867_v20 = vadd.f32 %v4122_v10, %v1283_v19  ;;  %5121 = vrot.lane.b32.xlu0 %v5861_v17, %s5504_s19  ;;  %4514 = vmatprep.mubr.msk.f32.mxu1 %vm1344_vm10, %v5863_v18 }
 0x352   : > { %v5943_v9 = vmul.f32 0.35355338, %v5865_v57 }
 0x353   : > { %v4494_v4 = vpop.f32.mrb[4].mxu0  ;;  %v5874_v21 = vpack.i.bf16 %v5865_v57, %v5867_v20  ;;  %v5936_v8 = vmul.f32 0.35355338, %v5867_v20 }
 0x354   : > { %v5876_v22 = vadd.f32 %v4494_v4, %v4122_v10  ;;  %v1293_v23 = vpop.f32.mrb[5].mxu0 }
 0x355   : > { %v5878_v24 = vadd.f32 %v4122_v10, %v1293_v23  ;;  %5126 = vrot.lane.b32.xlu0 %v5874_v21, %s5504_s19 }
 0x357   : > { %v4497_v25 = vpop.f32.mrb[6].mxu0  ;;  %v5883_v26 = vpack.i.bf16 %v5876_v22, %v5878_v24  ;;  %v5946_v50 = vmul.f32 0.35355338, %v5878_v24 }
 0x358   : > { %v5885_v13 = vadd.f32 %v4497_v25, %v4122_v10  ;;  %v1303_v27 = vpop.f32.mrb[7].mxu0 }
 0x359   : > { %v5887_v28 = vadd.f32 %v4122_v10, %v1303_v27  ;;  %5131 = vrot.lane.b32.xlu1 %v5883_v26, %s5504_s19  ;;  %5141 = vrot.lane.b32.xlu0 %v5861_v17, %s5505_s22  ;;  %v5953_v10 = vmul.f32 0.35355338, %v5876_v22 }
 0x35a   : > { %v5963_v11 = vmul.f32 0.35355338, %v5885_v13 }
 0x35b   : > { %v5893_v3 = vpack.i.bf16 %v5885_v13, %v5887_v28  ;;  %v5956_v58 = vmul.f32 0.35355338, %v5887_v28 }
 0x35d   : > { %5136 = vrot.lane.b32.xlu1 %v5893_v3, %s5504_s19  ;;  %5151 = vrot.lane.b32.xlu0 %v5883_v26, %s5505_s22  ;;  %s5514_s19 = smov 40  }
 0x361   : > { %5146 = vrot.lane.b32.xlu1 %v5874_v21, %s5505_s22  ;;  %5156 = vrot.lane.b32.xlu0 %v5861_v17, %s5506_s8 }
 0x365   : > { %5161 = vrot.lane.b32.xlu1 %v5874_v21, %s5506_s8 }
 0x369   : > { %5166 = vrot.lane.b32.xlu1 %v5893_v3, %s5505_s22  ;;  %s5515_s22 = smov 8  }
 0x3c3   : > { %v5122_v29 = vpop.permute.xlu0 %5121 }
 0x3c4   : > { %v5124_v30 = vunpack.i.h.bf16 %v5122_v29  ;;  %v5123_v31 = vunpack.i.l.bf16 %v5122_v29  ;;  %v5994_v29 = vld [vmem:[%s7063_s3 + $0x18] sm:$0xff] }
 0x3c6   : > { %v4822_v33 = vpack.c.bf16 %v5124_v30, %v5123_v31  ;;  %v5999_v30 = vld [vmem:[%s7063_s3 + $0x10] sm:$0xff] }
 0x3c7   : > { %v5127_v34 = vpop.permute.xlu0 %5126 }
 0x3c8   : > { %v5129_v14 = vunpack.i.h.bf16 %v5127_v34  ;;  %v5128_v35 = vunpack.i.l.bf16 %v5127_v34  ;;  %4824 = vmatprep.subr.msk.bf16.mxu1 %vm5905_vm11, %v4822_v33  ;;  %v6010_v34 = vld [vmem:[%s7063_s3 + $0x28] sm:$0xff] }
 0x3c9   : > { %4827 = vmatpush3.bf16.xpose.msk.msra.mxu1 %vm5905_vm11, %v4822_v33 }
 0x3ca   : > { %v4828_v36 = vpack.c.bf16 %v5129_v14, %v5128_v35 }
 0x3cb   : > { %v5132_v37 = vpop.permute.xlu1 %5131  ;;  %v5142_v38 = vpop.permute.xlu0 %5141 }
 0x3cc   : > { %v5134_v39 = vunpack.i.h.bf16 %v5132_v37  ;;  %v5133_v40 = vunpack.i.l.bf16 %v5132_v37  ;;  %v5144_v41 = vunpack.i.h.bf16 %v5142_v38  ;;  %v5143_v42 = vunpack.i.l.bf16 %v5142_v38  ;;  %4830 = vmatprep.subr.msk.bf16.mxu1 %vm5905_vm11, %v4828_v36  ;;  %v6022_v37 = vld [vmem:[%s7063_s3 + $0x20] sm:$0xff] }
 0x3ce   : > { %v4834_v43 = vpack.c.bf16 %v5134_v39, %v5133_v40  ;;  %v4846_v44 = vpack.c.bf16 %v5144_v41, %v5143_v42  ;;  %v6044_v41 = vld [vmem:[%s7063_s3 + $0x38] sm:$0xff] }
 0x3cf   : > { %v5137_v45 = vpop.permute.xlu1 %5136  ;;  %v5152_v48 = vpop.permute.xlu0 %5151 }
 0x3d0   : > { %4847 = vmatprep.subr.bf16.mxu0 %v4846_v44  ;;  %v5139_v46 = vunpack.i.h.bf16 %v5137_v45  ;;  %v5138_v47 = vunpack.i.l.bf16 %v5137_v45  ;;  %v5154_v52 = vunpack.i.h.bf16 %v5152_v48  ;;  %v5153_v53 = vunpack.i.l.bf16 %v5152_v48 }
 0x3d1   : > { %4833 = vmatpush3.bf16.xpose.msk.msra.mxu1 %vm5905_vm11, %v4828_v36  ;;  %4849 = vmatpush3.bf16.msra.mxu0 %v4846_v44 }
 0x3d2   : > { %4836 = vmatprep.subr.msk.bf16.mxu1 %vm5905_vm11, %v4834_v43  ;;  %v4840_v56 = vpack.c.bf16 %v5139_v46, %v5138_v47  ;;  %v4854_v51 = vpack.c.bf16 %v5154_v52, %v5153_v53 }
 0x3d3   : > { %v5147_v49 = vpop.permute.xlu1 %5146  ;;  %v5157_v61 = vpop.permute.xlu0 %5156 }
 0x3d4   : > { %v5149_v54 = vunpack.i.h.bf16 %v5147_v49  ;;  %v5148_v55 = vunpack.i.l.bf16 %v5147_v49  ;;  %v5159_v63 = vunpack.i.h.bf16 %v5157_v61  ;;  %v5158_v0 = vunpack.i.l.bf16 %v5157_v61 }
 0x3d6   : > { %v4850_v59 = vpack.c.bf16 %v5149_v54, %v5148_v55  ;;  %v5925_v6 = vpack.c.bf16 %v5159_v63, %v5158_v0 }
 0x3d7   : > { %v5919_v60 = vpop.permute.xlu1 %5161 }
 0x3d8   : > { %4851 = vmatprep.subr.bf16.mxu0 %v4850_v59  ;;  %v5164_v61 = vunpack.i.h.bf16 %v5919_v60 }
 0x3d9   : > { %4839 = vmatpush3.bf16.xpose.msk.msra.mxu1 %vm5905_vm11, %v4834_v43  ;;  %4853 = vmatpush3.bf16.msra.mxu0 %v4850_v59  ;;  %v6054_v43 = vld [vmem:[%s7063_s3 + $0x30] sm:$0xff] }
 0x3da   : > { %4855 = vmatprep.subr.bf16.mxu0 %v4854_v51  ;;  %4842 = vmatprep.subr.msk.bf16.mxu1 %vm5905_vm11, %v4840_v56 }
 0x3db   : > { %v5167_v62 = vpop.permute.xlu1 %5166 }
 0x3dc   : > { %v5169_v1 = vunpack.i.h.bf16 %v5167_v62  ;;  %v5168_v2 = vunpack.i.l.bf16 %v5167_v62  ;;  %v5163_v62 = vunpack.i.l.bf16 %v5919_v60 }
 0x3dd   : > { %4857 = vmatpush3.bf16.msra.mxu0 %v4854_v51 }
 0x3de   : > { %v4858_v5 = vpack.c.bf16 %v5169_v1, %v5168_v2  ;;  %v4868_v1 = vpack.c.bf16 %v5164_v61, %v5163_v62 }
 0x3e0   : > { %4859 = vmatprep.subr.bf16.mxu0 %v4858_v5 }
 0x3e1   : > { %4845 = vmatpush3.bf16.xpose.msk.msra.mxu1 %vm5905_vm11, %v4840_v56  ;;  %4861 = vmatpush3.bf16.msra.mxu0 %v4858_v5 }
 0x3e2   : > { %4864 = vmatprep.subr.msk.bf16.mxu0 %vm5905_vm11, %v5925_v6 }
 0x3e8   : > { %4515 = vmatmul.mubr.msk.f32.vlgmr.msra.gmra.mrb[0].mxu1 %vm1344_vm10, %v5933_v7 }
 0x3e9   : > { %4517 = vmatprep.mubr.msk.f32.mxu1 %vm1344_vm10, %v5936_v8 }
 0x3ec   : > { %4518 = vmatmul.mubr.msk.f32.gmra.mrb[2].mxu1 %vm1344_vm10, %v5943_v9 }
 0x3ed   : > { %4520 = vmatprep.mubr.msk.f32.mxu1 %vm1344_vm10, %v5946_v50 }
 0x3f0   : > { %4521 = vmatmul.mubr.msk.f32.gmra.mrb[4].mxu1 %vm1344_vm10, %v5953_v10 }
 0x3f1   : > { %4523 = vmatprep.mubr.msk.f32.mxu1 %vm1344_vm10, %v5956_v58 }
 0x3f4   : > { %4524 = vmatmul.mubr.msk.f32.gmra.mrb[6].mxu1 %vm1344_vm10, %v5963_v11 }
 0x4bb   : > { %v4516_v16 = vpop.f32.mrb[0].mxu1 }
 0x4bc   : > { %v5978_v57 = vadd.f32 %v4516_v16, %v5970_v12  ;;  %v1451_v19 = vpop.f32.mrb[1].mxu1 }
 0x4bd   : > { %v5981_v20 = vadd.f32 %v1451_v19, %v5975_v15 }
 0x4be   : > { %v1494_v4 = vsel %vm1490_vm12, %v5978_v57, -inf }
 0x4bf   : > { %1495 = vmax.xlane.f32.xlu1 %v1494_v4  ;;  %v4519_v22 = vpop.f32.mrb[2].mxu1  ;;  %v1491_v23 = vsel %vm1490_vm12, %v5981_v20, -inf }
 0x4c0   : > { %v1461_v24 = vpop.f32.mrb[3].mxu1  ;;  %1492 = vmax.xlane.f32.xlu0 %v1491_v23  ;;  %v6002_v31 = vadd.f32 %v4519_v22, %v5994_v29 }
 0x4c1   : > { %v6005_v33 = vadd.f32 %v1461_v24, %v5999_v30 }
 0x4c2   : > { %v1500_v14 = vsel %vm1490_vm12, %v6002_v31, -inf }
 0x4c3   : > { %v4522_v25 = vpop.f32.mrb[4].mxu1  ;;  %v1497_v36 = vsel %vm1490_vm12, %v6005_v33, -inf }
 0x4c4   : > { %v1471_v13 = vpop.f32.mrb[5].mxu1  ;;  %v6015_v35 = vadd.f32 %v4522_v25, %v6010_v34 }
 0x4c5   : > { %v6025_v38 = vadd.f32 %v1471_v13, %v6022_v37 }
 0x4c6   : > { %v1506_v39 = vsel %vm1490_vm12, %v6015_v35, -inf }
 0x4c7   : > { %v4525_v27 = vpop.f32.mrb[6].mxu1  ;;  %v1503_v40 = vsel %vm1490_vm12, %v6025_v38, -inf }
 0x4c8   : > { %v1481_v28 = vpop.f32.mrb[7].mxu1  ;;  %v6049_v42 = vadd.f32 %v4525_v27, %v6044_v41 }
 0x4c9   : > { %v6059_v44 = vadd.f32 %v1481_v28, %v6054_v43 }
 0x4ca   : > { %v1512_v45 = vsel %vm1490_vm12, %v6049_v42, -inf }
 0x4cb   : > { %v1509_v46 = vsel %vm1490_vm12, %v6059_v44, -inf }
 0x4d0   : > { %5176 = vrot.lane.b32.xlu1 %v5861_v17, %s5507_s24 }
 0x4d6   : > { %5171 = vrot.lane.b32.xlu0 %v5883_v26, %s5506_s8 }
 0x4f4   : > { %1501 = vmax.xlane.f32.xlu1 %v1500_v14 }
 0x4f5   : > { %1498 = vmax.xlane.f32.xlu0 %v1497_v36 }
 0x4f9   : > { %1507 = vmax.xlane.f32.xlu0 %v1506_v39 }
 0x4fd   : > { %1504 = vmax.xlane.f32.xlu0 %v1503_v40 }
 0x505   : > { %5186 = vrot.lane.b32.xlu1 %v5874_v21, %s5507_s24 }
 0x513   : > { %5181 = vrot.lane.b32.xlu0 %v5893_v3, %s5506_s8 }
 0x517   : > { %1732 = vrot.lane.b32.xlu0 %v5863_v18, %s5508_s27 }
 0x51b   : > { %5191 = vrot.lane.b32.xlu0 %v5883_v26, %s5507_s24 }
 0x51f   : > { %1738 = vrot.lane.b32.xlu0 %v5943_v9, %s5508_s27 }
 0x523   : > { %1740 = vrot.lane.b32.xlu0 %v5946_v50, %s5508_s27 }
 0x527   : > { %1744 = vrot.lane.b32.xlu0 %v5956_v58, %s5508_s27 }
 0x529   : > { %1513 = vmax.xlane.f32.xlu1 %v1512_v45 }
 0x52b   : > { %2142 = vrot.lane.b32.xlu0 %v5863_v18, %s5509_s1 }
 0x52d   : > { %1510 = vmax.xlane.f32.xlu1 %v1509_v46 }
 0x52f   : > { %2146 = vrot.lane.b32.xlu0 %v5936_v8, %s5509_s1 }
 0x533   : > { %2150 = vrot.lane.b32.xlu0 %v5946_v50, %s5509_s1 }
 0x537   : > { %2154 = vrot.lane.b32.xlu0 %v5956_v58, %s5509_s1 }
 0x53b   : > { %5206 = vrot.lane.b32.xlu0 %v5874_v21, %s5510_s6 }
 0x53e   : > { %1734 = vrot.lane.b32.xlu1 %v5933_v7, %s5508_s27 }
 0x53f   : > { %5221 = vrot.lane.b32.xlu0 %v5861_v17, %s5511_s28 }
 0x542   : > { %1736 = vrot.lane.b32.xlu1 %v5936_v8, %s5508_s27 }
 0x546   : > { %5196 = vrot.lane.b32.xlu1 %v5893_v3, %s5507_s24  ;;  %s5512_s24 = smov 72  }
 0x54a   : > { %1742 = vrot.lane.b32.xlu1 %v5953_v10, %s5508_s27 }
 0x54c   : > { %v1496_v47 = vpop.xlane.xlu1 %1495 }
 0x54d   : > { %v1516_v48 = vsub.f32 %v5978_v57, %v1496_v47  ;;  %v1493_v49 = vpop.xlane.xlu0 %1492 }
 0x54e   : > { %v1515_v52 = vsub.f32 %v5981_v20, %v1493_v49  ;;  %1746 = vrot.lane.b32.xlu1 %v5963_v11, %s5508_s27  ;;  %s7070_s27 = sld [smem:[#allocation8_spill]] }
 0x54f   : > { %v1525_v53 = vmul.f32 1.442695, %v1516_v48 }
 0x550   : > { %v1523_v54 = vmul.f32 1.442695, %v1515_v52  ;;  %v5177_v55 = vpop.permute.xlu1 %5176 }
 0x551   : > { %v5179_v56 = vunpack.i.h.bf16 %v5177_v55  ;;  %v5178_v59 = vunpack.i.l.bf16 %v5177_v55  ;;  %v5172_v2 = vpop.permute.xlu0 %5171 }
 0x552   : > { %5280 = vpow2.f32 %v1523_v54  ;;  %2144 = vrot.lane.b32.xlu1 %v5933_v7, %s5509_s1  ;;  %v5174_v60 = vunpack.i.h.bf16 %v5172_v2  ;;  %v5173_v5 = vunpack.i.l.bf16 %v5172_v2 }
 0x553   : > { %5282 = vpow2.f32 %v1525_v53  ;;  %v4902_v51 = vpack.c.bf16 %v5179_v56, %v5178_v59 }
 0x554   : > { %v4874_v16 = vpack.c.bf16 %v5174_v60, %v5173_v5 }
 0x555   : > { %4904 = vmatprep.subr.msk.bf16.mxu1 %vm5905_vm11, %v4902_v51 }
 0x556   : > { %4907 = vmatpush3.bf16.xpose.msk.msra.mxu1 %vm5905_vm11, %v4902_v51  ;;  %2148 = vrot.lane.b32.xlu1 %v5943_v9, %s5509_s1 }
 0x55a   : > { %2152 = vrot.lane.b32.xlu1 %v5953_v10, %s5509_s1 }
 0x55c   : > { %v6101_v63 = vpop.eup %5280 }
 0x55d   : > { %v6103_v0 = vpop.eup %5282  ;;  %4542 = vmatprep.mubr.msk.f32.mxu0 %vm1490_vm12, %v6101_v63 }
 0x55e   : > { %2156 = vrot.lane.b32.xlu1 %v5963_v11, %s5509_s1  ;;  %4543 = vmatmul.mubr.msk.f32.vlgmr.msra.gmra.mrb[8].mxu0 %vm1490_vm12, %v6103_v0 }
 0x55f   : > { %4867 = vmatpush3.bf16.xpose.msk.msra.mxu0 %vm5905_vm11, %v5925_v6 }
 0x560   : > { %4870 = vmatprep.subr.msk.bf16.mxu0 %vm5905_vm11, %v4868_v1 }
 0x562   : > { %5201 = vrot.lane.b32.xlu1 %v5861_v17, %s5510_s6 }
 0x566   : > { %5211 = vrot.lane.b32.xlu1 %v5883_v26, %s5510_s6 }
 0x567   : > { %4873 = vmatpush3.bf16.xpose.msk.msra.mxu0 %vm5905_vm11, %v4868_v1 }
 0x568   : > { %4876 = vmatprep.subr.msk.bf16.mxu0 %vm5905_vm11, %v4874_v16 }
 0x56a   : > { %5216 = vrot.lane.b32.xlu1 %v5893_v3, %s5510_s6  ;;  %s7078_s6 = scalar_lea.vmem %s7014_s10, %s5647_s21 }
 0x56e   : > { %5226 = vrot.lane.b32.xlu1 %v5874_v21, %s5511_s28 }
 0x56f   : > { %4879 = vmatpush3.bf16.xpose.msk.msra.mxu0 %vm5905_vm11, %v4874_v16 }
 0x572   : > { %5231 = vrot.lane.b32.xlu1 %v5883_v26, %s5511_s28 }
 0x576   : > { %5236 = vrot.lane.b32.xlu1 %v5893_v3, %s5511_s28 }
 0x581   : > { %v1502_v6 = vpop.xlane.xlu1 %1501 }
 0x582   : > { %v1518_v57 = vsub.f32 %v6002_v31, %v1502_v6  ;;  %v1499_v19 = vpop.xlane.xlu0 %1498 }
 0x583   : > { %v1517_v20 = vsub.f32 %v6005_v33, %v1499_v19 }
 0x584   : > { %v1529_v4 = vmul.f32 1.442695, %v1518_v57 }
 0x585   : > { %v1527_v22 = vmul.f32 1.442695, %v1517_v20  ;;  %v5187_v23 = vpop.permute.xlu1 %5186 }
 0x586   : > { %v5189_v24 = vunpack.i.h.bf16 %v5187_v23  ;;  %v5188_v25 = vunpack.i.l.bf16 %v5187_v23  ;;  %v1508_v13 = vpop.xlane.xlu0 %1507 }
 0x587   : > { %5284 = vpow2.f32 %v1527_v22  ;;  %v1520_v28 = vsub.f32 %v6015_v35, %v1508_v13 }
 0x588   : > { %5286 = vpow2.f32 %v1529_v4  ;;  %v4908_v27 = vpack.c.bf16 %v5189_v24, %v5188_v25 }
 0x589   : > { %v1533_v33 = vmul.f32 1.442695, %v1520_v28 }
 0x58a   : > { %4910 = vmatprep.subr.msk.bf16.mxu1 %vm5905_vm11, %v4908_v27  ;;  %v1505_v14 = vpop.xlane.xlu0 %1504 }
 0x58b   : > { %v1519_v31 = vsub.f32 %v6025_v38, %v1505_v14  ;;  %4913 = vmatpush3.bf16.xpose.msk.msra.mxu1 %vm5905_vm11, %v4908_v27 }
 0x58d   : > { %v1531_v36 = vmul.f32 1.442695, %v1519_v31 }
 0x58e   : > { %v5182_v39 = vpop.permute.xlu0 %5181 }
 0x58f   : > { %5288 = vpow2.f32 %v1531_v36  ;;  %v5184_v40 = vunpack.i.h.bf16 %v5182_v39  ;;  %v5183_v45 = vunpack.i.l.bf16 %v5182_v39 }
 0x590   : > { %5290 = vpow2.f32 %v1533_v33 }
 0x591   : > { %v6142_v46 = vpop.eup %5284  ;;  %v4880_v47 = vpack.c.bf16 %v5184_v40, %v5183_v45 }
 0x592   : > { %v6144_v35 = vpop.eup %5286  ;;  %4545 = vmatprep.mubr.msk.f32.mxu0 %vm1490_vm12, %v6142_v46  ;;  %v1733_v48 = vpop.permute.xlu0 %1732 }
 0x593   : > { %4546 = vmatmul.mubr.msk.f32.gmra.mrb[10].mxu0 %vm1490_vm12, %v6144_v35  ;;  %4882 = vmatprep.subr.msk.bf16.mxu0 %vm5905_vm11, %v4880_v47 }
 0x594   : > { %4885 = vmatpush3.bf16.xpose.msk.msra.mxu0 %vm5905_vm11, %v4880_v47 }
 0x596   : > { %v5192_v38 = vpop.permute.xlu0 %5191 }
 0x597   : > { %v5194_v49 = vunpack.i.h.bf16 %v5192_v38  ;;  %v5193_v52 = vunpack.i.l.bf16 %v5192_v38 }
 0x599   : > { %v6154_v53 = vpop.eup %5288  ;;  %v4914_v54 = vpack.c.bf16 %v5194_v49, %v5193_v52 }
 0x59a   : > { %v6156_v55 = vpop.eup %5290  ;;  %4548 = vmatprep.mubr.msk.f32.mxu0 %vm1490_vm12, %v6154_v53  ;;  %v1739_v56 = vpop.permute.xlu0 %1738 }
 0x59b   : > { %4549 = vmatmul.mubr.msk.f32.gmra.mrb[12].mxu0 %vm1490_vm12, %v6156_v55  ;;  %4916 = vmatprep.subr.msk.bf16.mxu1 %vm5905_vm11, %v4914_v54 }
 0x59c   : > { %4919 = vmatpush3.bf16.xpose.msk.msra.mxu1 %vm5905_vm11, %v4914_v54 }
 0x59e   : > { %v1741_v59 = vpop.permute.xlu0 %1740 }
 0x5a2   : > { %v1745_v51 = vpop.permute.xlu0 %1744 }
 0x5a6   : > { %v2143_v61 = vpop.permute.xlu0 %2142 }
 0x5a7   : > { %4626 = vmatprep.mubr.msk.f32.mxu1 %vm1344_vm10, %v2143_v61 }
 0x5b6   : > { %v1514_v62 = vpop.xlane.xlu1 %1513 }
 0x5b7   : > { %v1522_v1 = vsub.f32 %v6049_v42, %v1514_v62  ;;  %v2147_v42 = vpop.permute.xlu0 %2146 }
 0x5b9   : > { %v1537_v5 = vmul.f32 1.442695, %v1522_v1 }
 0x5ba   : > { %v1511_v2 = vpop.xlane.xlu1 %1510 }
 0x5bb   : > { %v1521_v60 = vsub.f32 %v6059_v44, %v1511_v2  ;;  %v2151_v27 = vpop.permute.xlu0 %2150 }
 0x5bd   : > { %v1535_v16 = vmul.f32 1.442695, %v1521_v60 }
 0x5be   : > { %v1735_v6 = vpop.permute.xlu1 %1734 }
 0x5bf   : > { %5292 = vpow2.f32 %v1535_v16  ;;  %v2155_v14 = vpop.permute.xlu0 %2154 }
 0x5c0   : > { %5294 = vpow2.f32 %v1537_v5 }
 0x5c2   : > { %v1737_v57 = vpop.permute.xlu1 %1736 }
 0x5c3   : > { %v5207_v36 = vpop.permute.xlu0 %5206 }
 0x5c4   : > { %v5209_v40 = vunpack.i.h.bf16 %v5207_v36  ;;  %v5208_v45 = vunpack.i.l.bf16 %v5207_v36 }
 0x5c6   : > { %v5197_v19 = vpop.permute.xlu1 %5196 }
 0x5c7   : > { %v5199_v20 = vunpack.i.h.bf16 %v5197_v19  ;;  %v5198_v4 = vunpack.i.l.bf16 %v5197_v19  ;;  %v5222_v1 = vpop.permute.xlu0 %5221 }
 0x5c8   : > { %v5224_v2 = vunpack.i.h.bf16 %v5222_v1  ;;  %v5223_v60 = vunpack.i.l.bf16 %v5222_v1 }
 0x5c9   : > { %v6169_v22 = vpop.eup %5292  ;;  %v4920_v23 = vpack.c.bf16 %v5199_v20, %v5198_v4 }
 0x5ca   : > { %v6171_v24 = vpop.eup %5294  ;;  %v1743_v25 = vpop.permute.xlu1 %1742  ;;  %4551 = vmatprep.mubr.msk.f32.mxu0 %vm1490_vm12, %v6169_v22  ;;  %v6196_v16 = vpack.c.bf16 %v5224_v2, %v5223_v60 }
 0x5cb   : > { %4552 = vmatmul.mubr.msk.f32.gmra.mrb[14].mxu0 %vm1490_vm12, %v6171_v24  ;;  %4922 = vmatprep.subr.msk.bf16.mxu1 %vm5905_vm11, %v4920_v23 }
 0x5cc   : > { %4570 = vmatprep.mubr.msk.f32.mxu0 %vm1344_vm10, %v1733_v48  ;;  %4925 = vmatpush3.bf16.xpose.msk.msra.mxu1 %vm5905_vm11, %v4920_v23 }
 0x5ce   : > { %v1747_v44 = vpop.permute.xlu1 %1746 }
 0x5cf   : > { %4571 = vmatmul.mubr.msk.f32.vlgmr.msra.gmra.mrb[16].mxu0 %vm1344_vm10, %v1735_v6 }
 0x5d0   : > { %4573 = vmatprep.mubr.msk.f32.mxu0 %vm1344_vm10, %v1737_v57 }
 0x5d2   : > { %v2145_v13 = vpop.permute.xlu1 %2144 }
 0x5d3   : > { %4574 = vmatmul.mubr.msk.f32.gmra.mrb[18].mxu0 %vm1344_vm10, %v1739_v56  ;;  %4627 = vmatmul.mubr.msk.f32.vlgmr.msra.gmra.mrb[8].mxu1 %vm1344_vm10, %v2145_v13  ;;  %v4890_v56 = vpack.c.bf16 %v5209_v40, %v5208_v45 }
 0x5d4   : > { %4576 = vmatprep.mubr.msk.f32.mxu0 %vm1344_vm10, %v1741_v59  ;;  %4629 = vmatprep.mubr.msk.f32.mxu1 %vm1344_vm10, %v2147_v42 }
 0x5d6   : > { %v2149_v28 = vpop.permute.xlu1 %2148 }
 0x5d7   : > { %4577 = vmatmul.mubr.msk.f32.gmra.mrb[20].mxu0 %vm1344_vm10, %v1743_v25  ;;  %4630 = vmatmul.mubr.msk.f32.gmra.mrb[10].mxu1 %vm1344_vm10, %v2149_v28 }
 0x5d8   : > { %4579 = vmatprep.mubr.msk.f32.mxu0 %vm1344_vm10, %v1745_v51  ;;  %4632 = vmatprep.mubr.msk.f32.mxu1 %vm1344_vm10, %v2151_v27 }
 0x5da   : > { %v2153_v31 = vpop.permute.xlu1 %2152 }
 0x5db   : > { %4580 = vmatmul.mubr.msk.f32.gmra.mrb[22].mxu0 %vm1344_vm10, %v1747_v44  ;;  %4633 = vmatmul.mubr.msk.f32.gmra.mrb[12].mxu1 %vm1344_vm10, %v2153_v31 }
 0x5dc   : > { %4635 = vmatprep.mubr.msk.f32.mxu1 %vm1344_vm10, %v2155_v14 }
 0x5de   : > { %v2157_v33 = vpop.permute.xlu1 %2156 }
 0x5df   : > { %4636 = vmatmul.mubr.msk.f32.gmra.mrb[14].mxu1 %vm1344_vm10, %v2157_v33 }
 0x5e2   : > { %v5202_v39 = vpop.permute.xlu1 %5201 }
 0x5e3   : > { %v5204_v47 = vunpack.i.h.bf16 %v5202_v39  ;;  %v5203_v48 = vunpack.i.l.bf16 %v5202_v39 }
 0x5e5   : > { %v4886_v38 = vpack.c.bf16 %v5204_v47, %v5203_v48 }
 0x5e6   : > { %v5212_v49 = vpop.permute.xlu1 %5211 }
 0x5e7   : > { %v5214_v52 = vunpack.i.h.bf16 %v5212_v49  ;;  %v5213_v54 = vunpack.i.l.bf16 %v5212_v49  ;;  %4887 = vmatprep.subr.bf16.mxu0 %v4886_v38 }
 0x5e8   : > { %4889 = vmatpush3.bf16.msra.mxu0 %v4886_v38 }
 0x5e9   : > { %4891 = vmatprep.subr.bf16.mxu0 %v4890_v56  ;;  %v4894_v62 = vpack.c.bf16 %v5214_v52, %v5213_v54 }
 0x5ea   : > { %v5217_v59 = vpop.permute.xlu1 %5216 }
 0x5eb   : > { %v5219_v51 = vunpack.i.h.bf16 %v5217_v59  ;;  %v5218_v61 = vunpack.i.l.bf16 %v5217_v59 }
 0x5ec   : > { %4893 = vmatpush3.bf16.msra.mxu0 %v4890_v56 }
 0x5ed   : > { %4895 = vmatprep.subr.bf16.mxu0 %v4894_v62  ;;  %v4898_v5 = vpack.c.bf16 %v5219_v51, %v5218_v61 }
 0x5f0   : > { %4897 = vmatpush3.bf16.msra.mxu0 %v4894_v62 }
 0x5f1   : > { %4899 = vmatprep.subr.bf16.mxu0 %v4898_v5 }
 0x5f4   : > { %4901 = vmatpush3.bf16.msra.mxu0 %v4898_v5 }
 0x5f5   : > { %4927 = vmatprep.subr.bf16.mxu0 %v6196_v16 }
 0x631   : > { %v6199_v6 = vpop.f32.mrb[8].mxu0 }
 0x632   : > { %7064 = vst [vmem:[#allocation9_spill] sm:$0xff] %v6199_v6  ;;  %v6201_v57 = vpop.f32.mrb[9].mxu0 }
 0x666   : > { %v6203_v19 = vpop.f32.mrb[10].mxu0 }
 0x667   : > { %7065 = vst [vmem:[#allocation10_spill] sm:$0xff] %v6203_v19  ;;  %v6205_v20 = vpop.f32.mrb[11].mxu0 }
 0x66e   : > { %v6207_v4 = vpop.f32.mrb[12].mxu0 }
 0x66f   : > { %7066 = vst [vmem:[#allocation11_spill] sm:$0xff] %v6207_v4  ;;  %v6209_v23 = vpop.f32.mrb[13].mxu0 }
 0x670   : > { %7067 = vst [vmem:[#allocation12_spill] sm:$0xff] %v6209_v23 }
 0x69e   : > { %v6211_v25 = vpop.f32.mrb[14].mxu0 }
 0x69f   : > { %7068 = vst [vmem:[#allocation13_spill] sm:$0xff] %v6211_v25  ;;  %v6213_v42 = vpop.f32.mrb[15].mxu0 }
 0x6a0   : > { %7069 = vst [vmem:[#allocation14_spill] sm:$0xff] %v6213_v42 }
 0x6a2   : > { %v4572_v44 = vpop.f32.mrb[16].mxu0 }
 0x6a3   : > { %v6216_v13 = vadd.f32 %v4572_v44, %v5970_v12  ;;  %v1862_v27 = vpop.f32.mrb[17].mxu0 }
 0x6a5   : > { %v1904_v28 = vsel %vm1490_vm12, %v6216_v13, -inf }
 0x6a6   : > { %v4628_v14 = vpop.f32.mrb[8].mxu1  ;;  %1905 = vmax.xlane.f32.xlu1 %v1904_v28  ;;  %v4575_v31 = vpop.f32.mrb[18].mxu0 }
 0x6a7   : > { %v6221_v33 = vadd.f32 %v4628_v14, %v5970_v12  ;;  %v1872_v36 = vpop.f32.mrb[19].mxu0  ;;  %v2272_v39 = vpop.f32.mrb[9].mxu1 }
 0x6a8   : > { %v6224_v40 = vadd.f32 %v2272_v39, %v5975_v15 }
 0x6a9   : > { %v2314_v45 = vsel %vm1490_vm12, %v6221_v33, -inf }
 0x6aa   : > { %2315 = vmax.xlane.f32.xlu0 %v2314_v45  ;;  %v4578_v47 = vpop.f32.mrb[20].mxu0  ;;  %v4631_v48 = vpop.f32.mrb[10].mxu1  ;;  %v2311_v56 = vsel %vm1490_vm12, %v6224_v40, -inf  ;;  %v1863_v45 = vadd.f32 %v1862_v27, %v5975_v15 }
 0x6ab   : > { %v1882_v38 = vpop.f32.mrb[21].mxu0  ;;  %v2282_v49 = vpop.f32.mrb[11].mxu1  ;;  %v6232_v54 = vadd.f32 %v4631_v48, %v5994_v29 }
 0x6ac   : > { %v6229_v52 = vadd.f32 %v2282_v49, %v5999_v30 }
 0x6ad   : > { %v2320_v5 = vsel %vm1490_vm12, %v6232_v54, -inf }
 0x6ae   : > { %v4634_v59 = vpop.f32.mrb[12].mxu1  ;;  %2312 = vmax.xlane.f32.xlu0 %v2311_v56  ;;  %v4581_v51 = vpop.f32.mrb[22].mxu0  ;;  %v2317_v61 = vsel %vm1490_vm12, %v6229_v52, -inf }
 0x6af   : > { %v2292_v62 = vpop.f32.mrb[13].mxu1  ;;  %2318 = vmax.xlane.f32.xlu1 %v2317_v61  ;;  %v1892_v1 = vpop.f32.mrb[23].mxu0  ;;  %v6242_v60 = vadd.f32 %v4634_v59, %v6010_v34  ;;  %v6260_v59 = vadd.f32 %v4575_v31, %v5994_v29  ;;  %v1901_v61 = vsel %vm1490_vm12, %v1863_v45, -inf }
 0x6b0   : > { %v6239_v2 = vadd.f32 %v2292_v62, %v6022_v37  ;;  %v6255_v49 = vadd.f32 %v1892_v1, %v6054_v43  ;;  %v1873_v1 = vadd.f32 %v1872_v36, %v5999_v30 }
 0x6b1   : > { %v2326_v48 = vsel %vm1490_vm12, %v6242_v60, -inf }
 0x6b2   : > { %v4637_v44 = vpop.f32.mrb[14].mxu1  ;;  %2321 = vmax.xlane.f32.xlu0 %v2320_v5  ;;  %v2323_v28 = vsel %vm1490_vm12, %v6239_v2, -inf  ;;  %v1919_v27 = vsel %vm1490_vm12, %v6255_v49, -inf  ;;  %v1910_v5 = vsel %vm1490_vm12, %v6260_v59, -inf }
 0x6b3   : > { %v2302_v14 = vpop.f32.mrb[15].mxu1  ;;  %2324 = vmax.xlane.f32.xlu1 %v2323_v28  ;;  %v6264_v62 = vadd.f32 %v4637_v44, %v6044_v41  ;;  %v6274_v28 = vadd.f32 %v4578_v47, %v6010_v34  ;;  %v1907_v44 = vsel %vm1490_vm12, %v1873_v1, -inf }
 0x6b4   : > { %v6249_v39 = vadd.f32 %v2302_v14, %v6054_v43  ;;  %v6278_v14 = vadd.f32 %v1882_v38, %v6022_v37 }
 0x6b5   : > { %v2332_v31 = vsel %vm1490_vm12, %v6264_v62, -inf  ;;  %v1916_v36 = vsel %vm1490_vm12, %v6274_v28, -inf }
 0x6b6   : > { %2327 = vmax.xlane.f32.xlu0 %v2326_v48  ;;  %v2329_v56 = vsel %vm1490_vm12, %v6249_v39, -inf  ;;  %v6283_v48 = vadd.f32 %v4581_v51, %v6044_v41 }
 0x6b7   : > { %2330 = vmax.xlane.f32.xlu1 %v2329_v56  ;;  %v1913_v56 = vsel %vm1490_vm12, %v6278_v14, -inf }
 0x6b8   : > { %v1922_v47 = vsel %vm1490_vm12, %v6283_v48, -inf }
 0x6ba   : > { %1902 = vmax.xlane.f32.xlu0 %v1901_v61 }
 0x6bb   : > { %1920 = vmax.xlane.f32.xlu1 %v1919_v27 }
 0x6be   : > { %1911 = vmax.xlane.f32.xlu0 %v1910_v5 }
 0x6bf   : > { %2333 = vmax.xlane.f32.xlu1 %v2332_v31 }
 0x6c2   : > { %1908 = vmax.xlane.f32.xlu0 %v1907_v44 }
 0x6c6   : > { %1917 = vmax.xlane.f32.xlu0 %v1916_v36 }
 0x6ca   : > { %1914 = vmax.xlane.f32.xlu0 %v1913_v56 }
 0x6ce   : > { %1923 = vmax.xlane.f32.xlu0 %v1922_v47 }
 0x6d0   : > { %5246 = vrot.lane.b32.xlu1 %v5874_v21, %s5512_s24 }
 0x6d4   : > { %5256 = vrot.lane.b32.xlu1 %v5893_v3, %s5512_s24 }
 0x6d8   : > { %2554 = vrot.lane.b32.xlu1 %v5933_v7, %s5513_s29  ;;  %v5227_v7 = vpop.permute.xlu1 %5226 }
 0x6dc   : > { %2558 = vrot.lane.b32.xlu1 %v5943_v9, %s5513_s29  ;;  %v5232_v9 = vpop.permute.xlu1 %5231 }
 0x6e0   : > { %2562 = vrot.lane.b32.xlu1 %v5953_v10, %s5513_s29  ;;  %v6305_v10 = vpop.permute.xlu1 %5236 }
 0x6e4   : > { %2566 = vrot.lane.b32.xlu1 %v5963_v11, %s5513_s29  ;;  %5241 = vrot.lane.b32.xlu0 %v5861_v17, %s5512_s24 }
 0x6e8   : > { %5266 = vrot.lane.b32.xlu1 %v5874_v21, %s5514_s19  ;;  %5251 = vrot.lane.b32.xlu0 %v5883_v26, %s5512_s24 }
 0x6ec   : > { %2552 = vrot.lane.b32.xlu0 %v5863_v18, %s5513_s29 }
 0x6f0   : > { %2556 = vrot.lane.b32.xlu0 %v5936_v8, %s5513_s29 }
 0x6f4   : > { %2560 = vrot.lane.b32.xlu0 %v5946_v50, %s5513_s29 }
 0x6f8   : > { %2564 = vrot.lane.b32.xlu0 %v5956_v58, %s5513_s29  ;;  %s7079_s29 = scalar_lea.vmem %s7015_s11, %s5647_s21 }
 0x6fc   : > { %5261 = vrot.lane.b32.xlu0 %v5861_v17, %s5514_s19 }
 0x733   : > { %v1906_v21 = vpop.xlane.xlu1 %1905 }
 0x734   : > { %v1926_v17 = vsub.f32 %v6216_v13, %v1906_v21  ;;  %v5229_v13 = vunpack.i.h.bf16 %v5227_v7  ;;  %v5228_v21 = vunpack.i.l.bf16 %v5227_v7 }
 0x736   : > { %v1935_v31 = vmul.f32 1.442695, %v1926_v17 }
 0x737   : > { %v6307_v11 = vpop.xlane.xlu0 %2315 }
 0x73b   : > { %v2313_v38 = vpop.xlane.xlu0 %2312 }
 0x73c   : > { %v6309_v51 = vpop.xlane.xlu1 %2318 }
 0x73f   : > { %v6311_v18 = vpop.xlane.xlu0 %2321 }
 0x740   : > { %v6313_v8 = vpop.xlane.xlu1 %2324 }
 0x743   : > { %v6315_v50 = vpop.xlane.xlu0 %2327 }
 0x744   : > { %v6317_v58 = vpop.xlane.xlu1 %2330 }
 0x747   : > { %v1903_v61 = vpop.xlane.xlu0 %1902 }
 0x748   : > { %v1925_v27 = vsub.f32 %v1863_v45, %v1903_v61  ;;  %v1921_v5 = vpop.xlane.xlu1 %1920 }
 0x749   : > { %v1931_v61 = vsub.f32 %v6255_v49, %v1921_v5  ;;  %v5239_v5 = vunpack.i.h.bf16 %v6305_v10 }
 0x74a   : > { %v1933_v44 = vmul.f32 1.442695, %v1925_v27 }
 0x74b   : > { %v1912_v36 = vpop.xlane.xlu0 %1911  ;;  %v1945_v49 = vmul.f32 1.442695, %v1931_v61  ;;  %v2339_v61 = vsub.f32 %v6239_v2, %v6313_v8 }
 0x74c   : > { %5296 = vpow2.f32 %v1933_v44  ;;  %v6320_v56 = vpop.xlane.xlu1 %2333  ;;  %v1928_v47 = vsub.f32 %v6260_v59, %v1912_v36  ;;  %v5234_v59 = vunpack.i.h.bf16 %v5232_v9  ;;  %v5238_v44 = vunpack.i.l.bf16 %v6305_v10 }
 0x74d   : > { %5298 = vpow2.f32 %v1935_v31  ;;  %v5233_v31 = vunpack.i.l.bf16 %v5232_v9  ;;  %v2336_v36 = vsub.f32 %v6221_v33, %v6307_v11 }
 0x74e   : > { %v1939_v4 = vmul.f32 1.442695, %v1928_v47 }
 0x74f   : > { %v1909_v25 = vpop.xlane.xlu0 %1908  ;;  %v4934_v9 = vpack.c.bf16 %v5234_v59, %v5233_v31 }
 0x750   : > { %v1927_v42 = vsub.f32 %v1873_v1, %v1909_v25  ;;  %v6323_v19 = vpop.permute.xlu1 %5246 }
 0x752   : > { %v1937_v6 = vmul.f32 1.442695, %v1927_v42 }
 0x753   : > { %v1918_v23 = vpop.xlane.xlu0 %1917 }
 0x754   : > { %5300 = vpow2.f32 %v1937_v6  ;;  %v1930_v45 = vsub.f32 %v6274_v28, %v1918_v23  ;;  %v6331_v25 = vpop.permute.xlu1 %5256  ;;  %v4930_v6 = vpack.c.bf16 %v5229_v13, %v5228_v21  ;;  %v2335_v23 = vsub.f32 %v6224_v40, %v2313_v38 }
 0x755   : > { %5302 = vpow2.f32 %v1939_v4  ;;  %v2337_v38 = vsub.f32 %v6229_v52, %v6309_v51  ;;  %v4938_v21 = vpack.c.bf16 %v5239_v5, %v5238_v44  ;;  %v2338_v52 = vsub.f32 %v6232_v54, %v6311_v18 }
 0x756   : > { %v6326_v17 = vpop.eup %5296  ;;  %v1943_v4 = vmul.f32 1.442695, %v1930_v45  ;;  %v2343_v40 = vmul.f32 1.442695, %v2335_v23  ;;  %v2345_v45 = vmul.f32 1.442695, %v2336_v36  ;;  %v2341_v18 = vsub.f32 %v6249_v39, %v6317_v58 }
 0x757   : > { %v6329_v27 = vpop.eup %5298  ;;  %4598 = vmatprep.mubr.msk.f32.mxu0 %vm1490_vm12, %v6326_v17  ;;  %v1915_v42 = vpop.xlane.xlu0 %1914  ;;  %v2347_v51 = vmul.f32 1.442695, %v2337_v38  ;;  %v2351_v54 = vmul.f32 1.442695, %v2339_v61  ;;  %v5248_v5 = vunpack.i.l.bf16 %v6323_v19 }
 0x758   : > { %v1929_v1 = vsub.f32 %v6278_v14, %v1915_v42  ;;  %4599 = vmatmul.mubr.msk.f32.vlgmr.msra.gmra.mrb[24].mxu0 %vm1490_vm12, %v6329_v27  ;;  %v6345_v47 = vpop.permute.xlu1 %2554 }
 0x759   : > { %4929 = vmatpush3.bf16.msra.mxu0 %v6196_v16 }
 0x75a   : > { %v1941_v28 = vmul.f32 1.442695, %v1929_v1  ;;  %4931 = vmatprep.subr.bf16.mxu0 %v4930_v6  ;;  %v2349_v1 = vmul.f32 1.442695, %v2338_v52 }
 0x75b   : > { %v1924_v7 = vpop.xlane.xlu0 %1923 }
 0x75c   : > { %5304 = vpow2.f32 %v1941_v28  ;;  %v1932_v14 = vsub.f32 %v6283_v48, %v1924_v7  ;;  %v6361_v31 = vpop.permute.xlu1 %2558 }
 0x75d   : > { %5306 = vpow2.f32 %v1943_v4  ;;  %4933 = vmatpush3.bf16.msra.mxu0 %v4930_v6  ;;  %v2340_v6 = vsub.f32 %v6242_v60, %v6315_v50  ;;  %v2342_v50 = vsub.f32 %v6264_v62, %v6320_v56 }
 0x75e   : > { %v6347_v16 = vpop.eup %5300  ;;  %5308 = vpow2.f32 %v1945_v49  ;;  %v1947_v13 = vmul.f32 1.442695, %v1932_v14  ;;  %4935 = vmatprep.subr.bf16.mxu0 %v4934_v9  ;;  %v2355_v49 = vmul.f32 1.442695, %v2341_v18  ;;  %v5259_v18 = vunpack.i.h.bf16 %v6331_v25 }
 0x75f   : > { %v6351_v10 = vpop.eup %5302  ;;  %4601 = vmatprep.mubr.msk.f32.mxu0 %vm1490_vm12, %v6347_v16  ;;  %v5242_v48 = vpop.permute.xlu0 %5241  ;;  %v2353_v60 = vmul.f32 1.442695, %v2340_v6  ;;  %v2357_v62 = vmul.f32 1.442695, %v2342_v50 }
 0x760   : > { %5310 = vpow2.f32 %v1947_v13  ;;  %v5244_v33 = vunpack.i.h.bf16 %v5242_v48  ;;  %v5243_v11 = vunpack.i.l.bf16 %v5242_v48  ;;  %4602 = vmatmul.mubr.msk.f32.gmra.mrb[26].mxu0 %vm1490_vm12, %v6351_v10  ;;  %v6381_v39 = vpop.permute.xlu1 %2562 }
 0x761   : > { %4937 = vmatpush3.bf16.msra.mxu0 %v4934_v9  ;;  %5312 = vpow2.f32 %v2343_v40  ;;  %v5249_v9 = vunpack.i.h.bf16 %v6323_v19 }
 0x762   : > { %v4942_v59 = vpack.c.bf16 %v5244_v33, %v5243_v11  ;;  %4939 = vmatprep.subr.bf16.mxu0 %v4938_v21  ;;  %5314 = vpow2.f32 %v2345_v45 }
 0x763   : > { %v5252_v42 = vpop.permute.xlu0 %5251  ;;  %5316 = vpow2.f32 %v2347_v51  ;;  %v4948_v40 = vpack.c.bf16 %v5249_v9, %v5248_v5 }
 0x764   : > { %5318 = vpow2.f32 %v2349_v1  ;;  %v2567_v44 = vpop.permute.xlu1 %2566  ;;  %v5254_v38 = vunpack.i.h.bf16 %v5252_v42  ;;  %v5253_v13 = vunpack.i.l.bf16 %v5252_v42 }
 0x765   : > { %4941 = vmatpush3.bf16.msra.mxu0 %v4938_v21  ;;  %5320 = vpow2.f32 %v2351_v54 }
 0x766   : > { %v6365_v4 = vpop.eup %5304  ;;  %4944 = vmatprep.subr.msk.bf16.mxu0 %vm5905_vm11, %v4942_v59  ;;  %5322 = vpow2.f32 %v2353_v60  ;;  %v4954_v45 = vpack.c.bf16 %v5254_v38, %v5253_v13  ;;  %v5258_v60 = vunpack.i.l.bf16 %v6331_v25 }
 0x767   : > { %v6371_v2 = vpop.eup %5306  ;;  %4604 = vmatprep.mubr.msk.f32.mxu0 %vm1490_vm12, %v6365_v4  ;;  %v2553_v8 = vpop.permute.xlu0 %2552  ;;  %5324 = vpow2.f32 %v2355_v49 }
 0x768   : > { %v6375_v23 = vpop.eup %5308  ;;  %4605 = vmatmul.mubr.msk.f32.gmra.mrb[28].mxu0 %vm1490_vm12, %v6371_v2  ;;  %5326 = vpow2.f32 %v2357_v62  ;;  %v5267_v11 = vpop.permute.xlu1 %5266  ;;  %v4960_v49 = vpack.c.bf16 %v5259_v18, %v5258_v60 }
 0x769   : > { %4607 = vmatprep.mubr.msk.f32.mxu0 %vm1490_vm12, %v6375_v23  ;;  %v5269_v61 = vunpack.i.h.bf16 %v5267_v11 }
 0x76a   : > { %v6385_v58 = vpop.eup %5310 }
 0x76b   : > { %v2557_v28 = vpop.permute.xlu0 %2556  ;;  %v6387_v7 = vpop.eup %5312 }
 0x76c   : > { %4608 = vmatmul.mubr.msk.f32.gmra.mrb[30].mxu0 %vm1490_vm12, %v6385_v58  ;;  %v6395_v56 = vpop.eup %5314 }
 0x76d   : > { %4654 = vmatprep.mubr.msk.f32.mxu0 %vm1490_vm12, %v6387_v7  ;;  %v6397_v36 = vpop.eup %5316 }
 0x76e   : > { %v6407_v19 = vpop.eup %5318 }
 0x76f   : > { %v2561_v14 = vpop.permute.xlu0 %2560  ;;  %v6409_v33 = vpop.eup %5320 }
 0x770   : > { %4655 = vmatmul.mubr.msk.f32.vlgmr.msra.gmra.mrb[32].mxu0 %vm1490_vm12, %v6395_v56  ;;  %v6415_v21 = vpop.eup %5322 }
 0x771   : > { %4947 = vmatpush3.bf16.xpose.msk.msra.mxu0 %vm5905_vm11, %v4942_v59  ;;  %4657 = vmatprep.mubr.msk.f32.mxu0 %vm1490_vm12, %v6397_v36  ;;  %v6417_v51 = vpop.eup %5324  ;;  %v5268_v59 = vunpack.i.l.bf16 %v5267_v11 }
 0x772   : > { %4950 = vmatprep.subr.msk.bf16.mxu0 %vm5905_vm11, %v4948_v40  ;;  %v6427_v54 = vpop.eup %5326 }
 0x773   : > { %v2565_v48 = vpop.permute.xlu0 %2564  ;;  %v4970_v50 = vpack.c.bf16 %v5269_v61, %v5268_v59 }
 0x774   : > { %4658 = vmatmul.mubr.msk.f32.gmra.mrb[34].mxu0 %vm1490_vm12, %v6407_v19 }
 0x775   : > { %4660 = vmatprep.mubr.msk.f32.mxu0 %vm1490_vm12, %v6409_v33 }
 0x777   : > { %v5262_v52 = vpop.permute.xlu0 %5261 }
 0x778   : > { %v5264_v1 = vunpack.i.h.bf16 %v5262_v52  ;;  %v5263_v42 = vunpack.i.l.bf16 %v5262_v52  ;;  %4661 = vmatmul.mubr.msk.f32.gmra.mrb[36].mxu0 %vm1490_vm12, %v6415_v21 }
 0x779   : > { %4953 = vmatpush3.bf16.xpose.msk.msra.mxu0 %vm5905_vm11, %v4948_v40  ;;  %4663 = vmatprep.mubr.msk.f32.mxu0 %vm1490_vm12, %v6417_v51 }
 0x77a   : > { %4956 = vmatprep.subr.msk.bf16.mxu0 %vm5905_vm11, %v4954_v45  ;;  %v4966_v6 = vpack.c.bf16 %v5264_v1, %v5263_v42 }
 0x77c   : > { %4664 = vmatmul.mubr.msk.f32.gmra.mrb[38].mxu0 %vm1490_vm12, %v6427_v54  ;;  %4967 = vmatprep.subr.bf16.mxu1 %v4966_v6 }
 0x77d   : > { %4682 = vmatprep.mubr.msk.f32.mxu0 %vm1344_vm10, %v2553_v8  ;;  %4969 = vmatpush3.bf16.msra.mxu1 %v4966_v6 }
 0x77e   : > { %4971 = vmatprep.subr.bf16.mxu1 %v4970_v50 }
 0x781   : > { %4959 = vmatpush3.bf16.xpose.msk.msra.mxu0 %vm5905_vm11, %v4954_v45  ;;  %4973 = vmatpush3.bf16.msra.mxu1 %v4970_v50 }
 0x782   : > { %4962 = vmatprep.subr.msk.bf16.mxu0 %vm5905_vm11, %v4960_v49 }
 0x789   : > { %4965 = vmatpush3.bf16.xpose.msk.msra.mxu0 %vm5905_vm11, %v4960_v49 }
 0x790   : > { %4683 = vmatmul.mubr.msk.f32.vlgmr.msra.gmra.mrb[40].mxu0 %vm1344_vm10, %v6345_v47 }
 0x791   : > { %4685 = vmatprep.mubr.msk.f32.mxu0 %vm1344_vm10, %v2557_v28 }
 0x794   : > { %4686 = vmatmul.mubr.msk.f32.gmra.mrb[42].mxu0 %vm1344_vm10, %v6361_v31 }
 0x795   : > { %4688 = vmatprep.mubr.msk.f32.mxu0 %vm1344_vm10, %v2561_v14 }
 0x798   : > { %4689 = vmatmul.mubr.msk.f32.gmra.mrb[44].mxu0 %vm1344_vm10, %v6381_v39 }
 0x799   : > { %4691 = vmatprep.mubr.msk.f32.mxu0 %vm1344_vm10, %v2565_v48 }
 0x79c   : > { %4692 = vmatmul.mubr.msk.f32.gmra.mrb[46].mxu0 %vm1344_vm10, %v2567_v44 }
 0x82b   : > { %v6450_v25 = vpop.f32.mrb[24].mxu0 }
 0x82c   : > { %v6452_v32 = vpop.f32.mrb[25].mxu0 }
 0x833   : > { %v6454_v8 = vpop.f32.mrb[26].mxu0 }
 0x834   : > { %v6456_v47 = vpop.f32.mrb[27].mxu0 }
 0x83b   : > { %v6458_v28 = vpop.f32.mrb[28].mxu0 }
 0x83c   : > { %v6460_v31 = vpop.f32.mrb[29].mxu0 }
 0x83f   : > { %v6462_v9 = vpop.f32.mrb[30].mxu0 }
 0x840   : > { %v6464_v5 = vpop.f32.mrb[31].mxu0 }
 0x843   : > { %v6466_v39 = vpop.f32.mrb[32].mxu0 }
 0x844   : > { %v6468_v62 = vpop.f32.mrb[33].mxu0 }
 0x847   : > { %v6470_v44 = vpop.f32.mrb[34].mxu0 }
 0x848   : > { %v6472_v14 = vpop.f32.mrb[35].mxu0 }
 0x84b   : > { %v6474_v40 = vpop.f32.mrb[36].mxu0 }
 0x84c   : > { %v6476_v38 = vpop.f32.mrb[37].mxu0 }
 0x84f   : > { %v6478_v13 = vpop.f32.mrb[38].mxu0 }
 0x850   : > { %v6480_v48 = vpop.f32.mrb[39].mxu0 }
 0x863   : > { %v4684_v11 = vpop.f32.mrb[40].mxu0 }
 0x864   : > { %v6483_v45 = vadd.f32 %v4684_v11, %v5970_v12  ;;  %v2682_v52 = vpop.f32.mrb[41].mxu0 }
 0x865   : > { %v6486_v61 = vadd.f32 %v2682_v52, %v5975_v15 }
 0x866   : > { %v2724_v59 = vsel %vm1490_vm12, %v6483_v45, -inf }
 0x867   : > { %2725 = vmax.xlane.f32.xlu1 %v2724_v59  ;;  %v4687_v1 = vpop.f32.mrb[42].mxu0  ;;  %v2721_v42 = vsel %vm1490_vm12, %v6486_v61, -inf }
 0x868   : > { %v6493_v6 = vadd.f32 %v4687_v1, %v5994_v29  ;;  %v2692_v18 = vpop.f32.mrb[43].mxu0  ;;  %2722 = vmax.xlane.f32.xlu0 %v2721_v42 }
 0x869   : > { %v6498_v60 = vadd.f32 %v2692_v18, %v5999_v30 }
 0x86a   : > { %v2730_v12 = vsel %vm1490_vm12, %v6493_v6, -inf }
 0x86b   : > { %v4690_v15 = vpop.f32.mrb[44].mxu0  ;;  %v2727_v59 = vsel %vm1490_vm12, %v6498_v60, -inf }
 0x86c   : > { %v2702_v50 = vpop.f32.mrb[45].mxu0  ;;  %2731 = vmax.xlane.f32.xlu0 %v2730_v12  ;;  %v6504_v11 = vadd.f32 %v4690_v15, %v6010_v34  ;;  %v2359_v12 = vsel %vm1490_vm12, %v6387_v7, 0.0  ;;  %v1955_v15 = vsel %vm1490_vm12, %v6347_v16, 0.0  ;;  %v2368_v7 = vsel %vm1490_vm12, %v6407_v19, 0.0 }
 0x86d   : > { %v6501_v49 = vadd.f32 %v2702_v50, %v6022_v37  ;;  %v2371_v16 = vsel %vm1490_vm12, %v6409_v33, 0.0  ;;  %v1970_v19 = vsel %vm1490_vm12, %v6385_v58, 0.0  ;;  %v2380_v33 = vsel %vm1490_vm12, %v6427_v54, 0.0 }
 0x86e   : > { %v2736_v34 = vsel %vm1490_vm12, %v6504_v11, -inf }
 0x86f   : > { %v4693_v52 = vpop.f32.mrb[46].mxu0  ;;  %v2733_v29 = vsel %vm1490_vm12, %v6501_v49, -inf }
 0x870   : > { %v6511_v1 = vadd.f32 %v4693_v52, %v6044_v41  ;;  %v2712_v30 = vpop.f32.mrb[47].mxu0  ;;  %2734 = vmax.xlane.f32.xlu1 %v2733_v29  ;;  %2728 = vmax.xlane.f32.xlu0 %v2727_v59  ;;  %v1949_v41 = vsel %vm1490_vm12, %v6326_v17, 0.0  ;;  %v1958_v17 = vsel %vm1490_vm12, %v6351_v10, 0.0  ;;  %v1967_v10 = vsel %vm1490_vm12, %v6375_v23, 0.0 }
 0x871   : > { %v6516_v42 = vadd.f32 %v2712_v30, %v6054_v43  ;;  %v1952_v43 = vsel %vm1490_vm12, %v6329_v27, 0.0  ;;  %v1961_v27 = vsel %vm1490_vm12, %v6365_v4, 0.0  ;;  %v2377_v4 = vsel %vm1490_vm12, %v6417_v51, 0.0 }
 0x872   : > { %v2742_v37 = vsel %vm1490_vm12, %v6511_v1, -inf }
 0x873   : > { %v2739_v18 = vsel %vm1490_vm12, %v6516_v42, -inf }
 0x874   : > { %2743 = vmax.xlane.f32.xlu1 %v2742_v37  ;;  %2737 = vmax.xlane.f32.xlu0 %v2736_v34 }
 0x878   : > { %2740 = vmax.xlane.f32.xlu1 %v2739_v18 }
 0x889   : > { %5276 = vrot.lane.b32.xlu1 %v5893_v3, %s5514_s19  ;;  %v2362_v3 = vsel %vm1490_vm12, %v6395_v56, 0.0  ;;  %v1964_v56 = vsel %vm1490_vm12, %v6371_v2, 0.0  ;;  %v1539_v2 = vsel %vm1490_vm12, %v6101_v63, 0.0 }
 0x88a   : > { %5271 = vrot.lane.b32.xlu0 %v5883_v26, %s5514_s19  ;;  %v2365_v26 = vsel %vm1490_vm12, %v6397_v36, 0.0  ;;  %v2374_v36 = vsel %vm1490_vm12, %v6415_v21, 0.0 }
 0x8a9   : > { %1950 = vadd.xlane.f32.xlu0 %v1949_v41 }
 0x8ad   : > { %1953 = vadd.xlane.f32.xlu1 %v1952_v43  ;;  %2360 = vadd.xlane.f32.xlu0 %v2359_v12 }
 0x8b1   : > { %1956 = vadd.xlane.f32.xlu1 %v1955_v15  ;;  %2363 = vadd.xlane.f32.xlu0 %v2362_v3 }
 0x8b5   : > { %2366 = vadd.xlane.f32.xlu1 %v2365_v26  ;;  %1959 = vadd.xlane.f32.xlu0 %v1958_v17 }
 0x8b9   : > { %1962 = vadd.xlane.f32.xlu1 %v1961_v27  ;;  %2369 = vadd.xlane.f32.xlu0 %v2368_v7 }
 0x8bd   : > { %2372 = vadd.xlane.f32.xlu1 %v2371_v16  ;;  %1965 = vadd.xlane.f32.xlu0 %v1964_v56 }
 0x8c1   : > { %1968 = vadd.xlane.f32.xlu1 %v1967_v10  ;;  %2375 = vadd.xlane.f32.xlu0 %v2374_v36 }
 0x8c5   : > { %2378 = vadd.xlane.f32.xlu1 %v2377_v4  ;;  %1971 = vadd.xlane.f32.xlu0 %v1970_v19 }
 0x8c9   : > { %1540 = vadd.xlane.f32.xlu1 %v1539_v2  ;;  %2381 = vadd.xlane.f32.xlu0 %v2380_v33 }
 0x8f4   : > { %v2726_v23 = vpop.xlane.xlu1 %2725 }
 0x8f5   : > { %v2746_v21 = vsub.f32 %v6483_v45, %v2726_v23  ;;  %v2723_v50 = vpop.xlane.xlu0 %2722 }
 0x8f6   : > { %v2745_v52 = vsub.f32 %v6486_v61, %v2723_v50 }
 0x8f7   : > { %v2755_v51 = vmul.f32 1.442695, %v2746_v21 }
 0x8f8   : > { %v2753_v29 = vmul.f32 1.442695, %v2745_v52 }
 0x8f9   : > { %5328 = vpow2.f32 %v2755_v51  ;;  %v2732_v58 = vpop.xlane.xlu0 %2731 }
 0x8fa   : > { %5330 = vpow2.f32 %v2753_v29  ;;  %v2748_v59 = vsub.f32 %v6493_v6, %v2732_v58  ;;  %v1545_v58 = vsel %vm1490_vm12, %v6142_v46, 0.0 }
 0x8fc   : > { %v2759_v30 = vmul.f32 1.442695, %v2748_v59 }
 0x8fd   : > { %v2735_v63 = vpop.xlane.xlu1 %2734  ;;  %v2729_v37 = vpop.xlane.xlu0 %2728 }
 0x8fe   : > { %5332 = vpow2.f32 %v2759_v30  ;;  %v2749_v54 = vsub.f32 %v6501_v49, %v2735_v63  ;;  %v2747_v34 = vsub.f32 %v6498_v60, %v2729_v37  ;;  %v1551_v30 = vsel %vm1490_vm12, %v6154_v53, 0.0 }
 0x8ff   : > { %v1542_v63 = vsel %vm1490_vm12, %v6103_v0, 0.0  ;;  %v1557_v53 = vsel %vm1490_vm12, %v6169_v22, 0.0  ;;  %v1554_v0 = vsel %vm1490_vm12, %v6156_v55, 0.0 }
 0x900   : > { %v2757_v18 = vmul.f32 1.442695, %v2747_v34  ;;  %v2761_v45 = vmul.f32 1.442695, %v2749_v54  ;;  %v1548_v54 = vsel %vm1490_vm12, %v6144_v35, 0.0  ;;  %v1560_v34 = vsel %vm1490_vm12, %v6171_v24, 0.0 }
 0x901   : > { %v2744_v41 = vpop.xlane.xlu1 %2743  ;;  %v2738_v43 = vpop.xlane.xlu0 %2737 }
 0x902   : > { %v2752_v61 = vsub.f32 %v6511_v1, %v2744_v41  ;;  %v2750_v12 = vsub.f32 %v6504_v11, %v2738_v43  ;;  %5334 = vpow2.f32 %v2757_v18 }
 0x903   : > { %v5329_v15 = vpop.eup %5328  ;;  %5336 = vpow2.f32 %v2761_v45 }
 0x904   : > { %v5331_v3 = vpop.eup %5330  ;;  %v2763_v6 = vmul.f32 1.442695, %v2750_v12  ;;  %v2772_v26 = vsel %vm1490_vm12, %v5329_v15, 0.0  ;;  %v2767_v17 = vmul.f32 1.442695, %v2752_v61 }
 0x905   : > { %v2741_v27 = vpop.xlane.xlu1 %2740  ;;  %2773 = vadd.xlane.f32.xlu0 %v2772_v26  ;;  %4710 = vmatprep.mubr.msk.f32.mxu1 %vm1490_vm12, %v5331_v3  ;;  %v5272_v60 = vpop.permute.xlu0 %5271  ;;  %v2769_v49 = vsel %vm1490_vm12, %v5331_v3, 0.0 }
 0x906   : > { %v5274_v7 = vunpack.i.h.bf16 %v5272_v60  ;;  %v5273_v16 = vunpack.i.l.bf16 %v5272_v60  ;;  %2770 = vadd.xlane.f32.xlu1 %v2769_v49  ;;  %5338 = vpow2.f32 %v2763_v6  ;;  %v2751_v56 = vsub.f32 %v6516_v42, %v2741_v27 }
 0x907   : > { %5340 = vpow2.f32 %v2767_v17 }
 0x908   : > { %v5333_v11 = vpop.eup %5332  ;;  %v4974_v1 = vpack.c.bf16 %v5274_v7, %v5273_v16  ;;  %v2765_v23 = vmul.f32 1.442695, %v2751_v56 }
 0x909   : > { %v5277_v10 = vpop.permute.xlu1 %5276  ;;  %v2778_v36 = vsel %vm1490_vm12, %v5333_v11, 0.0 }
 0x90a   : > { %v5279_v4 = vunpack.i.h.bf16 %v5277_v10  ;;  %v5278_v19 = vunpack.i.l.bf16 %v5277_v10  ;;  %2779 = vadd.xlane.f32.xlu0 %v2778_v36  ;;  %4975 = vmatprep.subr.bf16.mxu1 %v4974_v1  ;;  %5342 = vpow2.f32 %v2765_v23 }
 0x90b   : > { %4977 = vmatpush3.bf16.msra.mxu1 %v4974_v1 }
 0x90c   : > { %v4978_v2 = vpack.c.bf16 %v5279_v4, %v5278_v19  ;;  %v5335_v33 = vpop.eup %5334 }
 0x90d   : > { %v2775_v21 = vsel %vm1490_vm12, %v5335_v33, 0.0  ;;  %v5337_v50 = vpop.eup %5336 }
 0x90e   : > { %4979 = vmatprep.subr.bf16.mxu1 %v4978_v2  ;;  %2776 = vadd.xlane.f32.xlu1 %v2775_v21  ;;  %v2781_v42 = vsel %vm1490_vm12, %v5337_v50, 0.0 }
 0x90f   : > { %4981 = vmatpush3.bf16.msra.mxu1 %v4978_v2 }
 0x910   : > { %v5339_v52 = vpop.eup %5338 }
 0x911   : > { %v2784_v51 = vsel %vm1490_vm12, %v5339_v52, 0.0  ;;  %v5341_v29 = vpop.eup %5340 }
 0x912   : > { %4711 = vmatmul.mubr.msk.f32.vlgmr.msra.gmra.mrb[16].mxu1 %vm1490_vm12, %v5329_v15  ;;  %2782 = vadd.xlane.f32.xlu1 %v2781_v42  ;;  %v2790_v59 = vsel %vm1490_vm12, %v5341_v29, 0.0 }
 0x913   : > { %2785 = vadd.xlane.f32.xlu0 %v2784_v51  ;;  %4713 = vmatprep.mubr.msk.f32.mxu1 %vm1490_vm12, %v5335_v33 }
 0x914   : > { %v5343_v37 = vpop.eup %5342 }
 0x915   : > { %v2787_v46 = vsel %vm1490_vm12, %v5343_v37, 0.0 }
 0x916   : > { %4714 = vmatmul.mubr.msk.f32.gmra.mrb[18].mxu1 %vm1490_vm12, %v5333_v11  ;;  %1546 = vadd.xlane.f32.xlu1 %v1545_v58 }
 0x917   : > { %2791 = vadd.xlane.f32.xlu0 %v2790_v59  ;;  %4716 = vmatprep.mubr.msk.f32.mxu1 %vm1490_vm12, %v5337_v50 }
 0x91a   : > { %4717 = vmatmul.mubr.msk.f32.gmra.mrb[20].mxu1 %vm1490_vm12, %v5339_v52  ;;  %1552 = vadd.xlane.f32.xlu1 %v1551_v30  ;;  %v1171_v30 = vld [vmem:[%s7070_s27] sm:$0xff] }
 0x91b   : > { %1543 = vadd.xlane.f32.xlu0 %v1542_v63  ;;  %4719 = vmatprep.mubr.msk.f32.mxu1 %vm1490_vm12, %v5343_v37  ;;  %v1172_v63 = vld [vmem:[%s7070_s27 + $0x8] sm:$0xff]  ;;  %v1173_v37 = vld [vmem:[%s7070_s27 + $0x10] sm:$0xff] }
 0x91e   : > { %4720 = vmatmul.mubr.msk.f32.gmra.mrb[22].mxu1 %vm1490_vm12, %v5341_v29  ;;  %2788 = vadd.xlane.f32.xlu1 %v2787_v46  ;;  %v4982_v46 = vpack.c.bf16 %v1172_v63, %v1171_v30 }
 0x91f   : > { %1549 = vadd.xlane.f32.xlu0 %v1548_v54 }
 0x920   : > { %4983 = vmatprep.subr.bf16.mxu1 %v4982_v46 }
 0x921   : > { %4985 = vmatpush3.bf16.msra.mxu1 %v4982_v46 }
 0x922   : > { %1558 = vadd.xlane.f32.xlu1 %v1557_v53 }
 0x923   : > { %1555 = vadd.xlane.f32.xlu0 %v1554_v0 }
 0x927   : > { %1561 = vadd.xlane.f32.xlu0 %v1560_v34 }
 0x936   : > { %v1951_v18 = vpop.xlane.xlu0 %1950 }
 0x937   : > { %5344 = vrcp.f32 %v1951_v18 }
 0x93a   : > { %v1954_v45 = vpop.xlane.xlu1 %1953  ;;  %v2361_v35 = vpop.xlane.xlu0 %2360 }
 0x93b   : > { %5346 = vrcp.f32 %v1954_v45 }
 0x93c   : > { %5348 = vrcp.f32 %v2361_v35  ;;  %v7071_v35 = vld [vmem:[#allocation12_spill] sm:$0xff] }
 0x93e   : > { %v1957_v41 = vpop.xlane.xlu1 %1956  ;;  %v2364_v43 = vpop.xlane.xlu0 %2363 }
 0x93f   : > { %5350 = vrcp.f32 %v1957_v41 }
 0x940   : > { %5352 = vrcp.f32 %v2364_v43 }
 0x941   : > { %v5345_v22 = vpop.eup %5344 }
 0x942   : > { %v2367_v61 = vpop.xlane.xlu1 %2366  ;;  %v1960_v12 = vpop.xlane.xlu0 %1959  ;;  %v2127_v55 = vmul.f32 %v5345_v22, %v6452_v32 }
 0x943   : > { %5354 = vrcp.f32 %v2367_v61 }
 0x944   : > { %5356 = vrcp.f32 %v1960_v12  ;;  %2970 = vrot.lane.b32.xlu1 %v2127_v55, %s5515_s22 }
 0x945   : > { %v5347_v24 = vpop.eup %5346 }
 0x946   : > { %v5349_v15 = vpop.eup %5348  ;;  %v1963_v3 = vpop.xlane.xlu1 %1962  ;;  %v2129_v26 = vmul.f32 %v5347_v24, %v6450_v25 }
 0x947   : > { %v2370_v6 = vpop.xlane.xlu0 %2369  ;;  %5358 = vrcp.f32 %v1963_v3  ;;  %v2537_v17 = vmul.f32 %v5349_v15, %v6468_v62 }
 0x948   : > { %5360 = vrcp.f32 %v2370_v6  ;;  %2972 = vrot.lane.b32.xlu0 %v2129_v26, %s5515_s22 }
 0x949   : > { %v5351_v27 = vpop.eup %5350  ;;  %3002 = vrot.lane.b32.xlu1 %v2537_v17, %s5516_s25 }
 0x94a   : > { %v5353_v32 = vpop.eup %5352  ;;  %v2373_v60 = vpop.xlane.xlu1 %2372  ;;  %v2131_v7 = vmul.f32 %v5351_v27, %v6456_v47 }
 0x94b   : > { %v1966_v49 = vpop.xlane.xlu0 %1965  ;;  %5362 = vrcp.f32 %v2373_v60  ;;  %v2539_v16 = vmul.f32 %v5353_v32, %v6466_v39 }
 0x94c   : > { %5364 = vrcp.f32 %v1966_v49  ;;  %2974 = vrot.lane.b32.xlu0 %v2131_v7, %s5515_s22 }
 0x94d   : > { %v5355_v25 = vpop.eup %5354  ;;  %3004 = vrot.lane.b32.xlu1 %v2539_v16, %s5516_s25 }
 0x94e   : > { %v5357_v62 = vpop.eup %5356  ;;  %v1969_v11 = vpop.xlane.xlu1 %1968  ;;  %v2541_v56 = vmul.f32 %v5355_v25, %v6472_v14 }
 0x94f   : > { %v2376_v1 = vpop.xlane.xlu0 %2375  ;;  %5366 = vrcp.f32 %v1969_v11  ;;  %v2133_v10 = vmul.f32 %v5357_v62, %v6454_v8 }
 0x950   : > { %5368 = vrcp.f32 %v2376_v1  ;;  %3006 = vrot.lane.b32.xlu0 %v2541_v56, %s5516_s25 }
 0x951   : > { %v5359_v47 = vpop.eup %5358  ;;  %2976 = vrot.lane.b32.xlu1 %v2133_v10, %s5515_s22 }
 0x952   : > { %v5361_v39 = vpop.eup %5360  ;;  %v2379_v36 = vpop.xlane.xlu1 %2378  ;;  %v2135_v19 = vmul.f32 %v5359_v47, %v6460_v31 }
 0x953   : > { %v1972_v4 = vpop.xlane.xlu0 %1971  ;;  %5370 = vrcp.f32 %v2379_v36  ;;  %v2543_v2 = vmul.f32 %v5361_v39, %v6470_v44 }
 0x954   : > { %5372 = vrcp.f32 %v1972_v4  ;;  %2978 = vrot.lane.b32.xlu0 %v2135_v19, %s5515_s22 }
 0x955   : > { %v5363_v14 = vpop.eup %5362  ;;  %3008 = vrot.lane.b32.xlu1 %v2543_v2, %s5516_s25 }
 0x956   : > { %v5365_v8 = vpop.eup %5364  ;;  %v1541_v33 = vpop.xlane.xlu1 %1540  ;;  %v2545_v21 = vmul.f32 %v5363_v14, %v6476_v38 }
 0x957   : > { %v2382_v23 = vpop.xlane.xlu0 %2381  ;;  %5374 = vrcp.f32 %v1541_v33  ;;  %v2137_v50 = vmul.f32 %v5365_v8, %v6458_v28 }
 0x958   : > { %5376 = vrcp.f32 %v2382_v23  ;;  %3010 = vrot.lane.b32.xlu0 %v2545_v21, %s5516_s25 }
 0x959   : > { %v5367_v31 = vpop.eup %5366  ;;  %2980 = vrot.lane.b32.xlu1 %v2137_v50, %s5515_s22 }
 0x95a   : > { %v5369_v44 = vpop.eup %5368  ;;  %v2139_v52 = vmul.f32 %v5367_v31, %v6464_v5 }
 0x95b   : > { %v2547_v42 = vmul.f32 %v5369_v44, %v6474_v40 }
 0x95c   : > { %2982 = vrot.lane.b32.xlu0 %v2139_v52, %s5515_s22 }
 0x95d   : > { %v5371_v38 = vpop.eup %5370  ;;  %3012 = vrot.lane.b32.xlu1 %v2547_v42, %s5516_s25 }
 0x95e   : > { %v5373_v28 = vpop.eup %5372  ;;  %v2549_v51 = vmul.f32 %v5371_v38, %v6480_v48  ;;  %v1174_v48 = vld [vmem:[%s7070_s27 + $0x18] sm:$0xff] }
 0x95f   : > { %v2141_v29 = vmul.f32 %v5373_v28, %v6462_v9  ;;  %v4986_v54 = vpack.c.bf16 %v1174_v48, %v1173_v37  ;;  %v7072_v48 = vld [vmem:[#allocation9_spill] sm:$0xff] }
 0x960   : > { %3014 = vrot.lane.b32.xlu0 %v2549_v51, %s5516_s25 }
 0x961   : > { %v5375_v58 = vpop.eup %5374  ;;  %2984 = vrot.lane.b32.xlu1 %v2141_v29, %s5515_s22  ;;  %4987 = vmatprep.subr.bf16.mxu1 %v4986_v54 }
 0x962   : > { %v5377_v5 = vpop.eup %5376  ;;  %v6629_v40 = vmul.f32 %v5375_v58, %v6201_v57  ;;  %4989 = vmatpush3.bf16.msra.mxu1 %v4986_v54 }
 0x963   : > { %v2551_v59 = vmul.f32 %v5377_v5, %v6478_v13 }
 0x965   : > { %3016 = vrot.lane.b32.xlu1 %v2551_v59, %s5516_s25  ;;  %s7080_s25 = scalar_lea.vmem %s7017_s13, %s5647_s21 }
 0x992   : > { %v2774_v43 = vpop.xlane.xlu0 %2773 }
 0x993   : > { %v2771_v9 = vpop.xlane.xlu1 %2770 }
 0x997   : > { %v2780_v22 = vpop.xlane.xlu0 %2779 }
 0x99b   : > { %v2777_v53 = vpop.xlane.xlu1 %2776 }
 0x99f   : > { %v2783_v0 = vpop.xlane.xlu1 %2782 }
 0x9a0   : > { %v2786_v61 = vpop.xlane.xlu0 %2785 }
 0x9a3   : > { %v1547_v34 = vpop.xlane.xlu1 %1546 }
 0x9a4   : > { %5378 = vrcp.f32 %v1547_v34  ;;  %v2792_v12 = vpop.xlane.xlu0 %2791 }
 0x9a7   : > { %v1553_v57 = vpop.xlane.xlu1 %1552 }
 0x9a8   : > { %5380 = vrcp.f32 %v1553_v57  ;;  %v1544_v2 = vpop.xlane.xlu0 %1543 }
 0x9a9   : > { %5382 = vrcp.f32 %v2774_v43  ;;  %v7073_v43 = vld [vmem:[#allocation10_spill] sm:$0xff] }
 0x9aa   : > { %5384 = vrcp.f32 %v2771_v9 }
 0x9ab   : > { %5386 = vrcp.f32 %v2780_v22  ;;  %v2789_v24 = vpop.xlane.xlu1 %2788 }
 0x9ac   : > { %5388 = vrcp.f32 %v2777_v53  ;;  %v1550_v8 = vpop.xlane.xlu0 %1549 }
 0x9ad   : > { %5390 = vrcp.f32 %v2786_v61 }
 0x9ae   : > { %v5379_v13 = vpop.eup %5378  ;;  %5392 = vrcp.f32 %v2783_v0 }
 0x9af   : > { %v6638_v18 = vmul.f32 %v5379_v13, %v6205_v20  ;;  %5394 = vrcp.f32 %v2792_v12  ;;  %v1559_v14 = vpop.xlane.xlu1 %1558 }
 0x9b0   : > { %5396 = vrcp.f32 %v2789_v24  ;;  %v1556_v23 = vpop.xlane.xlu0 %1555 }
 0x9b1   : > { %5398 = vrcp.f32 %v1544_v2 }
 0x9b2   : > { %v5381_v45 = vpop.eup %5380  ;;  %5400 = vrcp.f32 %v1550_v8 }
 0x9b3   : > { %v6641_v41 = vmul.f32 %v5381_v45, %v7071_v35  ;;  %v5383_v55 = vpop.eup %5382  ;;  %5402 = vrcp.f32 %v1556_v23  ;;  %v4227_v23 = vld [vmem:[%s7077_s20] ss:$0 sm:$0xff] }
 0x9b4   : > { %v5385_v3 = vpop.eup %5384  ;;  %v1562_v50 = vpop.xlane.xlu0 %1561  ;;  %5404 = vrcp.f32 %v1559_v14 }
 0x9b5   : > { %v5387_v17 = vpop.eup %5386  ;;  %5406 = vrcp.f32 %v1562_v50 }
 0x9b6   : > { %v5389_v32 = vpop.eup %5388  ;;  %v2971_v33 = vpop.permute.xlu1 %2970 }
 0x9b7   : > { %v5391_v16 = vpop.eup %5390  ;;  %v3058_v53 = vsel %vm1344_vm10, %v6629_v40, %v2971_v33 }
 0x9b8   : > { %v5393_v62 = vpop.eup %5392 }
 0x9b9   : > { %v5395_v10 = vpop.eup %5394 }
 0x9ba   : > { %v5397_v39 = vpop.eup %5396  ;;  %v2973_v44 = vpop.permute.xlu0 %2972 }
 0x9bb   : > { %v3003_v21 = vpop.permute.xlu1 %3002  ;;  %v5399_v63 = vpop.eup %5398 }
 0x9bc   : > { %v1719_v54 = vmul.f32 %v5399_v63, %v7072_v48  ;;  %v5401_v9 = vpop.eup %5400  ;;  %v3067_v34 = vsel %vm3066_vm13, %v3058_v53, %v3003_v21  ;;  %v5458_v63 = vld [vmem:[%s5716_s12 + $0x10] sm:$0xff]  ;;  %v5459_v48 = vld [vmem:[%s5716_s12 + $0x18] sm:$0xff] }
 0x9bd   : > { %v1723_v22 = vmul.f32 %v5401_v9, %v7073_v43  ;;  %v5403_v12 = vpop.eup %5402 }
 0x9be   : > { %v2975_v42 = vpop.permute.xlu0 %2974  ;;  %v3059_v57 = vsel %vm1344_vm10, %v1719_v54, %v2973_v44 }
 0x9bf   : > { %v3005_v31 = vpop.permute.xlu1 %3004  ;;  %v3060_v40 = vsel %vm1344_vm10, %v6638_v18, %v2975_v42 }
 0x9c0   : > { %v3068_v45 = vsel %vm3066_vm13, %v3059_v57, %v3005_v31  ;;  %v5460_v57 = vld [vmem:[%s5716_s12 + $0x20] sm:$0xff] }
 0x9c2   : > { %v3007_v28 = vpop.permute.xlu0 %3006 }
 0x9c3   : > { %v2977_v52 = vpop.permute.xlu1 %2976 }
 0x9c4   : > { %v3061_v24 = vsel %vm1344_vm10, %v1723_v22, %v2977_v52  ;;  %v5456_v52 = vld [vmem:[%s5716_s12 + $0x8] sm:$0xff] }
 0x9c5   : > { %v5461_v22 = vld [vmem:[%s5716_s12 + $0x28] sm:$0xff] }
 0x9c6   : > { %v2979_v29 = vpop.permute.xlu0 %2978 }
 0x9c7   : > { %v3009_v38 = vpop.permute.xlu1 %3008 }
 0x9ca   : > { %v3011_v5 = vpop.permute.xlu0 %3010 }
 0x9cb   : > { %v2981_v51 = vpop.permute.xlu1 %2980 }
 0x9ce   : > { %v2983_v30 = vpop.permute.xlu0 %2982 }
 0x9cf   : > { %v3013_v58 = vpop.permute.xlu1 %3012 }
 0x9d2   : > { %v3015_v46 = vpop.permute.xlu0 %3014 }
 0x9d3   : > { %v2985_v59 = vpop.permute.xlu1 %2984 }
 0x9d7   : > { %v3017_v37 = vpop.permute.xlu1 %3016 }
 0x9e5   : > { %v4712_v15 = vpop.f32.mrb[16].mxu1 }
 0x9e6   : > { %v2949_v20 = vmul.f32 %v5383_v55, %v4712_v15  ;;  %v2907_v6 = vpop.f32.mrb[17].mxu1  ;;  %v3069_v15 = vsel %vm3066_vm13, %v3060_v40, %v3007_v28 }
 0x9e7   : > { %v2947_v26 = vmul.f32 %v5385_v3, %v2907_v6 }
 0x9e8   : > { %3036 = vrot.lane.b32.xlu1 %v2949_v20, %s5517_s18  ;;  %v3070_v20 = vsel %vm3066_vm13, %v3061_v24, %v3009_v38  ;;  %v5457_v38 = vld [vmem:[%s5716_s12] sm:$0xff]  ;;  %v5462_v24 = vld [vmem:[%s5716_s12 + $0x30] sm:$0xff] }
 0x9e9   : > { %3034 = vrot.lane.b32.xlu0 %v2947_v26, %s5517_s18  ;;  %v4715_v27 = vpop.f32.mrb[18].mxu1  ;;  %v5405_v26 = vpop.eup %5404 }
 0x9ea   : > { %v2953_v60 = vmul.f32 %v5387_v17, %v4715_v27  ;;  %v2917_v49 = vpop.f32.mrb[19].mxu1  ;;  %v7074_v17 = vld [vmem:[#allocation11_spill] sm:$0xff]  ;;  %v5407_v18 = vpop.eup %5406 }
 0x9eb   : > { %v2951_v7 = vmul.f32 %v5389_v32, %v2917_v49  ;;  %v1727_v27 = vmul.f32 %v5403_v12, %v7074_v17 }
 0x9ec   : > { %3040 = vrot.lane.b32.xlu1 %v2953_v60, %s5517_s18  ;;  %v3062_v60 = vsel %vm1344_vm10, %v6641_v41, %v2979_v29 }
 0x9ed   : > { %3038 = vrot.lane.b32.xlu0 %v2951_v7, %s5517_s18  ;;  %v4718_v25 = vpop.f32.mrb[20].mxu1  ;;  %v3063_v7 = vsel %vm1344_vm10, %v1727_v27, %v2981_v51 }
 0x9ee   : > { %v2957_v11 = vmul.f32 %v5391_v16, %v4718_v25  ;;  %v2927_v1 = vpop.f32.mrb[21].mxu1  ;;  %v3071_v16 = vsel %vm3066_vm13, %v3062_v60, %v3011_v5 }
 0x9ef   : > { %v2955_v56 = vmul.f32 %v5393_v62, %v2927_v1  ;;  %v3072_v62 = vsel %vm3066_vm13, %v3063_v7, %v3013_v58 }
 0x9f0   : > { %3044 = vrot.lane.b32.xlu1 %v2957_v11, %s5517_s18  ;;  %v7075_v11 = vld [vmem:[#allocation14_spill] sm:$0xff] }
 0x9f1   : > { %3042 = vrot.lane.b32.xlu0 %v2955_v56, %s5517_s18  ;;  %v4721_v47 = vpop.f32.mrb[22].mxu1  ;;  %v1729_v1 = vmul.f32 %v5405_v26, %v7075_v11 }
 0x9f2   : > { %v2961_v36 = vmul.f32 %v5395_v10, %v4721_v47  ;;  %v2937_v4 = vpop.f32.mrb[23].mxu1  ;;  %v7076_v10 = vld [vmem:[#allocation13_spill] sm:$0xff] }
 0x9f3   : > { %v2959_v19 = vmul.f32 %v5397_v39, %v2937_v4  ;;  %v1731_v47 = vmul.f32 %v5407_v18, %v7076_v10  ;;  %v3064_v41 = vsel %vm1344_vm10, %v1729_v1, %v2983_v30 }
 0x9f4   : > { %3048 = vrot.lane.b32.xlu1 %v2961_v36, %s5517_s18 }
 0x9f5   : > { %3046 = vrot.lane.b32.xlu0 %v2959_v19, %s5517_s18  ;;  %v3065_v4 = vsel %vm1344_vm10, %v1731_v47, %v2985_v59  ;;  %v3073_v19 = vsel %vm3066_vm13, %v3064_v41, %v3015_v46 }
 0x9f6   : > { %v3074_v14 = vsel %vm3066_vm13, %v3065_v4, %v3017_v37 }
 0xa5a   : > { %v3037_v0 = vpop.permute.xlu1 %3036 }
 0xa5b   : > { %v3035_v13 = vpop.permute.xlu0 %3034  ;;  %v3077_v61 = vsel %vm3075_vm14, %v3068_v45, %v3037_v0 }
 0xa5c   : > { %v3076_v35 = vsel %vm3075_vm14, %v3067_v34, %v3035_v13 }
 0xa5d   : > { %4730 = vmatprep.mubr.msk.f32.mxu1 %vm1182_vm9, %v3076_v35 }
 0xa5e   : > { %4731 = vmatmul.mubr.msk.f32.vlgmr.msra.gmra.mrb[24].mxu1 %vm1182_vm9, %v3077_v61  ;;  %v3041_v55 = vpop.permute.xlu1 %3040 }
 0xa5f   : > { %v3039_v3 = vpop.permute.xlu0 %3038  ;;  %v3079_v32 = vsel %vm3075_vm14, %v3070_v20, %v3041_v55 }
 0xa60   : > { %v3078_v6 = vsel %vm3075_vm14, %v3069_v15, %v3039_v3  ;;  %v5463_v3 = vld [vmem:[%s5716_s12 + $0x38] sm:$0xff] }
 0xa61   : > { %4733 = vmatprep.mubr.msk.f32.mxu1 %vm1182_vm9, %v3078_v6 }
 0xa62   : > { %4734 = vmatmul.mubr.msk.f32.gmra.mrb[26].mxu1 %vm1182_vm9, %v3079_v32  ;;  %v3045_v49 = vpop.permute.xlu1 %3044 }
 0xa63   : > { %v3043_v25 = vpop.permute.xlu0 %3042  ;;  %v3081_v39 = vsel %vm3075_vm14, %v3072_v62, %v3045_v49 }
 0xa64   : > { %v3080_v56 = vsel %vm3075_vm14, %v3071_v16, %v3043_v25 }
 0xa65   : > { %4736 = vmatprep.mubr.msk.f32.mxu1 %vm1182_vm9, %v3080_v56 }
 0xa66   : > { %4737 = vmatmul.mubr.msk.f32.gmra.mrb[28].mxu1 %vm1182_vm9, %v3081_v39  ;;  %v3049_v36 = vpop.permute.xlu1 %3048 }
 0xa67   : > { %v3047_v2 = vpop.permute.xlu0 %3046  ;;  %v3083_v33 = vsel %vm3075_vm14, %v3074_v14, %v3049_v36 }
 0xa68   : > { %v3082_v8 = vsel %vm3075_vm14, %v3073_v19, %v3047_v2 }
 0xa69   : > { %4739 = vmatprep.mubr.msk.f32.mxu1 %vm1182_vm9, %v3082_v8 }
 0xa6a   : > { %4740 = vmatmul.mubr.msk.f32.gmra.mrb[30].mxu1 %vm1182_vm9, %v3083_v33 }
 0xb31   : > { %v4732_v21 = vpop.f32.mrb[24].mxu1 }
 0xb32   : > { %v3186_v50 = vadd.f32 %v4732_v21, %v4227_v23  ;;  %v3180_v31 = vpop.f32.mrb[25].mxu1 }
 0xb33   : > { %v3181_v44 = vadd.f32 %v4227_v23, %v3180_v31 }
 0xb34   : > { %v3220_v42 = vadd.f32 %v5456_v52, %v3186_v50 }
 0xb35   : > { %v3219_v28 = vadd.f32 %v5457_v38, %v3181_v44  ;;  %v4735_v51 = vpop.f32.mrb[26].mxu1 }
 0xb36   : > { %v3196_v29 = vadd.f32 %v4735_v51, %v4227_v23  ;;  %v3190_v58 = vpop.f32.mrb[27].mxu1  ;;  %v3232_v5 = vsel %vm1182_vm9, %v3220_v42, 0.0 }
 0xb37   : > { %v3191_v59 = vadd.f32 %v4227_v23, %v3190_v58  ;;  %3233 = vadd.xlane.f32.xlu1 %v3232_v5  ;;  %v3229_v30 = vsel %vm1182_vm9, %v3219_v28, 0.0 }
 0xb38   : > { %3230 = vadd.xlane.f32.xlu0 %v3229_v30  ;;  %v3222_v54 = vadd.f32 %v5459_v48, %v3196_v29  ;;  %v3363_v48 = vld [vmem:[%s5689_s5 + $0x8] sm:$0xff] }
 0xb39   : > { %v3221_v37 = vadd.f32 %v5458_v63, %v3191_v59  ;;  %v4738_v46 = vpop.f32.mrb[28].mxu1 }
 0xb3a   : > { %v3200_v9 = vpop.f32.mrb[29].mxu1  ;;  %v3206_v53 = vadd.f32 %v4738_v46, %v4227_v23  ;;  %v3238_v43 = vsel %vm1182_vm9, %v3222_v54, 0.0  ;;  %v3362_v46 = vld [vmem:[%s5689_s5] sm:$0xff] }
 0xb3b   : > { %v3201_v0 = vadd.f32 %v4227_v23, %v3200_v9  ;;  %v3235_v34 = vsel %vm1182_vm9, %v3221_v37, 0.0  ;;  %v3364_v9 = vld [vmem:[%s5689_s5 + $0x10] sm:$0xff] }
 0xb3c   : > { %3236 = vadd.xlane.f32.xlu0 %v3235_v34  ;;  %v3224_v61 = vadd.f32 %v5461_v22, %v3206_v53  ;;  %v3365_v53 = vld [vmem:[%s5689_s5 + $0x18] sm:$0xff] }
 0xb3d   : > { %v3223_v13 = vadd.f32 %v5460_v57, %v3201_v0  ;;  %v4741_v45 = vpop.f32.mrb[30].mxu1  ;;  %v4994_v0 = vpack.c.bf16 %v3365_v53, %v3364_v9  ;;  %v3576_v9 = vld [vmem:[%s5703_s30 + $0x10] sm:$0xff]  ;;  %v3577_v53 = vld [vmem:[%s5703_s30 + $0x18] sm:$0xff] }
 0xb3e   : > { %v3210_v35 = vpop.f32.mrb[31].mxu1  ;;  %v3216_v12 = vadd.f32 %v4741_v45, %v4227_v23  ;;  %v3244_v6 = vsel %vm1182_vm9, %v3224_v61, 0.0 }
 0xb3f   : > { %v3211_v40 = vadd.f32 %v4227_v23, %v3210_v35  ;;  %v3241_v55 = vsel %vm1182_vm9, %v3223_v13, 0.0 }
 0xb40   : > { %3242 = vadd.xlane.f32.xlu1 %v3241_v55  ;;  %3239 = vadd.xlane.f32.xlu0 %v3238_v43  ;;  %v3226_v20 = vadd.f32 %v5463_v3, %v3216_v12 }
 0xb41   : > { %v3225_v15 = vadd.f32 %v5462_v24, %v3211_v40 }
 0xb42   : > { %v3250_v17 = vsel %vm1182_vm9, %v3226_v20, 0.0 }
 0xb43   : > { %v3247_v26 = vsel %vm1182_vm9, %v3225_v15, 0.0 }
 0xb44   : > { %3245 = vadd.xlane.f32.xlu0 %v3244_v6  ;;  %3248 = vadd.xlane.f32.xlu1 %v3247_v26 }
 0xb48   : > { %3251 = vadd.xlane.f32.xlu0 %v3250_v17 }
 0xbc4   : > { %v3234_v27 = vpop.xlane.xlu1 %3233 }
 0xbc5   : > { %v3255_v32 = vmul.f32 0.03125, %v3234_v27  ;;  %v3231_v18 = vpop.xlane.xlu0 %3230 }
 0xbc6   : > { %v3254_v60 = vmul.f32 0.03125, %v3231_v18  ;;  %v4236_v18 = vld [vmem:[%s7078_s6] ss:$0 sm:$0xff] }
 0xbc7   : > { %v6704_v49 = vsub.f32 %v3220_v42, %v3255_v32 }
 0xbc8   : > { %v6706_v7 = vsub.f32 %v3219_v28, %v3254_v60 }
 0xbc9   : > { %v3237_v16 = vpop.xlane.xlu0 %3236  ;;  %v3271_v25 = vmul.f32 %v6704_v49, %v6704_v49 }
 0xbca   : > { %v3256_v62 = vmul.f32 0.03125, %v3237_v16  ;;  %v3270_v11 = vmul.f32 %v6706_v7, %v6706_v7 }
 0xbcb   : > { %v3281_v1 = vsel %vm1182_vm9, %v3271_v25, 0.0 }
 0xbcc   : > { %v6713_v56 = vsub.f32 %v3221_v37, %v3256_v62  ;;  %3282 = vadd.xlane.f32.xlu0 %v3281_v1  ;;  %v3278_v10 = vsel %vm1182_vm9, %v3270_v11, 0.0 }
 0xbcd   : > { %v3243_v47 = vpop.xlane.xlu1 %3242  ;;  %3279 = vadd.xlane.f32.xlu1 %v3278_v10  ;;  %v3240_v39 = vpop.xlane.xlu0 %3239  ;;  %v4237_v10 = vld [vmem:[%s7079_s29] ss:$0 sm:$0xff] }
 0xbce   : > { %v3258_v41 = vmul.f32 0.03125, %v3243_v47  ;;  %v3257_v36 = vmul.f32 0.03125, %v3240_v39  ;;  %v3272_v4 = vmul.f32 %v6713_v56, %v6713_v56 }
 0xbd0   : > { %v6718_v19 = vsub.f32 %v3223_v13, %v3258_v41  ;;  %v6720_v2 = vsub.f32 %v3222_v54, %v3257_v36  ;;  %v3284_v14 = vsel %vm1182_vm9, %v3272_v4, 0.0  ;;  %v4990_v54 = vpack.c.bf16 %v3363_v48, %v3362_v46  ;;  %v3574_v48 = vld [vmem:[%s5703_s30] sm:$0xff] }
 0xbd1   : > { %v3249_v8 = vpop.xlane.xlu1 %3248  ;;  %3285 = vadd.xlane.f32.xlu1 %v3284_v14  ;;  %v3246_v33 = vpop.xlane.xlu0 %3245 }
 0xbd2   : > { %v3260_v23 = vmul.f32 0.03125, %v3249_v8  ;;  %v3259_v21 = vmul.f32 0.03125, %v3246_v33  ;;  %v3274_v50 = vmul.f32 %v6718_v19, %v6718_v19  ;;  %v3273_v31 = vmul.f32 %v6720_v2, %v6720_v2  ;;  %4991 = vmatprep.subr.bf16.mxu0 %v4990_v54 }
 0xbd3   : > { %4993 = vmatpush3.bf16.msra.mxu0 %v4990_v54 }
 0xbd4   : > { %v6727_v44 = vsub.f32 %v3225_v15, %v3260_v23  ;;  %v6729_v52 = vsub.f32 %v3224_v61, %v3259_v21  ;;  %v3290_v42 = vsel %vm1182_vm9, %v3274_v50, 0.0  ;;  %v3287_v38 = vsel %vm1182_vm9, %v3273_v31, 0.0  ;;  %4995 = vmatprep.subr.bf16.mxu0 %v4994_v0 }
 0xbd5   : > { %3291 = vadd.xlane.f32.xlu1 %v3290_v42  ;;  %3288 = vadd.xlane.f32.xlu0 %v3287_v38  ;;  %v3252_v28 = vpop.xlane.xlu0 %3251 }
 0xbd6   : > { %v3261_v51 = vmul.f32 0.03125, %v3252_v28  ;;  %v3276_v29 = vmul.f32 %v6727_v44, %v6727_v44  ;;  %v3275_v58 = vmul.f32 %v6729_v52, %v6729_v52 }
 0xbd7   : > { %4997 = vmatpush3.bf16.msra.mxu0 %v4994_v0  ;;  %v5002_v0 = vpack.c.bf16 %v3577_v53, %v3576_v9 }
 0xbd8   : > { %v6737_v5 = vsub.f32 %v3226_v20, %v3261_v51  ;;  %v3296_v59 = vsel %vm1182_vm9, %v3276_v29, 0.0  ;;  %v3293_v30 = vsel %vm1182_vm9, %v3275_v58, 0.0 }
 0xbd9   : > { %3297 = vadd.xlane.f32.xlu1 %v3296_v59  ;;  %3294 = vadd.xlane.f32.xlu0 %v3293_v30 }
 0xbda   : > { %v3277_v63 = vmul.f32 %v6737_v5, %v6737_v5 }
 0xbdc   : > { %v3299_v37 = vsel %vm1182_vm9, %v3277_v63, 0.0 }
 0xbdd   : > { %3300 = vadd.xlane.f32.xlu0 %v3299_v37 }
 0xc59   : > { %v3283_v34 = vpop.xlane.xlu0 %3282 }
 0xc5a   : > { %v3303_v57 = vmul.f32 0.03125, %v3283_v34  ;;  %v3280_v13 = vpop.xlane.xlu1 %3279  ;;  %v3578_v34 = vld [vmem:[%s5703_s30 + $0x20] sm:$0xff] }
 0xc5b   : > { %v3302_v45 = vmul.f32 0.03125, %v3280_v13 }
 0xc5c   : > { %v3311_v35 = vadd.f32 1e-05, %v3303_v57  ;;  %v3579_v57 = vld [vmem:[%s5703_s30 + $0x28] sm:$0xff] }
 0xc5d   : > { %v3310_v43 = vadd.f32 1e-05, %v3302_v45  ;;  %v5006_v13 = vpack.c.bf16 %v3579_v57, %v3578_v34  ;;  %v3580_v45 = vld [vmem:[%s5703_s30 + $0x30] sm:$0xff] }
 0xc5e   : > { %5408 = vrsqrt.f32 %v3311_v35  ;;  %v3286_v22 = vpop.xlane.xlu1 %3285  ;;  %v3581_v35 = vld [vmem:[%s5703_s30 + $0x38] sm:$0xff] }
 0xc5f   : > { %5410 = vrsqrt.f32 %v3310_v43  ;;  %v3304_v61 = vmul.f32 0.03125, %v3286_v22  ;;  %v5010_v43 = vpack.c.bf16 %v3581_v35, %v3580_v45  ;;  %v3582_v22 = vld [vmem:[%s5703_s30 + $0x40] sm:$0xff] }
 0xc61   : > { %v3312_v12 = vadd.f32 1e-05, %v3304_v61  ;;  %v3583_v61 = vld [vmem:[%s5703_s30 + $0x48] sm:$0xff] }
 0xc62   : > { %v3292_v40 = vpop.xlane.xlu1 %3291  ;;  %v3289_v55 = vpop.xlane.xlu0 %3288 }
 0xc63   : > { %5412 = vrsqrt.f32 %v3312_v12  ;;  %v3306_v24 = vmul.f32 0.03125, %v3292_v40  ;;  %v3305_v15 = vmul.f32 0.03125, %v3289_v55  ;;  %v5014_v12 = vpack.c.bf16 %v3583_v61, %v3582_v22  ;;  %v3584_v40 = vld [vmem:[%s5703_s30 + $0x50] sm:$0xff]  ;;  %v3585_v55 = vld [vmem:[%s5703_s30 + $0x58] sm:$0xff] }
 0xc65   : > { %v3314_v3 = vadd.f32 1e-05, %v3306_v24  ;;  %v3313_v20 = vadd.f32 1e-05, %v3305_v15  ;;  %v5018_v24 = vpack.c.bf16 %v3585_v55, %v3584_v40  ;;  %v3586_v15 = vld [vmem:[%s5703_s30 + $0x60] sm:$0xff] }
 0xc66   : > { %v3298_v6 = vpop.xlane.xlu1 %3297  ;;  %v3295_v26 = vpop.xlane.xlu0 %3294 }
 0xc67   : > { %5414 = vrsqrt.f32 %v3314_v3  ;;  %v3308_v17 = vmul.f32 0.03125, %v3298_v6  ;;  %v3307_v27 = vmul.f32 0.03125, %v3295_v26  ;;  %v3587_v3 = vld [vmem:[%s5703_s30 + $0x68] sm:$0xff]  ;;  %v3588_v6 = vld [vmem:[%s5703_s30 + $0x70] sm:$0xff]  ;;  %v3589_v26 = vld [vmem:[%s5703_s30 + $0x78] sm:$0xff] }
 0xc68   : > { %v5409_v32 = vpop.eup %5408  ;;  %5416 = vrsqrt.f32 %v3313_v20  ;;  %v5022_v20 = vpack.c.bf16 %v3587_v3, %v3586_v15 }
 0xc69   : > { %v5411_v60 = vpop.eup %5410  ;;  %v3327_v16 = vmul.f32 %v5409_v32, %v6704_v49  ;;  %v3316_v25 = vadd.f32 1e-05, %v3308_v17  ;;  %v3315_v62 = vadd.f32 1e-05, %v3307_v27  ;;  %v5026_v17 = vpack.c.bf16 %v3589_v26, %v3588_v6  ;;  %v4238_v27 = vld [vmem:[%s7080_s25] ss:$0 sm:$0xff] }
 0xc6a   : > { %v3301_v11 = vpop.xlane.xlu0 %3300  ;;  %v3326_v1 = vmul.f32 %v5411_v60, %v6706_v7 }
 0xc6b   : > { %v3341_v47 = vmul.f32 %v4236_v18, %v3327_v16  ;;  %5418 = vrsqrt.f32 %v3316_v25  ;;  %v3309_v39 = vmul.f32 0.03125, %v3301_v11 }
 0xc6c   : > { %5420 = vrsqrt.f32 %v3315_v62  ;;  %v3340_v41 = vmul.f32 %v4236_v18, %v3326_v1 }
 0xc6d   : > { %v5413_v36 = vpop.eup %5412  ;;  %v3317_v4 = vadd.f32 1e-05, %v3309_v39  ;;  %v6763_v8 = vadd.f32 %v4237_v10, %v3341_v47 }
 0xc6e   : > { %v6760_v14 = vadd.f32 %v4237_v10, %v3340_v41  ;;  %v3328_v49 = vmul.f32 %v5413_v36, %v6713_v56 }
 0xc6f   : > { %5422 = vrsqrt.f32 %v3317_v4 }
 0xc70   : > { %4750 = vmatprep.mubr.msk.f32.mxu0 %vm1182_vm9, %v6760_v14  ;;  %v3342_v7 = vmul.f32 %v4236_v18, %v3328_v49 }
 0xc71   : > { %v5415_v33 = vpop.eup %5414  ;;  %4751 = vmatmul.mubr.msk.f32.vlgmr.msra.gmra.mrb[48].mxu0 %vm1182_vm9, %v6763_v8 }
 0xc72   : > { %v5417_v23 = vpop.eup %5416  ;;  %v6769_v21 = vadd.f32 %v4237_v10, %v3342_v7  ;;  %v3330_v50 = vmul.f32 %v5415_v33, %v6718_v19 }
 0xc73   : > { %v3329_v31 = vmul.f32 %v5417_v23, %v6720_v2 }
 0xc74   : > { %4753 = vmatprep.mubr.msk.f32.mxu0 %vm1182_vm9, %v6769_v21  ;;  %v3344_v56 = vmul.f32 %v4236_v18, %v3330_v50 }
 0xc75   : > { %v5419_v42 = vpop.eup %5418  ;;  %v3343_v38 = vmul.f32 %v4236_v18, %v3329_v31 }
 0xc76   : > { %v5421_v28 = vpop.eup %5420  ;;  %v6775_v51 = vadd.f32 %v4237_v10, %v3344_v56  ;;  %v3332_v29 = vmul.f32 %v5419_v42, %v6727_v44 }
 0xc77   : > { %v6778_v58 = vadd.f32 %v4237_v10, %v3343_v38  ;;  %v3331_v59 = vmul.f32 %v5421_v28, %v6729_v52 }
 0xc78   : > { %v3346_v19 = vmul.f32 %v4236_v18, %v3332_v29 }
 0xc79   : > { %v5423_v30 = vpop.eup %5422  ;;  %4754 = vmatmul.mubr.msk.f32.gmra.mrb[50].mxu0 %vm1182_vm9, %v6778_v58  ;;  %v3345_v2 = vmul.f32 %v4236_v18, %v3331_v59 }
 0xc7a   : > { %4756 = vmatprep.mubr.msk.f32.mxu0 %vm1182_vm9, %v6775_v51  ;;  %v6785_v63 = vadd.f32 %v4237_v10, %v3346_v19  ;;  %v3333_v44 = vmul.f32 %v5423_v30, %v6737_v5  ;;  %v3575_v5 = vld [vmem:[%s5703_s30 + $0x8] sm:$0xff] }
 0xc7b   : > { %v6788_v37 = vadd.f32 %v4237_v10, %v3345_v2  ;;  %v4998_v54 = vpack.c.bf16 %v3575_v5, %v3574_v48 }
 0xc7c   : > { %v3347_v46 = vmul.f32 %v4236_v18, %v3333_v44 }
 0xc7d   : > { %4757 = vmatmul.mubr.msk.f32.gmra.mrb[52].mxu0 %vm1182_vm9, %v6788_v37  ;;  %4999 = vmatprep.subr.bf16.mxu1 %v4998_v54 }
 0xc7e   : > { %4759 = vmatprep.mubr.msk.f32.mxu0 %vm1182_vm9, %v6785_v63  ;;  %v6794_v52 = vadd.f32 %v4237_v10, %v3347_v46  ;;  %5001 = vmatpush3.bf16.msra.mxu1 %v4998_v54 }
 0xc7f   : > { %5003 = vmatprep.subr.bf16.mxu1 %v5002_v0 }
 0xc81   : > { %4760 = vmatmul.mubr.msk.f32.gmra.mrb[54].mxu0 %vm1182_vm9, %v6794_v52 }
 0xc82   : > { %5005 = vmatpush3.bf16.msra.mxu1 %v5002_v0 }
 0xc83   : > { %5007 = vmatprep.subr.bf16.mxu1 %v5006_v13 }
 0xc86   : > { %5009 = vmatpush3.bf16.msra.mxu1 %v5006_v13 }
 0xc87   : > { %5011 = vmatprep.subr.bf16.mxu1 %v5010_v43 }
 0xc8a   : > { %5013 = vmatpush3.bf16.msra.mxu1 %v5010_v43 }
 0xc8b   : > { %5015 = vmatprep.subr.bf16.mxu1 %v5014_v12 }
 0xc8e   : > { %5017 = vmatpush3.bf16.msra.mxu1 %v5014_v12 }
 0xc8f   : > { %5019 = vmatprep.subr.bf16.mxu1 %v5018_v24 }
 0xc92   : > { %5021 = vmatpush3.bf16.msra.mxu1 %v5018_v24 }
 0xc93   : > { %5023 = vmatprep.subr.bf16.mxu1 %v5022_v20 }
 0xc96   : > { %5025 = vmatpush3.bf16.msra.mxu1 %v5022_v20 }
 0xc97   : > { %5027 = vmatprep.subr.bf16.mxu1 %v5026_v17 }
 0xc9a   : > { %5029 = vmatpush3.bf16.msra.mxu1 %v5026_v17 }
 0xd44   : > { %v4752_v32 = vpop.f32.mrb[48].mxu0 }
 0xd45   : > { %v6819_v18 = vadd.f32 %v4752_v32, %v4238_v27  ;;  %v3463_v60 = vpop.f32.mrb[49].mxu0 }
 0xd46   : > { %v6821_v16 = vadd.f32 %v4238_v27, %v3463_v60 }
 0xd47   : > { %v3503_v25 = vmul.f32 %v6819_v18, %v6819_v18 }
 0xd48   : > { %v3502_v62 = vmul.f32 %v6821_v16, %v6821_v16 }
 0xd49   : > { %v3511_v11 = vmul.f32 %v3503_v25, %v6819_v18 }
 0xd4a   : > { %v3510_v1 = vmul.f32 %v3502_v62, %v6821_v16 }
 0xd4b   : > { %v3519_v10 = vmul.f32 0.044715, %v3511_v11 }
 0xd4c   : > { %v3518_v47 = vmul.f32 0.044715, %v3510_v1  ;;  %v4755_v39 = vpop.f32.mrb[50].mxu0 }
 0xd4d   : > { %v3527_v41 = vadd.f32 %v3519_v10, %v6819_v18  ;;  %v6830_v36 = vadd.f32 %v4755_v39, %v4238_v27  ;;  %v3473_v4 = vpop.f32.mrb[51].mxu0 }
 0xd4e   : > { %v3526_v49 = vadd.f32 %v3518_v47, %v6821_v16  ;;  %v6833_v7 = vadd.f32 %v4238_v27, %v3473_v4 }
 0xd4f   : > { %v3535_v33 = vmul.f32 0.7978846, %v3527_v41  ;;  %v3505_v23 = vmul.f32 %v6830_v36, %v6830_v36 }
 0xd50   : > { %v3534_v50 = vmul.f32 0.7978846, %v3526_v49  ;;  %v3504_v31 = vmul.f32 %v6833_v7, %v6833_v7  ;;  %v4758_v56 = vpop.f32.mrb[52].mxu0 }
 0xd51   : > { %5424 = vtanh.f32 %v3535_v33  ;;  %v3513_v42 = vmul.f32 %v3505_v23, %v6830_v36  ;;  %v6840_v38 = vadd.f32 %v4758_v56, %v4238_v27  ;;  %v3483_v28 = vpop.f32.mrb[53].mxu0 }
 0xd52   : > { %v3512_v29 = vmul.f32 %v3504_v31, %v6833_v7  ;;  %v6843_v59 = vadd.f32 %v4238_v27, %v3483_v28  ;;  %5426 = vtanh.f32 %v3534_v50 }
 0xd53   : > { %v3521_v19 = vmul.f32 0.044715, %v3513_v42  ;;  %v3507_v30 = vmul.f32 %v6840_v38, %v6840_v38 }
 0xd54   : > { %v3520_v2 = vmul.f32 0.044715, %v3512_v29  ;;  %v3506_v44 = vmul.f32 %v6843_v59, %v6843_v59  ;;  %v4761_v46 = vpop.f32.mrb[54].mxu0 }
 0xd55   : > { %v3529_v48 = vadd.f32 %v3521_v19, %v6830_v36  ;;  %v3515_v5 = vmul.f32 %v3507_v30, %v6840_v38  ;;  %v6851_v54 = vadd.f32 %v4761_v46, %v4238_v27  ;;  %v3493_v9 = vpop.f32.mrb[55].mxu0 }
 0xd56   : > { %v3528_v53 = vadd.f32 %v3520_v2, %v6833_v7  ;;  %v3514_v0 = vmul.f32 %v3506_v44, %v6843_v59  ;;  %v3494_v34 = vadd.f32 %v4238_v27, %v3493_v9 }
 0xd57   : > { %v3537_v57 = vmul.f32 0.7978846, %v3529_v48  ;;  %v3523_v13 = vmul.f32 0.044715, %v3515_v5  ;;  %v3509_v45 = vmul.f32 %v6851_v54, %v6851_v54 }
 0xd58   : > { %v3536_v35 = vmul.f32 0.7978846, %v3528_v53  ;;  %v3522_v43 = vmul.f32 0.044715, %v3514_v0  ;;  %v3508_v22 = vmul.f32 %v3494_v34, %v3494_v34  ;;  %v4247_v53 = vld [vmem:[%s792_s26] ss:$0 sm:$0xff] }
 0xd59   : > { %v3531_v61 = vadd.f32 %v3523_v13, %v6840_v38  ;;  %v3517_v12 = vmul.f32 %v3509_v45, %v6851_v54  ;;  %5428 = vtanh.f32 %v3537_v57 }
 0xd5a   : > { %v3530_v40 = vadd.f32 %v3522_v43, %v6843_v59  ;;  %v3516_v55 = vmul.f32 %v3508_v22, %v3494_v34  ;;  %5430 = vtanh.f32 %v3536_v35 }
 0xd5b   : > { %v5425_v24 = vpop.eup %5424  ;;  %v3539_v15 = vmul.f32 0.7978846, %v3531_v61  ;;  %v3525_v3 = vmul.f32 0.044715, %v3517_v12 }
 0xd5c   : > { %v5427_v20 = vpop.eup %5426  ;;  %v3551_v6 = vadd.f32 1.0, %v5425_v24  ;;  %v3538_v26 = vmul.f32 0.7978846, %v3530_v40  ;;  %v3524_v17 = vmul.f32 0.044715, %v3516_v55 }
 0xd5d   : > { %v3533_v27 = vadd.f32 %v3525_v3, %v6851_v54  ;;  %v3550_v32 = vadd.f32 1.0, %v5427_v20  ;;  %5432 = vtanh.f32 %v3539_v15 }
 0xd5e   : > { %v3559_v60 = vmul.f32 0.5, %v3551_v6  ;;  %v3532_v25 = vadd.f32 %v3524_v17, %v3494_v34  ;;  %5434 = vtanh.f32 %v3538_v26 }
 0xd5f   : > { %v3541_v62 = vmul.f32 0.7978846, %v3533_v27  ;;  %v3558_v11 = vmul.f32 0.5, %v3550_v32 }
 0xd60   : > { %v3540_v1 = vmul.f32 0.7978846, %v3532_v25  ;;  %v3567_v47 = vmul.f32 %v3559_v60, %v6819_v18 }
 0xd61   : > { %v3566_v10 = vmul.f32 %v3558_v11, %v6821_v16  ;;  %5436 = vtanh.f32 %v3541_v62 }
 0xd62   : > { %5438 = vtanh.f32 %v3540_v1 }
 0xd63   : > { %v5429_v39 = vpop.eup %5428  ;;  %4794 = vmatprep.mubr.f32.mxu1 %v3566_v10 }
 0xd64   : > { %v5431_v41 = vpop.eup %5430  ;;  %4795 = vmatmul.mubr.f32.vlgmr.msra.gmra.mrb[32].mxu1 %v3567_v47  ;;  %v3553_v4 = vadd.f32 1.0, %v5429_v39 }
 0xd65   : > { %v3552_v49 = vadd.f32 1.0, %v5431_v41 }
 0xd66   : > { %v3561_v33 = vmul.f32 0.5, %v3553_v4 }
 0xd67   : > { %v5433_v23 = vpop.eup %5432  ;;  %v3560_v50 = vmul.f32 0.5, %v3552_v49 }
 0xd68   : > { %v5435_v31 = vpop.eup %5434  ;;  %v3555_v56 = vadd.f32 1.0, %v5433_v23  ;;  %v3569_v16 = vmul.f32 %v3561_v33, %v6830_v36 }
 0xd69   : > { %v3568_v42 = vmul.f32 %v3560_v50, %v6833_v7  ;;  %v3554_v28 = vadd.f32 1.0, %v5435_v31 }
 0xd6a   : > { %v3563_v29 = vmul.f32 0.5, %v3555_v56 }
 0xd6b   : > { %v5437_v19 = vpop.eup %5436  ;;  %4797 = vmatprep.mubr.f32.mxu1 %v3568_v42  ;;  %v3562_v18 = vmul.f32 0.5, %v3554_v28 }
 0xd6c   : > { %v5439_v30 = vpop.eup %5438  ;;  %4798 = vmatmul.mubr.f32.gmra.mrb[34].mxu1 %v3569_v16  ;;  %v3557_v2 = vadd.f32 1.0, %v5437_v19  ;;  %v3571_v48 = vmul.f32 %v3563_v29, %v6840_v38 }
 0xd6d   : > { %v3570_v44 = vmul.f32 %v3562_v18, %v6843_v59  ;;  %v3556_v46 = vadd.f32 1.0, %v5439_v30 }
 0xd6e   : > { %v3565_v5 = vmul.f32 0.5, %v3557_v2 }
 0xd6f   : > { %4800 = vmatprep.mubr.f32.mxu1 %v3570_v44  ;;  %v3564_v9 = vmul.f32 0.5, %v3556_v46 }
 0xd70   : > { %4801 = vmatmul.mubr.f32.gmra.mrb[36].mxu1 %v3571_v48  ;;  %v3573_v36 = vmul.f32 %v3565_v5, %v6851_v54 }
 0xd71   : > { %v3572_v7 = vmul.f32 %v3564_v9, %v3494_v34 }
 0xd73   : > { %4803 = vmatprep.mubr.f32.mxu1 %v3572_v7 }
 0xd74   : > { %4804 = vmatmul.mubr.f32.gmra.mrb[38].mxu1 %v3573_v36 }
 0xe37   : > { %v4796_v0 = vpop.f32.mrb[32].mxu1 }
 0xe38   : > { %v3669_v57 = vadd.f32 %v4796_v0, %v4247_v53  ;;  %v3663_v59 = vpop.f32.mrb[33].mxu1 }
 0xe39   : > { %v3664_v13 = vadd.f32 %v4247_v53, %v3663_v59 }
 0xe3a   : > { %v3703_v38 = vadd.f32 %v3669_v57, %v6763_v8 }
 0xe3b   : > { %v3702_v45 = vadd.f32 %v3664_v13, %v6760_v14 }
 0xe3c   : > { %v3715_v35 = vsel %vm1182_vm9, %v3703_v38, 0.0 }
 0xe3d   : > { %3716 = vadd.xlane.f32.xlu0 %v3715_v35  ;;  %v3712_v54 = vsel %vm1182_vm9, %v3702_v45, 0.0 }
 0xe3e   : > { %3713 = vadd.xlane.f32.xlu1 %v3712_v54 }
 0xe3f   : > { %v4799_v34 = vpop.f32.mrb[34].mxu1 }
 0xe40   : > { %v3679_v43 = vadd.f32 %v4799_v34, %v4247_v53  ;;  %v3673_v22 = vpop.f32.mrb[35].mxu1 }
 0xe41   : > { %v3674_v61 = vadd.f32 %v4247_v53, %v3673_v22 }
 0xe42   : > { %v3705_v12 = vadd.f32 %v3679_v43, %v6778_v58 }
 0xe43   : > { %v3704_v40 = vadd.f32 %v3674_v61, %v6769_v21  ;;  %v4802_v55 = vpop.f32.mrb[36].mxu1 }
 0xe44   : > { %v3689_v24 = vadd.f32 %v4802_v55, %v4247_v53  ;;  %v3683_v15 = vpop.f32.mrb[37].mxu1  ;;  %v3721_v8 = vsel %vm1182_vm9, %v3705_v12, 0.0 }
 0xe45   : > { %v3684_v14 = vadd.f32 %v4247_v53, %v3683_v15  ;;  %3722 = vadd.xlane.f32.xlu0 %v3721_v8  ;;  %v3718_v3 = vsel %vm1182_vm9, %v3704_v40, 0.0 }
 0xe46   : > { %v3707_v20 = vadd.f32 %v3689_v24, %v6788_v37  ;;  %3719 = vadd.xlane.f32.xlu1 %v3718_v3 }
 0xe47   : > { %v3706_v6 = vadd.f32 %v3684_v14, %v6775_v51  ;;  %v4805_v26 = vpop.f32.mrb[38].mxu1 }
 0xe48   : > { %v3699_v17 = vadd.f32 %v4805_v26, %v4247_v53  ;;  %v3693_v27 = vpop.f32.mrb[39].mxu1  ;;  %v3727_v58 = vsel %vm1182_vm9, %v3707_v20, 0.0 }
 0xe49   : > { %v3694_v21 = vadd.f32 %v4247_v53, %v3693_v27  ;;  %3728 = vadd.xlane.f32.xlu0 %v3727_v58  ;;  %v3724_v32 = vsel %vm1182_vm9, %v3706_v6, 0.0  ;;  %v4248_v58 = vld [vmem:[%s795_s4] ss:$0 sm:$0xff] }
 0xe4a   : > { %v3709_v60 = vadd.f32 %v3699_v17, %v6794_v52  ;;  %3725 = vadd.xlane.f32.xlu1 %v3724_v32 }
 0xe4b   : > { %v3708_v25 = vadd.f32 %v3694_v21, %v6785_v63 }
 0xe4c   : > { %v3733_v62 = vsel %vm1182_vm9, %v3709_v60, 0.0 }
 0xe4d   : > { %3734 = vadd.xlane.f32.xlu0 %v3733_v62  ;;  %v3730_v37 = vsel %vm1182_vm9, %v3708_v25, 0.0 }
 0xe4e   : > { %3731 = vadd.xlane.f32.xlu1 %v3730_v37  ;;  %v4249_v37 = vld [vmem:[%s798_s7] ss:$0 sm:$0xff]  ;;  %s7081_s7 = sld [smem:[#allocation2_spill]] }
 0xe54   : > { %p4250_p8 = scmp.eq.s32.totalorder %s7081_s7, 3 }
 0xeca   : > { %v3717_v51 = vpop.xlane.xlu0 %3716 }
 0xecb   : > { %v3737_v11 = vmul.f32 0.03125, %v3717_v51  ;;  %v3714_v1 = vpop.xlane.xlu1 %3713 }
 0xecc   : > { %v3736_v10 = vmul.f32 0.03125, %v3714_v1 }
 0xecd   : > { %v6889_v47 = vsub.f32 %v3703_v38, %v3737_v11 }
 0xece   : > { %v6891_v39 = vsub.f32 %v3702_v45, %v3736_v10 }
 0xecf   : > { %v3753_v52 = vmul.f32 %v6889_v47, %v6889_v47 }
 0xed0   : > { %v3752_v63 = vmul.f32 %v6891_v39, %v6891_v39 }
 0xed1   : > { %v3763_v41 = vsel %vm1182_vm9, %v3753_v52, 0.0 }
 0xed2   : > { %v3723_v4 = vpop.xlane.xlu0 %3722  ;;  %3764 = vadd.xlane.f32.xlu0 %v3763_v41  ;;  %v3760_v49 = vsel %vm1182_vm9, %v3752_v63, 0.0 }
 0xed3   : > { %v3739_v33 = vmul.f32 0.03125, %v3723_v4  ;;  %v3720_v23 = vpop.xlane.xlu1 %3719  ;;  %3761 = vadd.xlane.f32.xlu1 %v3760_v49 }
 0xed4   : > { %v3738_v50 = vmul.f32 0.03125, %v3720_v23 }
 0xed5   : > { %v6899_v31 = vsub.f32 %v3705_v12, %v3739_v33 }
 0xed6   : > { %v6901_v56 = vsub.f32 %v3704_v40, %v3738_v50  ;;  %v3729_v42 = vpop.xlane.xlu0 %3728 }
 0xed7   : > { %v3741_v28 = vmul.f32 0.03125, %v3729_v42  ;;  %v3726_v16 = vpop.xlane.xlu1 %3725  ;;  %v3755_v29 = vmul.f32 %v6899_v31, %v6899_v31 }
 0xed8   : > { %v3740_v19 = vmul.f32 0.03125, %v3726_v16  ;;  %v3754_v18 = vmul.f32 %v6901_v56, %v6901_v56 }
 0xed9   : > { %v6907_v30 = vsub.f32 %v3707_v20, %v3741_v28  ;;  %v3769_v2 = vsel %vm1182_vm9, %v3755_v29, 0.0 }
 0xeda   : > { %v6910_v44 = vsub.f32 %v3706_v6, %v3740_v19  ;;  %3770 = vadd.xlane.f32.xlu0 %v3769_v2  ;;  %v3735_v46 = vpop.xlane.xlu0 %3734  ;;  %v3766_v48 = vsel %vm1182_vm9, %v3754_v18, 0.0 }
 0xedb   : > { %v3743_v5 = vmul.f32 0.03125, %v3735_v46  ;;  %3767 = vadd.xlane.f32.xlu1 %v3766_v48  ;;  %v3732_v9 = vpop.xlane.xlu1 %3731  ;;  %v3757_v7 = vmul.f32 %v6907_v30, %v6907_v30 }
 0xedc   : > { %v3742_v36 = vmul.f32 0.03125, %v3732_v9  ;;  %v3756_v53 = vmul.f32 %v6910_v44, %v6910_v44 }
 0xedd   : > { %v6917_v0 = vsub.f32 %v3709_v60, %v3743_v5  ;;  %v3775_v57 = vsel %vm1182_vm9, %v3757_v7, 0.0 }
 0xede   : > { %v6920_v59 = vsub.f32 %v3708_v25, %v3742_v36  ;;  %3776 = vadd.xlane.f32.xlu0 %v3775_v57  ;;  %v3772_v13 = vsel %vm1182_vm9, %v3756_v53, 0.0 }
 0xedf   : > { %3773 = vadd.xlane.f32.xlu1 %v3772_v13  ;;  %v3759_v38 = vmul.f32 %v6917_v0, %v6917_v0 }
 0xee0   : > { %v3758_v45 = vmul.f32 %v6920_v59, %v6920_v59 }
 0xee1   : > { %v3781_v35 = vsel %vm1182_vm9, %v3759_v38, 0.0 }
 0xee2   : > { %3782 = vadd.xlane.f32.xlu0 %v3781_v35  ;;  %v3778_v54 = vsel %vm1182_vm9, %v3758_v45, 0.0 }
 0xee3   : > { %3779 = vadd.xlane.f32.xlu1 %v3778_v54 }
 0xf5f   : > { %v3765_v34 = vpop.xlane.xlu0 %3764 }
 0xf60   : > { %v3785_v43 = vmul.f32 0.03125, %v3765_v34  ;;  %v3762_v22 = vpop.xlane.xlu1 %3761 }
 0xf61   : > { %v3784_v61 = vmul.f32 0.03125, %v3762_v22 }
 0xf62   : > { %v3793_v12 = vadd.f32 1e-05, %v3785_v43 }
 0xf63   : > { %v3792_v40 = vadd.f32 1e-05, %v3784_v61 }
 0xf64   : > { %5440 = vrsqrt.f32 %v3793_v12 }
 0xf65   : > { %5442 = vrsqrt.f32 %v3792_v40 }
 0xf67   : > { %v3771_v55 = vpop.xlane.xlu0 %3770 }
 0xf68   : > { %v3787_v24 = vmul.f32 0.03125, %v3771_v55  ;;  %v3768_v15 = vpop.xlane.xlu1 %3767 }
 0xf69   : > { %v3786_v8 = vmul.f32 0.03125, %v3768_v15 }
 0xf6a   : > { %v3795_v14 = vadd.f32 1e-05, %v3787_v24 }
 0xf6b   : > { %v3794_v3 = vadd.f32 1e-05, %v3786_v8  ;;  %v3777_v20 = vpop.xlane.xlu0 %3776 }
 0xf6c   : > { %5444 = vrsqrt.f32 %v3795_v14  ;;  %v3789_v6 = vmul.f32 0.03125, %v3777_v20  ;;  %v3774_v26 = vpop.xlane.xlu1 %3773 }
 0xf6d   : > { %5446 = vrsqrt.f32 %v3794_v3  ;;  %v3788_v17 = vmul.f32 0.03125, %v3774_v26 }
 0xf6e   : > { %v5441_v27 = vpop.eup %5440  ;;  %v3797_v21 = vadd.f32 1e-05, %v3789_v6 }
 0xf6f   : > { %v5443_v32 = vpop.eup %5442  ;;  %v3809_v60 = vmul.f32 %v5441_v27, %v6889_v47  ;;  %v3796_v25 = vadd.f32 1e-05, %v3788_v17  ;;  %v3783_v62 = vpop.xlane.xlu0 %3782 }
 0xf70   : > { %v3808_v51 = vmul.f32 %v5443_v32, %v6891_v39  ;;  %5448 = vrsqrt.f32 %v3797_v21  ;;  %v3791_v11 = vmul.f32 0.03125, %v3783_v62  ;;  %v3780_v1 = vpop.xlane.xlu1 %3779 }
 0xf71   : > { %v3823_v10 = vmul.f32 %v4248_v58, %v3809_v60  ;;  %5450 = vrsqrt.f32 %v3796_v25  ;;  %v3790_v52 = vmul.f32 0.03125, %v3780_v1 }
 0xf72   : > { %v3822_v63 = vmul.f32 %v4248_v58, %v3808_v51  ;;  %v3799_v41 = vadd.f32 1e-05, %v3791_v11 }
 0xf73   : > { %v3837_v4 = vadd.f32 %v4249_v37, %v3823_v10  ;;  %v3798_v49 = vadd.f32 1e-05, %v3790_v52 }
 0xf74   : > { %v3836_v47 = vadd.f32 %v4249_v37, %v3822_v63  ;;  %5452 = vrsqrt.f32 %v3799_v41 }
 0xf75   : > { %5454 = vrsqrt.f32 %v3798_v49  ;;  %3849 = vst.msk [vmem:[%s5716_s12 + $0x8] sm:$0xff] (!%p4250_p8), %vm1182_vm9, %v3837_v4 }
 0xf76   : > { %v5445_v33 = vpop.eup %5444  ;;  %3848 = vst.msk [vmem:[%s5716_s12] sm:$0xff] (!%p4250_p8), %vm1182_vm9, %v3836_v47 }
 0xf77   : > { %v5447_v23 = vpop.eup %5446  ;;  %v3811_v50 = vmul.f32 %v5445_v33, %v6899_v31 }
 0xf78   : > { %v3810_v42 = vmul.f32 %v5447_v23, %v6901_v56 }
 0xf79   : > { %v3825_v39 = vmul.f32 %v4248_v58, %v3811_v50 }
 0xf7a   : > { %v5449_v28 = vpop.eup %5448  ;;  %v3824_v16 = vmul.f32 %v4248_v58, %v3810_v42 }
 0xf7b   : > { %v5451_v29 = vpop.eup %5450  ;;  %v3839_v19 = vadd.f32 %v4249_v37, %v3825_v39  ;;  %v3813_v18 = vmul.f32 %v5449_v28, %v6907_v30 }
 0xf7c   : > { %v3838_v2 = vadd.f32 %v4249_v37, %v3824_v16  ;;  %v3812_v46 = vmul.f32 %v5451_v29, %v6910_v44 }
 0xf7d   : > { %v3827_v48 = vmul.f32 %v4248_v58, %v3813_v18  ;;  %3851 = vst.msk [vmem:[%s5716_s12 + $0x18] sm:$0xff] (!%p4250_p8), %vm1182_vm9, %v3839_v19 }
 0xf7e   : > { %v5453_v5 = vpop.eup %5452  ;;  %v3826_v9 = vmul.f32 %v4248_v58, %v3812_v46  ;;  %3847 = sbr.rel (%p4250_p8) target bundleno = 3975 (0xf87), region = 100  ;;  %3850 = vst.msk [vmem:[%s5716_s12 + $0x10] sm:$0xff] (!%p4250_p8), %vm1182_vm9, %v3838_v2 }
 0xf7f   : > { %v5455_v7 = vpop.eup %5454  ;;  %v3841_v36 = vadd.f32 %v4249_v37, %v3827_v48  ;;  %v3815_v53 = vmul.f32 %v5453_v5, %v6917_v0 }
 0xf80   : > { %v3840_v31 = vadd.f32 %v4249_v37, %v3826_v9  ;;  %v3814_v56 = vmul.f32 %v5455_v7, %v6920_v59 }
 0xf81   : > { %v3829_v57 = vmul.f32 %v4248_v58, %v3815_v53  ;;  %3853 = vst.msk [vmem:[%s5716_s12 + $0x28] sm:$0xff] (!%p4250_p8), %vm1182_vm9, %v3841_v36 }
 0xf82   : > { %v3828_v13 = vmul.f32 %v4248_v58, %v3814_v56  ;;  %3852 = vst.msk [vmem:[%s5716_s12 + $0x20] sm:$0xff] (!%p4250_p8), %vm1182_vm9, %v3840_v31 }
 0xf83   : > { %v3843_v38 = vadd.f32 %v4249_v37, %v3829_v57 }
 0xf84   : > { %v3842_v45 = vadd.f32 %v4249_v37, %v3828_v13 }
 0xf85   : > { %3855 = vst.msk [vmem:[%s5716_s12 + $0x38] sm:$0xff] %vm1182_vm9, %v3843_v38 }
 0xf86   : > { %3854 = vst.msk [vmem:[%s5716_s12 + $0x30] sm:$0xff] %vm1182_vm9, %v3842_v45 }
 0xf87 PF: > { %s7082_s21 = sld [smem:[#allocation2_spill]] }
 0xf8d   : > { %p4251_p9 = scmp.ne.s32.totalorder %s7082_s21, 3 }
 0xf8e   : > { %v3860_v30 = vld [vmem:[%s5662_s0] sm:$0xff] (!%p4251_p9)  ;;  %v3861_v44 = vld [vmem:[%s5662_s0 + $0x8] sm:$0xff] (!%p4251_p9)  ;;  %v3862_v0 = vld [vmem:[%s5662_s0 + $0x10] sm:$0xff] (!%p4251_p9) }
 0xf8f   : > { %3859 = sbr.rel (%p4251_p9) target bundleno = 3990 (0xf96), region = 104  ;;  %v3868_v59 = vadd.f32 (!%p4251_p9), %v3860_v30, %v3836_v47  ;;  %v3869_v35 = vadd.f32 (!%p4251_p9), %v3861_v44, %v3837_v4  ;;  %v3870_v54 = vadd.f32 (!%p4251_p9), %v3862_v0, %v3838_v2  ;;  %v3863_v34 = vld [vmem:[%s5662_s0 + $0x18] sm:$0xff] (!%p4251_p9)  ;;  %v3864_v43 = vld [vmem:[%s5662_s0 + $0x20] sm:$0xff] (!%p4251_p9)  ;;  %v3865_v22 = vld [vmem:[%s5662_s0 + $0x28] sm:$0xff] (!%p4251_p9) }
 0xf90   : > { %v3871_v61 = vadd.f32 (!%p4251_p9), %v3863_v34, %v3839_v19  ;;  %v3872_v12 = vadd.f32 (!%p4251_p9), %v3864_v43, %v3840_v31  ;;  %v3873_v40 = vadd.f32 (!%p4251_p9), %v3865_v22, %v3841_v36  ;;  %v3866_v55 = vld [vmem:[%s5662_s0 + $0x30] sm:$0xff] (!%p4251_p9)  ;;  %v3867_v24 = vld [vmem:[%s5662_s0 + $0x38] sm:$0xff] (!%p4251_p9) }
 0xf91   : > { %3876 = vst.msk [vmem:[%s5716_s12] sm:$0xff] (!%p4251_p9), %vm1182_vm9, %v3868_v59  ;;  %3877 = vst.msk [vmem:[%s5716_s12 + $0x8] sm:$0xff] (!%p4251_p9), %vm1182_vm9, %v3869_v35  ;;  %v3874_v15 = vadd.f32 (!%p4251_p9), %v3866_v55, %v3842_v45  ;;  %v3875_v8 = vadd.f32 (!%p4251_p9), %v3867_v24, %v3843_v38 }
 0xf92   : > { %3878 = vst.msk [vmem:[%s5716_s12 + $0x10] sm:$0xff] (!%p4251_p9), %vm1182_vm9, %v3870_v54  ;;  %3879 = vst.msk [vmem:[%s5716_s12 + $0x18] sm:$0xff] (!%p4251_p9), %vm1182_vm9, %v3871_v61 }
 0xf93   : > { %3880 = vst.msk [vmem:[%s5716_s12 + $0x20] sm:$0xff] (!%p4251_p9), %vm1182_vm9, %v3872_v12  ;;  %3881 = vst.msk [vmem:[%s5716_s12 + $0x28] sm:$0xff] (!%p4251_p9), %vm1182_vm9, %v3873_v40 }
 0xf94   : > { %3882 = vst.msk [vmem:[%s5716_s12 + $0x30] sm:$0xff] (!%p4251_p9), %vm1182_vm9, %v3874_v15  ;;  %3883 = vst.msk [vmem:[%s5716_s12 + $0x38] sm:$0xff] (!%p4251_p9), %vm1182_vm9, %v3875_v8 }
 0xf96 PF: > { %s7083_s0 = sld [smem:[#allocation5_spill]]  ;;  %s7084_s27 = sld [smem:[#allocation3_spill]] }
 0xf97   : > { %s7085_s28 = sld [smem:[#allocation4_spill]]  ;;  %s7086_s29 = sld [smem:[#allocation6_spill]] }
 0xf98   : > { %s7087_s30 = sld [smem:[#allocation7_spill]] }
 0xf9c   : > { %s28_s0 = sadd.s32 1, %s7083_s0  }
 0xf9d   : > { %p25_p10 = scmp.ge.s32.totalorder %s28_s0, 10  }
 0xf9f   :  { %27 = sbr.rel (!%p25_p10) target bundleno = 12 (0xc), region = 173 }

// kernel: _lambda_.15
= control target key start
LH: loop header
LB: loop body
LE: loop exit
PB: predicated region body
PF: predicated region fallthrough
CT: control target
= control target key end

     0   :  { %vm96_vm0 = vcmask 64512   ;;  %vm210_vm1 = vcmask 15360   ;;  %vm316_vm3 = vcmask 261120   ;;  %s3019_s28 = smov 112   ;;  %s3020_s29 = smov 126   ;;  %vm1332_vm4 = vcmask 31744   ;;  %s3683_s3 = inlined_call_operand.vmem [shape: f32[8,24], index: 3, kind: input, shape index: {}]   ;;  %s3684_s0 = inlined_call_operand.vmem [shape: f32[32,8], index: 0, kind: input, shape index: {}]   ;;  %s3685_s4 = inlined_call_operand.vmem [shape: f32[1,24], index: 4, kind: input, shape index: {}]   ;;  %s3686_s2 = inlined_call_operand.vmem [shape: f32[32,32], index: 2, kind: input, shape index: {}]   ;;  %s3687_s7 = inlined_call_operand.vmem [shape: f32[8,8], index: 7, kind: input, shape index: {}]   ;;  %s3688_s8 = inlined_call_operand.vmem [shape: f32[1,8], index: 8, kind: input, shape index: {}, may-alias: {6,8,10}]   ;;  %s3689_s5 = inlined_call_operand.vmem [shape: f32[8,8], index: 5, kind: input, shape index: {}]   ;;  %s3690_s11 = inlined_call_operand.vmem [shape: f32[8,1], index: 11, kind: input, shape index: {}]   ;;  %s3691_s9 = inlined_call_operand.vmem [shape: f32[1,8], index: 9, kind: input, shape index: {}]   ;;  %s3692_s10 = inlined_call_operand.vmem [shape: f32[1,8], index: 10, kind: input, shape index: {}, may-alias: {6,8,10}]   ;;  %s3693_s12 = inlined_call_operand.<no memory space> [shape: f32[1,1], index: 12, kind: input, shape index: {}, may-alias: {12,22}]   ;;  %s3694_s13 = inlined_call_operand.vmem [shape: f32[8,32], index: 13, kind: input, shape index: {}]   ;;  %s3695_s1 = inlined_call_operand.vmem [shape: f32[32,1], index: 1, kind: input, shape index: {}]   ;;  %s3696_s6 = inlined_call_operand.vmem [shape: f32[1,8], index: 6, kind: input, shape index: {}, may-alias: {6,8,10}]   ;;  %s3697_s14 = inlined_call_operand.vmem [shape: f32[1,32], index: 14, kind: input, shape index: {}, may-alias: {14,16}]   ;;  %s3698_s17 = inlined_call_operand.vmem [shape: f32[32,16], index: 17, kind: input, shape index: {}]   ;;  %s3699_s15 = inlined_call_operand.vmem [shape: f32[1,32], index: 15, kind: input, shape index: {}]   ;;  %s3700_s16 = inlined_call_operand.vmem [shape: f32[1,32], index: 16, kind: input, shape index: {}, may-alias: {14,16}]   ;;  %s3701_s18 = inlined_call_operand.vmem [shape: f32[1,16], index: 18, kind: input, shape index: {}, may-alias: {18,20}]   ;;  %s3702_s21 = inlined_call_operand.vmem [shape: f32[16,1], index: 21, kind: input, shape index: {}]   ;;  %s3703_s22 = inlined_call_operand.<no memory space> [shape: f32[1,1], index: 22, kind: input, shape index: {}, may-alias: {12,22}]   ;;  %s3704_s19 = inlined_call_operand.vmem [shape: f32[1,16], index: 19, kind: input, shape index: {}]   ;;  %s3705_s20 = inlined_call_operand.vmem [shape: f32[1,16], index: 20, kind: input, shape index: {}, may-alias: {18,20}]   ;;  %s3706_s23 = inlined_call_operand.vmem [shape: f32[32,1], index: 23, kind: output, shape index: {}]  }
   0x1   :  { %3709 = sst [smem:[#allocation4_spill]] %s3683_s3  ;;  %vm3199_vm2 = vmpackc.low %vm210_vm1, %vm210_vm1  ;;  %s3024_s30 = smov 124   ;;  %vm1337_vm5 = vcmask 48128   ;;  %vm2112_vm14 = vcmask 130048  }
   0x2   :  { %3710 = sst [smem:[#allocation5_spill]] %s3684_s0  ;;  %s3717_s24 = sld [smem:[#allocation4_spill]] }
   0x3   :  { %3711 = sst [smem:[#allocation6_spill]] %s3685_s4  ;;  %s3718_s0 = sld [smem:[#allocation5_spill]] }
   0x4   :  { %3712 = sst [smem:[#allocation7_spill]] %s3686_s2  ;;  %s3719_s3 = sld [smem:[#allocation6_spill]] }
   0x5   :  { %3713 = sst [smem:[#allocation8_spill]] %s3687_s7  ;;  %s3018_s7 = smov 120  }
   0x6   :  { %3714 = sst [smem:[#allocation9_spill]] %s3688_s8  ;;  %s3722_s25 = sld [smem:[#allocation7_spill]] }
   0x7   :  { %3715 = sst [smem:[#allocation10_spill]] %s3689_s5  ;;  %s3021_s2 = smov 118  }
   0x8   :  { %3716 = sst [smem:[#allocation11_spill]] %s3690_s11  ;;  %v86_v0 = vld [vmem:[%s3717_s24] sm:$0xff]  ;;  %s3025_s24 = smov 108  }
   0x9   :  { %v3159_v1 = vld [vmem:[%s3718_s0] sm:$0xff]  ;;  %v3164_v2 = vld [vmem:[%s3718_s0 + $0x8] sm:$0xff]  ;;  %2529 = vmatprep.subr.mxu0 %v86_v0  ;;  %v3171_v3 = vld [vmem:[%s3718_s0 + $0x10] sm:$0xff]  ;;  %s3027_s8 = smov 122   ;;  %s3723_s5 = sld [smem:[#allocation8_spill]] }
   0xa   :  { %2531 = vmatprep.mubr.msk.f32.mxu0 %vm96_vm0, %v3159_v1  ;;  %2530 = vmatpush3.msra.mxu0 %v86_v0  ;;  %v3180_v4 = vld [vmem:[%s3718_s0 + $0x18] sm:$0xff]  ;;  %v2325_v5 = vld [vmem:[%s3719_s3] ss:$0 sm:$0xff]  ;;  %s3022_s3 = smov 110   ;;  %s3028_s27 = smov 106  }
   0xb   :  { %2532 = vmatmul.mubr.msk.f32.vlgmr.msra.gmra.mrb[0].mxu0 %vm96_vm0, %v3164_v2  ;;  %s3726_s26 = sld [smem:[#allocation11_spill]]  ;;  %s3031_s4 = smov 6  }
   0xc   :  { %2534 = vmatprep.mubr.msk.f32.mxu0 %vm96_vm0, %v3171_v3  ;;  %v3226_v29 = vld [vmem:[%s3722_s25 + $0x8] sm:$0xff]  ;;  %v3231_v31 = vld [vmem:[%s3722_s25] sm:$0xff]  ;;  %v3239_v36 = vld [vmem:[%s3722_s25 + $0x10] sm:$0xff] }
   0xd   :  { %v3244_v37 = vld [vmem:[%s3722_s25 + $0x18] sm:$0xff]  ;;  %s3026_s25 = smov 114  }
   0xf   :  { %2535 = vmatmul.mubr.msk.f32.gmra.mrb[2].mxu0 %vm96_vm0, %v3180_v4 }
  0xde   :  { %v2533_v6 = vpop.f32.mrb[0].mxu0 }
  0xdf   :  { %v181_v7 = vadd.f32 %v2533_v6, %v2325_v5  ;;  %v175_v8 = vpop.f32.mrb[1].mxu0 }
  0xe0   :  { %v176_v9 = vadd.f32 %v2325_v5, %v175_v8 }
  0xe1   :  { %v3211_v26 = vmul.f32 0.70710677, %v181_v7 }
  0xe2   :  { %v3187_v10 = vpack.i.bf16 %v181_v7, %v176_v9  ;;  %v3189_v11 = vmul.f32 0.70710677, %v176_v9  ;;  %v2536_v12 = vpop.f32.mrb[2].mxu0 }
  0xe3   :  { %v191_v13 = vadd.f32 %v2536_v12, %v2325_v5  ;;  %v185_v14 = vpop.f32.mrb[3].mxu0 }
  0xe4   :  { %2813 = vrot.lane.b32.xlu0 %v3187_v10, %s3018_s7  ;;  %2545 = vmatprep.mubr.msk.f32.mxu1 %vm210_vm1, %v3189_v11  ;;  %v186_v15 = vadd.f32 %v2325_v5, %v185_v14 }
  0xe5   :  { %v3219_v28 = vmul.f32 0.70710677, %v191_v13 }
  0xe6   :  { %v3194_v16 = vpack.i.bf16 %v191_v13, %v186_v15  ;;  %v3213_v27 = vmul.f32 0.70710677, %v186_v15 }
  0xe8   :  { %2818 = vrot.lane.b32.xlu0 %v3194_v16, %s3018_s7  ;;  %s3023_s7 = smov 116  }
 0x156   :  { %v2814_v17 = vpop.permute.xlu0 %2813 }
 0x157   :  { %v2816_v18 = vunpack.i.h.bf16 %v2814_v17  ;;  %v2815_v19 = vunpack.i.l.bf16 %v2814_v17 }
 0x159   :  { %v2705_v21 = vpack.c.bf16 %v2816_v18, %v2815_v19 }
 0x15a   :  { %v2819_v22 = vpop.permute.xlu0 %2818 }
 0x15b   :  { %2707 = vmatprep.subr.msk.bf16.mxu1 %vm3199_vm2, %v2705_v21  ;;  %v2821_v23 = vunpack.i.h.bf16 %v2819_v22  ;;  %v2820_v24 = vunpack.i.l.bf16 %v2819_v22 }
 0x15c   :  { %2710 = vmatpush3.bf16.xpose.msk.msra.mxu1 %vm3199_vm2, %v2705_v21 }
 0x15d   :  { %v2711_v25 = vpack.c.bf16 %v2821_v23, %v2820_v24 }
 0x15f   :  { %2713 = vmatprep.subr.msk.bf16.mxu1 %vm3199_vm2, %v2711_v25 }
 0x164   :  { %2716 = vmatpush3.bf16.xpose.msk.msra.mxu1 %vm3199_vm2, %v2711_v25 }
 0x16b   :  { %2546 = vmatmul.mubr.msk.f32.vlgmr.msra.gmra.mrb[0].mxu1 %vm210_vm1, %v3211_v26 }
 0x16c   :  { %2548 = vmatprep.mubr.msk.f32.mxu1 %vm210_vm1, %v3213_v27 }
 0x16f   :  { %2549 = vmatmul.mubr.msk.f32.gmra.mrb[2].mxu1 %vm210_vm1, %v3219_v28 }
 0x23e   :  { %v2547_v30 = vpop.f32.mrb[0].mxu1 }
 0x23f   :  { %v303_v32 = vadd.f32 %v2547_v30, %v3226_v29  ;;  %v297_v33 = vpop.f32.mrb[1].mxu1 }
 0x240   :  { %v298_v34 = vadd.f32 %v297_v33, %v3231_v31 }
 0x241   :  { %v320_v35 = vsel %vm316_vm3, %v303_v32, -inf }
 0x242   :  { %321 = vmax.xlane.f32.xlu1 %v320_v35  ;;  %v2550_v38 = vpop.f32.mrb[2].mxu1  ;;  %v317_v42 = vsel %vm316_vm3, %v298_v34, -inf }
 0x243   :  { %v307_v39 = vpop.f32.mrb[3].mxu1  ;;  %v313_v41 = vadd.f32 %v2550_v38, %v3244_v37 }
 0x244   :  { %v308_v40 = vadd.f32 %v307_v39, %v3239_v36 }
 0x245   :  { %v326_v44 = vsel %vm316_vm3, %v313_v41, -inf }
 0x246   :  { %318 = vmax.xlane.f32.xlu1 %v317_v42  ;;  %v323_v43 = vsel %vm316_vm3, %v308_v40, -inf }
 0x247   :  { %324 = vmax.xlane.f32.xlu0 %v323_v43 }
 0x24a   :  { %327 = vmax.xlane.f32.xlu1 %v326_v44 }
 0x25b   :  { %2823 = vrot.lane.b32.xlu1 %v3187_v10, %s3019_s28 }
 0x25d   :  { %470 = vrot.lane.b32.xlu0 %v3189_v11, %s3020_s29 }
 0x25f   :  { %2828 = vrot.lane.b32.xlu1 %v3194_v16, %s3019_s28 }
 0x263   :  { %2833 = vrot.lane.b32.xlu1 %v3187_v10, %s3021_s2 }
 0x267   :  { %2838 = vrot.lane.b32.xlu1 %v3194_v16, %s3021_s2  ;;  %s3029_s2 = smov 2  }
 0x26b   :  { %472 = vrot.lane.b32.xlu1 %v3211_v26, %s3020_s29 }
 0x26f   :  { %474 = vrot.lane.b32.xlu1 %v3213_v27, %s3020_s29 }
 0x273   :  { %476 = vrot.lane.b32.xlu1 %v3219_v28, %s3020_s29  ;;  %s3724_s29 = sld [smem:[#allocation9_spill]] }
 0x277   :  { %2843 = vrot.lane.b32.xlu1 %v3187_v10, %s3022_s3 }
 0x2cf   :  { %v322_v45 = vpop.xlane.xlu1 %321 }
 0x2d0   :  { %v330_v49 = vsub.f32 %v303_v32, %v322_v45 }
 0x2d2   :  { %v335_v53 = vmul.f32 1.442695, %v330_v49 }
 0x2d3   :  { %v319_v46 = vpop.xlane.xlu1 %318 }
 0x2d4   :  { %v329_v47 = vsub.f32 %v298_v34, %v319_v46  ;;  %v325_v48 = vpop.xlane.xlu0 %324 }
 0x2d5   :  { %v331_v51 = vsub.f32 %v308_v40, %v325_v48 }
 0x2d6   :  { %v333_v50 = vmul.f32 1.442695, %v329_v47 }
 0x2d7   :  { %v328_v52 = vpop.xlane.xlu1 %327  ;;  %v337_v55 = vmul.f32 1.442695, %v331_v51 }
 0x2d8   :  { %2894 = vpow2.f32 %v333_v50  ;;  %v332_v54 = vsub.f32 %v313_v41, %v328_v52  ;;  %v471_v21 = vpop.permute.xlu0 %470 }
 0x2d9   :  { %2896 = vpow2.f32 %v335_v53 }
 0x2da   :  { %v339_v59 = vmul.f32 1.442695, %v332_v54  ;;  %2898 = vpow2.f32 %v337_v55 }
 0x2db   :  { %v2824_v56 = vpop.permute.xlu1 %2823 }
 0x2dc   :  { %v2826_v57 = vunpack.i.h.bf16 %v2824_v56  ;;  %v2825_v58 = vunpack.i.l.bf16 %v2824_v56  ;;  %2900 = vpow2.f32 %v339_v59 }
 0x2de   :  { %v2717_v60 = vpack.c.bf16 %v2826_v57, %v2825_v58 }
 0x2df   :  { %v2829_v61 = vpop.permute.xlu1 %2828 }
 0x2e0   :  { %v2831_v62 = vunpack.i.h.bf16 %v2829_v61  ;;  %v2830_v63 = vunpack.i.l.bf16 %v2829_v61  ;;  %2718 = vmatprep.subr.bf16.mxu0 %v2717_v60 }
 0x2e1   :  { %2720 = vmatpush3.bf16.msra.mxu0 %v2717_v60 }
 0x2e2   :  { %v3261_v0 = vpop.eup %2894  ;;  %v2721_v5 = vpack.c.bf16 %v2831_v62, %v2830_v63 }
 0x2e3   :  { %2559 = vmatprep.mubr.msk.f32.mxu0 %vm316_vm3, %v3261_v0  ;;  %v2834_v6 = vpop.permute.xlu1 %2833  ;;  %v3265_v12 = vpop.eup %2896 }
 0x2e4   :  { %v2836_v7 = vunpack.i.h.bf16 %v2834_v6  ;;  %v2835_v8 = vunpack.i.l.bf16 %v2834_v6  ;;  %2722 = vmatprep.subr.bf16.mxu0 %v2721_v5  ;;  %v3267_v14 = vpop.eup %2898 }
 0x2e5   :  { %2724 = vmatpush3.bf16.msra.mxu0 %v2721_v5 }
 0x2e6   :  { %v2725_v9 = vpack.c.bf16 %v2836_v7, %v2835_v8  ;;  %v3275_v18 = vpop.eup %2900 }
 0x2e7   :  { %v2839_v13 = vpop.permute.xlu1 %2838 }
 0x2e8   :  { %2560 = vmatmul.mubr.msk.f32.vlgmr.msra.gmra.mrb[4].mxu0 %vm316_vm3, %v3265_v12  ;;  %2727 = vmatprep.subr.msk.bf16.mxu0 %vm3199_vm2, %v2725_v9  ;;  %v2841_v15 = vunpack.i.h.bf16 %v2839_v13  ;;  %v2840_v17 = vunpack.i.l.bf16 %v2839_v13 }
 0x2e9   :  { %2562 = vmatprep.mubr.msk.f32.mxu0 %vm316_vm3, %v3267_v14 }
 0x2ea   :  { %v2731_v22 = vpack.c.bf16 %v2841_v15, %v2840_v17 }
 0x2eb   :  { %v473_v19 = vpop.permute.xlu1 %472 }
 0x2ec   :  { %2563 = vmatmul.mubr.msk.f32.gmra.mrb[6].mxu0 %vm316_vm3, %v3275_v18 }
 0x2ed   :  { %2573 = vmatprep.mubr.msk.f32.mxu0 %vm210_vm1, %v471_v21 }
 0x2ee   :  { %2730 = vmatpush3.bf16.xpose.msk.msra.mxu0 %vm3199_vm2, %v2725_v9 }
 0x2ef   :  { %v475_v23 = vpop.permute.xlu1 %474  ;;  %2733 = vmatprep.subr.msk.bf16.mxu0 %vm3199_vm2, %v2731_v22 }
 0x2f3   :  { %v477_v24 = vpop.permute.xlu1 %476 }
 0x2f6   :  { %2736 = vmatpush3.bf16.xpose.msk.msra.mxu0 %vm3199_vm2, %v2731_v22 }
 0x2f7   :  { %v2844_v25 = vpop.permute.xlu1 %2843 }
 0x2f8   :  { %v2846_v30 = vunpack.i.h.bf16 %v2844_v25  ;;  %v2845_v32 = vunpack.i.l.bf16 %v2844_v25 }
 0x2fa   :  { %v2737_v33 = vpack.c.bf16 %v2846_v30, %v2845_v32 }
 0x2fc   :  { %2738 = vmatprep.subr.bf16.mxu1 %v2737_v33 }
 0x2fd   :  { %2574 = vmatmul.mubr.msk.f32.vlgmr.msra.gmra.mrb[8].mxu0 %vm210_vm1, %v473_v19  ;;  %2740 = vmatpush3.bf16.msra.mxu1 %v2737_v33 }
 0x2fe   :  { %2576 = vmatprep.mubr.msk.f32.mxu0 %vm210_vm1, %v475_v23 }
 0x301   :  { %2577 = vmatmul.mubr.msk.f32.gmra.mrb[10].mxu0 %vm210_vm1, %v477_v24 }
 0x3bb   :  { %v3289_v34 = vpop.f32.mrb[4].mxu0 }
 0x3bc   :  { %v3291_v35 = vpop.f32.mrb[5].mxu0 }
 0x3bf   :  { %v3293_v38 = vpop.f32.mrb[6].mxu0 }
 0x3c0   :  { %v3295_v39 = vpop.f32.mrb[7].mxu0 }
 0x3d0   :  { %v2575_v40 = vpop.f32.mrb[8].mxu0 }
 0x3d1   :  { %v574_v41 = vadd.f32 %v2575_v40, %v3226_v29  ;;  %v568_v42 = vpop.f32.mrb[9].mxu0 }
 0x3d2   :  { %v569_v43 = vadd.f32 %v568_v42, %v3231_v31 }
 0x3d3   :  { %v590_v44 = vsel %vm316_vm3, %v574_v41, -inf }
 0x3d4   :  { %591 = vmax.xlane.f32.xlu0 %v590_v44  ;;  %v2578_v45 = vpop.f32.mrb[10].mxu0  ;;  %v587_v46 = vsel %vm316_vm3, %v569_v43, -inf }
 0x3d5   :  { %v584_v47 = vadd.f32 %v2578_v45, %v3244_v37  ;;  %v578_v48 = vpop.f32.mrb[11].mxu0  ;;  %588 = vmax.xlane.f32.xlu1 %v587_v46 }
 0x3d6   :  { %v579_v50 = vadd.f32 %v578_v48, %v3239_v36 }
 0x3d7   :  { %v596_v49 = vsel %vm316_vm3, %v584_v47, -inf }
 0x3d8   :  { %597 = vmax.xlane.f32.xlu0 %v596_v49  ;;  %v593_v51 = vsel %vm316_vm3, %v579_v50, -inf }
 0x3e6   :  { %2853 = vrot.lane.b32.xlu1 %v3187_v10, %s3023_s7 }
 0x3ea   :  { %2858 = vrot.lane.b32.xlu1 %v3194_v16, %s3023_s7 }
 0x3ee   :  { %2848 = vrot.lane.b32.xlu0 %v3194_v16, %s3022_s3  ;;  %s3030_s3 = smov 4  }
 0x3f2   :  { %740 = vrot.lane.b32.xlu0 %v3189_v11, %s3024_s30 }
 0x3f6   :  { %744 = vrot.lane.b32.xlu0 %v3213_v27, %s3024_s30 }
 0x40e   :  { %594 = vmax.xlane.f32.xlu1 %v593_v51 }
 0x41f   :  { %742 = vrot.lane.b32.xlu1 %v3211_v26, %s3024_s30 }
 0x423   :  { %746 = vrot.lane.b32.xlu1 %v3219_v28, %s3024_s30 }
 0x427   :  { %2863 = vrot.lane.b32.xlu1 %v3187_v10, %s3025_s24 }
 0x461   :  { %v592_v52 = vpop.xlane.xlu0 %591 }
 0x462   :  { %v600_v53 = vsub.f32 %v574_v41, %v592_v52  ;;  %v589_v54 = vpop.xlane.xlu1 %588 }
 0x463   :  { %v599_v55 = vsub.f32 %v569_v43, %v589_v54 }
 0x464   :  { %v605_v56 = vmul.f32 1.442695, %v600_v53 }
 0x465   :  { %v603_v57 = vmul.f32 1.442695, %v599_v55  ;;  %v598_v58 = vpop.xlane.xlu0 %597 }
 0x466   :  { %v2854_v59 = vpop.permute.xlu1 %2853  ;;  %v602_v21 = vsub.f32 %v584_v47, %v598_v58 }
 0x467   :  { %2902 = vpow2.f32 %v603_v57  ;;  %v2856_v61 = vunpack.i.h.bf16 %v2854_v59  ;;  %v2855_v62 = vunpack.i.l.bf16 %v2854_v59 }
 0x468   :  { %2904 = vpow2.f32 %v605_v56  ;;  %v609_v24 = vmul.f32 1.442695, %v602_v21 }
 0x469   :  { %v2849_v60 = vpop.permute.xlu0 %2848  ;;  %v2745_v7 = vpack.c.bf16 %v2856_v61, %v2855_v62 }
 0x46a   :  { %v2851_v63 = vunpack.i.h.bf16 %v2849_v60  ;;  %v2850_v5 = vunpack.i.l.bf16 %v2849_v60  ;;  %v2859_v8 = vpop.permute.xlu1 %2858 }
 0x46b   :  { %v2861_v15 = vunpack.i.h.bf16 %v2859_v8  ;;  %v2860_v17 = vunpack.i.l.bf16 %v2859_v8 }
 0x46c   :  { %v2741_v6 = vpack.c.bf16 %v2851_v63, %v2850_v5 }
 0x46d   :  { %v2751_v19 = vpack.c.bf16 %v2861_v15, %v2860_v17  ;;  %v741_v43 = vpop.permute.xlu0 %740 }
 0x46e   :  { %2742 = vmatprep.subr.bf16.mxu1 %v2741_v6 }
 0x46f   :  { %2744 = vmatpush3.bf16.msra.mxu1 %v2741_v6 }
 0x470   :  { %2747 = vmatprep.subr.msk.bf16.mxu1 %vm3199_vm2, %v2745_v7 }
 0x471   :  { %v3317_v9 = vpop.eup %2902  ;;  %v745_v46 = vpop.permute.xlu0 %744 }
 0x472   :  { %v3319_v13 = vpop.eup %2904  ;;  %2587 = vmatprep.mubr.msk.f32.mxu1 %vm316_vm3, %v3317_v9 }
 0x473   :  { %2588 = vmatmul.mubr.msk.f32.vlgmr.msra.gmra.mrb[4].mxu1 %vm316_vm3, %v3319_v13 }
 0x478   :  { %2750 = vmatpush3.bf16.xpose.msk.msra.mxu1 %vm3199_vm2, %v2745_v7 }
 0x479   :  { %2753 = vmatprep.subr.msk.bf16.mxu1 %vm3199_vm2, %v2751_v19 }
 0x480   :  { %2756 = vmatpush3.bf16.xpose.msk.msra.mxu1 %vm3199_vm2, %v2751_v19 }
 0x49b   :  { %v595_v22 = vpop.xlane.xlu1 %594 }
 0x49c   :  { %v601_v23 = vsub.f32 %v579_v50, %v595_v22 }
 0x49e   :  { %v607_v25 = vmul.f32 1.442695, %v601_v23 }
 0x49f   :  { %v743_v30 = vpop.permute.xlu1 %742 }
 0x4a0   :  { %2906 = vpow2.f32 %v607_v25 }
 0x4a1   :  { %2908 = vpow2.f32 %v609_v24 }
 0x4a3   :  { %v747_v32 = vpop.permute.xlu1 %746 }
 0x4a7   :  { %v2864_v33 = vpop.permute.xlu1 %2863 }
 0x4a8   :  { %v2866_v40 = vunpack.i.h.bf16 %v2864_v33  ;;  %v2865_v41 = vunpack.i.l.bf16 %v2864_v33 }
 0x4aa   :  { %v3331_v42 = vpop.eup %2906  ;;  %v2757_v44 = vpack.c.bf16 %v2866_v40, %v2865_v41 }
 0x4ab   :  { %v3333_v45 = vpop.eup %2908  ;;  %2590 = vmatprep.mubr.msk.f32.mxu1 %vm316_vm3, %v3331_v42 }
 0x4ac   :  { %2591 = vmatmul.mubr.msk.f32.gmra.mrb[6].mxu1 %vm316_vm3, %v3333_v45  ;;  %2758 = vmatprep.subr.bf16.mxu0 %v2757_v44 }
 0x4ad   :  { %2601 = vmatprep.mubr.msk.f32.mxu1 %vm210_vm1, %v741_v43  ;;  %2760 = vmatpush3.bf16.msra.mxu0 %v2757_v44 }
 0x4b0   :  { %2602 = vmatmul.mubr.msk.f32.vlgmr.msra.gmra.mrb[8].mxu1 %vm210_vm1, %v743_v30 }
 0x4b1   :  { %2604 = vmatprep.mubr.msk.f32.mxu1 %vm210_vm1, %v745_v46 }
 0x4b4   :  { %2605 = vmatmul.mubr.msk.f32.gmra.mrb[10].mxu1 %vm210_vm1, %v747_v32 }
 0x546   :  { %v3343_v47 = vpop.f32.mrb[4].mxu1 }
 0x547   :  { %v3345_v48 = vpop.f32.mrb[5].mxu1 }
 0x57f   :  { %v3347_v49 = vpop.f32.mrb[6].mxu1 }
 0x580   :  { %v3349_v50 = vpop.f32.mrb[7].mxu1 }
 0x583   :  { %v2603_v51 = vpop.f32.mrb[8].mxu1 }
 0x584   :  { %v844_v52 = vadd.f32 %v2603_v51, %v3226_v29  ;;  %v838_v53 = vpop.f32.mrb[9].mxu1 }
 0x585   :  { %v839_v54 = vadd.f32 %v838_v53, %v3231_v31 }
 0x586   :  { %v860_v55 = vsel %vm316_vm3, %v844_v52, -inf }
 0x587   :  { %861 = vmax.xlane.f32.xlu1 %v860_v55  ;;  %v2606_v56 = vpop.f32.mrb[10].mxu1  ;;  %v857_v57 = vsel %vm316_vm3, %v839_v54, -inf  ;;  %v1445_v55 = vld [vmem:[%s3723_s5] sm:$0xff] }
 0x588   :  { %v854_v58 = vadd.f32 %v2606_v56, %v3244_v37  ;;  %v848_v59 = vpop.f32.mrb[11].mxu1  ;;  %858 = vmax.xlane.f32.xlu0 %v857_v57 }
 0x589   :  { %v849_v61 = vadd.f32 %v848_v59, %v3239_v36 }
 0x58a   :  { %v866_v60 = vsel %vm316_vm3, %v854_v58, -inf }
 0x58b   :  { %v863_v62 = vsel %vm316_vm3, %v849_v61, -inf }
 0x58c   :  { %867 = vmax.xlane.f32.xlu0 %v866_v60 }
 0x590   :  { %864 = vmax.xlane.f32.xlu0 %v863_v62 }
 0x598   :  { %2873 = vrot.lane.b32.xlu1 %v3187_v10, %s3026_s25 }
 0x59c   :  { %2878 = vrot.lane.b32.xlu1 %v3194_v16, %s3026_s25 }
 0x5a0   :  { %1012 = vrot.lane.b32.xlu1 %v3211_v26, %s3027_s8 }
 0x5a4   :  { %1016 = vrot.lane.b32.xlu1 %v3219_v28, %s3027_s8 }
 0x5a6   :  { %2868 = vrot.lane.b32.xlu0 %v3194_v16, %s3025_s24  ;;  %s3725_s24 = sld [smem:[#allocation10_spill]] }
 0x5aa   :  { %1010 = vrot.lane.b32.xlu0 %v3189_v11, %s3027_s8 }
 0x5ae   :  { %1014 = vrot.lane.b32.xlu0 %v3213_v27, %s3027_s8 }
 0x614   :  { %v862_v63 = vpop.xlane.xlu1 %861 }
 0x615   :  { %v859_v5 = vpop.xlane.xlu0 %858  ;;  %v870_v7 = vsub.f32 %v844_v52, %v862_v63 }
 0x616   :  { %v869_v6 = vsub.f32 %v839_v54, %v859_v5 }
 0x617   :  { %v875_v17 = vmul.f32 1.442695, %v870_v7 }
 0x618   :  { %v873_v8 = vmul.f32 1.442695, %v869_v6  ;;  %v2874_v26 = vpop.permute.xlu1 %2873 }
 0x619   :  { %v868_v15 = vpop.xlane.xlu0 %867  ;;  %v2876_v24 = vunpack.i.h.bf16 %v2874_v26  ;;  %v2875_v11 = vunpack.i.l.bf16 %v2874_v26 }
 0x61a   :  { %2910 = vpow2.f32 %v873_v8  ;;  %v872_v19 = vsub.f32 %v854_v58, %v868_v15 }
 0x61b   :  { %2912 = vpow2.f32 %v875_v17  ;;  %v2765_v40 = vpack.c.bf16 %v2876_v24, %v2875_v11  ;;  %v611_v24 = vsel %vm316_vm3, %v3317_v9, 0.0 }
 0x61c   :  { %v879_v28 = vmul.f32 1.442695, %v872_v19  ;;  %v2879_v41 = vpop.permute.xlu1 %2878 }
 0x61d   :  { %v865_v21 = vpop.xlane.xlu0 %864  ;;  %v2881_v44 = vunpack.i.h.bf16 %v2879_v41  ;;  %v2880_v46 = vunpack.i.l.bf16 %v2879_v41 }
 0x61e   :  { %v871_v22 = vsub.f32 %v849_v61, %v865_v21 }
 0x61f   :  { %v2771_v54 = vpack.c.bf16 %v2881_v44, %v2880_v46 }
 0x620   :  { %v877_v23 = vmul.f32 1.442695, %v871_v22  ;;  %v1013_v56 = vpop.permute.xlu1 %1012 }
 0x621   :  { %v2869_v25 = vpop.permute.xlu0 %2868 }
 0x622   :  { %2914 = vpow2.f32 %v877_v23  ;;  %v2871_v27 = vunpack.i.h.bf16 %v2869_v25  ;;  %v2870_v30 = vunpack.i.l.bf16 %v2869_v25 }
 0x623   :  { %2916 = vpow2.f32 %v879_v28 }
 0x624   :  { %v3367_v32 = vpop.eup %2910  ;;  %v2761_v33 = vpack.c.bf16 %v2871_v27, %v2870_v30  ;;  %v1017_v58 = vpop.permute.xlu1 %1016  ;;  %v617_v27 = vsel %vm316_vm3, %v3331_v42, 0.0  ;;  %v614_v30 = vsel %vm316_vm3, %v3319_v13, 0.0 }
 0x625   :  { %2615 = vmatprep.mubr.msk.f32.mxu0 %vm316_vm3, %v3367_v32  ;;  %v3373_v43 = vpop.eup %2912  ;;  %v1011_v53 = vpop.permute.xlu0 %1010  ;;  %v881_v11 = vsel %vm316_vm3, %v3367_v32, 0.0  ;;  %v620_v32 = vsel %vm316_vm3, %v3333_v45, 0.0 }
 0x626   :  { %2762 = vmatprep.subr.bf16.mxu0 %v2761_v33 }
 0x627   :  { %2764 = vmatpush3.bf16.msra.mxu0 %v2761_v33  ;;  %v884_v33 = vsel %vm316_vm3, %v3373_v43, 0.0 }
 0x628   :  { %2767 = vmatprep.subr.msk.bf16.mxu0 %vm3199_vm2, %v2765_v40 }
 0x629   :  { %v1015_v57 = vpop.permute.xlu0 %1014 }
 0x62a   :  { %2616 = vmatmul.mubr.msk.f32.vlgmr.msra.gmra.mrb[12].mxu0 %vm316_vm3, %v3373_v43 }
 0x62c   :  { %v3377_v51 = vpop.eup %2914 }
 0x62d   :  { %v3379_v52 = vpop.eup %2916  ;;  %2618 = vmatprep.mubr.msk.f32.mxu0 %vm316_vm3, %v3377_v51  ;;  %v887_v9 = vsel %vm316_vm3, %v3377_v51, 0.0 }
 0x62e   :  { %2619 = vmatmul.mubr.msk.f32.gmra.mrb[14].mxu0 %vm316_vm3, %v3379_v52  ;;  %v890_v42 = vsel %vm316_vm3, %v3379_v52, 0.0 }
 0x62f   :  { %2629 = vmatprep.mubr.msk.f32.mxu0 %vm210_vm1, %v1011_v53 }
 0x630   :  { %2770 = vmatpush3.bf16.xpose.msk.msra.mxu0 %vm3199_vm2, %v2765_v40 }
 0x631   :  { %2773 = vmatprep.subr.msk.bf16.mxu0 %vm3199_vm2, %v2771_v54 }
 0x638   :  { %2776 = vmatpush3.bf16.xpose.msk.msra.mxu0 %vm3199_vm2, %v2771_v54 }
 0x639   :  { %2657 = vmatprep.subr.mxu0 %v1445_v55 }
 0x63f   :  { %2630 = vmatmul.mubr.msk.f32.vlgmr.msra.gmra.mrb[16].mxu0 %vm210_vm1, %v1013_v56 }
 0x640   :  { %2632 = vmatprep.mubr.msk.f32.mxu0 %vm210_vm1, %v1015_v57  ;;  %2658 = vmatpush3.msra.mxu0 %v1445_v55 }
 0x643   :  { %2633 = vmatmul.mubr.msk.f32.gmra.mrb[18].mxu0 %vm210_vm1, %v1017_v58 }
 0x644   :  { %2659 = vmatprep.mubr.msk.f32.mxu0 %vm96_vm0, %v3159_v1 }
 0x647   :  { %2660 = vmatmul.mubr.msk.f32.vlgmr.msra.gmra.mrb[20].mxu0 %vm96_vm0, %v3164_v2 }
 0x648   :  { %2662 = vmatprep.mubr.msk.f32.mxu0 %vm96_vm0, %v3171_v3 }
 0x64b   :  { %2663 = vmatmul.mubr.msk.f32.gmra.mrb[22].mxu0 %vm96_vm0, %v3180_v4 }
 0x6fd   :  { %v3406_v20 = vpop.f32.mrb[12].mxu0 }
 0x6fe   :  { %v3408_v59 = vpop.f32.mrb[13].mxu0 }
 0x701   :  { %v3410_v60 = vpop.f32.mrb[14].mxu0 }
 0x702   :  { %v3412_v61 = vpop.f32.mrb[15].mxu0 }
 0x712   :  { %v2631_v62 = vpop.f32.mrb[16].mxu0 }
 0x713   :  { %v1114_v1 = vadd.f32 %v2631_v62, %v3226_v29  ;;  %v1108_v63 = vpop.f32.mrb[17].mxu0 }
 0x714   :  { %v1109_v2 = vadd.f32 %v1108_v63, %v3231_v31 }
 0x715   :  { %v1130_v5 = vsel %vm316_vm3, %v1114_v1, -inf }
 0x716   :  { %1131 = vmax.xlane.f32.xlu1 %v1130_v5  ;;  %v2634_v3 = vpop.f32.mrb[18].mxu0  ;;  %v1127_v4 = vsel %vm316_vm3, %v1109_v2, -inf }
 0x717   :  { %v1124_v6 = vadd.f32 %v2634_v3, %v3244_v37  ;;  %v1118_v7 = vpop.f32.mrb[19].mxu0  ;;  %1128 = vmax.xlane.f32.xlu0 %v1127_v4  ;;  %v2383_v37 = vld [vmem:[%s3724_s29] ss:$0 sm:$0xff] }
 0x718   :  { %v1119_v15 = vadd.f32 %v1118_v7, %v3239_v36 }
 0x719   :  { %v1136_v8 = vsel %vm316_vm3, %v1124_v6, -inf }
 0x71a   :  { %v2661_v17 = vpop.f32.mrb[20].mxu0  ;;  %v1133_v19 = vsel %vm316_vm3, %v1119_v15, -inf }
 0x71b   :  { %1137 = vmax.xlane.f32.xlu0 %v1136_v8  ;;  %v1519_v29 = vpop.f32.mrb[21].mxu0  ;;  %v3435_v23 = vadd.f32 %v2661_v17, %v2383_v37 }
 0x71c   :  { %v3427_v26 = vadd.f32 %v2383_v37, %v1519_v29 }
 0x71e   :  { %v2664_v31 = vpop.f32.mrb[22].mxu0  ;;  %v1540_v22 = vsel %vm96_vm0, %v3427_v26, 0.0 }
 0x71f   :  { %1134 = vmax.xlane.f32.xlu0 %v1133_v19  ;;  %v1529_v21 = vpop.f32.mrb[23].mxu0 }
 0x720   :  { %v3429_v36 = vadd.f32 %v2383_v37, %v1529_v21 }
 0x722   :  { %v1546_v28 = vsel %vm96_vm0, %v3429_v36, 0.0 }
 0x727   :  { %2883 = vrot.lane.b32.xlu1 %v3187_v10, %s3028_s27  ;;  %v3437_v10 = vadd.f32 %v2664_v31, %v2383_v37 }
 0x729   :  { %v1549_v25 = vsel %vm96_vm0, %v3437_v10, 0.0 }
 0x735   :  { %2888 = vrot.lane.b32.xlu0 %v3194_v16, %s3028_s27  ;;  %v1543_v16 = vsel %vm96_vm0, %v3435_v23, 0.0 }
 0x74b   :  { %1541 = vadd.xlane.f32.xlu1 %v1540_v22 }
 0x74f   :  { %1547 = vadd.xlane.f32.xlu1 %v1546_v28 }
 0x753   :  { %612 = vadd.xlane.f32.xlu1 %v611_v24 }
 0x754   :  { %1544 = vadd.xlane.f32.xlu0 %v1543_v16 }
 0x757   :  { %882 = vadd.xlane.f32.xlu1 %v881_v11 }
 0x758   :  { %1550 = vadd.xlane.f32.xlu0 %v1549_v25 }
 0x75b   :  { %618 = vadd.xlane.f32.xlu1 %v617_v27 }
 0x75c   :  { %615 = vadd.xlane.f32.xlu0 %v614_v30 }
 0x75f   :  { %888 = vadd.xlane.f32.xlu1 %v887_v9 }
 0x760   :  { %885 = vadd.xlane.f32.xlu0 %v884_v33 }
 0x764   :  { %621 = vadd.xlane.f32.xlu0 %v620_v32  ;;  %v341_v32 = vsel %vm316_vm3, %v3261_v0, 0.0 }
 0x768   :  { %891 = vadd.xlane.f32.xlu0 %v890_v42 }
 0x7a3   :  { %v1132_v40 = vpop.xlane.xlu1 %1131 }
 0x7a4   :  { %v1140_v41 = vsub.f32 %v1114_v1, %v1132_v40  ;;  %v1129_v13 = vpop.xlane.xlu0 %1128 }
 0x7a5   :  { %v1139_v44 = vsub.f32 %v1109_v2, %v1129_v13 }
 0x7a6   :  { %v1145_v46 = vmul.f32 1.442695, %v1140_v41 }
 0x7a7   :  { %v1143_v53 = vmul.f32 1.442695, %v1139_v44  ;;  %v2884_v51 = vpop.permute.xlu1 %2883  ;;  %v347_v44 = vsel %vm316_vm3, %v3267_v14, 0.0 }
 0x7a8   :  { %2918 = vpow2.f32 %v1145_v46  ;;  %v2886_v54 = vunpack.i.h.bf16 %v2884_v51  ;;  %v2885_v55 = vunpack.i.l.bf16 %v2884_v51  ;;  %v1138_v43 = vpop.xlane.xlu0 %1137  ;;  %v350_v51 = vsel %vm316_vm3, %v3275_v18, 0.0 }
 0x7a9   :  { %2920 = vpow2.f32 %v1143_v53  ;;  %v1142_v56 = vsub.f32 %v1124_v6, %v1138_v43  ;;  %v344_v53 = vsel %vm316_vm3, %v3265_v12, 0.0 }
 0x7aa   :  { %v2777_v57 = vpack.c.bf16 %v2886_v54, %v2885_v55 }
 0x7ab   :  { %v1149_v45 = vmul.f32 1.442695, %v1142_v56 }
 0x7ac   :  { %2778 = vmatprep.subr.bf16.mxu1 %v2777_v57  ;;  %v1135_v58 = vpop.xlane.xlu0 %1134 }
 0x7ad   :  { %2922 = vpow2.f32 %v1149_v45  ;;  %v1141_v52 = vsub.f32 %v1119_v15, %v1135_v58  ;;  %2780 = vmatpush3.bf16.msra.mxu1 %v2777_v57 }
 0x7af   :  { %v1147_v62 = vmul.f32 1.442695, %v1141_v52 }
 0x7b0   :  { %v2889_v1 = vpop.permute.xlu0 %2888 }
 0x7b1   :  { %2924 = vpow2.f32 %v1147_v62  ;;  %v2891_v63 = vunpack.i.h.bf16 %v2889_v1  ;;  %v2890_v2 = vunpack.i.l.bf16 %v2889_v1 }
 0x7b2   :  { %v2919_v5 = vpop.eup %2918 }
 0x7b3   :  { %v2921_v3 = vpop.eup %2920  ;;  %v2781_v4 = vpack.c.bf16 %v2891_v63, %v2890_v2  ;;  %v1154_v7 = vsel %vm316_vm3, %v2919_v5, 0.0 }
 0x7b4   :  { %1155 = vadd.xlane.f32.xlu0 %v1154_v7  ;;  %2643 = vmatprep.mubr.msk.f32.mxu1 %vm316_vm3, %v2921_v3  ;;  %v1151_v6 = vsel %vm316_vm3, %v2921_v3, 0.0 }
 0x7b5   :  { %1152 = vadd.xlane.f32.xlu1 %v1151_v6  ;;  %2782 = vmatprep.subr.bf16.mxu1 %v2781_v4 }
 0x7b6   :  { %2784 = vmatpush3.bf16.msra.mxu1 %v2781_v4 }
 0x7b7   :  { %v2923_v8 = vpop.eup %2922 }
 0x7b8   :  { %v1160_v15 = vsel %vm316_vm3, %v2923_v8, 0.0 }
 0x7b9   :  { %1161 = vadd.xlane.f32.xlu0 %v1160_v15  ;;  %2644 = vmatmul.mubr.msk.f32.vlgmr.msra.gmra.mrb[12].mxu1 %vm316_vm3, %v2919_v5 }
 0x7bb   :  { %v2925_v17 = vpop.eup %2924 }
 0x7bc   :  { %2646 = vmatprep.mubr.msk.f32.mxu1 %vm316_vm3, %v2925_v17  ;;  %v1157_v29 = vsel %vm316_vm3, %v2925_v17, 0.0 }
 0x7bd   :  { %1158 = vadd.xlane.f32.xlu1 %v1157_v29  ;;  %2647 = vmatmul.mubr.msk.f32.gmra.mrb[14].mxu1 %vm316_vm3, %v2923_v8 }
 0x7d8   :  { %v1542_v19 = vpop.xlane.xlu1 %1541 }
 0x7d9   :  { %v1553_v31 = vmul.f32 0.125, %v1542_v19 }
 0x7db   :  { %v3468_v21 = vsub.f32 %v3427_v26, %v1553_v31 }
 0x7dc   :  { %v1548_v37 = vpop.xlane.xlu1 %1547 }
 0x7dd   :  { %v1555_v22 = vmul.f32 0.125, %v1548_v37  ;;  %v1561_v28 = vmul.f32 %v3468_v21, %v3468_v21 }
 0x7df   :  { %v3473_v16 = vsub.f32 %v3429_v36, %v1555_v22  ;;  %v1565_v24 = vsel %vm96_vm0, %v1561_v28, 0.0 }
 0x7e0   :  { %1566 = vadd.xlane.f32.xlu1 %v1565_v24  ;;  %v613_v41 = vpop.xlane.xlu1 %612 }
 0x7e1   :  { %v1545_v25 = vpop.xlane.xlu0 %1544  ;;  %v1563_v11 = vmul.f32 %v3473_v16, %v3473_v16  ;;  %2926 = vrcp.f32 %v613_v41 }
 0x7e2   :  { %v1554_v27 = vmul.f32 0.125, %v1545_v25 }
 0x7e3   :  { %v1571_v30 = vsel %vm96_vm0, %v1563_v11, 0.0 }
 0x7e4   :  { %v3480_v26 = vsub.f32 %v3435_v23, %v1554_v27  ;;  %1572 = vadd.xlane.f32.xlu1 %v1571_v30  ;;  %v883_v0 = vpop.xlane.xlu1 %882 }
 0x7e5   :  { %v1551_v9 = vpop.xlane.xlu0 %1550  ;;  %2928 = vrcp.f32 %v883_v0 }
 0x7e6   :  { %v1556_v33 = vmul.f32 0.125, %v1551_v9  ;;  %v1562_v36 = vmul.f32 %v3480_v26, %v3480_v26 }
 0x7e8   :  { %v3487_v42 = vsub.f32 %v3437_v10, %v1556_v33  ;;  %342 = vadd.xlane.f32.xlu1 %v341_v32  ;;  %v1568_v40 = vsel %vm96_vm0, %v1562_v36, 0.0  ;;  %v619_v14 = vpop.xlane.xlu1 %618 }
 0x7e9   :  { %1569 = vadd.xlane.f32.xlu0 %v1568_v40  ;;  %v616_v13 = vpop.xlane.xlu0 %615 }
 0x7ea   :  { %v1564_v23 = vmul.f32 %v3487_v42, %v3487_v42 }
 0x7eb   :  { %v2927_v55 = vpop.eup %2926 }
 0x7ec   :  { %348 = vadd.xlane.f32.xlu1 %v347_v44  ;;  %v1574_v46 = vsel %vm96_vm0, %v1564_v23, 0.0  ;;  %v733_v56 = vmul.f32 %v2927_v55, %v3345_v48  ;;  %v889_v58 = vpop.xlane.xlu1 %888  ;;  %v2388_v55 = vld [vmem:[%s3691_s9] ss:$0 sm:$0xff] }
 0x7ed   :  { %1575 = vadd.xlane.f32.xlu0 %v1574_v46  ;;  %v886_v10 = vpop.xlane.xlu0 %885 }
 0x7ee   :  { %2930 = vrcp.f32 %v886_v10 }
 0x7ef   :  { %v2929_v57 = vpop.eup %2928 }
 0x7f0   :  { %v1003_v12 = vmul.f32 %v2929_v57, %v3408_v59 }
 0x7f1   :  { %345 = vadd.xlane.f32.xlu0 %v344_v53  ;;  %v622_v54 = vpop.xlane.xlu0 %621 }
 0x7f2   :  { %2932 = vrcp.f32 %v622_v54 }
 0x7f3   :  { %2934 = vrcp.f32 %v616_v13 }
 0x7f5   :  { %351 = vadd.xlane.f32.xlu0 %v350_v51  ;;  %v892_v43 = vpop.xlane.xlu0 %891 }
 0x7f6   :  { %2936 = vrcp.f32 %v892_v43 }
 0x7f7   :  { %2938 = vrcp.f32 %v619_v14 }
 0x7f8   :  { %v2931_v45 = vpop.eup %2930  ;;  %2940 = vrcp.f32 %v889_v58 }
 0x7f9   :  { %v1005_v18 = vmul.f32 %v2931_v45, %v3406_v20  ;;  %v2389_v45 = vld [vmem:[%s3692_s10] ss:$0 sm:$0xff] }
 0x7fc   :  { %v2933_v52 = vpop.eup %2932 }
 0x7fd   :  { %1284 = vrot.lane.b32.xlu1 %v733_v56, %s3029_s2  ;;  %v2935_v62 = vpop.eup %2934  ;;  %v739_v48 = vmul.f32 %v2933_v52, %v3347_v49  ;;  %v88_v49 = vld [vmem:[%s3725_s24] sm:$0xff] }
 0x7fe   :  { %v735_v63 = vmul.f32 %v2935_v62, %v3343_v47  ;;  %2649 = vmatprep.subr.mxu1 %v88_v49 }
 0x7ff   :  { %2650 = vmatpush3.msra.mxu1 %v88_v49 }
 0x800   :  { %v2937_v1 = vpop.eup %2936 }
 0x801   :  { %1300 = vrot.lane.b32.xlu1 %v1003_v12, %s3030_s3  ;;  %v2939_v2 = vpop.eup %2938  ;;  %v1009_v59 = vmul.f32 %v2937_v1, %v3410_v60 }
 0x802   :  { %v737_v5 = vmul.f32 %v2939_v2, %v3349_v50  ;;  %v2941_v3 = vpop.eup %2940  ;;  %v3513_v50 = vld [vmem:[%s3726_s26] sm:$0xff] }
 0x803   :  { %v1007_v20 = vmul.f32 %v2941_v3, %v3412_v61  ;;  %2665 = vmatprep.subr.mxu1 %v3513_v50 }
 0x805   :  { %1302 = vrot.lane.b32.xlu1 %v1005_v18, %s3030_s3 }
 0x809   :  { %1290 = vrot.lane.b32.xlu1 %v739_v48, %s3029_s2 }
 0x80b   :  { %1286 = vrot.lane.b32.xlu0 %v735_v63, %s3029_s2 }
 0x80d   :  { %1306 = vrot.lane.b32.xlu1 %v1009_v59, %s3030_s3 }
 0x80f   :  { %1288 = vrot.lane.b32.xlu0 %v737_v5, %s3029_s2 }
 0x813   :  { %1304 = vrot.lane.b32.xlu0 %v1007_v20, %s3030_s3 }
 0x841   :  { %v1156_v4 = vpop.xlane.xlu0 %1155 }
 0x842   :  { %v1153_v47 = vpop.xlane.xlu1 %1152  ;;  %2942 = vrcp.f32 %v1156_v4 }
 0x843   :  { %2944 = vrcp.f32 %v1153_v47 }
 0x846   :  { %v1162_v7 = vpop.xlane.xlu0 %1161 }
 0x847   :  { %2946 = vrcp.f32 %v1162_v7 }
 0x84a   :  { %v1159_v60 = vpop.xlane.xlu1 %1158 }
 0x84b   :  { %2948 = vrcp.f32 %v1159_v60 }
 0x84c   :  { %v2943_v61 = vpop.eup %2942 }
 0x84d   :  { %v2945_v8 = vpop.eup %2944 }
 0x851   :  { %v2947_v19 = vpop.eup %2946 }
 0x855   :  { %v2949_v37 = vpop.eup %2948 }
 0x86d   :  { %v1567_v25 = vpop.xlane.xlu1 %1566 }
 0x86e   :  { %v1577_v27 = vmul.f32 0.125, %v1567_v25 }
 0x870   :  { %v1581_v33 = vadd.f32 1e-05, %v1577_v27 }
 0x871   :  { %v1573_v30 = vpop.xlane.xlu1 %1572 }
 0x872   :  { %v1579_v36 = vmul.f32 0.125, %v1573_v30  ;;  %2950 = vrsqrt.f32 %v1581_v33 }
 0x874   :  { %v1583_v13 = vadd.f32 1e-05, %v1579_v36 }
 0x875   :  { %v343_v23 = vpop.xlane.xlu1 %342 }
 0x876   :  { %v1570_v11 = vpop.xlane.xlu0 %1569 }
 0x877   :  { %v1578_v9 = vmul.f32 0.125, %v1570_v11 }
 0x879   :  { %v1582_v40 = vadd.f32 1e-05, %v1578_v9  ;;  %v349_v46 = vpop.xlane.xlu1 %348 }
 0x87a   :  { %v1576_v32 = vpop.xlane.xlu0 %1575 }
 0x87b   :  { %v1580_v41 = vmul.f32 0.125, %v1576_v32  ;;  %2952 = vrsqrt.f32 %v1582_v40 }
 0x87c   :  { %2954 = vrsqrt.f32 %v1583_v13  ;;  %v2951_v0 = vpop.eup %2950 }
 0x87d   :  { %v1584_v44 = vadd.f32 1e-05, %v1580_v41  ;;  %v1589_v53 = vmul.f32 %v2951_v0, %v3468_v21  ;;  %v1285_v54 = vpop.permute.xlu1 %1284 }
 0x87e   :  { %v346_v14 = vpop.xlane.xlu0 %345 }
 0x87f   :  { %2956 = vrsqrt.f32 %v1584_v44  ;;  %v1599_v57 = vmul.f32 %v2388_v55, %v1589_v53 }
 0x880   :  { %2958 = vrcp.f32 %v343_v23 }
 0x881   :  { %v1301_v58 = vpop.permute.xlu1 %1300  ;;  %v3526_v62 = vadd.f32 %v2389_v45, %v1599_v57  ;;  %2960 = vrcp.f32 %v346_v14  ;;  %v3032_v57 = vmov 0  }
 0x882   :  { %v352_v52 = vpop.xlane.xlu0 %351  ;;  %2893 = vset.pattern.permute.xlu1 %v3032_v57  ;;  %2892 = vset.pattern.permute.xlu0 %v3032_v57  ;;  %v2399_v57 = vld [vmem:[%s3697_s14] ss:$0 sm:$0xff] }
 0x883   :  { %v1617_v63 = vmin.f32 %v3526_v62, 0.0  ;;  %2962 = vrcp.f32 %v352_v52  ;;  %vm1613_vm6 = vcmp.gt.f32.partialorder %v3526_v62, 0.0 }
 0x884   :  { %2964 = vrcp.f32 %v349_v46 }
 0x885   :  { %v2953_v10 = vpop.eup %2952  ;;  %v1303_v2 = vpop.permute.xlu1 %1302 }
 0x886   :  { %v2955_v51 = vpop.eup %2954  ;;  %v1590_v43 = vmul.f32 %v2953_v10, %v3480_v26  ;;  %v1287_v59 = vpop.permute.xlu0 %1286 }
 0x887   :  { %v1591_v12 = vmul.f32 %v2955_v51, %v3473_v16 }
 0x888   :  { %v1600_v18 = vmul.f32 %v2388_v55, %v1590_v43 }
 0x889   :  { %v2957_v56 = vpop.eup %2956  ;;  %v1601_v48 = vmul.f32 %v2388_v55, %v1591_v12  ;;  %v1291_v49 = vpop.permute.xlu1 %1290  ;;  %v1798_v12 = vld [vmem:[%s3694_s13] sm:$0xff] }
 0x88a   :  { %v1592_v21 = vmul.f32 %v2957_v56, %v3487_v42  ;;  %v3528_v1 = vadd.f32 %v2389_v45, %v1600_v18  ;;  %v1621_v42 = vmul.f32 1.442695, %v1617_v63  ;;  %v2959_v7 = vpop.eup %2958  ;;  %v1289_v60 = vpop.permute.xlu0 %1288  ;;  %v28_v56 = vstv %s3693_s12  ;;  %2673 = vmatprep.subr.mxu0 %v1798_v12 }
 0x88b   :  { %v3531_v16 = vadd.f32 %v2389_v45, %v1601_v48  ;;  %29 = vst [vmem:[#allocation2] sm:$0x1] %v28_v56  ;;  %2674 = vmatpush3.msra.mxu0 %v1798_v12 }
 0x88c   :  { %v2645_v6 = vpop.f32.mrb[12].mxu1  ;;  %v1602_v26 = vmul.f32 %v2388_v55, %v1592_v21  ;;  %v1618_v5 = vmin.f32 %v3528_v1, 0.0  ;;  %2966 = vpow2.f32 %v1621_v42  ;;  %vm1614_vm7 = vcmp.gt.f32.partialorder %v3528_v1, 0.0 }
 0x88d   :  { %v1275_v15 = vmul.f32 %v2943_v61, %v2645_v6  ;;  %v1253_v17 = vpop.f32.mrb[13].mxu1  ;;  %v1619_v20 = vmin.f32 %v3531_v16, 0.0  ;;  %v2961_v6 = vpop.eup %2960  ;;  %vm1615_vm8 = vcmp.gt.f32.partialorder %v3531_v16, 0.0 }
 0x88e   :  { %v1273_v29 = vmul.f32 %v2945_v8, %v1253_v17  ;;  %v3534_v3 = vadd.f32 %v2389_v45, %v1602_v26  ;;  %v1623_v4 = vmul.f32 1.442695, %v1618_v5  ;;  %v463_v8 = vmul.f32 %v2959_v7, %v3291_v35 }
 0x88f   :  { %1318 = vrot.lane.b32.xlu1 %v1275_v15, %s3031_s4  ;;  %v1625_v61 = vmul.f32 1.442695, %v1619_v20  ;;  %v465_v17 = vmul.f32 %v2961_v6, %v3289_v34  ;;  %v1758_v6 = vld [vmem:[%s3695_s1] sm:$0xff] }
 0x890   :  { %1316 = vrot.lane.b32.xlu0 %v1273_v29, %s3031_s4  ;;  %v2648_v31 = vpop.f32.mrb[14].mxu1  ;;  %v1620_v47 = vmin.f32 %v3534_v3, 0.0  ;;  %2968 = vpow2.f32 %v1623_v4  ;;  %v2963_v29 = vpop.eup %2962  ;;  %vm1616_vm9 = vcmp.gt.f32.partialorder %v3534_v3, 0.0 }
 0x891   :  { %v1279_v22 = vmul.f32 %v2947_v19, %v2648_v31  ;;  %v1263_v28 = vpop.f32.mrb[15].mxu1  ;;  %2970 = vpow2.f32 %v1625_v61  ;;  %v1307_v19 = vpop.permute.xlu1 %1306 }
 0x892   :  { %v1277_v24 = vmul.f32 %v2949_v37, %v1263_v28  ;;  %v1627_v15 = vmul.f32 1.442695, %v1620_v47  ;;  %v1305_v31 = vpop.permute.xlu0 %1304  ;;  %v1328_v37 = vsel %vm210_vm1, %v463_v8, %v1285_v54  ;;  %v1329_v28 = vsel %vm210_vm1, %v465_v17, %v1287_v59  ;;  %v2394_v52 = vld [vmem:[#allocation2] ss:$0 sm:$0xff] }
 0x893   :  { %1322 = vrot.lane.b32.xlu1 %v1279_v22, %s3031_s4  ;;  %v2965_v22 = vpop.eup %2964  ;;  %v1333_v11 = vsel %vm1332_vm4, %v1328_v37, %v1301_v58  ;;  %v1334_v30 = vsel %vm1332_vm4, %v1329_v28, %v1303_v2 }
 0x894   :  { %1320 = vrot.lane.b32.xlu0 %v1277_v24, %s3031_s4  ;;  %2972 = vpow2.f32 %v1627_v15  ;;  %v469_v24 = vmul.f32 %v2963_v29, %v3293_v38  ;;  %v467_v34 = vmul.f32 %v2965_v22, %v3295_v39  ;;  %v1761_v22 = vld [vmem:[%s3695_s1 + $0x18] sm:$0xff] }
 0x896   :  { %v2967_v35 = vpop.eup %2966  ;;  %v1331_v33 = vsel %vm210_vm1, %v469_v24, %v1291_v49  ;;  %v1330_v38 = vsel %vm210_vm1, %v467_v34, %v1289_v60  ;;  %v1759_v60 = vld [vmem:[%s3695_s1 + $0x8] sm:$0xff]  ;;  %v1760_v24 = vld [vmem:[%s3695_s1 + $0x10] sm:$0xff] }
 0x897   :  { %v2390_v41 = vadd.f32 -1.0, %v2967_v35  ;;  %v1335_v39 = vsel %vm1332_vm4, %v1330_v38, %v1305_v31  ;;  %v1336_v44 = vsel %vm1332_vm4, %v1331_v33, %v1307_v19  ;;  %v3014_v33 = vld [vmem:[%s3718_s0 + $0x8] sm:$0xff] }
 0x899   :  { %v1633_v51 = vsel %vm1613_vm6, %v3526_v62, %v2390_v41 }
 0x89a   :  { %v2969_v32 = vpop.eup %2968 }
 0x89b   :  { %v2971_v13 = vpop.eup %2970  ;;  %v2391_v10 = vadd.f32 -1.0, %v2969_v32 }
 0x89c   :  { %v2392_v54 = vadd.f32 -1.0, %v2971_v13  ;;  %v3015_v13 = vld [vmem:[%s3718_s0] sm:$0xff] }
 0x89e   :  { %v2973_v53 = vpop.eup %2972  ;;  %v1635_v14 = vsel %vm1615_vm8, %v3531_v16, %v2392_v54  ;;  %v3016_v54 = vld [vmem:[%s3718_s0 + $0x10] sm:$0xff] }
 0x89f   :  { %v2393_v55 = vadd.f32 -1.0, %v2973_v53 }
 0x8a1   :  { %v1636_v43 = vsel %vm1616_vm9, %v3534_v3, %v2393_v55  ;;  %v3017_v55 = vld [vmem:[%s3718_s0 + $0x18] sm:$0xff] }
 0x901   :  { %v1319_v25 = vpop.permute.xlu1 %1318 }
 0x902   :  { %v1317_v27 = vpop.permute.xlu0 %1316  ;;  %v1339_v36 = vsel %vm1337_vm5, %v1334_v30, %v1319_v25 }
 0x903   :  { %v1338_v9 = vsel %vm1337_vm5, %v1333_v11, %v1317_v27  ;;  %v2378_v27 = vld [vmem:[%s3696_s6] ss:$0 sm:$0xff] }
 0x904   :  { %2651 = vmatprep.mubr.msk.f32.mxu1 %vm96_vm0, %v1338_v9 }
 0x905   :  { %2652 = vmatmul.mubr.msk.f32.vlgmr.msra.gmra.mrb[16].mxu1 %vm96_vm0, %v1339_v36  ;;  %v1323_v40 = vpop.permute.xlu1 %1322 }
 0x906   :  { %2666 = vmatpush3.msra.mxu1 %v3513_v50  ;;  %v1321_v23 = vpop.permute.xlu0 %1320  ;;  %v1341_v0 = vsel %vm1337_vm5, %v1336_v44, %v1323_v40  ;;  %v1634_v50 = vsel %vm1614_vm7, %v3528_v1, %v2391_v10 }
 0x907   :  { %v1340_v46 = vsel %vm1337_vm5, %v1335_v39, %v1321_v23 }
 0x908   :  { %2654 = vmatprep.mubr.msk.f32.mxu1 %vm96_vm0, %v1340_v46 }
 0x909   :  { %2655 = vmatmul.mubr.msk.f32.gmra.mrb[18].mxu1 %vm96_vm0, %v1341_v0 }
 0x90a   :  { %2667 = vmatprep.mubr.msk.f32.mxu1 %vm96_vm0, %v1633_v51 }
 0x90d   :  { %2668 = vmatmul.mubr.msk.f32.vlgmr.msra.gmra.mrb[20].mxu1 %vm96_vm0, %v1634_v50 }
 0x90e   :  { %2670 = vmatprep.mubr.msk.f32.mxu1 %vm96_vm0, %v1635_v14 }
 0x911   :  { %2671 = vmatmul.mubr.msk.f32.gmra.mrb[22].mxu1 %vm96_vm0, %v1636_v43 }
 0x9d8   :  { %v2653_v45 = vpop.f32.mrb[16].mxu1 }
 0x9d9   :  { %v1426_v58 = vpop.f32.mrb[17].mxu1  ;;  %v1432_v30 = vadd.f32 %v2653_v45, %v2378_v27 }
 0x9da   :  { %v1427_v34 = vadd.f32 %v2378_v27, %v1426_v58 }
 0x9db   :  { %v1791_v23 = vmul.f32 0.4, %v1432_v30 }
 0x9dc   :  { %v2656_v18 = vpop.f32.mrb[18].mxu1  ;;  %v1790_v38 = vmul.f32 0.4, %v1427_v34 }
 0x9dd   :  { %v1436_v21 = vpop.f32.mrb[19].mxu1  ;;  %v1442_v40 = vadd.f32 %v2656_v18, %v2378_v27 }
 0x9de   :  { %v1437_v41 = vadd.f32 %v2378_v27, %v1436_v21 }
 0x9df   :  { %v1793_v53 = vmul.f32 0.4, %v1442_v40 }
 0x9e0   :  { %v2669_v62 = vpop.f32.mrb[20].mxu1  ;;  %v1792_v51 = vmul.f32 0.4, %v1437_v41 }
 0x9e1   :  { %v1729_v48 = vadd.f32 %v2669_v62, %v2394_v52  ;;  %v1723_v1 = vpop.f32.mrb[21].mxu1 }
 0x9e2   :  { %v1724_v26 = vadd.f32 %v2394_v52, %v1723_v1 }
 0x9e3   :  { %v1743_v63 = vmul.f32 0.5, %v1729_v48 }
 0x9e4   :  { %v1742_v16 = vmul.f32 0.5, %v1724_v26  ;;  %v2672_v2 = vpop.f32.mrb[22].mxu1 }
 0x9e5   :  { %2974 = vtanh.f32 %v1743_v63  ;;  %v1739_v59 = vadd.f32 %v2672_v2, %v2394_v52  ;;  %v1733_v5 = vpop.f32.mrb[23].mxu1 }
 0x9e6   :  { %2976 = vtanh.f32 %v1742_v16  ;;  %v1734_v3 = vadd.f32 %v2394_v52, %v1733_v5 }
 0x9e7   :  { %v1745_v42 = vmul.f32 0.5, %v1739_v59 }
 0x9e8   :  { %v1744_v20 = vmul.f32 0.5, %v1734_v3 }
 0x9e9   :  { %2978 = vtanh.f32 %v1745_v42 }
 0x9ea   :  { %2980 = vtanh.f32 %v1744_v20 }
 0x9ef   :  { %v2975_v49 = vpop.eup %2974 }
 0x9f0   :  { %v2977_v4 = vpop.eup %2976  ;;  %v1751_v47 = vadd.f32 1.0, %v2975_v49 }
 0x9f1   :  { %v1750_v7 = vadd.f32 1.0, %v2977_v4 }
 0x9f2   :  { %v1755_v61 = vmul.f32 0.5, %v1751_v47 }
 0x9f3   :  { %v2979_v8 = vpop.eup %2978  ;;  %v1754_v15 = vmul.f32 0.5, %v1750_v7 }
 0x9f4   :  { %v2981_v17 = vpop.eup %2980  ;;  %v1753_v29 = vadd.f32 1.0, %v2979_v8  ;;  %v1763_v19 = vmul.f32 %v1759_v60, %v1755_v61 }
 0x9f5   :  { %v1752_v31 = vadd.f32 1.0, %v2981_v17  ;;  %v1762_v37 = vmul.f32 %v1758_v6, %v1754_v15 }
 0x9f6   :  { %v1757_v28 = vmul.f32 0.5, %v1753_v29  ;;  %1773 = vperm.xlu1 %2893, %v1763_v19  }
 0x9f7   :  { %v1756_v25 = vmul.f32 0.5, %v1752_v31  ;;  %1768 = vperm.xlu0 %2892, %v1762_v37  }
 0x9f8   :  { %v1765_v35 = vmul.f32 %v1761_v22, %v1757_v28  ;;  %v2002_v22 = vld [vmem:[%s3698_s17] sm:$0xff]  ;;  %v2003_v28 = vld [vmem:[%s3698_s17 + $0x8] sm:$0xff] }
 0x9f9   :  { %v1764_v11 = vmul.f32 %v1760_v24, %v1756_v25  ;;  %v2004_v24 = vld [vmem:[%s3698_s17 + $0x10] sm:$0xff]  ;;  %v2785_v25 = vpack.c.bf16 %v2003_v28, %v2002_v22 }
 0x9fb   :  { %1778 = vperm.xlu1 %2893, %v1764_v11   ;;  %1783 = vperm.xlu0 %2892, %v1765_v35   ;;  %v2005_v35 = vld [vmem:[%s3698_s17 + $0x18] sm:$0xff] }
 0x9fc   :  { %v2789_v11 = vpack.c.bf16 %v2005_v35, %v2004_v24  ;;  %2786 = vmatprep.subr.bf16.mxu1 %v2785_v25 }
 0x9fd   :  { %2788 = vmatpush3.bf16.msra.mxu1 %v2785_v25 }
 0x9fe   :  { %2790 = vmatprep.subr.bf16.mxu1 %v2789_v11 }
 0xa01   :  { %2792 = vmatpush3.bf16.msra.mxu1 %v2789_v11 }
 0xa75   :  { %v1774_v9 = vpop.permute.xlu1 %1773 }
 0xa76   :  { %v1787_v36 = vmul.f32 %v3014_v33, %v1774_v9  ;;  %v1769_v32 = vpop.permute.xlu0 %1768 }
 0xa77   :  { %v1786_v39 = vmul.f32 %v3015_v13, %v1769_v32 }
 0xa78   :  { %v1795_v46 = vadd.f32 %v1791_v23, %v1787_v36 }
 0xa79   :  { %v1794_v44 = vadd.f32 %v1790_v38, %v1786_v39 }
 0xa7a   :  { %v1779_v0 = vpop.permute.xlu1 %1778  ;;  %v1784_v10 = vpop.permute.xlu0 %1783 }
 0xa7b   :  { %v1788_v50 = vmul.f32 %v3016_v54, %v1779_v0  ;;  %v1789_v14 = vmul.f32 %v3017_v55, %v1784_v10  ;;  %2675 = vmatprep.mubr.msk.f32.mxu0 %vm96_vm0, %v1794_v44  ;;  %v2404_v44 = vld [vmem:[%s3699_s15] ss:$0 sm:$0xff] }
 0xa7c   :  { %2676 = vmatmul.mubr.msk.f32.vlgmr.msra.gmra.mrb[24].mxu0 %vm96_vm0, %v1795_v46  ;;  %v2405_v10 = vld [vmem:[%s3700_s16] ss:$0 sm:$0xff] }
 0xa7d   :  { %v1796_v43 = vadd.f32 %v1792_v51, %v1788_v50  ;;  %v1797_v56 = vadd.f32 %v1793_v53, %v1789_v14 }
 0xa7f   :  { %2678 = vmatprep.mubr.msk.f32.mxu0 %vm96_vm0, %v1796_v43 }
 0xa80   :  { %2679 = vmatmul.mubr.msk.f32.gmra.mrb[26].mxu0 %vm96_vm0, %v1797_v56 }
 0xb4f   :  { %v2677_v12 = vpop.f32.mrb[24].mxu0 }
 0xb50   :  { %v1890_v45 = vadd.f32 %v2677_v12, %v2399_v57  ;;  %v1884_v58 = vpop.f32.mrb[25].mxu0 }
 0xb51   :  { %v1885_v18 = vadd.f32 %v2399_v57, %v1884_v58 }
 0xb52   :  { %v1908_v21 = vsel %vm316_vm3, %v1890_v45, 0.0 }
 0xb53   :  { %1909 = vadd.xlane.f32.xlu0 %v1908_v21  ;;  %v2680_v52 = vpop.f32.mrb[26].mxu0  ;;  %v1905_v62 = vsel %vm316_vm3, %v1885_v18, 0.0 }
 0xb54   :  { %v1900_v48 = vadd.f32 %v2680_v52, %v2399_v57  ;;  %1906 = vadd.xlane.f32.xlu1 %v1905_v62  ;;  %v1894_v1 = vpop.f32.mrb[27].mxu0 }
 0xb55   :  { %v1895_v26 = vadd.f32 %v2399_v57, %v1894_v1 }
 0xb56   :  { %v1914_v63 = vsel %vm316_vm3, %v1900_v48, 0.0 }
 0xb57   :  { %v1911_v16 = vsel %vm316_vm3, %v1895_v26, 0.0 }
 0xb58   :  { %1915 = vadd.xlane.f32.xlu1 %v1914_v63  ;;  %1912 = vadd.xlane.f32.xlu0 %v1911_v16 }
 0xbe0   :  { %v1910_v2 = vpop.xlane.xlu0 %1909 }
 0xbe1   :  { %v1919_v59 = vmul.f32 0.03125, %v1910_v2  ;;  %v1907_v5 = vpop.xlane.xlu1 %1906 }
 0xbe2   :  { %v1918_v3 = vmul.f32 0.03125, %v1907_v5 }
 0xbe3   :  { %v1923_v42 = vsub.f32 %v1890_v45, %v1919_v59 }
 0xbe4   :  { %v1922_v20 = vsub.f32 %v1885_v18, %v1918_v3 }
 0xbe5   :  { %v1916_v49 = vpop.xlane.xlu1 %1915  ;;  %v1913_v4 = vpop.xlane.xlu0 %1912  ;;  %v1927_v47 = vmul.f32 %v1923_v42, %v1923_v42 }
 0xbe6   :  { %v1921_v7 = vmul.f32 0.03125, %v1916_v49  ;;  %v1920_v60 = vmul.f32 0.03125, %v1913_v4  ;;  %v1926_v61 = vmul.f32 %v1922_v20, %v1922_v20 }
 0xbe7   :  { %v1933_v6 = vsel %vm316_vm3, %v1927_v47, 0.0 }
 0xbe8   :  { %v1925_v8 = vsub.f32 %v1900_v48, %v1921_v7  ;;  %v1924_v15 = vsub.f32 %v1895_v26, %v1920_v60  ;;  %1934 = vadd.xlane.f32.xlu1 %v1933_v6  ;;  %v1930_v17 = vsel %vm316_vm3, %v1926_v61, 0.0  ;;  %v2410_v6 = vld [vmem:[%s3701_s18] ss:$0 sm:$0xff] }
 0xbe9   :  { %1931 = vadd.xlane.f32.xlu0 %v1930_v17 }
 0xbea   :  { %v1929_v29 = vmul.f32 %v1925_v8, %v1925_v8  ;;  %v1928_v19 = vmul.f32 %v1924_v15, %v1924_v15 }
 0xbec   :  { %v1939_v31 = vsel %vm316_vm3, %v1929_v29, 0.0  ;;  %v1936_v37 = vsel %vm316_vm3, %v1928_v19, 0.0 }
 0xbed   :  { %1940 = vadd.xlane.f32.xlu1 %v1939_v31  ;;  %1937 = vadd.xlane.f32.xlu0 %v1936_v37 }
 0xc75   :  { %v1935_v27 = vpop.xlane.xlu1 %1934 }
 0xc76   :  { %v1943_v34 = vmul.f32 0.03125, %v1935_v27  ;;  %v1932_v30 = vpop.xlane.xlu0 %1931 }
 0xc77   :  { %v1942_v9 = vmul.f32 0.03125, %v1932_v30 }
 0xc78   :  { %v1947_v33 = vadd.f32 1e-05, %v1943_v34 }
 0xc79   :  { %v1946_v36 = vadd.f32 1e-05, %v1942_v9 }
 0xc7a   :  { %2982 = vrsqrt.f32 %v1947_v33  ;;  %v1941_v32 = vpop.xlane.xlu1 %1940  ;;  %v1938_v38 = vpop.xlane.xlu0 %1937 }
 0xc7b   :  { %2984 = vrsqrt.f32 %v1946_v36  ;;  %v1945_v40 = vmul.f32 0.03125, %v1941_v32  ;;  %v1944_v41 = vmul.f32 0.03125, %v1938_v38 }
 0xc7d   :  { %v1949_v13 = vadd.f32 1e-05, %v1945_v40  ;;  %v1948_v39 = vadd.f32 1e-05, %v1944_v41 }
 0xc7f   :  { %2986 = vrsqrt.f32 %v1949_v13 }
 0xc80   :  { %2988 = vrsqrt.f32 %v1948_v39 }
 0xc84   :  { %v2983_v23 = vpop.eup %2982 }
 0xc85   :  { %v2985_v46 = vpop.eup %2984  ;;  %v1955_v0 = vmul.f32 %v2983_v23, %v1923_v42 }
 0xc86   :  { %v1954_v53 = vmul.f32 %v2985_v46, %v1922_v20 }
 0xc87   :  { %v1965_v51 = vmul.f32 %v2404_v44, %v1955_v0 }
 0xc88   :  { %v1964_v54 = vmul.f32 %v2404_v44, %v1954_v53 }
 0xc89   :  { %v2987_v50 = vpop.eup %2986  ;;  %v1975_v55 = vadd.f32 %v2405_v10, %v1965_v51 }
 0xc8a   :  { %v2989_v14 = vpop.eup %2988  ;;  %v1974_v43 = vadd.f32 %v2405_v10, %v1964_v54  ;;  %v1957_v56 = vmul.f32 %v2987_v50, %v1925_v8  ;;  %v2210_v54 = vld [vmem:[%s3702_s21] sm:$0xff]  ;;  %v2211_v50 = vld [vmem:[%s3702_s21 + $0x8] sm:$0xff] }
 0xc8b   :  { %v1983_v57 = vmin.f32 %v1975_v55, 0.0  ;;  %v1956_v12 = vmul.f32 %v2989_v14, %v1924_v15  ;;  %vm1979_vm11 = vcmp.gt.f32.partialorder %v1975_v55, 0.0  ;;  %v30_v14 = vstv %s3703_s22 }
 0xc8c   :  { %v1982_v45 = vmin.f32 %v1974_v43, 0.0  ;;  %v1967_v58 = vmul.f32 %v2404_v44, %v1957_v56  ;;  %vm1978_vm10 = vcmp.gt.f32.partialorder %v1974_v43, 0.0  ;;  %31 = vst [vmem:[#allocation3] sm:$0x1] %v30_v14 }
 0xc8d   :  { %v1988_v18 = vmul.f32 1.442695, %v1983_v57  ;;  %v1966_v21 = vmul.f32 %v2404_v44, %v1956_v12 }
 0xc8e   :  { %v1986_v52 = vmul.f32 1.442695, %v1982_v45  ;;  %v1977_v62 = vadd.f32 %v2405_v10, %v1967_v58 }
 0xc8f   :  { %2990 = vpow2.f32 %v1988_v18  ;;  %v1976_v48 = vadd.f32 %v2405_v10, %v1966_v21 }
 0xc90   :  { %2992 = vpow2.f32 %v1986_v52  ;;  %v1985_v1 = vmin.f32 %v1977_v62, 0.0  ;;  %vm1981_vm12 = vcmp.gt.f32.partialorder %v1977_v62, 0.0 }
 0xc91   :  { %v1984_v26 = vmin.f32 %v1976_v48, 0.0  ;;  %vm1980_vm13 = vcmp.gt.f32.partialorder %v1976_v48, 0.0 }
 0xc92   :  { %v1992_v63 = vmul.f32 1.442695, %v1985_v1 }
 0xc93   :  { %v1990_v16 = vmul.f32 1.442695, %v1984_v26 }
 0xc94   :  { %2994 = vpow2.f32 %v1992_v63  ;;  %v2415_v63 = vld [vmem:[%s3704_s19] ss:$0 sm:$0xff] }
 0xc95   :  { %2996 = vpow2.f32 %v1990_v16 }
 0xc99   :  { %v2991_v2 = vpop.eup %2990 }
 0xc9a   :  { %v2993_v59 = vpop.eup %2992  ;;  %v2407_v5 = vadd.f32 -1.0, %v2991_v2 }
 0xc9b   :  { %v2406_v3 = vadd.f32 -1.0, %v2993_v59  ;;  %v2416_v59 = vld [vmem:[%s3705_s20] ss:$0 sm:$0xff] }
 0xc9c   :  { %v1999_v49 = vsel %vm1979_vm11, %v1975_v55, %v2407_v5  ;;  %v2793_v55 = vpack.c.bf16 %v2211_v50, %v2210_v54 }
 0xc9d   :  { %v1998_v42 = vsel %vm1978_vm10, %v1974_v43, %v2406_v3 }
 0xc9e   :  { %v2995_v20 = vpop.eup %2994  ;;  %2689 = vmatprep.mubr.msk.f32.mxu1 %vm316_vm3, %v1998_v42  ;;  %2794 = vmatprep.subr.bf16.mxu0 %v2793_v55 }
 0xc9f   :  { %v2997_v4 = vpop.eup %2996  ;;  %2690 = vmatmul.mubr.msk.f32.vlgmr.msra.gmra.mrb[24].mxu1 %vm316_vm3, %v1999_v49  ;;  %v2409_v47 = vadd.f32 -1.0, %v2995_v20  ;;  %2796 = vmatpush3.bf16.msra.mxu0 %v2793_v55 }
 0xca0   :  { %v2408_v7 = vadd.f32 -1.0, %v2997_v4 }
 0xca1   :  { %v2001_v60 = vsel %vm1981_vm12, %v1977_v62, %v2409_v47 }
 0xca2   :  { %v2000_v61 = vsel %vm1980_vm13, %v1976_v48, %v2408_v7 }
 0xca3   :  { %2692 = vmatprep.mubr.msk.f32.mxu1 %vm316_vm3, %v2000_v61 }
 0xca4   :  { %2693 = vmatmul.mubr.msk.f32.gmra.mrb[26].mxu1 %vm316_vm3, %v2001_v60  ;;  %vm2316_vm3 = vcmask 7168  }
 0xd72   :  { %v2691_v8 = vpop.f32.mrb[24].mxu1 }
 0xd73   :  { %v2097_v15 = vadd.f32 %v2691_v8, %v2410_v6  ;;  %v2091_v17 = vpop.f32.mrb[25].mxu1 }
 0xd74   :  { %v2092_v29 = vadd.f32 %v2410_v6, %v2091_v17 }
 0xd75   :  { %v2116_v19 = vsel %vm2112_vm14, %v2097_v15, 0.0 }
 0xd76   :  { %2117 = vadd.xlane.f32.xlu1 %v2116_v19  ;;  %v2113_v31 = vsel %vm2112_vm14, %v2092_v29, 0.0 }
 0xd77   :  { %v2694_v37 = vpop.f32.mrb[26].mxu1  ;;  %2114 = vadd.xlane.f32.xlu0 %v2113_v31 }
 0xd78   :  { %v2107_v22 = vadd.f32 %v2694_v37, %v2410_v6  ;;  %v2101_v28 = vpop.f32.mrb[27].mxu1 }
 0xd79   :  { %v2102_v24 = vadd.f32 %v2410_v6, %v2101_v28 }
 0xd7a   :  { %v2122_v25 = vsel %vm2112_vm14, %v2107_v22, 0.0 }
 0xd7b   :  { %2123 = vadd.xlane.f32.xlu1 %v2122_v25  ;;  %v2119_v35 = vsel %vm2112_vm14, %v2102_v24, 0.0 }
 0xd7c   :  { %2120 = vadd.xlane.f32.xlu0 %v2119_v35 }
 0xe03   :  { %v2118_v11 = vpop.xlane.xlu1 %2117 }
 0xe04   :  { %v2127_v27 = vmul.f32 0.0625, %v2118_v11  ;;  %v2115_v34 = vpop.xlane.xlu0 %2114 }
 0xe05   :  { %v2126_v30 = vmul.f32 0.0625, %v2115_v34 }
 0xe06   :  { %v2131_v9 = vsub.f32 %v2097_v15, %v2127_v27 }
 0xe07   :  { %v2130_v33 = vsub.f32 %v2092_v29, %v2126_v30 }
 0xe08   :  { %v2124_v36 = vpop.xlane.xlu1 %2123  ;;  %v2135_v32 = vmul.f32 %v2131_v9, %v2131_v9 }
 0xe09   :  { %v2129_v38 = vmul.f32 0.0625, %v2124_v36  ;;  %v2121_v40 = vpop.xlane.xlu0 %2120  ;;  %v2134_v41 = vmul.f32 %v2130_v33, %v2130_v33 }
 0xe0a   :  { %v2128_v13 = vmul.f32 0.0625, %v2121_v40  ;;  %v2141_v39 = vsel %vm2112_vm14, %v2135_v32, 0.0 }
 0xe0b   :  { %v2133_v23 = vsub.f32 %v2107_v22, %v2129_v38  ;;  %2142 = vadd.xlane.f32.xlu1 %v2141_v39  ;;  %v2138_v44 = vsel %vm2112_vm14, %v2134_v41, 0.0  ;;  %v2421_v41 = vld [vmem:[#allocation3] ss:$0 sm:$0xff] }
 0xe0c   :  { %v2132_v46 = vsub.f32 %v2102_v24, %v2128_v13  ;;  %2139 = vadd.xlane.f32.xlu0 %v2138_v44 }
 0xe0d   :  { %v2137_v0 = vmul.f32 %v2133_v23, %v2133_v23 }
 0xe0e   :  { %v2136_v10 = vmul.f32 %v2132_v46, %v2132_v46 }
 0xe0f   :  { %v2147_v53 = vsel %vm2112_vm14, %v2137_v0, 0.0 }
 0xe10   :  { %2148 = vadd.xlane.f32.xlu1 %v2147_v53  ;;  %v2144_v51 = vsel %vm2112_vm14, %v2136_v10, 0.0 }
 0xe11   :  { %2145 = vadd.xlane.f32.xlu0 %v2144_v51 }
 0xe98   :  { %v2143_v43 = vpop.xlane.xlu1 %2142 }
 0xe99   :  { %v2151_v56 = vmul.f32 0.0625, %v2143_v43  ;;  %v2140_v57 = vpop.xlane.xlu0 %2139 }
 0xe9a   :  { %v2150_v12 = vmul.f32 0.0625, %v2140_v57 }
 0xe9b   :  { %v2155_v45 = vadd.f32 1e-05, %v2151_v56 }
 0xe9c   :  { %v2154_v58 = vadd.f32 1e-05, %v2150_v12 }
 0xe9d   :  { %2998 = vrsqrt.f32 %v2155_v45  ;;  %v2149_v18 = vpop.xlane.xlu1 %2148 }
 0xe9e   :  { %3000 = vrsqrt.f32 %v2154_v58  ;;  %v2153_v21 = vmul.f32 0.0625, %v2149_v18  ;;  %v2146_v52 = vpop.xlane.xlu0 %2145 }
 0xe9f   :  { %v2152_v62 = vmul.f32 0.0625, %v2146_v52 }
 0xea0   :  { %v2157_v48 = vadd.f32 1e-05, %v2153_v21 }
 0xea1   :  { %v2156_v1 = vadd.f32 1e-05, %v2152_v62 }
 0xea2   :  { %3002 = vrsqrt.f32 %v2157_v48 }
 0xea3   :  { %3004 = vrsqrt.f32 %v2156_v1 }
 0xea7   :  { %v2999_v26 = vpop.eup %2998 }
 0xea8   :  { %v3001_v16 = vpop.eup %3000  ;;  %v2163_v2 = vmul.f32 %v2999_v26, %v2131_v9 }
 0xea9   :  { %v2162_v5 = vmul.f32 %v3001_v16, %v2130_v33 }
 0xeaa   :  { %v2173_v3 = vmul.f32 %v2415_v63, %v2163_v2 }
 0xeab   :  { %v2172_v42 = vmul.f32 %v2415_v63, %v2162_v5 }
 0xeac   :  { %v3003_v20 = vpop.eup %3002  ;;  %v2183_v49 = vadd.f32 %v2416_v59, %v2173_v3 }
 0xead   :  { %v3005_v4 = vpop.eup %3004  ;;  %v2165_v47 = vmul.f32 %v3003_v20, %v2133_v23  ;;  %v2182_v7 = vadd.f32 %v2416_v59, %v2172_v42 }
 0xeae   :  { %v2164_v60 = vmul.f32 %v3005_v4, %v2132_v46  ;;  %v2191_v61 = vmin.f32 %v2183_v49, 0.0  ;;  %vm2187_vm0 = vcmp.gt.f32.partialorder %v2183_v49, 0.0 }
 0xeaf   :  { %v2190_v6 = vmin.f32 %v2182_v7, 0.0  ;;  %v2175_v8 = vmul.f32 %v2415_v63, %v2165_v47  ;;  %vm2186_vm15 = vcmp.gt.f32.partialorder %v2182_v7, 0.0 }
 0xeb0   :  { %v2196_v15 = vmul.f32 1.442695, %v2191_v61  ;;  %v2174_v17 = vmul.f32 %v2415_v63, %v2164_v60 }
 0xeb1   :  { %v2194_v29 = vmul.f32 1.442695, %v2190_v6  ;;  %v2185_v19 = vadd.f32 %v2416_v59, %v2175_v8 }
 0xeb2   :  { %3006 = vpow2.f32 %v2196_v15  ;;  %v2184_v31 = vadd.f32 %v2416_v59, %v2174_v17 }
 0xeb3   :  { %3008 = vpow2.f32 %v2194_v29  ;;  %v2193_v37 = vmin.f32 %v2185_v19, 0.0  ;;  %vm2189_vm2 = vcmp.gt.f32.partialorder %v2185_v19, 0.0 }
 0xeb4   :  { %v2192_v22 = vmin.f32 %v2184_v31, 0.0  ;;  %vm2188_vm1 = vcmp.gt.f32.partialorder %v2184_v31, 0.0 }
 0xeb5   :  { %v2200_v28 = vmul.f32 1.442695, %v2193_v37 }
 0xeb6   :  { %v2198_v24 = vmul.f32 1.442695, %v2192_v22 }
 0xeb7   :  { %3010 = vpow2.f32 %v2200_v28 }
 0xeb8   :  { %3012 = vpow2.f32 %v2198_v24 }
 0xebc   :  { %v3007_v25 = vpop.eup %3006 }
 0xebd   :  { %v3009_v35 = vpop.eup %3008  ;;  %v2418_v11 = vadd.f32 -1.0, %v3007_v25 }
 0xebe   :  { %v2417_v27 = vadd.f32 -1.0, %v3009_v35 }
 0xebf   :  { %v2207_v9 = vsel %vm2187_vm0, %v2183_v49, %v2418_v11 }
 0xec0   :  { %v2206_v34 = vsel %vm2186_vm15, %v2182_v7, %v2417_v27 }
 0xec1   :  { %v3011_v30 = vpop.eup %3010  ;;  %2699 = vmatprep.mubr.msk.f32.mxu0 %vm2112_vm14, %v2206_v34 }
 0xec2   :  { %v3013_v33 = vpop.eup %3012  ;;  %2700 = vmatmul.mubr.msk.f32.vlgmr.msra.gmra.mrb[28].mxu0 %vm2112_vm14, %v2207_v9  ;;  %v2420_v36 = vadd.f32 -1.0, %v3011_v30 }
 0xec3   :  { %v2419_v32 = vadd.f32 -1.0, %v3013_v33 }
 0xec4   :  { %v2209_v40 = vsel %vm2189_vm2, %v2185_v19, %v2420_v36 }
 0xec5   :  { %v2208_v38 = vsel %vm2188_vm1, %v2184_v31, %v2419_v32 }
 0xec6   :  { %2702 = vmatprep.mubr.msk.f32.mxu0 %vm2112_vm14, %v2208_v38 }
 0xec7   :  { %2703 = vmatmul.mubr.msk.f32.gmra.mrb[30].mxu0 %vm2112_vm14, %v2209_v40 }
 0xf95   :  { %v2701_v13 = vpop.f32.mrb[28].mxu0 }
 0xf96   :  { %v2303_v39 = vadd.f32 %v2701_v13, %v2421_v41  ;;  %v2297_v23 = vpop.f32.mrb[29].mxu0 }
 0xf97   :  { %v2298_v44 = vadd.f32 %v2421_v41, %v2297_v23 }
 0xf98   :  { %2318 = vst.msk [vmem:[%s3706_s23 + $0x8] sm:$0xff] %vm2316_vm3, %v2303_v39 }
 0xf99   :  { %2317 = vst.msk [vmem:[%s3706_s23] sm:$0xff] %vm2316_vm3, %v2298_v44 }
 0xf9a   :  { %v2704_v46 = vpop.f32.mrb[30].mxu0 }
 0xf9b   :  { %v2313_v0 = vadd.f32 %v2704_v46, %v2421_v41  ;;  %v2307_v10 = vpop.f32.mrb[31].mxu0 }
 0xf9c   :  { %v2308_v53 = vadd.f32 %v2421_v41, %v2307_v10 }
 0xf9d   :  { %2320 = vst.msk [vmem:[%s3706_s23 + $0x18] sm:$0xff] %vm2316_vm3, %v2313_v0 }
 0xf9e   :  { %2319 = vst.msk [vmem:[%s3706_s23 + $0x10] sm:$0xff] %vm2316_vm3, %v2308_v53 }

</bundles_post_ra>
